<compile_context>
chip_gen: v7x
topology: tpu7x:2x2x1
jax: 0.10.0
libtpu: 0.0.40
codegen_flags: <defaults>
</compile_context>

<pallas_src>
import jax
import jax.numpy as jnp
import numpy as np
from jax.experimental import pallas as pl
from jax.experimental.pallas import tpu as pltpu

H = W = 28
HP, WP = H + 2, W + 2          # zero-padded fine frame (30, 30)
MG = 128                        # zero margin (lanes) on each side of the flat frame
ROWS = 16                       # scratch sublane rows (>= max channels, mult. of 8)


# ----------------------------- fused Pallas kernel ---------------------------

def _make_kernel(n_batch):
    P = n_batch * HP * WP
    WTOT = MG + P + MG

    def kernel(x_ref, m0_ref, m1_ref, m2_ref,
               w1a_ref, s1a_ref, w1b_ref, s1b_ref,
               w2a_ref, s2a_ref, w2b_ref, s2b_ref,
               w3a_ref, s3a_ref, wfc_ref, bfc_ref,
               out_ref, buf_a, buf_b):
        # Zero only the lane margins: every interior row that is ever read is
        # fully overwritten by its producing stage, so a full-buffer clear
        # would be wasted store bandwidth.  The untouched zero margins provide
        # the exact zero padding the shifted conv/pool reads rely on.
        zeros_m = jnp.zeros((ROWS, MG), jnp.float32)
        buf_a[:, 0:MG] = zeros_m
        buf_a[:, MG + P:WTOT] = zeros_m
        buf_b[:, 0:MG] = zeros_m
        buf_b[:, MG + P:WTOT] = zeros_m
        # Load the (already zero-padded, flattened) input into row 0 of buf_a.
        buf_a[0:1, MG:MG + P] = x_ref[...]

        def conv(src, dst, w_ref, shift_ref, cin, cout, dil, mask_ref):
            """3x3 conv (dilated taps) + folded-BN shift + ReLU, lane-dense."""
            acc = None
            for t in range(9):
                ky, kx = t // 3, t % 3
                off = dil * ((ky - 1) * WP + (kx - 1))
                xs = src[0:cin, MG + off:MG + off + P]           # (cin, P)
                wt = w_ref[t]                                     # (cout, cin)
                if cin == 1:
                    term = wt * xs                                # VPU outer product
                else:
                    term = jnp.dot(wt, xs,
                                   preferred_element_type=jnp.float32)
                acc = term if acc is None else acc + term
            y = jnp.maximum(acc + shift_ref[...], 0.0)            # BN shift + ReLU
            if mask_ref is not None:
                y = y * mask_ref[...]                             # keep padding exact
            dst[0:cout, MG:MG + P] = y

        def pool(src, dst, c, dil, mask_ref):
            """MaxPool2d(2,2): 4-way max of shifted views; stays on the fine frame."""
            r00 = src[0:c, MG:MG + P]
            r01 = src[0:c, MG + dil:MG + dil + P]
            r10 = src[0:c, MG + dil * WP:MG + dil * WP + P]
            r11 = src[0:c, MG + dil * WP + dil:MG + dil * WP + dil + P]
            y = jnp.maximum(jnp.maximum(r00, r01), jnp.maximum(r10, r11))
            if mask_ref is not None:
                y = y * mask_ref[...]
            dst[0:c, MG:MG + P] = y

        # conv1 block (28x28 grid, dilation 1)
        conv(buf_a, buf_b, w1a_ref, s1a_ref, 1, 6, 1, m0_ref)
        conv(buf_b, buf_a, w1b_ref, s1b_ref, 6, 6, 1, None)
        pool(buf_a, buf_b, 6, 1, m1_ref)
        # conv2 block (14x14 grid as dilation-2 taps on the same frame)
        conv(buf_b, buf_a, w2a_ref, s2a_ref, 6, 8, 2, m1_ref)
        conv(buf_a, buf_b, w2b_ref, s2b_ref, 8, 8, 2, None)
        pool(buf_b, buf_a, 8, 2, m2_ref)
        # conv3 block (7x7 grid as dilation-4 taps)
        conv(buf_a, buf_b, w3a_ref, s3a_ref, 8, 10, 4, None)
        pool(buf_b, buf_a, 10, 4, None)                           # 10x3x3 features

        # fc1: per sample, gather the 9 pooled taps (static slices) and
        # accumulate the (10c,10o) products on the VPU; ONE sublane reduction
        # per sample produces the logits row.
        bias = bfc_ref[...]                                       # (1, 10)
        for n in range(n_batch):
            acc = jnp.zeros((10, 10), jnp.float32)
            for s in range(9):
                uo, vo = s // 3, s % 3
                q = MG + n * HP * WP + (8 * uo + 1) * WP + (8 * vo + 1)
                col = buf_a[0:10, q:q + 1]                        # (10c, 1)
                acc = acc + wfc_ref[s] * col
            out_ref[n:n + 1, :] = bias + jnp.sum(acc, axis=0, keepdims=True)

        # log_softmax over the whole (n_batch, 10) logits block in one pass.
        logits = out_ref[...]
        mx = jnp.max(logits, axis=1, keepdims=True)
        z = logits - mx
        lse = jnp.log(jnp.sum(jnp.exp(z), axis=1, keepdims=True))
        out_ref[...] = z - lse

    return kernel, P, WTOT


# ----------------------------- host-side helpers -----------------------------

def _masks(n_batch):
    """Static masks selecting the valid data positions at each resolution."""
    def grid_mask(sel):
        m = np.zeros((HP, WP), np.float32)
        idx = np.asarray(list(sel))
        m[np.ix_(idx, idx)] = 1.0
        return np.tile(m.reshape(-1), n_batch)[None, :]
    m0 = grid_mask(range(1, H + 1))      # 28x28 interior
    m1 = grid_mask(range(1, 28, 2))      # 14x14 pooled positions
    m2 = grid_mask(range(1, 26, 4))      # 7x7 pooled positions
    return m0, m1, m2


def _prep_conv_w(w_hwio, scale):
    """Fold BN scale into the conv weight; layout as (tap, Cout, Cin)."""
    cin, cout = w_hwio.shape[2], w_hwio.shape[3]
    wf = w_hwio * scale                                   # (3,3,Cin,Cout) * (Cout,)
    return jnp.transpose(wf, (0, 1, 3, 2)).reshape(9, cout, cin)


def _full_spec(shape):
    n = len(shape)
    return pl.BlockSpec(shape, lambda i, _n=n: (0,) * _n)


@jax.jit
def net_forward(x_nchw, p):
    n_batch = x_nchw.shape[0]
    kernel, P, WTOT = _make_kernel(n_batch)
    m0, m1, m2 = _masks(n_batch)

    # zero-pad into the 30x30 frame and flatten lane-dense: (1, N*30*30)
    xpad = jnp.pad(x_nchw[:, 0], ((0, 0), (1, 1), (1, 1)))
    xflat = xpad.reshape(1, n_batch * HP * WP)

    inputs = [xflat, jnp.asarray(m0), jnp.asarray(m1), jnp.asarray(m2)]
    for name in ("c1a", "c1b", "c2a", "c2b", "c3a"):
        w, scale, shift = p[name]
        inputs.append(_prep_conv_w(w, scale))
        inputs.append(shift.reshape(-1, 1))
    # fc weight permuted to (tap s, Cin=10, Cout=10); bias as a (1, 10) row
    inputs.append(jnp.transpose(p["fc_w"].reshape(10, 9, 10), (1, 0, 2)))
    inputs.append(p["fc_b"].reshape(1, 10))

    out = pl.pallas_call(
        kernel,
        out_shape=jax.ShapeDtypeStruct((n_batch, 10), jnp.float32),
        grid=(1,),
        in_specs=[_full_spec(a.shape) for a in inputs],
        out_specs=pl.BlockSpec((n_batch, 10), lambda i: (0, 0)),
        scratch_shapes=[pltpu.VMEM((ROWS, WTOT), jnp.float32),
                        pltpu.VMEM((ROWS, WTOT), jnp.float32)],
        compiler_params=pltpu.CompilerParams(
            dimension_semantics=("arbitrary",)),
    )(*inputs)
    return out


# ----------------------------- parameters ------------------------------------

def _fold_bn(conv_bias, gamma, beta, mean, var, eps=1e-5):
    scale = gamma / jnp.sqrt(var + eps)
    shift = (conv_bias - mean) * scale + beta
    return scale, shift


def init_params(key):
    ks = list(jax.random.split(key, 32))
    it = iter(ks)

    def nrm(shape, s=0.1):
        return s * jax.random.normal(next(it), shape, jnp.float32)

    params = {}
    for name, cin, cout in [("c1a", 1, 6), ("c1b", 6, 6),
                            ("c2a", 6, 8), ("c2b", 8, 8),
                            ("c3a", 8, 10)]:
        w = nrm((3, 3, cin, cout))                        # HWIO
        b = nrm((cout,))
        gamma = 1.0 + nrm((cout,))
        beta = nrm((cout,))
        mean = nrm((cout,))
        var = jnp.abs(nrm((cout,))) + 0.5
        scale, shift = _fold_bn(b, gamma, beta, mean, var)
        params[name] = (w, scale, shift)
    params["fc_w"] = nrm((10 * 3 * 3, 10))
    params["fc_b"] = nrm((10,))
    return params


# ----------------------------- pure-JAX reference ----------------------------

def reference_forward(x_nchw, p):
    x = jnp.transpose(x_nchw, (0, 2, 3, 1))

    def conv_ref(x, w, scale, shift):
        y = jax.lax.conv_general_dilated(
            x, w, window_strides=(1, 1), padding="SAME",
            dimension_numbers=("NHWC", "HWIO", "NHWC"))
        return jnp.maximum(y * scale + shift, 0.0)

    def pool_ref(x):
        return jax.lax.reduce_window(x, -jnp.inf, jax.lax.max,
                                     (1, 2, 2, 1), (1, 2, 2, 1), "VALID")

    x = conv_ref(x, *p["c1a"]); x = conv_ref(x, *p["c1b"]); x = pool_ref(x)
    x = conv_ref(x, *p["c2a"]); x = conv_ref(x, *p["c2b"]); x = pool_ref(x)
    x = conv_ref(x, *p["c3a"]); x = pool_ref(x)
    n = x.shape[0]
    x = jnp.transpose(x, (0, 3, 1, 2)).reshape(n, 10 * 3 * 3)
    logits = x @ p["fc_w"] + p["fc_b"]
    return jax.nn.log_softmax(logits, axis=1)


# ----------------------------- main -------------------------------------------

if __name__ == "__main__":
    key = jax.random.PRNGKey(0)
    pkey, xkey = jax.random.split(key)
    params = init_params(pkey)

    # 28x28 input is implied by the module's view(-1, 10*3*3); batch=2 is small.
    x = jax.random.normal(xkey, (2, 1, 28, 28), jnp.float32)

    out = jax.block_until_ready(net_forward(x, params))
    assert out.shape == (2, 10), out.shape

    # log_softmax sanity: rows exponentiate to a probability distribution
    probs = np.exp(np.asarray(out))
    assert np.allclose(probs.sum(axis=1), 1.0, atol=1e-4)

    # numerical check against a pure-JAX reference
    ref = jax.block_until_ready(reference_forward(x, params))
    assert np.allclose(np.asarray(out), np.asarray(ref), atol=2e-4, rtol=2e-4)

    print("KERNEL_OK")
</pallas_src>

<mosaic_0001>
module attributes {stable_mosaic.version = 11 : i64} {
  func.func @kernel(%arg0: i32, %arg1: memref<1x1800xf32, #tpu.memory_space<vmem>>, %arg2: memref<1x1800xf32, #tpu.memory_space<vmem>>, %arg3: memref<1x1800xf32, #tpu.memory_space<vmem>>, %arg4: memref<1x1800xf32, #tpu.memory_space<vmem>>, %arg5: memref<9x6x1xf32, #tpu.memory_space<vmem>>, %arg6: memref<6x1xf32, #tpu.memory_space<vmem>>, %arg7: memref<9x6x6xf32, #tpu.memory_space<vmem>>, %arg8: memref<6x1xf32, #tpu.memory_space<vmem>>, %arg9: memref<9x8x6xf32, #tpu.memory_space<vmem>>, %arg10: memref<8x1xf32, #tpu.memory_space<vmem>>, %arg11: memref<9x8x8xf32, #tpu.memory_space<vmem>>, %arg12: memref<8x1xf32, #tpu.memory_space<vmem>>, %arg13: memref<9x10x8xf32, #tpu.memory_space<vmem>>, %arg14: memref<10x1xf32, #tpu.memory_space<vmem>>, %arg15: memref<9x10x10xf32, #tpu.memory_space<vmem>>, %arg16: memref<1x10xf32, #tpu.memory_space<vmem>>, %arg17: memref<2x10xf32, #tpu.memory_space<vmem>>, %arg18: memref<16x2056xf32, #tpu.memory_space<vmem>>, %arg19: memref<16x2056xf32, #tpu.memory_space<vmem>>) attributes {dimension_semantics = [#tpu.dimension_semantics<arbitrary>], iteration_bounds = array<i64: 1>, scalar_prefetch = 0 : i64, scratch_operands = 2 : i64, tpu.core_type = #tpu.core_type<tc>, window_params = [{pipeline_mode = #tpu.pipeline_mode<synchronous>, transform_indices = @transform_0, window_bounds = array<i64: 1, 1800>}, {pipeline_mode = #tpu.pipeline_mode<synchronous>, transform_indices = @transform_1, window_bounds = array<i64: 1, 1800>}, {pipeline_mode = #tpu.pipeline_mode<synchronous>, transform_indices = @transform_2, window_bounds = array<i64: 1, 1800>}, {pipeline_mode = #tpu.pipeline_mode<synchronous>, transform_indices = @transform_3, window_bounds = array<i64: 1, 1800>}, {pipeline_mode = #tpu.pipeline_mode<synchronous>, transform_indices = @transform_4, window_bounds = array<i64: 9, 6, 1>}, {pipeline_mode = #tpu.pipeline_mode<synchronous>, transform_indices = @transform_5, window_bounds = array<i64: 6, 1>}, {pipeline_mode = #tpu.pipeline_mode<synchronous>, transform_indices = @transform_6, window_bounds = array<i64: 9, 6, 6>}, {pipeline_mode = #tpu.pipeline_mode<synchronous>, transform_indices = @transform_7, window_bounds = array<i64: 6, 1>}, {pipeline_mode = #tpu.pipeline_mode<synchronous>, transform_indices = @transform_8, window_bounds = array<i64: 9, 8, 6>}, {pipeline_mode = #tpu.pipeline_mode<synchronous>, transform_indices = @transform_9, window_bounds = array<i64: 8, 1>}, {pipeline_mode = #tpu.pipeline_mode<synchronous>, transform_indices = @transform_10, window_bounds = array<i64: 9, 8, 8>}, {pipeline_mode = #tpu.pipeline_mode<synchronous>, transform_indices = @transform_11, window_bounds = array<i64: 8, 1>}, {pipeline_mode = #tpu.pipeline_mode<synchronous>, transform_indices = @transform_12, window_bounds = array<i64: 9, 10, 8>}, {pipeline_mode = #tpu.pipeline_mode<synchronous>, transform_indices = @transform_13, window_bounds = array<i64: 10, 1>}, {pipeline_mode = #tpu.pipeline_mode<synchronous>, transform_indices = @transform_14, window_bounds = array<i64: 9, 10, 10>}, {pipeline_mode = #tpu.pipeline_mode<synchronous>, transform_indices = @transform_15, window_bounds = array<i64: 1, 10>}, {pipeline_mode = #tpu.pipeline_mode<synchronous>, transform_indices = @transform_16, window_bounds = array<i64: 2, 10>}]} {
    %cst = arith.constant 0.000000e+00 : f32
    %0 = vector.broadcast %cst : f32 to vector<16x128xf32>
    %c0 = arith.constant 0 : index
    %c0_0 = arith.constant 0 : index
    %1 = vector.load %arg18[%c0, %c0_0] : memref<16x2056xf32, #tpu.memory_space<vmem>>, vector<16x128xf32>
    tpu.vector_store %arg18[%c0, %c0_0], %0 {strides = array<i32>} : memref<16x2056xf32, #tpu.memory_space<vmem>>, vector<16x128xf32>,
    %c0_1 = arith.constant 0 : index
    %c1928 = arith.constant 1928 : index
    %2 = vector.load %arg18[%c0_1, %c1928] : memref<16x2056xf32, #tpu.memory_space<vmem>>, vector<16x128xf32>
    tpu.vector_store %arg18[%c0_1, %c1928], %0 {strides = array<i32>} : memref<16x2056xf32, #tpu.memory_space<vmem>>, vector<16x128xf32>,
    %c0_2 = arith.constant 0 : index
    %c0_3 = arith.constant 0 : index
    %3 = vector.load %arg19[%c0_2, %c0_3] : memref<16x2056xf32, #tpu.memory_space<vmem>>, vector<16x128xf32>
    tpu.vector_store %arg19[%c0_2, %c0_3], %0 {strides = array<i32>} : memref<16x2056xf32, #tpu.memory_space<vmem>>, vector<16x128xf32>,
    %c0_4 = arith.constant 0 : index
    %c1928_5 = arith.constant 1928 : index
    %4 = vector.load %arg19[%c0_4, %c1928_5] : memref<16x2056xf32, #tpu.memory_space<vmem>>, vector<16x128xf32>
    tpu.vector_store %arg19[%c0_4, %c1928_5], %0 {strides = array<i32>} : memref<16x2056xf32, #tpu.memory_space<vmem>>, vector<16x128xf32>,
    %c0_6 = arith.constant 0 : index
    %c0_7 = arith.constant 0 : index
    %5 = vector.load %arg1[%c0_6, %c0_7] : memref<1x1800xf32, #tpu.memory_space<vmem>>, vector<1x1800xf32>
    %c0_8 = arith.constant 0 : index
    %c128 = arith.constant 128 : index
    %6 = vector.load %arg18[%c0_8, %c128] : memref<16x2056xf32, #tpu.memory_space<vmem>>, vector<1x1800xf32>
    tpu.vector_store %arg18[%c0_8, %c128], %5 {strides = array<i32>} : memref<16x2056xf32, #tpu.memory_space<vmem>>, vector<1x1800xf32>,
    %c0_9 = arith.constant 0 : index
    %c97 = arith.constant 97 : index
    %7 = vector.load %arg18[%c0_9, %c97] : memref<16x2056xf32, #tpu.memory_space<vmem>>, vector<1x1800xf32>
    %c0_10 = arith.constant 0 : index
    %c0_11 = arith.constant 0 : index
    %c0_12 = arith.constant 0 : index
    %8 = vector.load %arg5[%c0_10, %c0_11, %c0_12] : memref<9x6x1xf32, #tpu.memory_space<vmem>>, vector<1x6x1xf32>
    %9 = vector.shape_cast %8 : vector<1x6x1xf32> to vector<6x1xf32>
    %10 = vector.broadcast %9 : vector<6x1xf32> to vector<6x1800xf32>
    %11 = vector.broadcast %7 : vector<1x1800xf32> to vector<6x1800xf32>
    %12 = arith.mulf %10, %11 : vector<6x1800xf32>
    %c0_13 = arith.constant 0 : index
    %c98 = arith.constant 98 : index
    %13 = vector.load %arg18[%c0_13, %c98] : memref<16x2056xf32, #tpu.memory_space<vmem>>, vector<1x1800xf32>
    %c1 = arith.constant 1 : index
    %c0_14 = arith.constant 0 : index
    %c0_15 = arith.constant 0 : index
    %14 = vector.load %arg5[%c1, %c0_14, %c0_15] : memref<9x6x1xf32, #tpu.memory_space<vmem>>, vector<1x6x1xf32>
    %15 = vector.shape_cast %14 : vector<1x6x1xf32> to vector<6x1xf32>
    %16 = vector.broadcast %15 : vector<6x1xf32> to vector<6x1800xf32>
    %17 = vector.broadcast %13 : vector<1x1800xf32> to vector<6x1800xf32>
    %18 = arith.mulf %16, %17 : vector<6x1800xf32>
    %19 = arith.addf %12, %18 : vector<6x1800xf32>
    %c0_16 = arith.constant 0 : index
    %c99 = arith.constant 99 : index
    %20 = vector.load %arg18[%c0_16, %c99] : memref<16x2056xf32, #tpu.memory_space<vmem>>, vector<1x1800xf32>
    %c2 = arith.constant 2 : index
    %c0_17 = arith.constant 0 : index
    %c0_18 = arith.constant 0 : index
    %21 = vector.load %arg5[%c2, %c0_17, %c0_18] : memref<9x6x1xf32, #tpu.memory_space<vmem>>, vector<1x6x1xf32>
    %22 = vector.shape_cast %21 : vector<1x6x1xf32> to vector<6x1xf32>
    %23 = vector.broadcast %22 : vector<6x1xf32> to vector<6x1800xf32>
    %24 = vector.broadcast %20 : vector<1x1800xf32> to vector<6x1800xf32>
    %25 = arith.mulf %23, %24 : vector<6x1800xf32>
    %26 = arith.addf %19, %25 : vector<6x1800xf32>
    %c0_19 = arith.constant 0 : index
    %c127 = arith.constant 127 : index
    %27 = vector.load %arg18[%c0_19, %c127] : memref<16x2056xf32, #tpu.memory_space<vmem>>, vector<1x1800xf32>
    %c3 = arith.constant 3 : index
    %c0_20 = arith.constant 0 : index
    %c0_21 = arith.constant 0 : index
    %28 = vector.load %arg5[%c3, %c0_20, %c0_21] : memref<9x6x1xf32, #tpu.memory_space<vmem>>, vector<1x6x1xf32>
    %29 = vector.shape_cast %28 : vector<1x6x1xf32> to vector<6x1xf32>
    %30 = vector.broadcast %29 : vector<6x1xf32> to vector<6x1800xf32>
    %31 = vector.broadcast %27 : vector<1x1800xf32> to vector<6x1800xf32>
    %32 = arith.mulf %30, %31 : vector<6x1800xf32>
    %33 = arith.addf %26, %32 : vector<6x1800xf32>
    %c0_22 = arith.constant 0 : index
    %c128_23 = arith.constant 128 : index
    %34 = vector.load %arg18[%c0_22, %c128_23] : memref<16x2056xf32, #tpu.memory_space<vmem>>, vector<1x1800xf32>
    %c4 = arith.constant 4 : index
    %c0_24 = arith.constant 0 : index
    %c0_25 = arith.constant 0 : index
    %35 = vector.load %arg5[%c4, %c0_24, %c0_25] : memref<9x6x1xf32, #tpu.memory_space<vmem>>, vector<1x6x1xf32>
    %36 = vector.shape_cast %35 : vector<1x6x1xf32> to vector<6x1xf32>
    %37 = vector.broadcast %36 : vector<6x1xf32> to vector<6x1800xf32>
    %38 = vector.broadcast %34 : vector<1x1800xf32> to vector<6x1800xf32>
    %39 = arith.mulf %37, %38 : vector<6x1800xf32>
    %40 = arith.addf %33, %39 : vector<6x1800xf32>
    %c0_26 = arith.constant 0 : index
    %c129 = arith.constant 129 : index
    %41 = vector.load %arg18[%c0_26, %c129] : memref<16x2056xf32, #tpu.memory_space<vmem>>, vector<1x1800xf32>
    %c5 = arith.constant 5 : index
    %c0_27 = arith.constant 0 : index
    %c0_28 = arith.constant 0 : index
    %42 = vector.load %arg5[%c5, %c0_27, %c0_28] : memref<9x6x1xf32, #tpu.memory_space<vmem>>, vector<1x6x1xf32>
    %43 = vector.shape_cast %42 : vector<1x6x1xf32> to vector<6x1xf32>
    %44 = vector.broadcast %43 : vector<6x1xf32> to vector<6x1800xf32>
    %45 = vector.broadcast %41 : vector<1x1800xf32> to vector<6x1800xf32>
    %46 = arith.mulf %44, %45 : vector<6x1800xf32>
    %47 = arith.addf %40, %46 : vector<6x1800xf32>
    %c0_29 = arith.constant 0 : index
    %c157 = arith.constant 157 : index
    %48 = vector.load %arg18[%c0_29, %c157] : memref<16x2056xf32, #tpu.memory_space<vmem>>, vector<1x1800xf32>
    %c6 = arith.constant 6 : index
    %c0_30 = arith.constant 0 : index
    %c0_31 = arith.constant 0 : index
    %49 = vector.load %arg5[%c6, %c0_30, %c0_31] : memref<9x6x1xf32, #tpu.memory_space<vmem>>, vector<1x6x1xf32>
    %50 = vector.shape_cast %49 : vector<1x6x1xf32> to vector<6x1xf32>
    %51 = vector.broadcast %50 : vector<6x1xf32> to vector<6x1800xf32>
    %52 = vector.broadcast %48 : vector<1x1800xf32> to vector<6x1800xf32>
    %53 = arith.mulf %51, %52 : vector<6x1800xf32>
    %54 = arith.addf %47, %53 : vector<6x1800xf32>
    %c0_32 = arith.constant 0 : index
    %c158 = arith.constant 158 : index
    %55 = vector.load %arg18[%c0_32, %c158] : memref<16x2056xf32, #tpu.memory_space<vmem>>, vector<1x1800xf32>
    %c7 = arith.constant 7 : index
    %c0_33 = arith.constant 0 : index
    %c0_34 = arith.constant 0 : index
    %56 = vector.load %arg5[%c7, %c0_33, %c0_34] : memref<9x6x1xf32, #tpu.memory_space<vmem>>, vector<1x6x1xf32>
    %57 = vector.shape_cast %56 : vector<1x6x1xf32> to vector<6x1xf32>
    %58 = vector.broadcast %57 : vector<6x1xf32> to vector<6x1800xf32>
    %59 = vector.broadcast %55 : vector<1x1800xf32> to vector<6x1800xf32>
    %60 = arith.mulf %58, %59 : vector<6x1800xf32>
    %61 = arith.addf %54, %60 : vector<6x1800xf32>
    %c0_35 = arith.constant 0 : index
    %c159 = arith.constant 159 : index
    %62 = vector.load %arg18[%c0_35, %c159] : memref<16x2056xf32, #tpu.memory_space<vmem>>, vector<1x1800xf32>
    %c8 = arith.constant 8 : index
    %c0_36 = arith.constant 0 : index
    %c0_37 = arith.constant 0 : index
    %63 = vector.load %arg5[%c8, %c0_36, %c0_37] : memref<9x6x1xf32, #tpu.memory_space<vmem>>, vector<1x6x1xf32>
    %64 = vector.shape_cast %63 : vector<1x6x1xf32> to vector<6x1xf32>
    %65 = vector.broadcast %64 : vector<6x1xf32> to vector<6x1800xf32>
    %66 = vector.broadcast %62 : vector<1x1800xf32> to vector<6x1800xf32>
    %67 = arith.mulf %65, %66 : vector<6x1800xf32>
    %68 = arith.addf %61, %67 : vector<6x1800xf32>
    %c0_38 = arith.constant 0 : index
    %c0_39 = arith.constant 0 : index
    %69 = vector.load %arg6[%c0_38, %c0_39] : memref<6x1xf32, #tpu.memory_space<vmem>>, vector<6x1xf32>
    %70 = vector.broadcast %69 : vector<6x1xf32> to vector<6x1800xf32>
    %71 = arith.addf %68, %70 : vector<6x1800xf32>
    %cst_40 = arith.constant 0.000000e+00 : f32
    %72 = vector.broadcast %cst_40 : f32 to vector<6x1800xf32>
    %73 = arith.maximumf %71, %72 : vector<6x1800xf32>
    %c0_41 = arith.constant 0 : index
    %c0_42 = arith.constant 0 : index
    %74 = vector.load %arg2[%c0_41, %c0_42] : memref<1x1800xf32, #tpu.memory_space<vmem>>, vector<1x1800xf32>
    %75 = vector.broadcast %74 : vector<1x1800xf32> to vector<6x1800xf32>
    %76 = arith.mulf %73, %75 : vector<6x1800xf32>
    %c0_43 = arith.constant 0 : index
    %c128_44 = arith.constant 128 : index
    %77 = vector.load %arg19[%c0_43, %c128_44] : memref<16x2056xf32, #tpu.memory_space<vmem>>, vector<6x1800xf32>
    tpu.vector_store %arg19[%c0_43, %c128_44], %76 {strides = array<i32>} : memref<16x2056xf32, #tpu.memory_space<vmem>>, vector<6x1800xf32>,
    %c0_45 = arith.constant 0 : index
    %c97_46 = arith.constant 97 : index
    %78 = vector.load %arg19[%c0_45, %c97_46] : memref<16x2056xf32, #tpu.memory_space<vmem>>, vector<6x1800xf32>
    %c0_47 = arith.constant 0 : index
    %c0_48 = arith.constant 0 : index
    %c0_49 = arith.constant 0 : index
    %79 = vector.load %arg7[%c0_47, %c0_48, %c0_49] : memref<9x6x6xf32, #tpu.memory_space<vmem>>, vector<1x6x6xf32>
    %80 = vector.shape_cast %79 : vector<1x6x6xf32> to vector<6x6xf32>
    %cst_50 = arith.constant dense<0.000000e+00> : vector<6x1800xf32>
    %81 = tpu.matmul %80, %78, %cst_50 {dimension_numbers = #tpu.dot_dimension_numbers<[1], [0], [0], [1], [0, 0, 1, 1], [], []>} : vector<6x6xf32>, vector<6x1800xf32>, vector<6x1800xf32> -> vector<6x1800xf32>
    %c0_51 = arith.constant 0 : index
    %c98_52 = arith.constant 98 : index
    %82 = vector.load %arg19[%c0_51, %c98_52] : memref<16x2056xf32, #tpu.memory_space<vmem>>, vector<6x1800xf32>
    %c1_53 = arith.constant 1 : index
    %c0_54 = arith.constant 0 : index
    %c0_55 = arith.constant 0 : index
    %83 = vector.load %arg7[%c1_53, %c0_54, %c0_55] : memref<9x6x6xf32, #tpu.memory_space<vmem>>, vector<1x6x6xf32>
    %84 = vector.shape_cast %83 : vector<1x6x6xf32> to vector<6x6xf32>
    %cst_56 = arith.constant dense<0.000000e+00> : vector<6x1800xf32>
    %85 = tpu.matmul %84, %82, %cst_56 {dimension_numbers = #tpu.dot_dimension_numbers<[1], [0], [0], [1], [0, 0, 1, 1], [], []>} : vector<6x6xf32>, vector<6x1800xf32>, vector<6x1800xf32> -> vector<6x1800xf32>
    %86 = arith.addf %81, %85 : vector<6x1800xf32>
    %c0_57 = arith.constant 0 : index
    %c99_58 = arith.constant 99 : index
    %87 = vector.load %arg19[%c0_57, %c99_58] : memref<16x2056xf32, #tpu.memory_space<vmem>>, vector<6x1800xf32>
    %c2_59 = arith.constant 2 : index
    %c0_60 = arith.constant 0 : index
    %c0_61 = arith.constant 0 : index
    %88 = vector.load %arg7[%c2_59, %c0_60, %c0_61] : memref<9x6x6xf32, #tpu.memory_space<vmem>>, vector<1x6x6xf32>
    %89 = vector.shape_cast %88 : vector<1x6x6xf32> to vector<6x6xf32>
    %cst_62 = arith.constant dense<0.000000e+00> : vector<6x1800xf32>
    %90 = tpu.matmul %89, %87, %cst_62 {dimension_numbers = #tpu.dot_dimension_numbers<[1], [0], [0], [1], [0, 0, 1, 1], [], []>} : vector<6x6xf32>, vector<6x1800xf32>, vector<6x1800xf32> -> vector<6x1800xf32>
    %91 = arith.addf %86, %90 : vector<6x1800xf32>
    %c0_63 = arith.constant 0 : index
    %c127_64 = arith.constant 127 : index
    %92 = vector.load %arg19[%c0_63, %c127_64] : memref<16x2056xf32, #tpu.memory_space<vmem>>, vector<6x1800xf32>
    %c3_65 = arith.constant 3 : index
    %c0_66 = arith.constant 0 : index
    %c0_67 = arith.constant 0 : index
    %93 = vector.load %arg7[%c3_65, %c0_66, %c0_67] : memref<9x6x6xf32, #tpu.memory_space<vmem>>, vector<1x6x6xf32>
    %94 = vector.shape_cast %93 : vector<1x6x6xf32> to vector<6x6xf32>
    %cst_68 = arith.constant dense<0.000000e+00> : vector<6x1800xf32>
    %95 = tpu.matmul %94, %92, %cst_68 {dimension_numbers = #tpu.dot_dimension_numbers<[1], [0], [0], [1], [0, 0, 1, 1], [], []>} : vector<6x6xf32>, vector<6x1800xf32>, vector<6x1800xf32> -> vector<6x1800xf32>
    %96 = arith.addf %91, %95 : vector<6x1800xf32>
    %c0_69 = arith.constant 0 : index
    %c128_70 = arith.constant 128 : index
    %97 = vector.load %arg19[%c0_69, %c128_70] : memref<16x2056xf32, #tpu.memory_space<vmem>>, vector<6x1800xf32>
    %c4_71 = arith.constant 4 : index
    %c0_72 = arith.constant 0 : index
    %c0_73 = arith.constant 0 : index
    %98 = vector.load %arg7[%c4_71, %c0_72, %c0_73] : memref<9x6x6xf32, #tpu.memory_space<vmem>>, vector<1x6x6xf32>
    %99 = vector.shape_cast %98 : vector<1x6x6xf32> to vector<6x6xf32>
    %cst_74 = arith.constant dense<0.000000e+00> : vector<6x1800xf32>
    %100 = tpu.matmul %99, %97, %cst_74 {dimension_numbers = #tpu.dot_dimension_numbers<[1], [0], [0], [1], [0, 0, 1, 1], [], []>} : vector<6x6xf32>, vector<6x1800xf32>, vector<6x1800xf32> -> vector<6x1800xf32>
    %101 = arith.addf %96, %100 : vector<6x1800xf32>
    %c0_75 = arith.constant 0 : index
    %c129_76 = arith.constant 129 : index
    %102 = vector.load %arg19[%c0_75, %c129_76] : memref<16x2056xf32, #tpu.memory_space<vmem>>, vector<6x1800xf32>
    %c5_77 = arith.constant 5 : index
    %c0_78 = arith.constant 0 : index
    %c0_79 = arith.constant 0 : index
    %103 = vector.load %arg7[%c5_77, %c0_78, %c0_79] : memref<9x6x6xf32, #tpu.memory_space<vmem>>, vector<1x6x6xf32>
    %104 = vector.shape_cast %103 : vector<1x6x6xf32> to vector<6x6xf32>
    %cst_80 = arith.constant dense<0.000000e+00> : vector<6x1800xf32>
    %105 = tpu.matmul %104, %102, %cst_80 {dimension_numbers = #tpu.dot_dimension_numbers<[1], [0], [0], [1], [0, 0, 1, 1], [], []>} : vector<6x6xf32>, vector<6x1800xf32>, vector<6x1800xf32> -> vector<6x1800xf32>
    %106 = arith.addf %101, %105 : vector<6x1800xf32>
    %c0_81 = arith.constant 0 : index
    %c157_82 = arith.constant 157 : index
    %107 = vector.load %arg19[%c0_81, %c157_82] : memref<16x2056xf32, #tpu.memory_space<vmem>>, vector<6x1800xf32>
    %c6_83 = arith.constant 6 : index
    %c0_84 = arith.constant 0 : index
    %c0_85 = arith.constant 0 : index
    %108 = vector.load %arg7[%c6_83, %c0_84, %c0_85] : memref<9x6x6xf32, #tpu.memory_space<vmem>>, vector<1x6x6xf32>
    %109 = vector.shape_cast %108 : vector<1x6x6xf32> to vector<6x6xf32>
    %cst_86 = arith.constant dense<0.000000e+00> : vector<6x1800xf32>
    %110 = tpu.matmul %109, %107, %cst_86 {dimension_numbers = #tpu.dot_dimension_numbers<[1], [0], [0], [1], [0, 0, 1, 1], [], []>} : vector<6x6xf32>, vector<6x1800xf32>, vector<6x1800xf32> -> vector<6x1800xf32>
    %111 = arith.addf %106, %110 : vector<6x1800xf32>
    %c0_87 = arith.constant 0 : index
    %c158_88 = arith.constant 158 : index
    %112 = vector.load %arg19[%c0_87, %c158_88] : memref<16x2056xf32, #tpu.memory_space<vmem>>, vector<6x1800xf32>
    %c7_89 = arith.constant 7 : index
    %c0_90 = arith.constant 0 : index
    %c0_91 = arith.constant 0 : index
    %113 = vector.load %arg7[%c7_89, %c0_90, %c0_91] : memref<9x6x6xf32, #tpu.memory_space<vmem>>, vector<1x6x6xf32>
    %114 = vector.shape_cast %113 : vector<1x6x6xf32> to vector<6x6xf32>
    %cst_92 = arith.constant dense<0.000000e+00> : vector<6x1800xf32>
    %115 = tpu.matmul %114, %112, %cst_92 {dimension_numbers = #tpu.dot_dimension_numbers<[1], [0], [0], [1], [0, 0, 1, 1], [], []>} : vector<6x6xf32>, vector<6x1800xf32>, vector<6x1800xf32> -> vector<6x1800xf32>
    %116 = arith.addf %111, %115 : vector<6x1800xf32>
    %c0_93 = arith.constant 0 : index
    %c159_94 = arith.constant 159 : index
    %117 = vector.load %arg19[%c0_93, %c159_94] : memref<16x2056xf32, #tpu.memory_space<vmem>>, vector<6x1800xf32>
    %c8_95 = arith.constant 8 : index
    %c0_96 = arith.constant 0 : index
    %c0_97 = arith.constant 0 : index
    %118 = vector.load %arg7[%c8_95, %c0_96, %c0_97] : memref<9x6x6xf32, #tpu.memory_space<vmem>>, vector<1x6x6xf32>
    %119 = vector.shape_cast %118 : vector<1x6x6xf32> to vector<6x6xf32>
    %cst_98 = arith.constant dense<0.000000e+00> : vector<6x1800xf32>
    %120 = tpu.matmul %119, %117, %cst_98 {dimension_numbers = #tpu.dot_dimension_numbers<[1], [0], [0], [1], [0, 0, 1, 1], [], []>} : vector<6x6xf32>, vector<6x1800xf32>, vector<6x1800xf32> -> vector<6x1800xf32>
    %121 = arith.addf %116, %120 : vector<6x1800xf32>
    %c0_99 = arith.constant 0 : index
    %c0_100 = arith.constant 0 : index
    %122 = vector.load %arg8[%c0_99, %c0_100] : memref<6x1xf32, #tpu.memory_space<vmem>>, vector<6x1xf32>
    %123 = vector.broadcast %122 : vector<6x1xf32> to vector<6x1800xf32>
    %124 = arith.addf %121, %123 : vector<6x1800xf32>
    %cst_101 = arith.constant 0.000000e+00 : f32
    %125 = vector.broadcast %cst_101 : f32 to vector<6x1800xf32>
    %126 = arith.maximumf %124, %125 : vector<6x1800xf32>
    %c0_102 = arith.constant 0 : index
    %c128_103 = arith.constant 128 : index
    %127 = vector.load %arg18[%c0_102, %c128_103] : memref<16x2056xf32, #tpu.memory_space<vmem>>, vector<6x1800xf32>
    tpu.vector_store %arg18[%c0_102, %c128_103], %126 {strides = array<i32>} : memref<16x2056xf32, #tpu.memory_space<vmem>>, vector<6x1800xf32>,
    %c0_104 = arith.constant 0 : index
    %c128_105 = arith.constant 128 : index
    %128 = vector.load %arg18[%c0_104, %c128_105] : memref<16x2056xf32, #tpu.memory_space<vmem>>, vector<6x1800xf32>
    %c0_106 = arith.constant 0 : index
    %c129_107 = arith.constant 129 : index
    %129 = vector.load %arg18[%c0_106, %c129_107] : memref<16x2056xf32, #tpu.memory_space<vmem>>, vector<6x1800xf32>
    %c0_108 = arith.constant 0 : index
    %c158_109 = arith.constant 158 : index
    %130 = vector.load %arg18[%c0_108, %c158_109] : memref<16x2056xf32, #tpu.memory_space<vmem>>, vector<6x1800xf32>
    %c0_110 = arith.constant 0 : index
    %c159_111 = arith.constant 159 : index
    %131 = vector.load %arg18[%c0_110, %c159_111] : memref<16x2056xf32, #tpu.memory_space<vmem>>, vector<6x1800xf32>
    %132 = arith.maximumf %128, %129 : vector<6x1800xf32>
    %133 = arith.maximumf %130, %131 : vector<6x1800xf32>
    %134 = arith.maximumf %132, %133 : vector<6x1800xf32>
    %c0_112 = arith.constant 0 : index
    %c0_113 = arith.constant 0 : index
    %135 = vector.load %arg3[%c0_112, %c0_113] : memref<1x1800xf32, #tpu.memory_space<vmem>>, vector<1x1800xf32>
    %136 = vector.broadcast %135 : vector<1x1800xf32> to vector<6x1800xf32>
    %137 = arith.mulf %134, %136 : vector<6x1800xf32>
    %c0_114 = arith.constant 0 : index
    %c128_115 = arith.constant 128 : index
    %138 = vector.load %arg19[%c0_114, %c128_115] : memref<16x2056xf32, #tpu.memory_space<vmem>>, vector<6x1800xf32>
    tpu.vector_store %arg19[%c0_114, %c128_115], %137 {strides = array<i32>} : memref<16x2056xf32, #tpu.memory_space<vmem>>, vector<6x1800xf32>,
    %c0_116 = arith.constant 0 : index
    %c66 = arith.constant 66 : index
    %139 = vector.load %arg19[%c0_116, %c66] : memref<16x2056xf32, #tpu.memory_space<vmem>>, vector<6x1800xf32>
    %c0_117 = arith.constant 0 : index
    %c0_118 = arith.constant 0 : index
    %c0_119 = arith.constant 0 : index
    %140 = vector.load %arg9[%c0_117, %c0_118, %c0_119] : memref<9x8x6xf32, #tpu.memory_space<vmem>>, vector<1x8x6xf32>
    %141 = vector.shape_cast %140 : vector<1x8x6xf32> to vector<8x6xf32>
    %cst_120 = arith.constant dense<0.000000e+00> : vector<8x1800xf32>
    %142 = tpu.matmul %141, %139, %cst_120 {dimension_numbers = #tpu.dot_dimension_numbers<[1], [0], [0], [1], [0, 0, 1, 1], [], []>} : vector<8x6xf32>, vector<6x1800xf32>, vector<8x1800xf32> -> vector<8x1800xf32>
    %c0_121 = arith.constant 0 : index
    %c68 = arith.constant 68 : index
    %143 = vector.load %arg19[%c0_121, %c68] : memref<16x2056xf32, #tpu.memory_space<vmem>>, vector<6x1800xf32>
    %c1_122 = arith.constant 1 : index
    %c0_123 = arith.constant 0 : index
    %c0_124 = arith.constant 0 : index
    %144 = vector.load %arg9[%c1_122, %c0_123, %c0_124] : memref<9x8x6xf32, #tpu.memory_space<vmem>>, vector<1x8x6xf32>
    %145 = vector.shape_cast %144 : vector<1x8x6xf32> to vector<8x6xf32>
    %cst_125 = arith.constant dense<0.000000e+00> : vector<8x1800xf32>
    %146 = tpu.matmul %145, %143, %cst_125 {dimension_numbers = #tpu.dot_dimension_numbers<[1], [0], [0], [1], [0, 0, 1, 1], [], []>} : vector<8x6xf32>, vector<6x1800xf32>, vector<8x1800xf32> -> vector<8x1800xf32>
    %147 = arith.addf %142, %146 : vector<8x1800xf32>
    %c0_126 = arith.constant 0 : index
    %c70 = arith.constant 70 : index
    %148 = vector.load %arg19[%c0_126, %c70] : memref<16x2056xf32, #tpu.memory_space<vmem>>, vector<6x1800xf32>
    %c2_127 = arith.constant 2 : index
    %c0_128 = arith.constant 0 : index
    %c0_129 = arith.constant 0 : index
    %149 = vector.load %arg9[%c2_127, %c0_128, %c0_129] : memref<9x8x6xf32, #tpu.memory_space<vmem>>, vector<1x8x6xf32>
    %150 = vector.shape_cast %149 : vector<1x8x6xf32> to vector<8x6xf32>
    %cst_130 = arith.constant dense<0.000000e+00> : vector<8x1800xf32>
    %151 = tpu.matmul %150, %148, %cst_130 {dimension_numbers = #tpu.dot_dimension_numbers<[1], [0], [0], [1], [0, 0, 1, 1], [], []>} : vector<8x6xf32>, vector<6x1800xf32>, vector<8x1800xf32> -> vector<8x1800xf32>
    %152 = arith.addf %147, %151 : vector<8x1800xf32>
    %c0_131 = arith.constant 0 : index
    %c126 = arith.constant 126 : index
    %153 = vector.load %arg19[%c0_131, %c126] : memref<16x2056xf32, #tpu.memory_space<vmem>>, vector<6x1800xf32>
    %c3_132 = arith.constant 3 : index
    %c0_133 = arith.constant 0 : index
    %c0_134 = arith.constant 0 : index
    %154 = vector.load %arg9[%c3_132, %c0_133, %c0_134] : memref<9x8x6xf32, #tpu.memory_space<vmem>>, vector<1x8x6xf32>
    %155 = vector.shape_cast %154 : vector<1x8x6xf32> to vector<8x6xf32>
    %cst_135 = arith.constant dense<0.000000e+00> : vector<8x1800xf32>
    %156 = tpu.matmul %155, %153, %cst_135 {dimension_numbers = #tpu.dot_dimension_numbers<[1], [0], [0], [1], [0, 0, 1, 1], [], []>} : vector<8x6xf32>, vector<6x1800xf32>, vector<8x1800xf32> -> vector<8x1800xf32>
    %157 = arith.addf %152, %156 : vector<8x1800xf32>
    %c0_136 = arith.constant 0 : index
    %c128_137 = arith.constant 128 : index
    %158 = vector.load %arg19[%c0_136, %c128_137] : memref<16x2056xf32, #tpu.memory_space<vmem>>, vector<6x1800xf32>
    %c4_138 = arith.constant 4 : index
    %c0_139 = arith.constant 0 : index
    %c0_140 = arith.constant 0 : index
    %159 = vector.load %arg9[%c4_138, %c0_139, %c0_140] : memref<9x8x6xf32, #tpu.memory_space<vmem>>, vector<1x8x6xf32>
    %160 = vector.shape_cast %159 : vector<1x8x6xf32> to vector<8x6xf32>
    %cst_141 = arith.constant dense<0.000000e+00> : vector<8x1800xf32>
    %161 = tpu.matmul %160, %158, %cst_141 {dimension_numbers = #tpu.dot_dimension_numbers<[1], [0], [0], [1], [0, 0, 1, 1], [], []>} : vector<8x6xf32>, vector<6x1800xf32>, vector<8x1800xf32> -> vector<8x1800xf32>
    %162 = arith.addf %157, %161 : vector<8x1800xf32>
    %c0_142 = arith.constant 0 : index
    %c130 = arith.constant 130 : index
    %163 = vector.load %arg19[%c0_142, %c130] : memref<16x2056xf32, #tpu.memory_space<vmem>>, vector<6x1800xf32>
    %c5_143 = arith.constant 5 : index
    %c0_144 = arith.constant 0 : index
    %c0_145 = arith.constant 0 : index
    %164 = vector.load %arg9[%c5_143, %c0_144, %c0_145] : memref<9x8x6xf32, #tpu.memory_space<vmem>>, vector<1x8x6xf32>
    %165 = vector.shape_cast %164 : vector<1x8x6xf32> to vector<8x6xf32>
    %cst_146 = arith.constant dense<0.000000e+00> : vector<8x1800xf32>
    %166 = tpu.matmul %165, %163, %cst_146 {dimension_numbers = #tpu.dot_dimension_numbers<[1], [0], [0], [1], [0, 0, 1, 1], [], []>} : vector<8x6xf32>, vector<6x1800xf32>, vector<8x1800xf32> -> vector<8x1800xf32>
    %167 = arith.addf %162, %166 : vector<8x1800xf32>
    %c0_147 = arith.constant 0 : index
    %c186 = arith.constant 186 : index
    %168 = vector.load %arg19[%c0_147, %c186] : memref<16x2056xf32, #tpu.memory_space<vmem>>, vector<6x1800xf32>
    %c6_148 = arith.constant 6 : index
    %c0_149 = arith.constant 0 : index
    %c0_150 = arith.constant 0 : index
    %169 = vector.load %arg9[%c6_148, %c0_149, %c0_150] : memref<9x8x6xf32, #tpu.memory_space<vmem>>, vector<1x8x6xf32>
    %170 = vector.shape_cast %169 : vector<1x8x6xf32> to vector<8x6xf32>
    %cst_151 = arith.constant dense<0.000000e+00> : vector<8x1800xf32>
    %171 = tpu.matmul %170, %168, %cst_151 {dimension_numbers = #tpu.dot_dimension_numbers<[1], [0], [0], [1], [0, 0, 1, 1], [], []>} : vector<8x6xf32>, vector<6x1800xf32>, vector<8x1800xf32> -> vector<8x1800xf32>
    %172 = arith.addf %167, %171 : vector<8x1800xf32>
    %c0_152 = arith.constant 0 : index
    %c188 = arith.constant 188 : index
    %173 = vector.load %arg19[%c0_152, %c188] : memref<16x2056xf32, #tpu.memory_space<vmem>>, vector<6x1800xf32>
    %c7_153 = arith.constant 7 : index
    %c0_154 = arith.constant 0 : index
    %c0_155 = arith.constant 0 : index
    %174 = vector.load %arg9[%c7_153, %c0_154, %c0_155] : memref<9x8x6xf32, #tpu.memory_space<vmem>>, vector<1x8x6xf32>
    %175 = vector.shape_cast %174 : vector<1x8x6xf32> to vector<8x6xf32>
    %cst_156 = arith.constant dense<0.000000e+00> : vector<8x1800xf32>
    %176 = tpu.matmul %175, %173, %cst_156 {dimension_numbers = #tpu.dot_dimension_numbers<[1], [0], [0], [1], [0, 0, 1, 1], [], []>} : vector<8x6xf32>, vector<6x1800xf32>, vector<8x1800xf32> -> vector<8x1800xf32>
    %177 = arith.addf %172, %176 : vector<8x1800xf32>
    %c0_157 = arith.constant 0 : index
    %c190 = arith.constant 190 : index
    %178 = vector.load %arg19[%c0_157, %c190] : memref<16x2056xf32, #tpu.memory_space<vmem>>, vector<6x1800xf32>
    %c8_158 = arith.constant 8 : index
    %c0_159 = arith.constant 0 : index
    %c0_160 = arith.constant 0 : index
    %179 = vector.load %arg9[%c8_158, %c0_159, %c0_160] : memref<9x8x6xf32, #tpu.memory_space<vmem>>, vector<1x8x6xf32>
    %180 = vector.shape_cast %179 : vector<1x8x6xf32> to vector<8x6xf32>
    %cst_161 = arith.constant dense<0.000000e+00> : vector<8x1800xf32>
    %181 = tpu.matmul %180, %178, %cst_161 {dimension_numbers = #tpu.dot_dimension_numbers<[1], [0], [0], [1], [0, 0, 1, 1], [], []>} : vector<8x6xf32>, vector<6x1800xf32>, vector<8x1800xf32> -> vector<8x1800xf32>
    %182 = arith.addf %177, %181 : vector<8x1800xf32>
    %c0_162 = arith.constant 0 : index
    %c0_163 = arith.constant 0 : index
    %183 = vector.load %arg10[%c0_162, %c0_163] : memref<8x1xf32, #tpu.memory_space<vmem>>, vector<8x1xf32>
    %184 = vector.broadcast %183 : vector<8x1xf32> to vector<8x1800xf32>
    %185 = arith.addf %182, %184 : vector<8x1800xf32>
    %cst_164 = arith.constant 0.000000e+00 : f32
    %186 = vector.broadcast %cst_164 : f32 to vector<8x1800xf32>
    %187 = arith.maximumf %185, %186 : vector<8x1800xf32>
    %c0_165 = arith.constant 0 : index
    %c0_166 = arith.constant 0 : index
    %188 = vector.load %arg3[%c0_165, %c0_166] : memref<1x1800xf32, #tpu.memory_space<vmem>>, vector<1x1800xf32>
    %189 = vector.broadcast %188 : vector<1x1800xf32> to vector<8x1800xf32>
    %190 = arith.mulf %187, %189 : vector<8x1800xf32>
    %c0_167 = arith.constant 0 : index
    %c128_168 = arith.constant 128 : index
    %191 = vector.load %arg18[%c0_167, %c128_168] : memref<16x2056xf32, #tpu.memory_space<vmem>>, vector<8x1800xf32>
    tpu.vector_store %arg18[%c0_167, %c128_168], %190 {strides = array<i32>} : memref<16x2056xf32, #tpu.memory_space<vmem>>, vector<8x1800xf32>,
    %c0_169 = arith.constant 0 : index
    %c66_170 = arith.constant 66 : index
    %192 = vector.load %arg18[%c0_169, %c66_170] : memref<16x2056xf32, #tpu.memory_space<vmem>>, vector<8x1800xf32>
    %c0_171 = arith.constant 0 : index
    %c0_172 = arith.constant 0 : index
    %c0_173 = arith.constant 0 : index
    %193 = vector.load %arg11[%c0_171, %c0_172, %c0_173] : memref<9x8x8xf32, #tpu.memory_space<vmem>>, vector<1x8x8xf32>
    %194 = vector.shape_cast %193 : vector<1x8x8xf32> to vector<8x8xf32>
    %cst_174 = arith.constant dense<0.000000e+00> : vector<8x1800xf32>
    %195 = tpu.matmul %194, %192, %cst_174 {dimension_numbers = #tpu.dot_dimension_numbers<[1], [0], [0], [1], [0, 0, 1, 1], [], []>} : vector<8x8xf32>, vector<8x1800xf32>, vector<8x1800xf32> -> vector<8x1800xf32>
    %c0_175 = arith.constant 0 : index
    %c68_176 = arith.constant 68 : index
    %196 = vector.load %arg18[%c0_175, %c68_176] : memref<16x2056xf32, #tpu.memory_space<vmem>>, vector<8x1800xf32>
    %c1_177 = arith.constant 1 : index
    %c0_178 = arith.constant 0 : index
    %c0_179 = arith.constant 0 : index
    %197 = vector.load %arg11[%c1_177, %c0_178, %c0_179] : memref<9x8x8xf32, #tpu.memory_space<vmem>>, vector<1x8x8xf32>
    %198 = vector.shape_cast %197 : vector<1x8x8xf32> to vector<8x8xf32>
    %cst_180 = arith.constant dense<0.000000e+00> : vector<8x1800xf32>
    %199 = tpu.matmul %198, %196, %cst_180 {dimension_numbers = #tpu.dot_dimension_numbers<[1], [0], [0], [1], [0, 0, 1, 1], [], []>} : vector<8x8xf32>, vector<8x1800xf32>, vector<8x1800xf32> -> vector<8x1800xf32>
    %200 = arith.addf %195, %199 : vector<8x1800xf32>
    %c0_181 = arith.constant 0 : index
    %c70_182 = arith.constant 70 : index
    %201 = vector.load %arg18[%c0_181, %c70_182] : memref<16x2056xf32, #tpu.memory_space<vmem>>, vector<8x1800xf32>
    %c2_183 = arith.constant 2 : index
    %c0_184 = arith.constant 0 : index
    %c0_185 = arith.constant 0 : index
    %202 = vector.load %arg11[%c2_183, %c0_184, %c0_185] : memref<9x8x8xf32, #tpu.memory_space<vmem>>, vector<1x8x8xf32>
    %203 = vector.shape_cast %202 : vector<1x8x8xf32> to vector<8x8xf32>
    %cst_186 = arith.constant dense<0.000000e+00> : vector<8x1800xf32>
    %204 = tpu.matmul %203, %201, %cst_186 {dimension_numbers = #tpu.dot_dimension_numbers<[1], [0], [0], [1], [0, 0, 1, 1], [], []>} : vector<8x8xf32>, vector<8x1800xf32>, vector<8x1800xf32> -> vector<8x1800xf32>
    %205 = arith.addf %200, %204 : vector<8x1800xf32>
    %c0_187 = arith.constant 0 : index
    %c126_188 = arith.constant 126 : index
    %206 = vector.load %arg18[%c0_187, %c126_188] : memref<16x2056xf32, #tpu.memory_space<vmem>>, vector<8x1800xf32>
    %c3_189 = arith.constant 3 : index
    %c0_190 = arith.constant 0 : index
    %c0_191 = arith.constant 0 : index
    %207 = vector.load %arg11[%c3_189, %c0_190, %c0_191] : memref<9x8x8xf32, #tpu.memory_space<vmem>>, vector<1x8x8xf32>
    %208 = vector.shape_cast %207 : vector<1x8x8xf32> to vector<8x8xf32>
    %cst_192 = arith.constant dense<0.000000e+00> : vector<8x1800xf32>
    %209 = tpu.matmul %208, %206, %cst_192 {dimension_numbers = #tpu.dot_dimension_numbers<[1], [0], [0], [1], [0, 0, 1, 1], [], []>} : vector<8x8xf32>, vector<8x1800xf32>, vector<8x1800xf32> -> vector<8x1800xf32>
    %210 = arith.addf %205, %209 : vector<8x1800xf32>
    %c0_193 = arith.constant 0 : index
    %c128_194 = arith.constant 128 : index
    %211 = vector.load %arg18[%c0_193, %c128_194] : memref<16x2056xf32, #tpu.memory_space<vmem>>, vector<8x1800xf32>
    %c4_195 = arith.constant 4 : index
    %c0_196 = arith.constant 0 : index
    %c0_197 = arith.constant 0 : index
    %212 = vector.load %arg11[%c4_195, %c0_196, %c0_197] : memref<9x8x8xf32, #tpu.memory_space<vmem>>, vector<1x8x8xf32>
    %213 = vector.shape_cast %212 : vector<1x8x8xf32> to vector<8x8xf32>
    %cst_198 = arith.constant dense<0.000000e+00> : vector<8x1800xf32>
    %214 = tpu.matmul %213, %211, %cst_198 {dimension_numbers = #tpu.dot_dimension_numbers<[1], [0], [0], [1], [0, 0, 1, 1], [], []>} : vector<8x8xf32>, vector<8x1800xf32>, vector<8x1800xf32> -> vector<8x1800xf32>
    %215 = arith.addf %210, %214 : vector<8x1800xf32>
    %c0_199 = arith.constant 0 : index
    %c130_200 = arith.constant 130 : index
    %216 = vector.load %arg18[%c0_199, %c130_200] : memref<16x2056xf32, #tpu.memory_space<vmem>>, vector<8x1800xf32>
    %c5_201 = arith.constant 5 : index
    %c0_202 = arith.constant 0 : index
    %c0_203 = arith.constant 0 : index
    %217 = vector.load %arg11[%c5_201, %c0_202, %c0_203] : memref<9x8x8xf32, #tpu.memory_space<vmem>>, vector<1x8x8xf32>
    %218 = vector.shape_cast %217 : vector<1x8x8xf32> to vector<8x8xf32>
    %cst_204 = arith.constant dense<0.000000e+00> : vector<8x1800xf32>
    %219 = tpu.matmul %218, %216, %cst_204 {dimension_numbers = #tpu.dot_dimension_numbers<[1], [0], [0], [1], [0, 0, 1, 1], [], []>} : vector<8x8xf32>, vector<8x1800xf32>, vector<8x1800xf32> -> vector<8x1800xf32>
    %220 = arith.addf %215, %219 : vector<8x1800xf32>
    %c0_205 = arith.constant 0 : index
    %c186_206 = arith.constant 186 : index
    %221 = vector.load %arg18[%c0_205, %c186_206] : memref<16x2056xf32, #tpu.memory_space<vmem>>, vector<8x1800xf32>
    %c6_207 = arith.constant 6 : index
    %c0_208 = arith.constant 0 : index
    %c0_209 = arith.constant 0 : index
    %222 = vector.load %arg11[%c6_207, %c0_208, %c0_209] : memref<9x8x8xf32, #tpu.memory_space<vmem>>, vector<1x8x8xf32>
    %223 = vector.shape_cast %222 : vector<1x8x8xf32> to vector<8x8xf32>
    %cst_210 = arith.constant dense<0.000000e+00> : vector<8x1800xf32>
    %224 = tpu.matmul %223, %221, %cst_210 {dimension_numbers = #tpu.dot_dimension_numbers<[1], [0], [0], [1], [0, 0, 1, 1], [], []>} : vector<8x8xf32>, vector<8x1800xf32>, vector<8x1800xf32> -> vector<8x1800xf32>
    %225 = arith.addf %220, %224 : vector<8x1800xf32>
    %c0_211 = arith.constant 0 : index
    %c188_212 = arith.constant 188 : index
    %226 = vector.load %arg18[%c0_211, %c188_212] : memref<16x2056xf32, #tpu.memory_space<vmem>>, vector<8x1800xf32>
    %c7_213 = arith.constant 7 : index
    %c0_214 = arith.constant 0 : index
    %c0_215 = arith.constant 0 : index
    %227 = vector.load %arg11[%c7_213, %c0_214, %c0_215] : memref<9x8x8xf32, #tpu.memory_space<vmem>>, vector<1x8x8xf32>
    %228 = vector.shape_cast %227 : vector<1x8x8xf32> to vector<8x8xf32>
    %cst_216 = arith.constant dense<0.000000e+00> : vector<8x1800xf32>
    %229 = tpu.matmul %228, %226, %cst_216 {dimension_numbers = #tpu.dot_dimension_numbers<[1], [0], [0], [1], [0, 0, 1, 1], [], []>} : vector<8x8xf32>, vector<8x1800xf32>, vector<8x1800xf32> -> vector<8x1800xf32>
    %230 = arith.addf %225, %229 : vector<8x1800xf32>
    %c0_217 = arith.constant 0 : index
    %c190_218 = arith.constant 190 : index
    %231 = vector.load %arg18[%c0_217, %c190_218] : memref<16x2056xf32, #tpu.memory_space<vmem>>, vector<8x1800xf32>
    %c8_219 = arith.constant 8 : index
    %c0_220 = arith.constant 0 : index
    %c0_221 = arith.constant 0 : index
    %232 = vector.load %arg11[%c8_219, %c0_220, %c0_221] : memref<9x8x8xf32, #tpu.memory_space<vmem>>, vector<1x8x8xf32>
    %233 = vector.shape_cast %232 : vector<1x8x8xf32> to vector<8x8xf32>
    %cst_222 = arith.constant dense<0.000000e+00> : vector<8x1800xf32>
    %234 = tpu.matmul %233, %231, %cst_222 {dimension_numbers = #tpu.dot_dimension_numbers<[1], [0], [0], [1], [0, 0, 1, 1], [], []>} : vector<8x8xf32>, vector<8x1800xf32>, vector<8x1800xf32> -> vector<8x1800xf32>
    %235 = arith.addf %230, %234 : vector<8x1800xf32>
    %c0_223 = arith.constant 0 : index
    %c0_224 = arith.constant 0 : index
    %236 = vector.load %arg12[%c0_223, %c0_224] : memref<8x1xf32, #tpu.memory_space<vmem>>, vector<8x1xf32>
    %237 = vector.broadcast %236 : vector<8x1xf32> to vector<8x1800xf32>
    %238 = arith.addf %235, %237 : vector<8x1800xf32>
    %cst_225 = arith.constant 0.000000e+00 : f32
    %239 = vector.broadcast %cst_225 : f32 to vector<8x1800xf32>
    %240 = arith.maximumf %238, %239 : vector<8x1800xf32>
    %c0_226 = arith.constant 0 : index
    %c128_227 = arith.constant 128 : index
    %241 = vector.load %arg19[%c0_226, %c128_227] : memref<16x2056xf32, #tpu.memory_space<vmem>>, vector<8x1800xf32>
    tpu.vector_store %arg19[%c0_226, %c128_227], %240 {strides = array<i32>} : memref<16x2056xf32, #tpu.memory_space<vmem>>, vector<8x1800xf32>,
    %c0_228 = arith.constant 0 : index
    %c128_229 = arith.constant 128 : index
    %242 = vector.load %arg19[%c0_228, %c128_229] : memref<16x2056xf32, #tpu.memory_space<vmem>>, vector<8x1800xf32>
    %c0_230 = arith.constant 0 : index
    %c130_231 = arith.constant 130 : index
    %243 = vector.load %arg19[%c0_230, %c130_231] : memref<16x2056xf32, #tpu.memory_space<vmem>>, vector<8x1800xf32>
    %c0_232 = arith.constant 0 : index
    %c188_233 = arith.constant 188 : index
    %244 = vector.load %arg19[%c0_232, %c188_233] : memref<16x2056xf32, #tpu.memory_space<vmem>>, vector<8x1800xf32>
    %c0_234 = arith.constant 0 : index
    %c190_235 = arith.constant 190 : index
    %245 = vector.load %arg19[%c0_234, %c190_235] : memref<16x2056xf32, #tpu.memory_space<vmem>>, vector<8x1800xf32>
    %246 = arith.maximumf %242, %243 : vector<8x1800xf32>
    %247 = arith.maximumf %244, %245 : vector<8x1800xf32>
    %248 = arith.maximumf %246, %247 : vector<8x1800xf32>
    %c0_236 = arith.constant 0 : index
    %c0_237 = arith.constant 0 : index
    %249 = vector.load %arg4[%c0_236, %c0_237] : memref<1x1800xf32, #tpu.memory_space<vmem>>, vector<1x1800xf32>
    %250 = vector.broadcast %249 : vector<1x1800xf32> to vector<8x1800xf32>
    %251 = arith.mulf %248, %250 : vector<8x1800xf32>
    %c0_238 = arith.constant 0 : index
    %c128_239 = arith.constant 128 : index
    %252 = vector.load %arg18[%c0_238, %c128_239] : memref<16x2056xf32, #tpu.memory_space<vmem>>, vector<8x1800xf32>
    tpu.vector_store %arg18[%c0_238, %c128_239], %251 {strides = array<i32>} : memref<16x2056xf32, #tpu.memory_space<vmem>>, vector<8x1800xf32>,
    %c0_240 = arith.constant 0 : index
    %c4_241 = arith.constant 4 : index
    %253 = vector.load %arg18[%c0_240, %c4_241] : memref<16x2056xf32, #tpu.memory_space<vmem>>, vector<8x1800xf32>
    %c0_242 = arith.constant 0 : index
    %c0_243 = arith.constant 0 : index
    %c0_244 = arith.constant 0 : index
    %254 = vector.load %arg13[%c0_242, %c0_243, %c0_244] : memref<9x10x8xf32, #tpu.memory_space<vmem>>, vector<1x10x8xf32>
    %255 = vector.shape_cast %254 : vector<1x10x8xf32> to vector<10x8xf32>
    %cst_245 = arith.constant dense<0.000000e+00> : vector<10x1800xf32>
    %256 = tpu.matmul %255, %253, %cst_245 {dimension_numbers = #tpu.dot_dimension_numbers<[1], [0], [0], [1], [0, 0, 1, 1], [], []>} : vector<10x8xf32>, vector<8x1800xf32>, vector<10x1800xf32> -> vector<10x1800xf32>
    %c0_246 = arith.constant 0 : index
    %c8_247 = arith.constant 8 : index
    %257 = vector.load %arg18[%c0_246, %c8_247] : memref<16x2056xf32, #tpu.memory_space<vmem>>, vector<8x1800xf32>
    %c1_248 = arith.constant 1 : index
    %c0_249 = arith.constant 0 : index
    %c0_250 = arith.constant 0 : index
    %258 = vector.load %arg13[%c1_248, %c0_249, %c0_250] : memref<9x10x8xf32, #tpu.memory_space<vmem>>, vector<1x10x8xf32>
    %259 = vector.shape_cast %258 : vector<1x10x8xf32> to vector<10x8xf32>
    %cst_251 = arith.constant dense<0.000000e+00> : vector<10x1800xf32>
    %260 = tpu.matmul %259, %257, %cst_251 {dimension_numbers = #tpu.dot_dimension_numbers<[1], [0], [0], [1], [0, 0, 1, 1], [], []>} : vector<10x8xf32>, vector<8x1800xf32>, vector<10x1800xf32> -> vector<10x1800xf32>
    %261 = arith.addf %256, %260 : vector<10x1800xf32>
    %c0_252 = arith.constant 0 : index
    %c12 = arith.constant 12 : index
    %262 = vector.load %arg18[%c0_252, %c12] : memref<16x2056xf32, #tpu.memory_space<vmem>>, vector<8x1800xf32>
    %c2_253 = arith.constant 2 : index
    %c0_254 = arith.constant 0 : index
    %c0_255 = arith.constant 0 : index
    %263 = vector.load %arg13[%c2_253, %c0_254, %c0_255] : memref<9x10x8xf32, #tpu.memory_space<vmem>>, vector<1x10x8xf32>
    %264 = vector.shape_cast %263 : vector<1x10x8xf32> to vector<10x8xf32>
    %cst_256 = arith.constant dense<0.000000e+00> : vector<10x1800xf32>
    %265 = tpu.matmul %264, %262, %cst_256 {dimension_numbers = #tpu.dot_dimension_numbers<[1], [0], [0], [1], [0, 0, 1, 1], [], []>} : vector<10x8xf32>, vector<8x1800xf32>, vector<10x1800xf32> -> vector<10x1800xf32>
    %266 = arith.addf %261, %265 : vector<10x1800xf32>
    %c0_257 = arith.constant 0 : index
    %c124 = arith.constant 124 : index
    %267 = vector.load %arg18[%c0_257, %c124] : memref<16x2056xf32, #tpu.memory_space<vmem>>, vector<8x1800xf32>
    %c3_258 = arith.constant 3 : index
    %c0_259 = arith.constant 0 : index
    %c0_260 = arith.constant 0 : index
    %268 = vector.load %arg13[%c3_258, %c0_259, %c0_260] : memref<9x10x8xf32, #tpu.memory_space<vmem>>, vector<1x10x8xf32>
    %269 = vector.shape_cast %268 : vector<1x10x8xf32> to vector<10x8xf32>
    %cst_261 = arith.constant dense<0.000000e+00> : vector<10x1800xf32>
    %270 = tpu.matmul %269, %267, %cst_261 {dimension_numbers = #tpu.dot_dimension_numbers<[1], [0], [0], [1], [0, 0, 1, 1], [], []>} : vector<10x8xf32>, vector<8x1800xf32>, vector<10x1800xf32> -> vector<10x1800xf32>
    %271 = arith.addf %266, %270 : vector<10x1800xf32>
    %c0_262 = arith.constant 0 : index
    %c128_263 = arith.constant 128 : index
    %272 = vector.load %arg18[%c0_262, %c128_263] : memref<16x2056xf32, #tpu.memory_space<vmem>>, vector<8x1800xf32>
    %c4_264 = arith.constant 4 : index
    %c0_265 = arith.constant 0 : index
    %c0_266 = arith.constant 0 : index
    %273 = vector.load %arg13[%c4_264, %c0_265, %c0_266] : memref<9x10x8xf32, #tpu.memory_space<vmem>>, vector<1x10x8xf32>
    %274 = vector.shape_cast %273 : vector<1x10x8xf32> to vector<10x8xf32>
    %cst_267 = arith.constant dense<0.000000e+00> : vector<10x1800xf32>
    %275 = tpu.matmul %274, %272, %cst_267 {dimension_numbers = #tpu.dot_dimension_numbers<[1], [0], [0], [1], [0, 0, 1, 1], [], []>} : vector<10x8xf32>, vector<8x1800xf32>, vector<10x1800xf32> -> vector<10x1800xf32>
    %276 = arith.addf %271, %275 : vector<10x1800xf32>
    %c0_268 = arith.constant 0 : index
    %c132 = arith.constant 132 : index
    %277 = vector.load %arg18[%c0_268, %c132] : memref<16x2056xf32, #tpu.memory_space<vmem>>, vector<8x1800xf32>
    %c5_269 = arith.constant 5 : index
    %c0_270 = arith.constant 0 : index
    %c0_271 = arith.constant 0 : index
    %278 = vector.load %arg13[%c5_269, %c0_270, %c0_271] : memref<9x10x8xf32, #tpu.memory_space<vmem>>, vector<1x10x8xf32>
    %279 = vector.shape_cast %278 : vector<1x10x8xf32> to vector<10x8xf32>
    %cst_272 = arith.constant dense<0.000000e+00> : vector<10x1800xf32>
    %280 = tpu.matmul %279, %277, %cst_272 {dimension_numbers = #tpu.dot_dimension_numbers<[1], [0], [0], [1], [0, 0, 1, 1], [], []>} : vector<10x8xf32>, vector<8x1800xf32>, vector<10x1800xf32> -> vector<10x1800xf32>
    %281 = arith.addf %276, %280 : vector<10x1800xf32>
    %c0_273 = arith.constant 0 : index
    %c244 = arith.constant 244 : index
    %282 = vector.load %arg18[%c0_273, %c244] : memref<16x2056xf32, #tpu.memory_space<vmem>>, vector<8x1800xf32>
    %c6_274 = arith.constant 6 : index
    %c0_275 = arith.constant 0 : index
    %c0_276 = arith.constant 0 : index
    %283 = vector.load %arg13[%c6_274, %c0_275, %c0_276] : memref<9x10x8xf32, #tpu.memory_space<vmem>>, vector<1x10x8xf32>
    %284 = vector.shape_cast %283 : vector<1x10x8xf32> to vector<10x8xf32>
    %cst_277 = arith.constant dense<0.000000e+00> : vector<10x1800xf32>
    %285 = tpu.matmul %284, %282, %cst_277 {dimension_numbers = #tpu.dot_dimension_numbers<[1], [0], [0], [1], [0, 0, 1, 1], [], []>} : vector<10x8xf32>, vector<8x1800xf32>, vector<10x1800xf32> -> vector<10x1800xf32>
    %286 = arith.addf %281, %285 : vector<10x1800xf32>
    %c0_278 = arith.constant 0 : index
    %c248 = arith.constant 248 : index
    %287 = vector.load %arg18[%c0_278, %c248] : memref<16x2056xf32, #tpu.memory_space<vmem>>, vector<8x1800xf32>
    %c7_279 = arith.constant 7 : index
    %c0_280 = arith.constant 0 : index
    %c0_281 = arith.constant 0 : index
    %288 = vector.load %arg13[%c7_279, %c0_280, %c0_281] : memref<9x10x8xf32, #tpu.memory_space<vmem>>, vector<1x10x8xf32>
    %289 = vector.shape_cast %288 : vector<1x10x8xf32> to vector<10x8xf32>
    %cst_282 = arith.constant dense<0.000000e+00> : vector<10x1800xf32>
    %290 = tpu.matmul %289, %287, %cst_282 {dimension_numbers = #tpu.dot_dimension_numbers<[1], [0], [0], [1], [0, 0, 1, 1], [], []>} : vector<10x8xf32>, vector<8x1800xf32>, vector<10x1800xf32> -> vector<10x1800xf32>
    %291 = arith.addf %286, %290 : vector<10x1800xf32>
    %c0_283 = arith.constant 0 : index
    %c252 = arith.constant 252 : index
    %292 = vector.load %arg18[%c0_283, %c252] : memref<16x2056xf32, #tpu.memory_space<vmem>>, vector<8x1800xf32>
    %c8_284 = arith.constant 8 : index
    %c0_285 = arith.constant 0 : index
    %c0_286 = arith.constant 0 : index
    %293 = vector.load %arg13[%c8_284, %c0_285, %c0_286] : memref<9x10x8xf32, #tpu.memory_space<vmem>>, vector<1x10x8xf32>
    %294 = vector.shape_cast %293 : vector<1x10x8xf32> to vector<10x8xf32>
    %cst_287 = arith.constant dense<0.000000e+00> : vector<10x1800xf32>
    %295 = tpu.matmul %294, %292, %cst_287 {dimension_numbers = #tpu.dot_dimension_numbers<[1], [0], [0], [1], [0, 0, 1, 1], [], []>} : vector<10x8xf32>, vector<8x1800xf32>, vector<10x1800xf32> -> vector<10x1800xf32>
    %296 = arith.addf %291, %295 : vector<10x1800xf32>
    %c0_288 = arith.constant 0 : index
    %c0_289 = arith.constant 0 : index
    %297 = vector.load %arg14[%c0_288, %c0_289] : memref<10x1xf32, #tpu.memory_space<vmem>>, vector<10x1xf32>
    %298 = vector.broadcast %297 : vector<10x1xf32> to vector<10x1800xf32>
    %299 = arith.addf %296, %298 : vector<10x1800xf32>
    %cst_290 = arith.constant 0.000000e+00 : f32
    %300 = vector.broadcast %cst_290 : f32 to vector<10x1800xf32>
    %301 = arith.maximumf %299, %300 : vector<10x1800xf32>
    %c0_291 = arith.constant 0 : index
    %c128_292 = arith.constant 128 : index
    %302 = vector.load %arg19[%c0_291, %c128_292] : memref<16x2056xf32, #tpu.memory_space<vmem>>, vector<10x1800xf32>
    tpu.vector_store %arg19[%c0_291, %c128_292], %301 {strides = array<i32>} : memref<16x2056xf32, #tpu.memory_space<vmem>>, vector<10x1800xf32>,
    %c0_293 = arith.constant 0 : index
    %c128_294 = arith.constant 128 : index
    %303 = vector.load %arg19[%c0_293, %c128_294] : memref<16x2056xf32, #tpu.memory_space<vmem>>, vector<10x1800xf32>
    %c0_295 = arith.constant 0 : index
    %c132_296 = arith.constant 132 : index
    %304 = vector.load %arg19[%c0_295, %c132_296] : memref<16x2056xf32, #tpu.memory_space<vmem>>, vector<10x1800xf32>
    %c0_297 = arith.constant 0 : index
    %c248_298 = arith.constant 248 : index
    %305 = vector.load %arg19[%c0_297, %c248_298] : memref<16x2056xf32, #tpu.memory_space<vmem>>, vector<10x1800xf32>
    %c0_299 = arith.constant 0 : index
    %c252_300 = arith.constant 252 : index
    %306 = vector.load %arg19[%c0_299, %c252_300] : memref<16x2056xf32, #tpu.memory_space<vmem>>, vector<10x1800xf32>
    %307 = arith.maximumf %303, %304 : vector<10x1800xf32>
    %308 = arith.maximumf %305, %306 : vector<10x1800xf32>
    %309 = arith.maximumf %307, %308 : vector<10x1800xf32>
    %c0_301 = arith.constant 0 : index
    %c128_302 = arith.constant 128 : index
    %310 = vector.load %arg18[%c0_301, %c128_302] : memref<16x2056xf32, #tpu.memory_space<vmem>>, vector<10x1800xf32>
    tpu.vector_store %arg18[%c0_301, %c128_302], %309 {strides = array<i32>} : memref<16x2056xf32, #tpu.memory_space<vmem>>, vector<10x1800xf32>,
    %c0_303 = arith.constant 0 : index
    %c0_304 = arith.constant 0 : index
    %311 = vector.load %arg16[%c0_303, %c0_304] : memref<1x10xf32, #tpu.memory_space<vmem>>, vector<1x10xf32>
    %cst_305 = arith.constant 0.000000e+00 : f32
    %312 = vector.broadcast %cst_305 : f32 to vector<10x10xf32>
    %c0_306 = arith.constant 0 : index
    %c159_307 = arith.constant 159 : index
    %313 = vector.load %arg18[%c0_306, %c159_307] : memref<16x2056xf32, #tpu.memory_space<vmem>>, vector<10x1xf32>
    %c0_308 = arith.constant 0 : index
    %c0_309 = arith.constant 0 : index
    %c0_310 = arith.constant 0 : index
    %314 = vector.load %arg15[%c0_308, %c0_309, %c0_310] : memref<9x10x10xf32, #tpu.memory_space<vmem>>, vector<1x10x10xf32>
    %315 = vector.shape_cast %314 : vector<1x10x10xf32> to vector<10x10xf32>
    %316 = vector.broadcast %313 : vector<10x1xf32> to vector<10x10xf32>
    %317 = arith.mulf %315, %316 : vector<10x10xf32>
    %318 = arith.addf %312, %317 : vector<10x10xf32>
    %c0_311 = arith.constant 0 : index
    %c167 = arith.constant 167 : index
    %319 = vector.load %arg18[%c0_311, %c167] : memref<16x2056xf32, #tpu.memory_space<vmem>>, vector<10x1xf32>
    %c1_312 = arith.constant 1 : index
    %c0_313 = arith.constant 0 : index
    %c0_314 = arith.constant 0 : index
    %320 = vector.load %arg15[%c1_312, %c0_313, %c0_314] : memref<9x10x10xf32, #tpu.memory_space<vmem>>, vector<1x10x10xf32>
    %321 = vector.shape_cast %320 : vector<1x10x10xf32> to vector<10x10xf32>
    %322 = vector.broadcast %319 : vector<10x1xf32> to vector<10x10xf32>
    %323 = arith.mulf %321, %322 : vector<10x10xf32>
    %324 = arith.addf %318, %323 : vector<10x10xf32>
    %c0_315 = arith.constant 0 : index
    %c175 = arith.constant 175 : index
    %325 = vector.load %arg18[%c0_315, %c175] : memref<16x2056xf32, #tpu.memory_space<vmem>>, vector<10x1xf32>
    %c2_316 = arith.constant 2 : index
    %c0_317 = arith.constant 0 : index
    %c0_318 = arith.constant 0 : index
    %326 = vector.load %arg15[%c2_316, %c0_317, %c0_318] : memref<9x10x10xf32, #tpu.memory_space<vmem>>, vector<1x10x10xf32>
    %327 = vector.shape_cast %326 : vector<1x10x10xf32> to vector<10x10xf32>
    %328 = vector.broadcast %325 : vector<10x1xf32> to vector<10x10xf32>
    %329 = arith.mulf %327, %328 : vector<10x10xf32>
    %330 = arith.addf %324, %329 : vector<10x10xf32>
    %c0_319 = arith.constant 0 : index
    %c399 = arith.constant 399 : index
    %331 = vector.load %arg18[%c0_319, %c399] : memref<16x2056xf32, #tpu.memory_space<vmem>>, vector<10x1xf32>
    %c3_320 = arith.constant 3 : index
    %c0_321 = arith.constant 0 : index
    %c0_322 = arith.constant 0 : index
    %332 = vector.load %arg15[%c3_320, %c0_321, %c0_322] : memref<9x10x10xf32, #tpu.memory_space<vmem>>, vector<1x10x10xf32>
    %333 = vector.shape_cast %332 : vector<1x10x10xf32> to vector<10x10xf32>
    %334 = vector.broadcast %331 : vector<10x1xf32> to vector<10x10xf32>
    %335 = arith.mulf %333, %334 : vector<10x10xf32>
    %336 = arith.addf %330, %335 : vector<10x10xf32>
    %c0_323 = arith.constant 0 : index
    %c407 = arith.constant 407 : index
    %337 = vector.load %arg18[%c0_323, %c407] : memref<16x2056xf32, #tpu.memory_space<vmem>>, vector<10x1xf32>
    %c4_324 = arith.constant 4 : index
    %c0_325 = arith.constant 0 : index
    %c0_326 = arith.constant 0 : index
    %338 = vector.load %arg15[%c4_324, %c0_325, %c0_326] : memref<9x10x10xf32, #tpu.memory_space<vmem>>, vector<1x10x10xf32>
    %339 = vector.shape_cast %338 : vector<1x10x10xf32> to vector<10x10xf32>
    %340 = vector.broadcast %337 : vector<10x1xf32> to vector<10x10xf32>
    %341 = arith.mulf %339, %340 : vector<10x10xf32>
    %342 = arith.addf %336, %341 : vector<10x10xf32>
    %c0_327 = arith.constant 0 : index
    %c415 = arith.constant 415 : index
    %343 = vector.load %arg18[%c0_327, %c415] : memref<16x2056xf32, #tpu.memory_space<vmem>>, vector<10x1xf32>
    %c5_328 = arith.constant 5 : index
    %c0_329 = arith.constant 0 : index
    %c0_330 = arith.constant 0 : index
    %344 = vector.load %arg15[%c5_328, %c0_329, %c0_330] : memref<9x10x10xf32, #tpu.memory_space<vmem>>, vector<1x10x10xf32>
    %345 = vector.shape_cast %344 : vector<1x10x10xf32> to vector<10x10xf32>
    %346 = vector.broadcast %343 : vector<10x1xf32> to vector<10x10xf32>
    %347 = arith.mulf %345, %346 : vector<10x10xf32>
    %348 = arith.addf %342, %347 : vector<10x10xf32>
    %c0_331 = arith.constant 0 : index
    %c639 = arith.constant 639 : index
    %349 = vector.load %arg18[%c0_331, %c639] : memref<16x2056xf32, #tpu.memory_space<vmem>>, vector<10x1xf32>
    %c6_332 = arith.constant 6 : index
    %c0_333 = arith.constant 0 : index
    %c0_334 = arith.constant 0 : index
    %350 = vector.load %arg15[%c6_332, %c0_333, %c0_334] : memref<9x10x10xf32, #tpu.memory_space<vmem>>, vector<1x10x10xf32>
    %351 = vector.shape_cast %350 : vector<1x10x10xf32> to vector<10x10xf32>
    %352 = vector.broadcast %349 : vector<10x1xf32> to vector<10x10xf32>
    %353 = arith.mulf %351, %352 : vector<10x10xf32>
    %354 = arith.addf %348, %353 : vector<10x10xf32>
    %c0_335 = arith.constant 0 : index
    %c647 = arith.constant 647 : index
    %355 = vector.load %arg18[%c0_335, %c647] : memref<16x2056xf32, #tpu.memory_space<vmem>>, vector<10x1xf32>
    %c7_336 = arith.constant 7 : index
    %c0_337 = arith.constant 0 : index
    %c0_338 = arith.constant 0 : index
    %356 = vector.load %arg15[%c7_336, %c0_337, %c0_338] : memref<9x10x10xf32, #tpu.memory_space<vmem>>, vector<1x10x10xf32>
    %357 = vector.shape_cast %356 : vector<1x10x10xf32> to vector<10x10xf32>
    %358 = vector.broadcast %355 : vector<10x1xf32> to vector<10x10xf32>
    %359 = arith.mulf %357, %358 : vector<10x10xf32>
    %360 = arith.addf %354, %359 : vector<10x10xf32>
    %c0_339 = arith.constant 0 : index
    %c655 = arith.constant 655 : index
    %361 = vector.load %arg18[%c0_339, %c655] : memref<16x2056xf32, #tpu.memory_space<vmem>>, vector<10x1xf32>
    %c8_340 = arith.constant 8 : index
    %c0_341 = arith.constant 0 : index
    %c0_342 = arith.constant 0 : index
    %362 = vector.load %arg15[%c8_340, %c0_341, %c0_342] : memref<9x10x10xf32, #tpu.memory_space<vmem>>, vector<1x10x10xf32>
    %363 = vector.shape_cast %362 : vector<1x10x10xf32> to vector<10x10xf32>
    %364 = vector.broadcast %361 : vector<10x1xf32> to vector<10x10xf32>
    %365 = arith.mulf %363, %364 : vector<10x10xf32>
    %366 = arith.addf %360, %365 : vector<10x10xf32>
    %cst_343 = arith.constant dense<0.000000e+00> : vector<10xf32>
    %367 = vector.multi_reduction <add>, %366, %cst_343 [0] : vector<10x10xf32> to vector<10xf32>
    %368 = vector.shape_cast %367 : vector<10xf32> to vector<1x10xf32>
    %369 = arith.addf %311, %368 : vector<1x10xf32>
    %c0_344 = arith.constant 0 : index
    %c0_345 = arith.constant 0 : index
    %370 = vector.load %arg17[%c0_344, %c0_345] : memref<2x10xf32, #tpu.memory_space<vmem>>, vector<1x10xf32>
    tpu.vector_store %arg17[%c0_344, %c0_345], %369 {strides = array<i32>} : memref<2x10xf32, #tpu.memory_space<vmem>>, vector<1x10xf32>,
    %cst_346 = arith.constant 0.000000e+00 : f32
    %371 = vector.broadcast %cst_346 : f32 to vector<10x10xf32>
    %c0_347 = arith.constant 0 : index
    %c1059 = arith.constant 1059 : index
    %372 = vector.load %arg18[%c0_347, %c1059] : memref<16x2056xf32, #tpu.memory_space<vmem>>, vector<10x1xf32>
    %c0_348 = arith.constant 0 : index
    %c0_349 = arith.constant 0 : index
    %c0_350 = arith.constant 0 : index
    %373 = vector.load %arg15[%c0_348, %c0_349, %c0_350] : memref<9x10x10xf32, #tpu.memory_space<vmem>>, vector<1x10x10xf32>
    %374 = vector.shape_cast %373 : vector<1x10x10xf32> to vector<10x10xf32>
    %375 = vector.broadcast %372 : vector<10x1xf32> to vector<10x10xf32>
    %376 = arith.mulf %374, %375 : vector<10x10xf32>
    %377 = arith.addf %371, %376 : vector<10x10xf32>
    %c0_351 = arith.constant 0 : index
    %c1067 = arith.constant 1067 : index
    %378 = vector.load %arg18[%c0_351, %c1067] : memref<16x2056xf32, #tpu.memory_space<vmem>>, vector<10x1xf32>
    %c1_352 = arith.constant 1 : index
    %c0_353 = arith.constant 0 : index
    %c0_354 = arith.constant 0 : index
    %379 = vector.load %arg15[%c1_352, %c0_353, %c0_354] : memref<9x10x10xf32, #tpu.memory_space<vmem>>, vector<1x10x10xf32>
    %380 = vector.shape_cast %379 : vector<1x10x10xf32> to vector<10x10xf32>
    %381 = vector.broadcast %378 : vector<10x1xf32> to vector<10x10xf32>
    %382 = arith.mulf %380, %381 : vector<10x10xf32>
    %383 = arith.addf %377, %382 : vector<10x10xf32>
    %c0_355 = arith.constant 0 : index
    %c1075 = arith.constant 1075 : index
    %384 = vector.load %arg18[%c0_355, %c1075] : memref<16x2056xf32, #tpu.memory_space<vmem>>, vector<10x1xf32>
    %c2_356 = arith.constant 2 : index
    %c0_357 = arith.constant 0 : index
    %c0_358 = arith.constant 0 : index
    %385 = vector.load %arg15[%c2_356, %c0_357, %c0_358] : memref<9x10x10xf32, #tpu.memory_space<vmem>>, vector<1x10x10xf32>
    %386 = vector.shape_cast %385 : vector<1x10x10xf32> to vector<10x10xf32>
    %387 = vector.broadcast %384 : vector<10x1xf32> to vector<10x10xf32>
    %388 = arith.mulf %386, %387 : vector<10x10xf32>
    %389 = arith.addf %383, %388 : vector<10x10xf32>
    %c0_359 = arith.constant 0 : index
    %c1299 = arith.constant 1299 : index
    %390 = vector.load %arg18[%c0_359, %c1299] : memref<16x2056xf32, #tpu.memory_space<vmem>>, vector<10x1xf32>
    %c3_360 = arith.constant 3 : index
    %c0_361 = arith.constant 0 : index
    %c0_362 = arith.constant 0 : index
    %391 = vector.load %arg15[%c3_360, %c0_361, %c0_362] : memref<9x10x10xf32, #tpu.memory_space<vmem>>, vector<1x10x10xf32>
    %392 = vector.shape_cast %391 : vector<1x10x10xf32> to vector<10x10xf32>
    %393 = vector.broadcast %390 : vector<10x1xf32> to vector<10x10xf32>
    %394 = arith.mulf %392, %393 : vector<10x10xf32>
    %395 = arith.addf %389, %394 : vector<10x10xf32>
    %c0_363 = arith.constant 0 : index
    %c1307 = arith.constant 1307 : index
    %396 = vector.load %arg18[%c0_363, %c1307] : memref<16x2056xf32, #tpu.memory_space<vmem>>, vector<10x1xf32>
    %c4_364 = arith.constant 4 : index
    %c0_365 = arith.constant 0 : index
    %c0_366 = arith.constant 0 : index
    %397 = vector.load %arg15[%c4_364, %c0_365, %c0_366] : memref<9x10x10xf32, #tpu.memory_space<vmem>>, vector<1x10x10xf32>
    %398 = vector.shape_cast %397 : vector<1x10x10xf32> to vector<10x10xf32>
    %399 = vector.broadcast %396 : vector<10x1xf32> to vector<10x10xf32>
    %400 = arith.mulf %398, %399 : vector<10x10xf32>
    %401 = arith.addf %395, %400 : vector<10x10xf32>
    %c0_367 = arith.constant 0 : index
    %c1315 = arith.constant 1315 : index
    %402 = vector.load %arg18[%c0_367, %c1315] : memref<16x2056xf32, #tpu.memory_space<vmem>>, vector<10x1xf32>
    %c5_368 = arith.constant 5 : index
    %c0_369 = arith.constant 0 : index
    %c0_370 = arith.constant 0 : index
    %403 = vector.load %arg15[%c5_368, %c0_369, %c0_370] : memref<9x10x10xf32, #tpu.memory_space<vmem>>, vector<1x10x10xf32>
    %404 = vector.shape_cast %403 : vector<1x10x10xf32> to vector<10x10xf32>
    %405 = vector.broadcast %402 : vector<10x1xf32> to vector<10x10xf32>
    %406 = arith.mulf %404, %405 : vector<10x10xf32>
    %407 = arith.addf %401, %406 : vector<10x10xf32>
    %c0_371 = arith.constant 0 : index
    %c1539 = arith.constant 1539 : index
    %408 = vector.load %arg18[%c0_371, %c1539] : memref<16x2056xf32, #tpu.memory_space<vmem>>, vector<10x1xf32>
    %c6_372 = arith.constant 6 : index
    %c0_373 = arith.constant 0 : index
    %c0_374 = arith.constant 0 : index
    %409 = vector.load %arg15[%c6_372, %c0_373, %c0_374] : memref<9x10x10xf32, #tpu.memory_space<vmem>>, vector<1x10x10xf32>
    %410 = vector.shape_cast %409 : vector<1x10x10xf32> to vector<10x10xf32>
    %411 = vector.broadcast %408 : vector<10x1xf32> to vector<10x10xf32>
    %412 = arith.mulf %410, %411 : vector<10x10xf32>
    %413 = arith.addf %407, %412 : vector<10x10xf32>
    %c0_375 = arith.constant 0 : index
    %c1547 = arith.constant 1547 : index
    %414 = vector.load %arg18[%c0_375, %c1547] : memref<16x2056xf32, #tpu.memory_space<vmem>>, vector<10x1xf32>
    %c7_376 = arith.constant 7 : index
    %c0_377 = arith.constant 0 : index
    %c0_378 = arith.constant 0 : index
    %415 = vector.load %arg15[%c7_376, %c0_377, %c0_378] : memref<9x10x10xf32, #tpu.memory_space<vmem>>, vector<1x10x10xf32>
    %416 = vector.shape_cast %415 : vector<1x10x10xf32> to vector<10x10xf32>
    %417 = vector.broadcast %414 : vector<10x1xf32> to vector<10x10xf32>
    %418 = arith.mulf %416, %417 : vector<10x10xf32>
    %419 = arith.addf %413, %418 : vector<10x10xf32>
    %c0_379 = arith.constant 0 : index
    %c1555 = arith.constant 1555 : index
    %420 = vector.load %arg18[%c0_379, %c1555] : memref<16x2056xf32, #tpu.memory_space<vmem>>, vector<10x1xf32>
    %c8_380 = arith.constant 8 : index
    %c0_381 = arith.constant 0 : index
    %c0_382 = arith.constant 0 : index
    %421 = vector.load %arg15[%c8_380, %c0_381, %c0_382] : memref<9x10x10xf32, #tpu.memory_space<vmem>>, vector<1x10x10xf32>
    %422 = vector.shape_cast %421 : vector<1x10x10xf32> to vector<10x10xf32>
    %423 = vector.broadcast %420 : vector<10x1xf32> to vector<10x10xf32>
    %424 = arith.mulf %422, %423 : vector<10x10xf32>
    %425 = arith.addf %419, %424 : vector<10x10xf32>
    %cst_383 = arith.constant dense<0.000000e+00> : vector<10xf32>
    %426 = vector.multi_reduction <add>, %425, %cst_383 [0] : vector<10x10xf32> to vector<10xf32>
    %427 = vector.shape_cast %426 : vector<10xf32> to vector<1x10xf32>
    %428 = arith.addf %311, %427 : vector<1x10xf32>
    %c1_384 = arith.constant 1 : index
    %c0_385 = arith.constant 0 : index
    %429 = vector.load %arg17[%c1_384, %c0_385] : memref<2x10xf32, #tpu.memory_space<vmem>>, vector<1x10xf32>
    tpu.vector_store %arg17[%c1_384, %c0_385], %428 {strides = array<i32>} : memref<2x10xf32, #tpu.memory_space<vmem>>, vector<1x10xf32>,
    %c0_386 = arith.constant 0 : index
    %c0_387 = arith.constant 0 : index
    %430 = vector.load %arg17[%c0_386, %c0_387] : memref<2x10xf32, #tpu.memory_space<vmem>>, vector<2x10xf32>
    %cst_388 = arith.constant dense<0xFF800000> : vector<2xf32>
    %431 = vector.multi_reduction <maximumf>, %430, %cst_388 [1] : vector<2x10xf32> to vector<2xf32>
    %432 = vector.shape_cast %431 : vector<2xf32> to vector<2x1xf32>
    %433 = vector.broadcast %432 : vector<2x1xf32> to vector<2x10xf32>
    %434 = arith.subf %430, %433 : vector<2x10xf32>
    %435 = math.exp %434 : vector<2x10xf32>
    %cst_389 = arith.constant dense<0.000000e+00> : vector<2xf32>
    %436 = vector.multi_reduction <add>, %435, %cst_389 [1] : vector<2x10xf32> to vector<2xf32>
    %437 = vector.shape_cast %436 : vector<2xf32> to vector<2x1xf32>
    %438 = math.log %437 : vector<2x1xf32>
    %439 = vector.broadcast %438 : vector<2x1xf32> to vector<2x10xf32>
    %440 = arith.subf %434, %439 : vector<2x10xf32>
    %c0_390 = arith.constant 0 : index
    %c0_391 = arith.constant 0 : index
    %441 = vector.load %arg17[%c0_390, %c0_391] : memref<2x10xf32, #tpu.memory_space<vmem>>, vector<2x10xf32>
    tpu.vector_store %arg17[%c0_390, %c0_391], %440 {strides = array<i32>} : memref<2x10xf32, #tpu.memory_space<vmem>>, vector<2x10xf32>,
    return
  }
  func.func @transform_0(%arg0: i32) -> (i32, i32) {
    %c0_i32 = arith.constant 0 : i32
    %c0_i32_0 = arith.constant 0 : i32
    %c0_i32_1 = arith.constant 0 : i32
    return %c0_i32, %c0_i32_0 : i32, i32
  }
  func.func @transform_1(%arg0: i32) -> (i32, i32) {
    %c0_i32 = arith.constant 0 : i32
    %c0_i32_0 = arith.constant 0 : i32
    %c0_i32_1 = arith.constant 0 : i32
    return %c0_i32, %c0_i32_0 : i32, i32
  }
  func.func @transform_2(%arg0: i32) -> (i32, i32) {
    %c0_i32 = arith.constant 0 : i32
    %c0_i32_0 = arith.constant 0 : i32
    %c0_i32_1 = arith.constant 0 : i32
    return %c0_i32, %c0_i32_0 : i32, i32
  }
  func.func @transform_3(%arg0: i32) -> (i32, i32) {
    %c0_i32 = arith.constant 0 : i32
    %c0_i32_0 = arith.constant 0 : i32
    %c0_i32_1 = arith.constant 0 : i32
    return %c0_i32, %c0_i32_0 : i32, i32
  }
  func.func @transform_4(%arg0: i32) -> (i32, i32, i32) {
    %c0_i32 = arith.constant 0 : i32
    %c0_i32_0 = arith.constant 0 : i32
    %c0_i32_1 = arith.constant 0 : i32
    %c0_i32_2 = arith.constant 0 : i32
    return %c0_i32, %c0_i32_0, %c0_i32_1 : i32, i32, i32
  }
  func.func @transform_5(%arg0: i32) -> (i32, i32) {
    %c0_i32 = arith.constant 0 : i32
    %c0_i32_0 = arith.constant 0 : i32
    %c0_i32_1 = arith.constant 0 : i32
    return %c0_i32, %c0_i32_0 : i32, i32
  }
  func.func @transform_6(%arg0: i32) -> (i32, i32, i32) {
    %c0_i32 = arith.constant 0 : i32
    %c0_i32_0 = arith.constant 0 : i32
    %c0_i32_1 = arith.constant 0 : i32
    %c0_i32_2 = arith.constant 0 : i32
    return %c0_i32, %c0_i32_0, %c0_i32_1 : i32, i32, i32
  }
  func.func @transform_7(%arg0: i32) -> (i32, i32) {
    %c0_i32 = arith.constant 0 : i32
    %c0_i32_0 = arith.constant 0 : i32
    %c0_i32_1 = arith.constant 0 : i32
    return %c0_i32, %c0_i32_0 : i32, i32
  }
  func.func @transform_8(%arg0: i32) -> (i32, i32, i32) {
    %c0_i32 = arith.constant 0 : i32
    %c0_i32_0 = arith.constant 0 : i32
    %c0_i32_1 = arith.constant 0 : i32
    %c0_i32_2 = arith.constant 0 : i32
    return %c0_i32, %c0_i32_0, %c0_i32_1 : i32, i32, i32
  }
  func.func @transform_9(%arg0: i32) -> (i32, i32) {
    %c0_i32 = arith.constant 0 : i32
    %c0_i32_0 = arith.constant 0 : i32
    %c0_i32_1 = arith.constant 0 : i32
    return %c0_i32, %c0_i32_0 : i32, i32
  }
  func.func @transform_10(%arg0: i32) -> (i32, i32, i32) {
    %c0_i32 = arith.constant 0 : i32
    %c0_i32_0 = arith.constant 0 : i32
    %c0_i32_1 = arith.constant 0 : i32
    %c0_i32_2 = arith.constant 0 : i32
    return %c0_i32, %c0_i32_0, %c0_i32_1 : i32, i32, i32
  }
  func.func @transform_11(%arg0: i32) -> (i32, i32) {
    %c0_i32 = arith.constant 0 : i32
    %c0_i32_0 = arith.constant 0 : i32
    %c0_i32_1 = arith.constant 0 : i32
    return %c0_i32, %c0_i32_0 : i32, i32
  }
  func.func @transform_12(%arg0: i32) -> (i32, i32, i32) {
    %c0_i32 = arith.constant 0 : i32
    %c0_i32_0 = arith.constant 0 : i32
    %c0_i32_1 = arith.constant 0 : i32
    %c0_i32_2 = arith.constant 0 : i32
    return %c0_i32, %c0_i32_0, %c0_i32_1 : i32, i32, i32
  }
  func.func @transform_13(%arg0: i32) -> (i32, i32) {
    %c0_i32 = arith.constant 0 : i32
    %c0_i32_0 = arith.constant 0 : i32
    %c0_i32_1 = arith.constant 0 : i32
    return %c0_i32, %c0_i32_0 : i32, i32
  }
  func.func @transform_14(%arg0: i32) -> (i32, i32, i32) {
    %c0_i32 = arith.constant 0 : i32
    %c0_i32_0 = arith.constant 0 : i32
    %c0_i32_1 = arith.constant 0 : i32
    %c0_i32_2 = arith.constant 0 : i32
    return %c0_i32, %c0_i32_0, %c0_i32_1 : i32, i32, i32
  }
  func.func @transform_15(%arg0: i32) -> (i32, i32) {
    %c0_i32 = arith.constant 0 : i32
    %c0_i32_0 = arith.constant 0 : i32
    %c0_i32_1 = arith.constant 0 : i32
    return %c0_i32, %c0_i32_0 : i32, i32
  }
  func.func @transform_16(%arg0: i32) -> (i32, i32) {
    %c0_i32 = arith.constant 0 : i32
    %c0_i32_0 = arith.constant 0 : i32
    %c0_i32_1 = arith.constant 0 : i32
    return %c0_i32, %c0_i32_0 : i32, i32
  }
}

</mosaic_0001>

<bundles_post_ra>
// kernel: net_forward.1
= control target key start
LH: loop header
LB: loop body
LE: loop exit
PB: predicated region body
PF: predicated region fallthrough
CT: control target
= control target key end

     0   :  { %s35369_s0 = inlined_call_operand.vmem [shape: f32[1,1800], index: 0, kind: input, shape index: {}]   ;;  %s35370_s1 = inlined_call_operand.vmem [shape: f32[1,1800], index: 1, kind: input, shape index: {}]   ;;  %s35371_s2 = inlined_call_operand.vmem [shape: f32[1,1800], index: 2, kind: input, shape index: {}]   ;;  %s35372_s3 = inlined_call_operand.vmem [shape: f32[1,1800], index: 3, kind: input, shape index: {}]   ;;  %s35373_s4 = inlined_call_operand.vmem [shape: f32[9,6,1], index: 4, kind: input, shape index: {}]   ;;  %s35374_s5 = inlined_call_operand.vmem [shape: f32[6,1], index: 5, kind: input, shape index: {}]   ;;  %s35375_s6 = inlined_call_operand.vmem [shape: f32[9,6,6], index: 6, kind: input, shape index: {}]   ;;  %s35376_s7 = inlined_call_operand.vmem [shape: f32[6,1], index: 7, kind: input, shape index: {}]   ;;  %s35377_s8 = inlined_call_operand.vmem [shape: f32[9,8,6], index: 8, kind: input, shape index: {}]   ;;  %s35378_s9 = inlined_call_operand.vmem [shape: f32[8,1], index: 9, kind: input, shape index: {}]   ;;  %s35379_s10 = inlined_call_operand.vmem [shape: f32[9,8,8], index: 10, kind: input, shape index: {}]   ;;  %s35380_s11 = inlined_call_operand.vmem [shape: f32[8,1], index: 11, kind: input, shape index: {}]   ;;  %s35381_s12 = inlined_call_operand.vmem [shape: f32[9,10,8], index: 12, kind: input, shape index: {}]   ;;  %s35382_s13 = inlined_call_operand.vmem [shape: f32[10,1], index: 13, kind: input, shape index: {}]   ;;  %s35383_s14 = inlined_call_operand.vmem [shape: f32[9,10,10], index: 14, kind: input, shape index: {}]   ;;  %s35384_s15 = inlined_call_operand.vmem [shape: f32[1,10], index: 15, kind: input, shape index: {}]   ;;  %s35385_s16 = inlined_call_operand.hbm [shape: f32[2,10], index: 16, kind: output, shape index: {}]  }
   0x1   :  { %35482 = sst [smem:[#allocation74_spill]] %s35369_s0 }
   0x2   :  { %v27319_v0 = vld [vmem:[%s35373_s4 + $0x8] sm:$0x3f]  ;;  %v73_v1 = vlaneseq  ;;  %v28983_v2 = vmov 0   ;;  %v27321_v3 = vld [vmem:[%s35373_s4 + $0x18] sm:$0x3f]  ;;  %v28984_v4 = vmov 0.0  }
   0x3   :  { %28908 = vset.pattern.permute.xlu0 %v28983_v2  ;;  %28909 = vset.pattern.permute.xlu1 %v28983_v2  ;;  %54 = vst [vmem:[#allocation2] sm:$0xff] %v28984_v4  ;;  %62 = vst [vmem:[#allocation3] sm:$0xff] %v28984_v4  ;;  %v27320_v5 = vld [vmem:[%s35373_s4 + $0x10] sm:$0x3f]  ;;  %v27322_v6 = vld [vmem:[%s35373_s4 + $0x20] sm:$0x3f] }
   0x4   :  { %189 = vperm.xlu0 %28908, %v27319_v0   ;;  %419 = vperm.xlu1 %28909, %v27321_v3   ;;  %s35483_s0 = sld [smem:[#allocation74_spill]]  ;;  %vm56_vm0 = vcmask 1047616   ;;  %vm75_vm1 = vcmp.lt.s32.totalorder %v73_v1, 776 }
   0x5   :  { %1699 = vmatprep.mubr.f32.mxu0 %v28984_v4  ;;  %1770 = vmatprep.mubr.f32.mxu1 %v28984_v4  ;;  %57 = vst.msk [vmem:[#allocation2 + $0x78] sm:$0xff] %vm56_vm0, %v28984_v4  ;;  %64 = vst.msk [vmem:[#allocation3 + $0x78] sm:$0xff] %vm56_vm0, %v28984_v4 }
   0x6   :  { %66 = vst.msk [vmem:[#allocation3 + $0x100] sm:$0xff] %vm56_vm0, %v28984_v4 }
   0xa   :  { %v68_v7 = vld [vmem:[%s35483_s0] sm:$0xff]  ;;  %v69_v8 = vld [vmem:[%s35483_s0 + $0x8] sm:$0x7f] }
   0xb   :  { %71 = vst [vmem:[#allocation2 + $0x8] ss:$8 sm:$0xf] %v68_v7  ;;  %72 = vst [vmem:[#allocation2 + $0x8] ss:$8 sm:$0xf0] %v68_v7 }
   0xc   :  { %78 = vst.msk [vmem:[#allocation2 + $0x48] ss:$8 sm:$0xf] %vm75_vm1, %v69_v8 }
   0xd   :  { %21 = vsyncpa [#allocation5], 0  ;;  %301 = vperm.xlu0 %28908, %v27320_v5   ;;  %624 = vperm.xlu1 %28909, %v27322_v6   ;;  %79 = vst.msk [vmem:[#allocation2 + $0x48] ss:$8 sm:$0x70] %vm75_vm1, %v69_v8  ;;  %v96_v15 = vshrl.u32 %v73_v1, 7 }
   0xe   :  { %v27323_v9 = vld [vmem:[%s35373_s4 + $0x28] sm:$0x3f]  ;;  %v27324_v10 = vld [vmem:[%s35373_s4 + $0x30] sm:$0x3f]  ;;  %v27325_v11 = vld [vmem:[%s35373_s4 + $0x38] sm:$0x3f] }
   0xf   :  { %v27326_v12 = vld [vmem:[%s35373_s4 + $0x40] sm:$0x3f]  ;;  %v29146_v19 = vsub.s32 1, %v96_v15  ;;  %v29148_v20 = vsub.s32 0, %v96_v15  ;;  %v29156_v23 = vsub.s32 3, %v96_v15  ;;  %v29158_v24 = vsub.s32 2, %v96_v15 }
  0x10   :  { %v87_v13 = vld [vmem:[%s35373_s4] sm:$0x3f]  ;;  %s28985_s4 = smov 127   ;;  %v29186_v35 = vsub.s32 5, %v96_v15  ;;  %v29188_v36 = vsub.s32 4, %v96_v15  ;;  %v29192_v37 = vsub.s32 7, %v96_v15 }
  0x11   :  { %813 = vperm.xlu0 %28908, %v27323_v9   ;;  %925 = vperm.xlu1 %28909, %v27324_v10   ;;  %v1257_v14 = vld [vmem:[%s35374_s5] sm:$0x3f]  ;;  %35484 = vst [vmem:[#allocation7_spill] sm:$0xff] %v29146_v19  ;;  %35485 = vst [vmem:[#allocation8_spill] sm:$0xff] %v29148_v20  ;;  %s28986_s5 = smov 126   ;;  %v29194_v38 = vsub.s32 6, %v96_v15 }
  0x12   :  { %v80_v16 = vld [vmem:[#allocation2] ss:$8 sm:$0xf]  ;;  %35486 = vst [vmem:[#allocation9_spill] sm:$0xff] %v29156_v23  ;;  %35487 = vst [vmem:[#allocation10_spill] sm:$0xff] %v29158_v24  ;;  %s28987_s0 = smov 98  }
  0x13   :  { %v81_v17 = vld [vmem:[#allocation2] ss:$8 sm:$0xf0]  ;;  %35488 = vst [vmem:[#allocation11_spill] sm:$0xff] %v29186_v35  ;;  %35489 = vst [vmem:[#allocation12_spill] sm:$0xff] %v29188_v36  ;;  %s28988_s17 = smov 97  }
  0x14   :  { %v82_v18 = vor.u32 %v81_v17, %v80_v16  ;;  %35490 = vst [vmem:[#allocation13_spill] sm:$0xff] %v29192_v37  ;;  %35491 = vst [vmem:[#allocation14_spill] sm:$0xff] %v29194_v38  ;;  %v409_v39 = vld [vmem:[#allocation2] ss:$8 sm:$0xf]  ;;  %s28989_s18 = smov 96  }
  0x15   :  { %1037 = vperm.xlu0 %28908, %v27325_v11   ;;  %1149 = vperm.xlu1 %28909, %v27326_v12   ;;  %v410_v40 = vld [vmem:[#allocation2] ss:$8 sm:$0xf0]  ;;  %s28990_s19 = smov 68   ;;  %s28991_s20 = smov 67   ;;  %vm252_vm2 = vcmask 1039360  }
  0x16   :  { %v29151_v21 = vrot.slane %v82_v18, %v29146_v19  ;;  %v29154_v22 = vrot.slane %v82_v18, %v29148_v20  ;;  %v29167_v28 = vrot.slane %v82_v18, %v29156_v23  ;;  %v29170_v29 = vrot.slane %v82_v18, %v29158_v24  ;;  %v614_v61 = vld [vmem:[#allocation2 + $0x8] ss:$8 sm:$0xf]  ;;  %s28992_s21 = smov 66   ;;  %s28994_s26 = smov 30  }
  0x17   :  { %v29201_v43 = vrot.slane %v82_v18, %v29186_v35  ;;  %v29204_v44 = vrot.slane %v82_v18, %v29188_v36  ;;  %v29208_v45 = vor.u32 %v410_v40, %v409_v39  ;;  %v29215_v48 = vrot.slane %v82_v18, %v29192_v37  ;;  %v615_v62 = vld [vmem:[#allocation2 + $0x8] ss:$8 sm:$0xf0]  ;;  %s28995_s27 = smov 29   ;;  %s28996_s28 = smov 1  }
  0x18   :  { %v29218_v49 = vrot.slane %v82_v18, %v29194_v38  ;;  %v84_v1 = vld [vmem:[#allocation2 + $0x40] ss:$8 sm:$0xf]  ;;  %v29252_v3 = vor.u32 %v615_v62, %v614_v61  ;;  %vm364_vm3 = vcmask 1031168   ;;  %vm568_vm4 = vcmask 801792   ;;  %s29000_s25 = smov 62  }
  0x19   :  { %90 = vperm.xlu0 %28908, %v87_v13   ;;  %v431_v50 = vrot.slane %v29208_v45, %v29146_v19  ;;  %v427_v51 = vrot.slane %v29208_v45, %v29148_v20  ;;  %v439_v57 = vrot.slane %v29208_v45, %v29156_v23  ;;  %v435_v58 = vrot.slane %v29208_v45, %v29158_v24  ;;  %v85_v2 = vld [vmem:[#allocation2 + $0x40] ss:$8 sm:$0x70] }
  0x1a   :  { %v29258_v6 = vor.u32 %v85_v2, %v84_v1  ;;  %v29264_v7 = vrot.slane %v29252_v3, %v29146_v19  ;;  %v29268_v8 = vrot.slane %v29252_v3, %v29148_v20  ;;  %v29284_v13 = vrot.slane %v29252_v3, %v29158_v24  ;;  %v412_v1 = vld [vmem:[#allocation2 + $0x40] ss:$8 sm:$0xf] }
  0x1b   :  { %v443_v16 = vrot.slane %v29208_v45, %v29188_v36  ;;  %v29368_v61 = vrot.slane %v29252_v3, %v29194_v38  ;;  %v29372_v62 = vrot.slane %v29252_v3, %v29186_v35  ;;  %v413_v2 = vld [vmem:[#allocation2 + $0x40] ss:$8 sm:$0xf0]  ;;  %vm764_vm5 = vcmask 793600  }
  0x1c   :  { %v29278_v12 = vrot.slane %v29258_v6, %v29148_v20  ;;  %v29294_v17 = vrot.slane %v29258_v6, %v29146_v19  ;;  %v29316_v39 = vrot.slane %v29258_v6, %v29156_v23  ;;  %vm876_vm6 = vcmask 785408  }
  0x1d   :  { %1260 = vperm.xlu0 %28908, %v1257_v14   ;;  %vm988_vm7 = vcmask 556032   ;;  %vm1100_vm8 = vcmask 547840   ;;  %vm1212_vm9 = vcmask 539648   ;;  %vm1476_vm10 = vcmask 252928  }
  0x1e   :  { %vm1520_vm11 = vcmask 62464   ;;  %vm1585_vm12 = vcmask 244736   ;;  %vm1604_vm13 = vcmask 1045504   ;;  %vm1600_vm14 = vcmask 48128  }
  0x1f   :  { %vm28997_vm15 = vmmov 0   ;;  %vm2878_vm0 = vcmask 236544   ;;  %vm3574_vm1 = vcmask 7168  }
  0x83   :  { %v29160_v25 = vpop.permute.xlu0 %189  ;;  %v29230_v54 = vpop.permute.xlu1 %419 }
  0x84   :  { %v193_v26 = vmul.f32 %v29160_v25, %v29151_v21  ;;  %v192_v27 = vmul.f32 %v29160_v25, %v29154_v22  ;;  %v195_v30 = vmul.f32 %v29160_v25, %v29167_v28  ;;  %v194_v31 = vmul.f32 %v29160_v25, %v29170_v29 }
  0x85   :  { %v197_v46 = vmul.f32 %v29160_v25, %v29201_v43  ;;  %v196_v47 = vmul.f32 %v29160_v25, %v29204_v44  ;;  %v199_v52 = vmul.f32 %v29160_v25, %v29215_v48  ;;  %v198_v53 = vmul.f32 %v29160_v25, %v29218_v49 }
  0x86   :  { %224 = vrot.lane.b32.xlu0 %v193_v26, %s28985_s4  ;;  %222 = vrot.lane.b32.xlu1 %v192_v27, %s28985_s4  ;;  %v505_v55 = vmul.f32 %v431_v50, %v29230_v54  ;;  %v504_v56 = vmul.f32 %v427_v51, %v29230_v54  ;;  %v507_v59 = vmul.f32 %v439_v57, %v29230_v54 }
  0x87   :  { %v506_v60 = vmul.f32 %v435_v58, %v29230_v54  ;;  %v200_v14 = vmul.f32 %v29160_v25, %v29278_v12  ;;  %v508_v18 = vmul.f32 %v443_v16, %v29230_v54  ;;  %v201_v26 = vmul.f32 %v29160_v25, %v29294_v17 }
  0x88   :  { %v29303_v27 = vrot.slane %v29258_v6, %v29158_v24 }
  0x8a   :  { %228 = vrot.lane.b32.xlu0 %v195_v30, %s28985_s4  ;;  %226 = vrot.lane.b32.xlu1 %v194_v31, %s28985_s4  ;;  %v447_v30 = vrot.slane %v29208_v45, %v29186_v35  ;;  %v202_v31 = vmul.f32 %v29160_v25, %v29303_v27 }
  0x8c   :  { %v29178_v32 = vpop.permute.xlu0 %301  ;;  %v29270_v9 = vpop.permute.xlu1 %624 }
  0x8d   :  { %v305_v33 = vmul.f32 %v29178_v32, %v29151_v21  ;;  %v304_v34 = vmul.f32 %v29178_v32, %v29154_v22  ;;  %v307_v41 = vmul.f32 %v29178_v32, %v29167_v28  ;;  %v306_v42 = vmul.f32 %v29178_v32, %v29170_v29 }
  0x8e   :  { %v309_v63 = vmul.f32 %v29178_v32, %v29201_v43  ;;  %v308_v0 = vmul.f32 %v29178_v32, %v29204_v44  ;;  %v311_v4 = vmul.f32 %v29178_v32, %v29215_v48  ;;  %v310_v5 = vmul.f32 %v29178_v32, %v29218_v49 }
  0x8f   :  { %336 = vrot.lane.b32.xlu0 %v305_v33, %s28986_s5  ;;  %334 = vrot.lane.b32.xlu1 %v304_v34, %s28986_s5  ;;  %v705_v10 = vmul.f32 %v29264_v7, %v29270_v9  ;;  %v704_v11 = vmul.f32 %v29268_v8, %v29270_v9  ;;  %v706_v15 = vmul.f32 %v29284_v13, %v29270_v9 }
  0x90   :  { %v509_v33 = vmul.f32 %v447_v30, %v29230_v54  ;;  %v451_v34 = vrot.slane %v29208_v45, %v29194_v38 }
  0x92   :  { %v510_v40 = vmul.f32 %v451_v34, %v29230_v54 }
  0x93   :  { %340 = vrot.lane.b32.xlu0 %v307_v41, %s28986_s5  ;;  %338 = vrot.lane.b32.xlu1 %v306_v42, %s28986_s5  ;;  %v203_v41 = vmul.f32 %v29160_v25, %v29316_v39  ;;  %v455_v42 = vrot.slane %v29208_v45, %v29192_v37 }
  0x95   :  { %v511_v50 = vmul.f32 %v455_v42, %v29230_v54 }
  0x97   :  { %232 = vrot.lane.b32.xlu0 %v197_v46, %s28985_s4  ;;  %230 = vrot.lane.b32.xlu1 %v196_v47, %s28985_s4  ;;  %v29325_v46 = vpop.permute.xlu0 %813 }
  0x98   :  { %v816_v47 = vmul.f32 %v29325_v46, %v29268_v8  ;;  %v818_v51 = vmul.f32 %v29325_v46, %v29284_v13  ;;  %v817_v45 = vmul.f32 %v29325_v46, %v29264_v7 }
  0x9b   :  { %236 = vrot.lane.b32.xlu0 %v199_v52, %s28985_s4  ;;  %234 = vrot.lane.b32.xlu1 %v198_v53, %s28985_s4  ;;  %v313_v52 = vmul.f32 %v29178_v32, %v29294_v17  ;;  %v312_v53 = vmul.f32 %v29178_v32, %v29278_v12  ;;  %v29420_v42 = vpop.permute.xlu0 %1037 }
  0x9f   :  { %538 = vrot.lane.b32.xlu0 %v505_v55, %s28987_s0  ;;  %536 = vrot.lane.b32.xlu1 %v504_v56, %s28987_s0  ;;  %v29348_v55 = vrot.slane %v29252_v3, %v29188_v36  ;;  %v29352_v56 = vrot.slane %v29252_v3, %v29156_v23 }
  0xa1   :  { %v708_v57 = vmul.f32 %v29348_v55, %v29270_v9  ;;  %v707_v58 = vmul.f32 %v29352_v56, %v29270_v9  ;;  %v820_v34 = vmul.f32 %v29325_v46, %v29348_v55 }
  0xa3   :  { %542 = vrot.lane.b32.xlu0 %v507_v59, %s28987_s0  ;;  %540 = vrot.lane.b32.xlu1 %v506_v60, %s28987_s0  ;;  %v315_v59 = vmul.f32 %v29178_v32, %v29316_v39  ;;  %v314_v60 = vmul.f32 %v29178_v32, %v29303_v27 }
  0xa7   :  { %344 = vrot.lane.b32.xlu0 %v309_v63, %s28986_s5  ;;  %342 = vrot.lane.b32.xlu1 %v308_v0, %s28986_s5  ;;  %v710_v63 = vmul.f32 %v29368_v61, %v29270_v9  ;;  %v709_v0 = vmul.f32 %v29372_v62, %v29270_v9 }
  0xab   :  { %348 = vrot.lane.b32.xlu0 %v311_v4, %s28986_s5  ;;  %346 = vrot.lane.b32.xlu1 %v310_v5, %s28986_s5  ;;  %v29380_v4 = vpop.permute.xlu1 %925 }
  0xac   :  { %v929_v5 = vmul.f32 %v29380_v4, %v29264_v7  ;;  %v930_v16 = vmul.f32 %v29380_v4, %v29284_v13 }
  0xaf   :  { %736 = vrot.lane.b32.xlu0 %v705_v10, %s28988_s17  ;;  %734 = vrot.lane.b32.xlu1 %v704_v11, %s28988_s17  ;;  %v928_v10 = vmul.f32 %v29380_v4, %v29268_v8  ;;  %v29388_v11 = vrot.slane %v29258_v6, %v29186_v35 }
  0xb1   :  { %35492 = vst [vmem:[#allocation15_spill] sm:$0xff] %v29388_v11 }
  0xb3   :  { %238 = vrot.lane.b32.xlu0 %v200_v14, %s28985_s4  ;;  %738 = vrot.lane.b32.xlu1 %v706_v15, %s28988_s17  ;;  %v29390_v14 = vor.u32 %v413_v2, %v412_v1  ;;  %v205_v15 = vmul.f32 %v29160_v25, %v29388_v11  ;;  %v822_v1 = vmul.f32 %v29325_v46, %v29368_v61 }
  0xb7   :  { %544 = vrot.lane.b32.xlu0 %v508_v18, %s28987_s0  ;;  %240 = vrot.lane.b32.xlu1 %v201_v26, %s28985_s4  ;;  %v463_v18 = vrot.slane %v29390_v14, %v29146_v19  ;;  %v29402_v26 = vrot.slane %v29258_v6, %v29188_v36 }
  0xb9   :  { %v513_v30 = vmul.f32 %v463_v18, %v29230_v54 }
  0xbb   :  { %242 = vrot.lane.b32.xlu0 %v202_v31, %s28985_s4  ;;  %546 = vrot.lane.b32.xlu1 %v509_v33, %s28987_s0  ;;  %v204_v31 = vmul.f32 %v29160_v25, %v29402_v26  ;;  %v459_v33 = vrot.slane %v29390_v14, %v29148_v20 }
  0xbf   :  { %548 = vrot.lane.b32.xlu0 %v510_v40, %s28987_s0  ;;  %244 = vrot.lane.b32.xlu1 %v203_v41, %s28985_s4  ;;  %v512_v40 = vmul.f32 %v459_v33, %v29230_v54  ;;  %v467_v41 = vrot.slane %v29390_v14, %v29158_v24 }
  0xc3   :  { %846 = vrot.lane.b32.xlu0 %v816_v47, %s28989_s18  ;;  %550 = vrot.lane.b32.xlu1 %v511_v50, %s28987_s0  ;;  %v514_v47 = vmul.f32 %v467_v41, %v29230_v54  ;;  %v819_v50 = vmul.f32 %v29325_v46, %v29352_v56 }
  0xc7   :  { %850 = vrot.lane.b32.xlu0 %v818_v51, %s28989_s18  ;;  %848 = vrot.lane.b32.xlu1 %v817_v45, %s28989_s18  ;;  %v29427_v51 = vrot.slane %v29258_v6, %v29194_v38  ;;  %v821_v45 = vmul.f32 %v29325_v46, %v29372_v62  ;;  %v1040_v6 = vmul.f32 %v29420_v42, %v29268_v8 }
  0xc9   :  { %35493 = vst [vmem:[#allocation16_spill] sm:$0xff] %v29427_v51 }
  0xcb   :  { %352 = vrot.lane.b32.xlu0 %v313_v52, %s28986_s5  ;;  %350 = vrot.lane.b32.xlu1 %v312_v53, %s28986_s5  ;;  %v206_v52 = vmul.f32 %v29160_v25, %v29427_v51  ;;  %v471_v53 = vrot.slane %v29390_v14, %v29156_v23  ;;  %v617_v25 = vld [vmem:[#allocation2 + $0x48] ss:$8 sm:$0xf] }
  0xcf   :  { %742 = vrot.lane.b32.xlu0 %v708_v57, %s28988_s17  ;;  %740 = vrot.lane.b32.xlu1 %v707_v58, %s28988_s17  ;;  %v29437_v57 = vpop.permute.xlu0 %90  ;;  %v515_v58 = vmul.f32 %v471_v53, %v29230_v54 }
  0xd3   :  { %356 = vrot.lane.b32.xlu0 %v315_v59, %s28986_s5  ;;  %354 = vrot.lane.b32.xlu1 %v314_v60, %s28986_s5  ;;  %v618_v59 = vld [vmem:[#allocation2 + $0x48] ss:$8 sm:$0x70]  ;;  %v29446_v60 = vpop.permute.xlu0 %1260 }
  0xd4   :  { %35494 = vst [vmem:[#allocation17_spill] sm:$0xff] %v29446_v60  ;;  %v29456_v2 = vor.u32 %v618_v59, %v617_v25 }
  0xd6   :  { %v29470_v18 = vrot.slane %v29456_v2, %v29148_v20 }
  0xd7   :  { %746 = vrot.lane.b32.xlu0 %v710_v63, %s28988_s17  ;;  %744 = vrot.lane.b32.xlu1 %v709_v0, %s28988_s17  ;;  %v29448_v63 = vpop.permute.xlu1 %1149  ;;  %v1042_v0 = vmul.f32 %v29420_v42, %v29284_v13 }
  0xd8   :  { %v712_v33 = vmul.f32 %v29470_v18, %v29270_v9 }
  0xdb   :  { %960 = vrot.lane.b32.xlu0 %v929_v5, %s28990_s19  ;;  %958 = vrot.lane.b32.xlu1 %v928_v10, %s28990_s19 }
  0xdf   :  { %248 = vrot.lane.b32.xlu0 %v205_v15, %s28985_s4  ;;  %962 = vrot.lane.b32.xlu1 %v930_v16, %s28990_s19  ;;  %v317_v15 = vmul.f32 %v29178_v32, %v29388_v11  ;;  %v1041_v16 = vmul.f32 %v29420_v42, %v29264_v7 }
  0xe3   :  { %554 = vrot.lane.b32.xlu0 %v513_v30, %s28987_s0  ;;  %246 = vrot.lane.b32.xlu1 %v204_v31, %s28985_s4 }
  0xe7   :  { %854 = vrot.lane.b32.xlu0 %v820_v34, %s28989_s18  ;;  %552 = vrot.lane.b32.xlu1 %v512_v40, %s28987_s0  ;;  %v316_v34 = vmul.f32 %v29178_v32, %v29402_v26  ;;  %v29484_v40 = vrot.slane %v29252_v3, %v29192_v37 }
  0xeb   :  { %556 = vrot.lane.b32.xlu0 %v514_v47, %s28987_s0  ;;  %852 = vrot.lane.b32.xlu1 %v819_v50, %s28989_s18  ;;  %v932_v50 = vmul.f32 %v29380_v4, %v29348_v55 }
  0xef   :  { %856 = vrot.lane.b32.xlu0 %v821_v45, %s28989_s18  ;;  %250 = vrot.lane.b32.xlu1 %v206_v52, %s28985_s4  ;;  %v711_v45 = vmul.f32 %v29484_v40, %v29270_v9  ;;  %v29498_v52 = vrot.slane %v29456_v2, %v29146_v19 }
  0xf3   :  { %1070 = vrot.lane.b32.xlu0 %v1040_v6, %s28991_s20  ;;  %558 = vrot.lane.b32.xlu1 %v515_v58, %s28987_s0  ;;  %v713_v6 = vmul.f32 %v29498_v52, %v29270_v9  ;;  %v931_v58 = vmul.f32 %v29380_v4, %v29352_v56 }
  0xf7   :  { %1074 = vrot.lane.b32.xlu0 %v1042_v0, %s28991_s20  ;;  %858 = vrot.lane.b32.xlu1 %v822_v1, %s28989_s18  ;;  %v933_v0 = vmul.f32 %v29380_v4, %v29372_v62  ;;  %v318_v1 = vmul.f32 %v29178_v32, %v29427_v51 }
  0xf8   :  { %v29458_v5 = vpop.permute.xlu0 %224  ;;  %v29460_v10 = vpop.permute.xlu1 %222 }
  0xfb   :  { %360 = vrot.lane.b32.xlu0 %v317_v15, %s28986_s5  ;;  %1072 = vrot.lane.b32.xlu1 %v1041_v16, %s28991_s20  ;;  %v29522_v15 = vrot.slane %v29456_v2, %v29158_v24 }
  0xfc   :  { %v29472_v30 = vpop.permute.xlu0 %228  ;;  %v29474_v31 = vpop.permute.xlu1 %226 }
  0xff   :  { %750 = vrot.lane.b32.xlu0 %v712_v33, %s28988_s17  ;;  %358 = vrot.lane.b32.xlu1 %v316_v34, %s28986_s5  ;;  %v1152_v34 = vmul.f32 %v29448_v63, %v29268_v8  ;;  %v479_v8 = vrot.slane %v29390_v14, %v29186_v35 }
 0x101   :  { %v29486_v41 = vpop.permute.xlu0 %336  ;;  %v29488_v47 = vpop.permute.xlu1 %334 }
 0x103   :  { %966 = vrot.lane.b32.xlu0 %v932_v50, %s28990_s19  ;;  %748 = vrot.lane.b32.xlu1 %v711_v45, %s28988_s17  ;;  %v714_v50 = vmul.f32 %v29522_v15, %v29270_v9 }
 0x105   :  { %v29500_v3 = vpop.permute.xlu0 %340  ;;  %v29502_v53 = vpop.permute.xlu1 %338 }
 0x107   :  { %752 = vrot.lane.b32.xlu0 %v713_v6, %s28988_s17  ;;  %964 = vrot.lane.b32.xlu1 %v931_v58, %s28990_s19  ;;  %v1154_v6 = vmul.f32 %v29448_v63, %v29284_v13  ;;  %v934_v58 = vmul.f32 %v29380_v4, %v29368_v61  ;;  %v475_v13 = vrot.slane %v29390_v14, %v29188_v36 }
 0x109   :  { %v29510_v25 = vpop.permute.xlu0 %232  ;;  %v29512_v59 = vpop.permute.xlu1 %230  ;;  %v516_v51 = vmul.f32 %v475_v13, %v29230_v54 }
 0x10a   :  { %35495 = vst [vmem:[#allocation18_spill] sm:$0xff] %v29510_v25 }
 0x10b   :  { %968 = vrot.lane.b32.xlu0 %v933_v0, %s28990_s19  ;;  %362 = vrot.lane.b32.xlu1 %v318_v1, %s28986_s5 }
 0x10d   :  { %v29524_v16 = vpop.permute.xlu0 %236  ;;  %v29526_v33 = vpop.permute.xlu1 %234 }
 0x10e   :  { %35496 = vst [vmem:[#allocation19_spill] sm:$0xff] %v29524_v16  ;;  %35497 = vst [vmem:[#allocation20_spill] sm:$0xff] %v29526_v33  ;;  %v938_v33 = vmul.f32 %v29380_v4, %v29522_v15 }
 0x10f   :  { %1182 = vrot.lane.b32.xlu0 %v1152_v34, %s28992_s21  ;;  %754 = vrot.lane.b32.xlu1 %v714_v50, %s28988_s17  ;;  %v517_v34 = vmul.f32 %v479_v8, %v29230_v54  ;;  %v1153_v50 = vmul.f32 %v29448_v63, %v29264_v7 }
 0x111   :  { %v29534_v32 = vpop.permute.xlu0 %538  ;;  %v29536_v45 = vpop.permute.xlu1 %536 }
 0x113   :  { %1186 = vrot.lane.b32.xlu0 %v1154_v6, %s28992_s21  ;;  %970 = vrot.lane.b32.xlu1 %v934_v58, %s28990_s19  ;;  %v824_v58 = vmul.f32 %v29325_v46, %v29470_v18 }
 0x115   :  { %v29546_v0 = vpop.permute.xlu0 %542  ;;  %v29548_v1 = vpop.permute.xlu1 %540 }
 0x117   :  { %562 = vrot.lane.b32.xlu0 %v517_v34, %s28987_s0  ;;  %1184 = vrot.lane.b32.xlu1 %v1153_v50, %s28992_s21  ;;  %v1044_v34 = vmul.f32 %v29420_v42, %v29348_v55  ;;  %v823_v50 = vmul.f32 %v29325_v46, %v29484_v40 }
 0x119   :  { %v29557_v60 = vpop.permute.xlu0 %344  ;;  %v29559_v6 = vpop.permute.xlu1 %342 }
 0x11a   :  { %35498 = vst [vmem:[#allocation21_spill] sm:$0xff] %v29557_v60  ;;  %35499 = vst [vmem:[#allocation22_spill] sm:$0xff] %v29559_v6  ;;  %v487_v60 = vrot.slane %v29390_v14, %v29192_v37 }
 0x11b   :  { %862 = vrot.lane.b32.xlu0 %v824_v58, %s28989_s18  ;;  %560 = vrot.lane.b32.xlu1 %v516_v51, %s28987_s0 }
 0x11c   :  { %v519_v58 = vmul.f32 %v487_v60, %v29230_v54 }
 0x11d   :  { %v29566_v7 = vpop.permute.xlu0 %348  ;;  %v29568_v8 = vpop.permute.xlu1 %346 }
 0x11e   :  { %35500 = vst [vmem:[#allocation23_spill] sm:$0xff] %v29566_v7  ;;  %35501 = vst [vmem:[#allocation24_spill] sm:$0xff] %v29568_v8  ;;  %v1043_v7 = vmul.f32 %v29420_v42, %v29352_v56  ;;  %v483_v8 = vrot.slane %v29390_v14, %v29194_v38 }
 0x11f   :  { %1078 = vrot.lane.b32.xlu0 %v1044_v34, %s28991_s20  ;;  %860 = vrot.lane.b32.xlu1 %v823_v50, %s28989_s18  ;;  %v826_v50 = vmul.f32 %v29325_v46, %v29522_v15 }
 0x120   :  { %v518_v11 = vmul.f32 %v483_v8, %v29230_v54  ;;  %v29610_v54 = vrot.slane %v29456_v2, %v29188_v36 }
 0x121   :  { %v29578_v13 = vpop.permute.xlu0 %736  ;;  %v29580_v51 = vpop.permute.xlu1 %734 }
 0x123   :  { %566 = vrot.lane.b32.xlu0 %v519_v58, %s28987_s0  ;;  %1076 = vrot.lane.b32.xlu1 %v1043_v7, %s28991_s20  ;;  %v1046_v7 = vmul.f32 %v29420_v42, %v29368_v61  ;;  %v825_v58 = vmul.f32 %v29325_v46, %v29498_v52 }
 0x125   :  { %v29589_v6 = vpop.permute.xlu0 %238  ;;  %v29591_v34 = vpop.permute.xlu1 %738 }
 0x126   :  { %35502 = vst [vmem:[#allocation25_spill] sm:$0xff] %v29589_v6  ;;  %v1156_v6 = vmul.f32 %v29448_v63, %v29348_v55  ;;  %v1155_v55 = vmul.f32 %v29448_v63, %v29352_v56 }
 0x127   :  { %866 = vrot.lane.b32.xlu0 %v826_v50, %s28989_s18  ;;  %564 = vrot.lane.b32.xlu1 %v518_v11, %s28987_s0  ;;  %v716_v50 = vmul.f32 %v29610_v54, %v29270_v9 }
 0x129   :  { %v29598_v60 = vpop.permute.xlu0 %544  ;;  %v29600_v14 = vpop.permute.xlu1 %240 }
 0x12a   :  { %35503 = vst [vmem:[#allocation26_spill] sm:$0xff] %v29598_v60  ;;  %35504 = vst [vmem:[#allocation27_spill] sm:$0xff] %v29600_v14  ;;  %v1045_v14 = vmul.f32 %v29420_v42, %v29372_v62 }
 0x12b   :  { %1082 = vrot.lane.b32.xlu0 %v1046_v7, %s28991_s20  ;;  %864 = vrot.lane.b32.xlu1 %v825_v58, %s28989_s18  ;;  %v29624_v7 = vrot.slane %v29456_v2, %v29156_v23 }
 0x12d   :  { %v29612_v8 = vpop.permute.xlu0 %242  ;;  %v29614_v11 = vpop.permute.xlu1 %546 }
 0x12e   :  { %35505 = vst [vmem:[#allocation28_spill] sm:$0xff] %v29612_v8  ;;  %35506 = vst [vmem:[#allocation29_spill] sm:$0xff] %v29614_v11  ;;  %v936_v11 = vmul.f32 %v29380_v4, %v29470_v18  ;;  %v715_v8 = vmul.f32 %v29624_v7, %v29270_v9 }
 0x12f   :  { %758 = vrot.lane.b32.xlu0 %v716_v50, %s28988_s17  ;;  %1080 = vrot.lane.b32.xlu1 %v1045_v14, %s28991_s20 }
 0x131   :  { %v29626_v58 = vpop.permute.xlu0 %548  ;;  %v29628_v60 = vpop.permute.xlu1 %244 }
 0x132   :  { %35507 = vst [vmem:[#allocation30_spill] sm:$0xff] %v29626_v58  ;;  %35508 = vst [vmem:[#allocation31_spill] sm:$0xff] %v29628_v60  ;;  %v935_v60 = vmul.f32 %v29380_v4, %v29484_v40  ;;  %v29648_v58 = vrot.slane %v29456_v2, %v29194_v38 }
 0x133   :  { %974 = vrot.lane.b32.xlu0 %v936_v11, %s28990_s19  ;;  %756 = vrot.lane.b32.xlu1 %v715_v8, %s28988_s17 }
 0x135   :  { %v29636_v50 = vpop.permute.xlu0 %846  ;;  %v29638_v14 = vpop.permute.xlu1 %550 }
 0x136   :  { %35509 = vst [vmem:[#allocation32_spill] sm:$0xff] %v29638_v14  ;;  %v718_v14 = vmul.f32 %v29648_v58, %v29270_v9 }
 0x137   :  { %1190 = vrot.lane.b32.xlu0 %v1156_v6, %s28992_s21  ;;  %972 = vrot.lane.b32.xlu1 %v935_v60, %s28990_s19  ;;  %v29662_v6 = vrot.slane %v29456_v2, %v29186_v35  ;;  %v1158_v2 = vmul.f32 %v29448_v63, %v29368_v61 }
 0x139   :  { %v29650_v11 = vpop.permute.xlu0 %850  ;;  %v29652_v8 = vpop.permute.xlu1 %848  ;;  %v717_v25 = vmul.f32 %v29662_v6, %v29270_v9 }
 0x13b   :  { %762 = vrot.lane.b32.xlu0 %v718_v14, %s28988_s17  ;;  %1188 = vrot.lane.b32.xlu1 %v1155_v55, %s28992_s21  ;;  %v937_v55 = vmul.f32 %v29380_v4, %v29498_v52 }
 0x13d   :  { %v29664_v60 = vpop.permute.xlu0 %352  ;;  %v29666_v16 = vpop.permute.xlu1 %350 }
 0x13e   :  { %35510 = vst [vmem:[#allocation33_spill] sm:$0xff] %v29664_v60  ;;  %35511 = vst [vmem:[#allocation34_spill] sm:$0xff] %v29666_v16  ;;  %v939_v16 = vmul.f32 %v29380_v4, %v29624_v7 }
 0x13f   :  { %978 = vrot.lane.b32.xlu0 %v938_v33, %s28990_s19  ;;  %760 = vrot.lane.b32.xlu1 %v717_v25, %s28988_s17  ;;  %v828_v25 = vmul.f32 %v29325_v46, %v29610_v54  ;;  %v1157_v33 = vmul.f32 %v29448_v63, %v29372_v62 }
 0x141   :  { %v29674_v56 = vpop.permute.xlu0 %742  ;;  %v29676_v14 = vpop.permute.xlu1 %740 }
 0x142   :  { %35512 = vst [vmem:[#allocation35_spill] sm:$0xff] %v29674_v56  ;;  %35513 = vst [vmem:[#allocation36_spill] sm:$0xff] %v29676_v14 }
 0x143   :  { %1194 = vrot.lane.b32.xlu0 %v1158_v2, %s28992_s21  ;;  %976 = vrot.lane.b32.xlu1 %v937_v55, %s28990_s19  ;;  %v1048_v2 = vmul.f32 %v29420_v42, %v29470_v18  ;;  %v827_v55 = vmul.f32 %v29325_v46, %v29624_v7 }
 0x145   :  { %v29684_v60 = vpop.permute.xlu0 %356  ;;  %v29686_v9 = vpop.permute.xlu1 %354 }
 0x146   :  { %35514 = vst [vmem:[#allocation37_spill] sm:$0xff] %v29684_v60  ;;  %35515 = vst [vmem:[#allocation38_spill] sm:$0xff] %v29686_v9  ;;  %v829_v9 = vmul.f32 %v29325_v46, %v29662_v6 }
 0x147   :  { %870 = vrot.lane.b32.xlu0 %v828_v25, %s28989_s18  ;;  %1192 = vrot.lane.b32.xlu1 %v1157_v33, %s28992_s21  ;;  %v830_v25 = vmul.f32 %v29325_v46, %v29648_v58  ;;  %v1047_v33 = vmul.f32 %v29420_v42, %v29484_v40 }
 0x149   :  { %v29694_v61 = vpop.permute.xlu0 %746  ;;  %v29696_v56 = vpop.permute.xlu1 %744 }
 0x14a   :  { %35516 = vst [vmem:[#allocation39_spill] sm:$0xff] %v29694_v61  ;;  %35517 = vst [vmem:[#allocation40_spill] sm:$0xff] %v29696_v56  ;;  %v1050_v56 = vmul.f32 %v29420_v42, %v29522_v15 }
 0x14b   :  { %1086 = vrot.lane.b32.xlu0 %v1048_v2, %s28991_s20  ;;  %868 = vrot.lane.b32.xlu1 %v827_v55, %s28989_s18  ;;  %v29717_v2 = vld [vmem:[%s35370_s1] sm:$0xff] }
 0x14c   :  { %v1300_v46 = vrot.slane %v29717_v2, %v29148_v20 }
 0x14d   :  { %v29704_v60 = vpop.permute.xlu0 %960  ;;  %v29706_v62 = vpop.permute.xlu1 %958 }
 0x14f   :  { %874 = vrot.lane.b32.xlu0 %v830_v25, %s28989_s18  ;;  %1084 = vrot.lane.b32.xlu1 %v1047_v33, %s28991_s20  ;;  %v1304_v25 = vrot.slane %v29717_v2, %v29146_v19 }
 0x151   :  { %v29719_v55 = vpop.permute.xlu0 %248  ;;  %v29721_v61 = vpop.permute.xlu1 %962 }
 0x152   :  { %35518 = vst [vmem:[#allocation41_spill] sm:$0xff] %v29719_v55  ;;  %v1049_v55 = vmul.f32 %v29420_v42, %v29498_v52 }
 0x153   :  { %1090 = vrot.lane.b32.xlu0 %v1050_v56, %s28991_s20  ;;  %872 = vrot.lane.b32.xlu1 %v829_v9, %s28989_s18  ;;  %s28998_s18 = smov 99  }
 0x155   :  { %v29731_v33 = vpop.permute.xlu0 %554  ;;  %v29733_v14 = vpop.permute.xlu1 %246 }
 0x156   :  { %35519 = vst [vmem:[#allocation42_spill] sm:$0xff] %v29731_v33  ;;  %35520 = vst [vmem:[#allocation43_spill] sm:$0xff] %v29733_v14  ;;  %v1308_v33 = vrot.slane %v29717_v2, %v29158_v24  ;;  %v1159_v14 = vmul.f32 %v29448_v63, %v29484_v40 }
 0x157   :  { %1359 = vrot.lane.b32.xlu0 %v1304_v25, %s28988_s17  ;;  %1088 = vrot.lane.b32.xlu1 %v1049_v55, %s28991_s20 }
 0x159   :  { %v29741_v56 = vpop.permute.xlu0 %854  ;;  %v29743_v9 = vpop.permute.xlu1 %552 }
 0x15a   :  { %35521 = vst [vmem:[#allocation44_spill] sm:$0xff] %v29741_v56  ;;  %35522 = vst [vmem:[#allocation45_spill] sm:$0xff] %v29743_v9 }
 0x15b   :  { %980 = vrot.lane.b32.xlu0 %v939_v16, %s28990_s19  ;;  %1357 = vrot.lane.b32.xlu1 %v1300_v46, %s28988_s17  ;;  %v941_v16 = vmul.f32 %v29380_v4, %v29662_v6  ;;  %v940_v46 = vmul.f32 %v29380_v4, %v29610_v54 }
 0x15d   :  { %v29751_v25 = vpop.permute.xlu0 %556  ;;  %v29753_v55 = vpop.permute.xlu1 %852 }
 0x15e   :  { %35523 = vst [vmem:[#allocation46_spill] sm:$0xff] %v29751_v25 }
 0x15f   :  { %1196 = vrot.lane.b32.xlu0 %v1159_v14, %s28992_s21  ;;  %1361 = vrot.lane.b32.xlu1 %v1308_v33, %s28988_s17  ;;  %v1161_v14 = vmul.f32 %v29448_v63, %v29498_v52  ;;  %v1160_v33 = vmul.f32 %v29448_v63, %v29470_v18  ;;  %v1312_v18 = vrot.slane %v29717_v2, %v29156_v23 }
 0x161   :  { %v29759_v56 = vpop.permute.xlu0 %856  ;;  %v29761_v9 = vpop.permute.xlu1 %250 }
 0x162   :  { %35524 = vst [vmem:[#allocation47_spill] sm:$0xff] %v29759_v56  ;;  %35525 = vst [vmem:[#allocation48_spill] sm:$0xff] %v29761_v9 }
 0x163   :  { %984 = vrot.lane.b32.xlu0 %v941_v16, %s28990_s19  ;;  %982 = vrot.lane.b32.xlu1 %v940_v46, %s28990_s19  ;;  %v1051_v16 = vmul.f32 %v29420_v42, %v29624_v7  ;;  %v942_v46 = vmul.f32 %v29380_v4, %v29648_v58 }
 0x165   :  { %v29769_v25 = vpop.permute.xlu0 %1070  ;;  %v29771_v40 = vpop.permute.xlu1 %558 }
 0x167   :  { %1200 = vrot.lane.b32.xlu0 %v1161_v14, %s28992_s21  ;;  %1198 = vrot.lane.b32.xlu1 %v1160_v33, %s28992_s21  ;;  %v1162_v33 = vmul.f32 %v29448_v63, %v29522_v15  ;;  %v1320_v15 = vrot.slane %v29717_v2, %v29186_v35 }
 0x169   :  { %v29779_v9 = vpop.permute.xlu0 %1074  ;;  %v29781_v56 = vpop.permute.xlu1 %858 }
 0x16a   :  { %35526 = vst [vmem:[#allocation49_spill] sm:$0xff] %v29781_v56 }
 0x16b   :  { %1092 = vrot.lane.b32.xlu0 %v1051_v16, %s28991_s20  ;;  %986 = vrot.lane.b32.xlu1 %v942_v46, %s28990_s19  ;;  %v1053_v16 = vmul.f32 %v29420_v42, %v29662_v6  ;;  %v1052_v46 = vmul.f32 %v29420_v42, %v29610_v54 }
 0x16d   :  { %v29791_v52 = vpop.permute.xlu0 %360  ;;  %v29793_v14 = vpop.permute.xlu1 %1072 }
 0x16e   :  { %35527 = vst [vmem:[#allocation50_spill] sm:$0xff] %v29791_v52 }
 0x16f   :  { %1363 = vrot.lane.b32.xlu0 %v1312_v18, %s28988_s17  ;;  %1202 = vrot.lane.b32.xlu1 %v1162_v33, %s28992_s21  ;;  %v1316_v18 = vrot.slane %v29717_v2, %v29188_v36 }
 0x171   :  { %v29799_v56 = vpop.permute.xlu0 %750  ;;  %v29801_v4 = vpop.permute.xlu1 %358 }
 0x172   :  { %35528 = vst [vmem:[#allocation51_spill] sm:$0xff] %v29799_v56  ;;  %35529 = vst [vmem:[#allocation52_spill] sm:$0xff] %v29801_v4 }
 0x173   :  { %1096 = vrot.lane.b32.xlu0 %v1053_v16, %s28991_s20  ;;  %1094 = vrot.lane.b32.xlu1 %v1052_v46, %s28991_s20  ;;  %v1163_v16 = vmul.f32 %v29448_v63, %v29624_v7  ;;  %v1054_v46 = vmul.f32 %v29420_v42, %v29648_v58  ;;  %v1328_v42 = vrot.slane %v29717_v2, %v29192_v37  ;;  %v1294_v7 = vld [vmem:[%s35370_s1 + $0x8] sm:$0x7f]  ;;  %s28993_s1 = smov 31  }
 0x174   :  { %v1332_v37 = vrot.slane %v1294_v7, %v29148_v20 }
 0x175   :  { %v29813_v33 = vpop.permute.xlu0 %966  ;;  %v29815_v56 = vpop.permute.xlu1 %748 }
 0x176   :  { %35530 = vst [vmem:[#allocation53_spill] sm:$0xff] %v29815_v56  ;;  %v1324_v56 = vrot.slane %v29717_v2, %v29194_v38 }
 0x177   :  { %1367 = vrot.lane.b32.xlu0 %v1320_v15, %s28988_s17  ;;  %1365 = vrot.lane.b32.xlu1 %v1316_v18, %s28988_s17 }
 0x179   :  { %v29819_v52 = vpop.permute.xlu0 %752  ;;  %v29821_v4 = vpop.permute.xlu1 %964 }
 0x17a   :  { %35531 = vst [vmem:[#allocation54_spill] sm:$0xff] %v29819_v52  ;;  %v1165_v52 = vmul.f32 %v29448_v63, %v29662_v6  ;;  %v1336_v6 = vrot.slane %v1294_v7, %v29146_v19  ;;  %v1340_v19 = vrot.slane %v1294_v7, %v29158_v24 }
 0x17b   :  { %1204 = vrot.lane.b32.xlu0 %v1163_v16, %s28992_s21  ;;  %1098 = vrot.lane.b32.xlu1 %v1054_v46, %s28991_s20  ;;  %s29009_s20 = smov 8  }
 0x17d   :  { %v29831_v15 = vpop.permute.xlu0 %968  ;;  %v29833_v18 = vpop.permute.xlu1 %362 }
 0x17e   :  { %35532 = vst [vmem:[#allocation55_spill] sm:$0xff] %v29833_v18  ;;  %v1164_v18 = vmul.f32 %v29448_v63, %v29610_v54  ;;  %v1344_v54 = vrot.slane %v1294_v7, %v29156_v23 }
 0x17f   :  { %1208 = vrot.lane.b32.xlu0 %v1165_v52, %s28992_s21  ;;  %1369 = vrot.lane.b32.xlu1 %v1324_v56, %s28988_s17  ;;  %v1166_v52 = vmul.f32 %v29448_v63, %v29648_v58  ;;  %v1352_v63 = vrot.slane %v1294_v7, %v29186_v35 }
 0x181   :  { %v29844_v16 = vpop.permute.xlu0 %1182  ;;  %v29846_v46 = vpop.permute.xlu1 %754 }
 0x183   :  { %1371 = vrot.lane.b32.xlu0 %v1328_v42, %s28988_s17  ;;  %1206 = vrot.lane.b32.xlu1 %v1164_v18, %s28992_s21 }
 0x185   :  { %v29853_v56 = vpop.permute.xlu0 %1186  ;;  %v29855_v2 = vpop.permute.xlu1 %970 }
 0x187   :  { %1210 = vrot.lane.b32.xlu1 %v1166_v52, %s28992_s21  ;;  %1375 = vrot.lane.b32.xlu0 %v1336_v6, %s28988_s17  ;;  %v1348_v6 = vrot.slane %v1294_v7, %v29188_v36 }
 0x189   :  { %v29863_v42 = vpop.permute.xlu0 %562  ;;  %v29865_v18 = vpop.permute.xlu1 %1184 }
 0x18b   :  { %1373 = vrot.lane.b32.xlu1 %v1332_v37, %s28988_s17  ;;  %1379 = vrot.lane.b32.xlu0 %v1344_v54, %s28988_s17  ;;  %v1356_v37 = vrot.slane %v1294_v7, %v29194_v38 }
 0x18d   :  { %v29871_v58 = vpop.permute.xlu0 %862  ;;  %v29873_v52 = vpop.permute.xlu1 %560 }
 0x18e   :  { %35533 = vst [vmem:[#allocation56_spill] sm:$0xff] %v29871_v58 }
 0x18f   :  { %1377 = vrot.lane.b32.xlu1 %v1340_v19, %s28988_s17  ;;  %1383 = vrot.lane.b32.xlu0 %v1352_v63, %s28988_s17 }
 0x191   :  { %v29878_v23 = vpop.permute.xlu0 %1078  ;;  %v29880_v20 = vpop.permute.xlu1 %860 }
 0x192   :  { %35534 = vst [vmem:[#allocation57_spill] sm:$0xff] %v29880_v20 }
 0x193   :  { %1381 = vrot.lane.b32.xlu1 %v1348_v6, %s28988_s17 }
 0x195   :  { %v29884_v54 = vpop.permute.xlu0 %566  ;;  %v29886_v35 = vpop.permute.xlu1 %1076 }
 0x196   :  { %35535 = vst [vmem:[#allocation58_spill] sm:$0xff] %v29884_v54 }
 0x197   :  { %1385 = vrot.lane.b32.xlu1 %v1356_v37, %s28988_s17 }
 0x199   :  { %v29889_v24 = vpop.permute.xlu0 %866  ;;  %v29891_v19 = vpop.permute.xlu1 %564 }
 0x19a   :  { %35536 = vst [vmem:[#allocation59_spill] sm:$0xff] %v29889_v24  ;;  %35537 = vst [vmem:[#allocation60_spill] sm:$0xff] %v29891_v19 }
 0x19d   :  { %v29893_v63 = vpop.permute.xlu0 %1082  ;;  %v29895_v36 = vpop.permute.xlu1 %864 }
 0x19e   :  { %35538 = vst [vmem:[#allocation61_spill] sm:$0xff] %v29893_v63  ;;  %35539 = vst [vmem:[#allocation62_spill] sm:$0xff] %v29895_v36 }
 0x1a1   :  { %v29897_v58 = vpop.permute.xlu0 %758  ;;  %v29899_v20 = vpop.permute.xlu1 %1080 }
 0x1a2   :  { %35540 = vst [vmem:[#allocation63_spill] sm:$0xff] %v29897_v58  ;;  %v170_v58 = vmul.f32 %v29154_v22, %v29437_v57  ;;  %v366_v22 = vsel %vm364_vm3, %v29486_v41, %v29502_v53 }
 0x1a5   :  { %v29901_v6 = vpop.permute.xlu0 %974  ;;  %v29903_v7 = vpop.permute.xlu1 %756 }
 0x1a6   :  { %35541 = vst [vmem:[#allocation64_spill] sm:$0xff] %v29901_v6  ;;  %35542 = vst [vmem:[#allocation65_spill] sm:$0xff] %v29903_v7  ;;  %v253_v6 = vsel %vm252_vm2, %v29460_v10, %v29458_v5  ;;  %v254_v7 = vsel %vm252_vm2, %v29458_v5, %v29474_v31  ;;  %v172_v5 = vmul.f32 %v29170_v29, %v29437_v57 }
 0x1a7   :  { %v282_v10 = vadd.f32 %v253_v6, %v170_v58  ;;  %v173_v58 = vmul.f32 %v29167_v28, %v29437_v57  ;;  %v174_v29 = vmul.f32 %v29204_v44, %v29437_v57  ;;  %v367_v28 = vsel %vm364_vm3, %v29502_v53, %v29500_v3 }
 0x1a8   :  { %v765_v44 = vsel %vm764_vm5, %v29580_v51, %v29578_v13 }
 0x1a9   :  { %v29905_v38 = vpop.permute.xlu0 %1190  ;;  %v29907_v54 = vpop.permute.xlu1 %972 }
 0x1aa   :  { %35543 = vst [vmem:[#allocation66_spill] sm:$0xff] %v29907_v54 }
 0x1ad   :  { %v29909_v37 = vpop.permute.xlu0 %762  ;;  %v29911_v24 = vpop.permute.xlu1 %1188 }
 0x1ae   :  { %35544 = vst [vmem:[#allocation67_spill] sm:$0xff] %v29909_v37  ;;  %v171_v37 = vmul.f32 %v29151_v21, %v29437_v57  ;;  %v569_v21 = vsel %vm568_vm4, %v29536_v45, %v29534_v32  ;;  %v175_v45 = vmul.f32 %v29201_v43, %v29437_v57  ;;  %v29968_v43 = vmul.f32 %v29215_v48, %v29437_v57 }
 0x1af   :  { %v29983_v48 = vmul.f32 %v29294_v17, %v29437_v57  ;;  %v989_v17 = vsel %vm988_vm7, %v29706_v62, %v29704_v60 }
 0x1b0   :  { %v283_v19 = vadd.f32 %v254_v7, %v171_v37 }
 0x1b1   :  { %v29913_v63 = vpop.permute.xlu0 %978  ;;  %v29915_v36 = vpop.permute.xlu1 %760 }
 0x1b2   :  { %35545 = vst [vmem:[#allocation68_spill] sm:$0xff] %v29913_v63  ;;  %35546 = vst [vmem:[#allocation69_spill] sm:$0xff] %v29915_v36  ;;  %v365_v63 = vsel %vm364_vm3, %v29488_v47, %v29486_v41  ;;  %v255_v47 = vsel %vm252_vm2, %v29474_v31, %v29472_v30  ;;  %v570_v41 = vsel %vm568_vm4, %v29534_v32, %v29548_v1 }
 0x1b3   :  { %v395_v6 = vadd.f32 %v366_v22, %v283_v19  ;;  %v176_v31 = vmul.f32 %v29218_v49, %v29437_v57  ;;  %v284_v19 = vadd.f32 %v255_v47, %v172_v5  ;;  %v877_v49 = vsel %vm876_vm6, %v29636_v50, %v29652_v8 }
 0x1b5   :  { %v29930_v36 = vpop.permute.xlu0 %1194  ;;  %v29932_v54 = vpop.permute.xlu1 %976  ;;  %v396_v22 = vadd.f32 %v367_v28, %v284_v19  ;;  %v30002_v28 = vmul.f32 %v29316_v39, %v29437_v57  ;;  %v256_v39 = vsel %vm252_vm2, %v29472_v30, %v29512_v59 }
 0x1b6   :  { %35547 = vst [vmem:[#allocation70_spill] sm:$0xff] %v29930_v36  ;;  %v394_v36 = vadd.f32 %v365_v63, %v282_v10  ;;  %v600_v63 = vadd.f32 %v570_v41, %v395_v6  ;;  %v571_v10 = vsel %vm568_vm4, %v29548_v1, %v29546_v0 }
 0x1b7   :  { %v601_v41 = vadd.f32 %v571_v10, %v396_v22  ;;  %v35554_v22 = vld [vmem:[#allocation19_spill] sm:$0xff] }
 0x1b8   :  { %v599_v32 = vadd.f32 %v569_v21, %v394_v36  ;;  %v29976_v36 = vmul.f32 %v29278_v12, %v29437_v57  ;;  %v795_v5 = vadd.f32 %v765_v44, %v600_v63  ;;  %v766_v12 = vsel %vm764_vm5, %v29578_v13, %v29591_v34  ;;  %v35551_v44 = vld [vmem:[#allocation18_spill] sm:$0xff] }
 0x1b9   :  { %v29954_v7 = vpop.permute.xlu0 %870  ;;  %v29956_v37 = vpop.permute.xlu1 %1192  ;;  %v878_v13 = vsel %vm876_vm6, %v29652_v8, %v29650_v11  ;;  %v257_v19 = vsel %vm252_vm2, %v29512_v59, %v35551_v44  ;;  %v796_v63 = vadd.f32 %v766_v12, %v601_v41  ;;  %v1213_v59 = vsel %vm1212_vm9, %v29844_v16, %v29865_v18 }
 0x1ba   :  { %35548 = vst [vmem:[#allocation71_spill] sm:$0xff] %v29954_v7  ;;  %v794_v53 = vadd.f32 %v29580_v51, %v599_v32  ;;  %v29994_v51 = vmul.f32 %v29303_v27, %v29437_v57  ;;  %v907_v6 = vadd.f32 %v877_v49, %v795_v5  ;;  %v1101_v32 = vsel %vm1100_vm8, %v29769_v25, %v29793_v14 }
 0x1bb   :  { %v990_v49 = vsel %vm988_vm7, %v29704_v60, %v29721_v61  ;;  %v908_v12 = vadd.f32 %v878_v13, %v796_v63 }
 0x1bc   :  { %v906_v47 = vadd.f32 %v29636_v50, %v794_v53  ;;  %v30010_v50 = vmul.f32 %v29402_v26, %v29437_v57  ;;  %v1019_v8 = vadd.f32 %v989_v17, %v907_v6  ;;  %v35553_v26 = vld [vmem:[#allocation20_spill] sm:$0xff]  ;;  %v285_v6 = vadd.f32 %v256_v39, %v173_v58  ;;  %v35559_v58 = vld [vmem:[#allocation22_spill] sm:$0xff]  ;;  %v35560_v39 = vld [vmem:[#allocation21_spill] sm:$0xff] }
 0x1bd   :  { %v29985_v21 = vpop.permute.xlu0 %1086  ;;  %v29987_v1 = vpop.permute.xlu1 %868  ;;  %v258_v53 = vsel %vm252_vm2, %v35551_v44, %v35553_v26  ;;  %v259_v5 = vsel %vm252_vm2, %v35553_v26, %v35554_v22  ;;  %v35556_v44 = vld [vmem:[#allocation16_spill] sm:$0xff]  ;;  %v1020_v26 = vadd.f32 %v990_v49, %v908_v12  ;;  %v35564_v49 = vld [vmem:[#allocation26_spill] sm:$0xff] }
 0x1be   :  { %35549 = vst [vmem:[#allocation72_spill] sm:$0xff] %v29985_v21  ;;  %35550 = vst [vmem:[#allocation73_spill] sm:$0xff] %v29987_v1  ;;  %v1018_v27 = vadd.f32 %v29706_v62, %v906_v47  ;;  %v35555_v47 = vld [vmem:[#allocation15_spill] sm:$0xff]  ;;  %v1131_v41 = vadd.f32 %v1101_v32, %v1019_v8  ;;  %v30044_v60 = vmul.f32 %v35556_v44, %v29437_v57 }
 0x1bf   :  { %v30040_v17 = vmul.f32 %v35555_v47, %v29437_v57  ;;  %v287_v21 = vadd.f32 %v258_v53, %v175_v45  ;;  %v288_v32 = vadd.f32 %v259_v5, %v176_v31  ;;  %v368_v57 = vsel %vm364_vm3, %v29500_v3, %v35559_v58  ;;  %v35562_v45 = vld [vmem:[#allocation23_spill] sm:$0xff]  ;;  %v35566_v5 = vld [vmem:[#allocation28_spill] sm:$0xff] }
 0x1c0   :  { %v1130_v30 = vadd.f32 %v29769_v25, %v1018_v27  ;;  %v1102_v25 = vsel %vm1100_vm8, %v29793_v14, %v29779_v9  ;;  %v1243_v13 = vadd.f32 %v1213_v59, %v1131_v41  ;;  %v369_v8 = vsel %vm364_vm3, %v35559_v58, %v35560_v39  ;;  %v35565_v59 = vld [vmem:[#allocation27_spill] sm:$0xff]  ;;  %v35567_v41 = vld [vmem:[#allocation17_spill] sm:$0xff] }
 0x1c1   :  { %v30021_v10 = vpop.permute.xlu0 %874  ;;  %v30023_v62 = vpop.permute.xlu1 %1084  ;;  %v1214_v14 = vsel %vm1212_vm9, %v29865_v18, %v29853_v56  ;;  %v1132_v53 = vadd.f32 %v1102_v25, %v1020_v26  ;;  %v262_v12 = vsel %vm252_vm2, %v35565_v59, %v35566_v5  ;;  %v397_v58 = vadd.f32 %v368_v57, %v285_v6 }
 0x1c2   :  { %35552 = vst [vmem:[#allocation18_spill] sm:$0xff] %v30021_v10  ;;  %v1242_v27 = vadd.f32 %v29844_v16, %v1130_v30  ;;  %v286_v10 = vadd.f32 %v257_v19, %v174_v29  ;;  %v35561_v16 = vld [vmem:[#allocation24_spill] sm:$0xff]  ;;  %v35563_v19 = vld [vmem:[#allocation25_spill] sm:$0xff]  ;;  %v572_v30 = vsel %vm568_vm4, %v29546_v0, %v35564_v49  ;;  %v1264_v26 = vadd.f32 %v35567_v41, %v1243_v13 }
 0x1c3   :  { %v370_v29 = vsel %vm364_vm3, %v35560_v39, %v35561_v16  ;;  %v371_v31 = vsel %vm364_vm3, %v35561_v16, %v35562_v45  ;;  %v260_v3 = vsel %vm252_vm2, %v35554_v22, %v35563_v19  ;;  %v261_v18 = vsel %vm252_vm2, %v35563_v19, %v35565_v59  ;;  %v35568_v39 = vld [vmem:[#allocation29_spill] sm:$0xff] }
 0x1c4   :  { %v1263_v44 = vadd.f32 %v35567_v41, %v1242_v27  ;;  %v573_v22 = vsel %vm568_vm4, %v35564_v49, %v35568_v39  ;;  %v1244_v25 = vadd.f32 %v1214_v14, %v1132_v53  ;;  %v400_v19 = vadd.f32 %v371_v31, %v288_v32  ;;  %v35569_v27 = vld [vmem:[#allocation30_spill] sm:$0xff]  ;;  %v35570_v53 = vld [vmem:[#allocation31_spill] sm:$0xff]  ;;  %v35571_v49 = vld [vmem:[#allocation32_spill] sm:$0xff] }
 0x1c5   :  { %v30050_v63 = vpop.permute.xlu0 %1090  ;;  %v30052_v47 = vpop.permute.xlu1 %872  ;;  %v289_v7 = vadd.f32 %v260_v3, %v29968_v43  ;;  %v602_v1 = vadd.f32 %v572_v30, %v397_v58  ;;  %v290_v59 = vadd.f32 %v261_v18, %v29976_v36  ;;  %v291_v6 = vadd.f32 %v262_v12, %v29983_v48  ;;  %v35572_v43 = vld [vmem:[#allocation34_spill] sm:$0xff]  ;;  %v35573_v32 = vld [vmem:[#allocation33_spill] sm:$0xff]  ;;  %v35574_v30 = vld [vmem:[#allocation36_spill] sm:$0xff] }
 0x1c6   :  { %35557 = vst [vmem:[#allocation20_spill] sm:$0xff] %v30050_v63  ;;  %35558 = vst [vmem:[#allocation19_spill] sm:$0xff] %v30052_v47  ;;  %v398_v63 = vadd.f32 %v369_v8, %v286_v10  ;;  %v399_v47 = vadd.f32 %v370_v29, %v287_v21  ;;  %v574_v57 = vsel %vm568_vm4, %v35568_v39, %v35569_v27  ;;  %v1278_v10 = vmax.f32 %v1263_v44, 0.0  ;;  %v35575_v58 = vld [vmem:[#allocation35_spill] sm:$0xff] }
 0x1c7   :  { %v263_v13 = vsel %vm252_vm2, %v35566_v5, %v35570_v53  ;;  %v575_v21 = vsel %vm568_vm4, %v35569_v27, %v35571_v49  ;;  %v372_v36 = vsel %vm364_vm3, %v35562_v45, %v35572_v43  ;;  %v373_v48 = vsel %vm364_vm3, %v35572_v43, %v35573_v32  ;;  %v35579_v43 = vld [vmem:[#allocation39_spill] sm:$0xff] }
 0x1c8   :  { %v603_v14 = vadd.f32 %v573_v22, %v398_v63  ;;  %v1265_v8 = vadd.f32 %v35567_v41, %v1244_v25  ;;  %v1279_v29 = vmax.f32 %v1264_v26, 0.0  ;;  %v604_v3 = vadd.f32 %v574_v57, %v399_v47  ;;  %v35576_v26 = vld [vmem:[#allocation38_spill] sm:$0xff] }
 0x1c9   :  { %v1360_v16 = vpop.permute.xlu0 %1359  ;;  %v30086_v0 = vpop.permute.xlu1 %1088  ;;  %v767_v18 = vsel %vm764_vm5, %v29591_v34, %v35574_v30  ;;  %v292_v45 = vadd.f32 %v263_v13, %v29994_v51  ;;  %v605_v44 = vadd.f32 %v575_v21, %v400_v19  ;;  %v768_v39 = vsel %vm764_vm5, %v35574_v30, %v35575_v58  ;;  %v35577_v19 = vld [vmem:[#allocation37_spill] sm:$0xff]  ;;  %v35578_v13 = vld [vmem:[#allocation40_spill] sm:$0xff] }
 0x1ca   :  { %v401_v25 = vadd.f32 %v372_v36, %v289_v7  ;;  %v402_v27 = vadd.f32 %v373_v48, %v290_v59  ;;  %v374_v47 = vsel %vm364_vm3, %v35573_v32, %v35576_v26  ;;  %v879_v34 = vsel %vm876_vm6, %v29650_v11, %v29753_v55 }
 0x1cb   :  { %v797_v51 = vadd.f32 %v767_v18, %v602_v1  ;;  %v375_v57 = vsel %vm364_vm3, %v35576_v26, %v35577_v19  ;;  %v769_v7 = vsel %vm764_vm5, %v35575_v58, %v35578_v13  ;;  %v1280_v21 = vmax.f32 %v1265_v8, 0.0 }
 0x1cc   :  { %v798_v11 = vadd.f32 %v768_v39, %v603_v14  ;;  %v770_v1 = vsel %vm764_vm5, %v35578_v13, %v35579_v43  ;;  %v991_v36 = vsel %vm988_vm7, %v29721_v61, %v29821_v4  ;;  %v403_v48 = vadd.f32 %v374_v47, %v291_v6  ;;  %v35582_v39 = vld [vmem:[#allocation45_spill] sm:$0xff]  ;;  %v35583_v6 = vld [vmem:[#allocation42_spill] sm:$0xff] }
 0x1cd   :  { %v30107_v63 = vpop.permute.xlu0 %980  ;;  %v1358_v31 = vpop.permute.xlu1 %1357  ;;  %v909_v8 = vadd.f32 %v879_v34, %v797_v51  ;;  %v404_v18 = vadd.f32 %v375_v57, %v292_v45  ;;  %v799_v14 = vadd.f32 %v769_v7, %v604_v3  ;;  %v1103_v61 = vsel %vm1100_vm8, %v29779_v9, %v29886_v35  ;;  %v35584_v47 = vld [vmem:[#allocation46_spill] sm:$0xff]  ;;  %v35586_v57 = vld [vmem:[#allocation47_spill] sm:$0xff]  ;;  %v35587_v7 = vld [vmem:[#allocation48_spill] sm:$0xff] }
 0x1ce   :  { %v1387_v5 = vsel %vm764_vm5, %v1358_v31, %v1360_v16  ;;  %v1416_v12 = vmul.f32 %v1358_v31, %v1278_v10  ;;  %v800_v58 = vadd.f32 %v770_v1, %v605_v44  ;;  %v578_v9 = vsel %vm568_vm4, %v35583_v6, %v35584_v47  ;;  %v35585_v44 = vld [vmem:[#allocation44_spill] sm:$0xff] }
 0x1cf   :  { %v1417_v22 = vmul.f32 %v1387_v5, %v1279_v29  ;;  %v35580_v29 = vld [vmem:[#allocation43_spill] sm:$0xff]  ;;  %v35581_v5 = vld [vmem:[#allocation41_spill] sm:$0xff]  ;;  %v1215_v34 = vsel %vm1212_vm9, %v29853_v56, %v29911_v24  ;;  %v881_v13 = vsel %vm876_vm6, %v35585_v44, %v35586_v57 }
 0x1d0   :  { %1446 = vrot.lane.b32.xlu0 %v1416_v12, %s28993_s1  ;;  %v264_v31 = vsel %vm252_vm2, %v35570_v53, %v35580_v29  ;;  %v265_v12 = vsel %vm252_vm2, %v35580_v29, %v35581_v5  ;;  %v577_v53 = vsel %vm568_vm4, %v35582_v39, %v35583_v6  ;;  %v35591_v6 = vld [vmem:[#allocation53_spill] sm:$0xff] }
 0x1d1   :  { %v30130_v59 = vpop.permute.xlu0 %1196  ;;  %1448 = vrot.lane.b32.xlu1 %v1417_v22, %s28993_s1  ;;  %v30133_v10 = vpop.permute.xlu1 %1361  ;;  %v1021_v22 = vadd.f32 %v991_v36, %v909_v8  ;;  %v293_v26 = vadd.f32 %v264_v31, %v30002_v28  ;;  %v294_v51 = vadd.f32 %v265_v12, %v30010_v50  ;;  %v266_v28 = vsel %vm252_vm2, %v35581_v5, %v35587_v7 }
 0x1d2   :  { %v1388_v32 = vsel %vm764_vm5, %v1360_v16, %v30133_v10  ;;  %v576_v16 = vsel %vm568_vm4, %v35571_v49, %v35582_v39  ;;  %v880_v49 = vsel %vm876_vm6, %v29753_v55, %v35585_v44  ;;  %v607_v36 = vadd.f32 %v577_v53, %v402_v27  ;;  %v35589_v39 = vld [vmem:[#allocation52_spill] sm:$0xff]  ;;  %v35592_v53 = vld [vmem:[#allocation51_spill] sm:$0xff] }
 0x1d3   :  { %v1418_v30 = vmul.f32 %v1388_v32, %v1280_v21  ;;  %v1133_v21 = vadd.f32 %v1103_v61, %v1021_v22  ;;  %v606_v1 = vadd.f32 %v576_v16, %v401_v25  ;;  %v579_v55 = vsel %vm568_vm4, %v35584_v47, %v29771_v40  ;;  %v35588_v32 = vld [vmem:[#allocation49_spill] sm:$0xff]  ;;  %v35590_v16 = vld [vmem:[#allocation50_spill] sm:$0xff] }
 0x1d4   :  { %v882_v56 = vsel %vm876_vm6, %v35586_v57, %v35588_v32  ;;  %v608_v50 = vadd.f32 %v578_v9, %v403_v48  ;;  %v910_v29 = vadd.f32 %v880_v49, %v798_v11  ;;  %v296_v31 = vadd.f32 %v35587_v7, %v30044_v60  ;;  %v35594_v57 = vld [vmem:[#allocation55_spill] sm:$0xff] }
 0x1d5   :  { %v30158_v45 = vpop.permute.xlu0 %984  ;;  %v30160_v3 = vpop.permute.xlu1 %982  ;;  %1450 = vrot.lane.b32.xlu0 %v1418_v30, %s28993_s1  ;;  %v1245_v8 = vadd.f32 %v1215_v34, %v1133_v21  ;;  %v911_v25 = vadd.f32 %v881_v13, %v799_v14  ;;  %v295_v27 = vadd.f32 %v266_v28, %v30040_v17  ;;  %v992_v12 = vsel %vm988_vm7, %v29821_v4, %v29813_v33 }
 0x1d6   :  { %v993_v48 = vsel %vm988_vm7, %v29813_v33, %v29831_v15  ;;  %v609_v11 = vadd.f32 %v579_v55, %v404_v18  ;;  %v912_v61 = vadd.f32 %v882_v56, %v800_v58  ;;  %v376_v60 = vsel %vm364_vm3, %v35577_v19, %v35589_v39  ;;  %v35593_v18 = vld [vmem:[#allocation54_spill] sm:$0xff] }
 0x1d7   :  { %v377_v14 = vsel %vm364_vm3, %v35589_v39, %v35590_v16  ;;  %v771_v17 = vsel %vm764_vm5, %v35579_v43, %v35591_v6  ;;  %v772_v4 = vsel %vm764_vm5, %v35591_v6, %v35592_v53  ;;  %v1104_v33 = vsel %vm1100_vm8, %v29886_v35, %v29878_v23  ;;  %v35598_v6 = vld [vmem:[#allocation58_spill] sm:$0xff] }
 0x1d8   :  { %v1105_v19 = vsel %vm1100_vm8, %v29878_v23, %v29899_v20  ;;  %v773_v58 = vsel %vm764_vm5, %v35592_v53, %v35593_v18  ;;  %v1022_v22 = vadd.f32 %v992_v12, %v910_v29  ;;  %v1023_v47 = vadd.f32 %v993_v48, %v911_v25  ;;  %v35600_v53 = vld [vmem:[#allocation62_spill] sm:$0xff] }
 0x1d9   :  { %v30188_v30 = vpop.permute.xlu0 %1200  ;;  %v30190_v5 = vpop.permute.xlu1 %1198  ;;  %v1266_v43 = vadd.f32 %v35567_v41, %v1245_v8  ;;  %v405_v49 = vadd.f32 %v376_v60, %v293_v26  ;;  %v406_v34 = vadd.f32 %v377_v14, %v294_v51  ;;  %v1216_v35 = vsel %vm1212_vm9, %v29911_v24, %v29905_v38  ;;  %v35596_v14 = vld [vmem:[#allocation56_spill] sm:$0xff] }
 0x1da   :  { %v1217_v23 = vsel %vm1212_vm9, %v29905_v38, %v29956_v37  ;;  %v378_v13 = vsel %vm364_vm3, %v35590_v16, %v35594_v57  ;;  %v774_v7 = vsel %vm764_vm5, %v35593_v18, %v29846_v46  ;;  %v1134_v28 = vadd.f32 %v1104_v33, %v1022_v22  ;;  %v35601_v22 = vld [vmem:[#allocation66_spill] sm:$0xff] }
 0x1db   :  { %v1135_v21 = vadd.f32 %v1105_v19, %v1023_v47  ;;  %v801_v26 = vadd.f32 %v771_v17, %v606_v1  ;;  %v802_v51 = vadd.f32 %v772_v4, %v607_v36  ;;  %v803_v55 = vadd.f32 %v773_v58, %v608_v50  ;;  %v35602_v47 = vld [vmem:[#allocation70_spill] sm:$0xff] }
 0x1dc   :  { %v994_v24 = vsel %vm988_vm7, %v29831_v15, %v29855_v2  ;;  %v408_v56 = vadd.f32 %v35594_v57, %v296_v31  ;;  %v1246_v38 = vadd.f32 %v1216_v35, %v1134_v28  ;;  %v1281_v25 = vmax.f32 %v1266_v43, 0.0  ;;  %v35595_v31 = vld [vmem:[#allocation57_spill] sm:$0xff] }
 0x1dd   :  { %v30221_v9 = vpop.permute.xlu0 %1092  ;;  %v30223_v44 = vpop.permute.xlu1 %986  ;;  %v1247_v29 = vadd.f32 %v1217_v23, %v1135_v21  ;;  %v407_v48 = vadd.f32 %v378_v13, %v295_v27  ;;  %v804_v39 = vadd.f32 %v774_v7, %v609_v11  ;;  %v580_v1 = vsel %vm568_vm4, %v29771_v40, %v29873_v52  ;;  %v35597_v11 = vld [vmem:[#allocation60_spill] sm:$0xff]  ;;  %v35603_v13 = vld [vmem:[#allocation59_spill] sm:$0xff]  ;;  %v35604_v21 = vld [vmem:[#allocation65_spill] sm:$0xff] }
 0x1de   :  { %v1024_v50 = vadd.f32 %v994_v24, %v912_v61  ;;  %v581_v15 = vsel %vm568_vm4, %v29873_v52, %v29863_v42  ;;  %v883_v60 = vsel %vm876_vm6, %v35588_v32, %v35595_v31  ;;  %v884_v27 = vsel %vm876_vm6, %v35595_v31, %v35596_v14  ;;  %v35599_v61 = vld [vmem:[#allocation61_spill] sm:$0xff] }
 0x1df   :  { %v582_v40 = vsel %vm568_vm4, %v29863_v42, %v35597_v11  ;;  %v1106_v52 = vsel %vm1100_vm8, %v29899_v20, %v35599_v61  ;;  %v610_v17 = vadd.f32 %v580_v1, %v405_v49  ;;  %v885_v32 = vsel %vm876_vm6, %v35596_v14, %v35600_v53  ;;  %v35606_v1 = vld [vmem:[#allocation64_spill] sm:$0xff]  ;;  %v35608_v14 = vld [vmem:[#allocation67_spill] sm:$0xff] }
 0x1e0   :  { %v1267_v4 = vadd.f32 %v35567_v41, %v1246_v38  ;;  %v1268_v33 = vadd.f32 %v35567_v41, %v1247_v29  ;;  %v611_v18 = vadd.f32 %v581_v15, %v406_v34  ;;  %v913_v58 = vadd.f32 %v883_v60, %v801_v26  ;;  %v35605_v29 = vld [vmem:[#allocation63_spill] sm:$0xff]  ;;  %v35607_v60 = vld [vmem:[#allocation69_spill] sm:$0xff] }
 0x1e1   :  { %v1364_v8 = vpop.permute.xlu0 %1363  ;;  %v30241_v12 = vpop.permute.xlu1 %1202  ;;  %v995_v20 = vsel %vm988_vm7, %v29855_v2, %v35601_v22  ;;  %v1218_v43 = vsel %vm1212_vm9, %v29956_v37, %v35602_v47  ;;  %v914_v49 = vadd.f32 %v884_v27, %v802_v51  ;;  %v612_v35 = vadd.f32 %v582_v40, %v407_v48 }
 0x1e2   :  { %v1389_v36 = vsel %vm764_vm5, %v30133_v10, %v1364_v8  ;;  %v583_v10 = vsel %vm568_vm4, %v35597_v11, %v35598_v6  ;;  %v1136_v57 = vadd.f32 %v1106_v52, %v1024_v50  ;;  %v886_v7 = vsel %vm876_vm6, %v35600_v53, %v35603_v13  ;;  %v35609_v11 = vld [vmem:[#allocation68_spill] sm:$0xff] }
 0x1e3   :  { %v1419_v16 = vmul.f32 %v1389_v36, %v1281_v25  ;;  %v613_v23 = vadd.f32 %v583_v10, %v408_v56  ;;  %v915_v28 = vadd.f32 %v885_v32, %v803_v55  ;;  %v775_v34 = vsel %vm764_vm5, %v29846_v46, %v35604_v21  ;;  %v35610_v10 = vld [vmem:[#allocation73_spill] sm:$0xff] }
 0x1e4   :  { %v1107_v2 = vsel %vm1100_vm8, %v35599_v61, %v30023_v62  ;;  %v1025_v26 = vadd.f32 %v995_v20, %v913_v58  ;;  %v1248_v24 = vadd.f32 %v1218_v43, %v1136_v57  ;;  %v1282_v51 = vmax.f32 %v1267_v4, 0.0  ;;  %v35612_v57 = vld [vmem:[#allocation72_spill] sm:$0xff] }
 0x1e5   :  { %v30271_v19 = vpop.permute.xlu0 %1096  ;;  %1452 = vrot.lane.b32.xlu1 %v1419_v16, %s28993_s1  ;;  %v30274_v42 = vpop.permute.xlu1 %1094  ;;  %v1283_v38 = vmax.f32 %v1268_v33, 0.0  ;;  %v776_v25 = vsel %vm764_vm5, %v35604_v21, %v35605_v29  ;;  %v1219_v55 = vsel %vm1212_vm9, %v35602_v47, %v30130_v59  ;;  %v996_v36 = vsel %vm988_vm7, %v35601_v22, %v35606_v1  ;;  %v35611_v22 = vld [vmem:[#allocation71_spill] sm:$0xff] }
 0x1e6   :  { %v1137_v50 = vadd.f32 %v1107_v2, %v1025_v26  ;;  %v777_v16 = vsel %vm764_vm5, %v35605_v29, %v35607_v60  ;;  %v778_v27 = vsel %vm764_vm5, %v35607_v60, %v35608_v14  ;;  %v998_v40 = vsel %vm988_vm7, %v29932_v54, %v35609_v11 }
 0x1e7   :  { %v1269_v6 = vadd.f32 %v35567_v41, %v1248_v24  ;;  %v887_v61 = vsel %vm876_vm6, %v35603_v13, %v35610_v10  ;;  %v916_v4 = vadd.f32 %v886_v7, %v804_v39  ;;  %v805_v33 = vadd.f32 %v775_v34, %v610_v17 }
 0x1e8   :  { %v1249_v52 = vadd.f32 %v1219_v55, %v1137_v50  ;;  %v806_v58 = vadd.f32 %v776_v25, %v611_v18  ;;  %v1026_v20 = vadd.f32 %v996_v36, %v914_v49  ;;  %v807_v47 = vadd.f32 %v777_v16, %v612_v35  ;;  %v35615_v55 = vld [vmem:[#allocation18_spill] sm:$0xff] }
 0x1e9   :  { %v1368_v37 = vpop.permute.xlu0 %1367  ;;  %v1366_v56 = vpop.permute.xlu1 %1365  ;;  %v808_v43 = vadd.f32 %v778_v27, %v613_v23  ;;  %v1108_v13 = vsel %vm1100_vm8, %v30023_v62, %v35612_v57  ;;  %v1028_v2 = vadd.f32 %v998_v40, %v916_v4  ;;  %v917_v26 = vadd.f32 %v887_v61, %v805_v33 }
 0x1ea   :  { %v1390_v46 = vsel %vm764_vm5, %v1364_v8, %v1366_v56  ;;  %v1391_v48 = vsel %vm764_vm5, %v1366_v56, %v1368_v37  ;;  %v997_v8 = vsel %vm988_vm7, %v35606_v1, %v29932_v54  ;;  %v888_v54 = vsel %vm876_vm6, %v35610_v10, %v35611_v22  ;;  %v35614_v56 = vld [vmem:[#allocation20_spill] sm:$0xff] }
 0x1eb   :  { %v1420_v15 = vmul.f32 %v1390_v46, %v1282_v51  ;;  %v1421_v31 = vmul.f32 %v1391_v48, %v1283_v38  ;;  %v1027_v21 = vadd.f32 %v997_v8, %v915_v28  ;;  %v1109_v39 = vsel %vm1100_vm8, %v35612_v57, %v30086_v0  ;;  %v35613_v51 = vld [vmem:[#allocation19_spill] sm:$0xff] }
 0x1ec   :  { %v918_v17 = vadd.f32 %v888_v54, %v806_v58  ;;  %v1270_v18 = vadd.f32 %v35567_v41, %v1249_v52  ;;  %v1220_v49 = vsel %vm1212_vm9, %v30130_v59, %v30190_v5  ;;  %v1284_v23 = vmax.f32 %v1269_v6, 0.0 }
 0x1ed   :  { %v1205_v53 = vpop.permute.xlu0 %1204  ;;  %1456 = vrot.lane.b32.xlu1 %v1421_v31, %s28993_s1  ;;  %v30319_v32 = vpop.permute.xlu1 %1098  ;;  %1454 = vrot.lane.b32.xlu0 %v1420_v15, %s28993_s1  ;;  %v1138_v34 = vadd.f32 %v1108_v13, %v1026_v20  ;;  %v999_v62 = vsel %vm988_vm7, %v35609_v11, %v30107_v63  ;;  %v1221_v28 = vsel %vm1212_vm9, %v30190_v5, %v30188_v30 }
 0x1ee   :  { %v889_v38 = vsel %vm876_vm6, %v35611_v22, %v35613_v51  ;;  %v1110_v59 = vsel %vm1100_vm8, %v30086_v0, %v35614_v56  ;;  %v1139_v29 = vadd.f32 %v1109_v39, %v1027_v21  ;;  %v890_v46 = vsel %vm876_vm6, %v35613_v51, %v35615_v55 }
 0x1ef   :  { %v1000_v5 = vsel %vm988_vm7, %v30107_v63, %v30160_v3  ;;  %v1250_v48 = vadd.f32 %v1220_v49, %v1138_v34  ;;  %v1029_v1 = vadd.f32 %v999_v62, %v917_v26  ;;  %v1222_v0 = vsel %vm1212_vm9, %v30188_v30, %v30241_v12 }
 0x1f0   :  { %v1251_v36 = vadd.f32 %v1221_v28, %v1139_v29  ;;  %v1285_v15 = vmax.f32 %v1270_v18, 0.0  ;;  %v1140_v60 = vadd.f32 %v1110_v59, %v1028_v2  ;;  %v1001_v63 = vsel %vm988_vm7, %v30160_v3, %v30158_v45 }
 0x1f1   :  { %v1209_v35 = vpop.permute.xlu0 %1208  ;;  %v1370_v7 = vpop.permute.xlu1 %1369  ;;  %v1223_v16 = vsel %vm1212_vm9, %v30241_v12, %v1205_v53  ;;  %v919_v27 = vadd.f32 %v889_v38, %v807_v47  ;;  %v1030_v8 = vadd.f32 %v1000_v5, %v918_v17  ;;  %v1271_v30 = vadd.f32 %v35567_v41, %v1250_v48 }
 0x1f2   :  { %v1392_v24 = vsel %vm764_vm5, %v1368_v37, %v1370_v7  ;;  %v1111_v37 = vsel %vm1100_vm8, %v35614_v56, %v30221_v9  ;;  %v1252_v6 = vadd.f32 %v1222_v0, %v1140_v60  ;;  %v1112_v10 = vsel %vm1100_vm8, %v30221_v9, %v30274_v42 }
 0x1f3   :  { %v1422_v25 = vmul.f32 %v1392_v24, %v1284_v23  ;;  %v1141_v11 = vadd.f32 %v1111_v37, %v1029_v1  ;;  %v1113_v3 = vsel %vm1100_vm8, %v30274_v42, %v30271_v19  ;;  %v1031_v61 = vadd.f32 %v1001_v63, %v919_v27 }
 0x1f4   :  { %v1272_v12 = vadd.f32 %v35567_v41, %v1251_v36  ;;  %v1002_v52 = vsel %vm988_vm7, %v30158_v45, %v30223_v44  ;;  %v920_v22 = vadd.f32 %v890_v46, %v808_v43  ;;  %v1142_v20 = vadd.f32 %v1112_v10, %v1030_v8 }
 0x1f5   :  { %v1372_v50 = vpop.permute.xlu0 %1371  ;;  %v1207_v31 = vpop.permute.xlu1 %1206  ;;  %1458 = vrot.lane.b32.xlu0 %v1422_v25, %s28993_s1  ;;  %v1253_v4 = vadd.f32 %v1223_v16, %v1141_v11  ;;  %v1143_v47 = vadd.f32 %v1113_v3, %v1031_v61  ;;  %v1273_v57 = vadd.f32 %v35567_v41, %v1252_v6  ;;  %v1114_v13 = vsel %vm1100_vm8, %v30271_v19, %v30319_v32 }
 0x1f6   :  { %v1393_v14 = vsel %vm764_vm5, %v1370_v7, %v1372_v50  ;;  %v1224_v54 = vsel %vm1212_vm9, %v1205_v53, %v1207_v31  ;;  %v1225_v9 = vsel %vm1212_vm9, %v1207_v31, %v1209_v35  ;;  %v1032_v42 = vadd.f32 %v1002_v52, %v920_v22 }
 0x1f7   :  { %v1423_v40 = vmul.f32 %v1393_v14, %v1285_v15  ;;  %v1286_v45 = vmax.f32 %v1271_v30, 0.0  ;;  %v1274_v44 = vadd.f32 %v35567_v41, %v1253_v4  ;;  %v1254_v21 = vadd.f32 %v1224_v54, %v1142_v20 }
 0x1f8   :  { %v1255_v2 = vadd.f32 %v1225_v9, %v1143_v47  ;;  %v1287_v26 = vmax.f32 %v1272_v12, 0.0  ;;  %v1144_v49 = vadd.f32 %v1114_v13, %v1032_v42  ;;  %v1288_v34 = vmax.f32 %v1273_v57, 0.0 }
 0x1f9   :  { %1460 = vrot.lane.b32.xlu1 %v1423_v40, %s28993_s1  ;;  %v1211_v33 = vpop.permute.xlu1 %1210  ;;  %v1376_v58 = vpop.permute.xlu0 %1375  ;;  %v1275_v19 = vadd.f32 %v35567_v41, %v1254_v21  ;;  %v1289_v28 = vmax.f32 %v1274_v44, 0.0  ;;  %vm5515_vm6 = vcmask 809984   ;;  %vm9871_vm8 = vcmask 15360  }
 0x1fa   :  { %v1226_v53 = vsel %vm1212_vm9, %v1209_v35, %v1211_v33  ;;  %v1276_v32 = vadd.f32 %v35567_v41, %v1255_v2 }
 0x1fb   :  { %v1256_v62 = vadd.f32 %v1226_v53, %v1144_v49  ;;  %v1290_v25 = vmax.f32 %v1275_v19, 0.0 }
 0x1fc   :  { %v1291_v55 = vmax.f32 %v1276_v32, 0.0 }
 0x1fd   :  { %v1374_v43 = vpop.permute.xlu1 %1373  ;;  %v1380_v39 = vpop.permute.xlu0 %1379  ;;  %v1277_v29 = vadd.f32 %v35567_v41, %v1256_v62 }
 0x1fe   :  { %v1394_v17 = vsel %vm764_vm5, %v1372_v50, %v1374_v43  ;;  %v1395_v18 = vsel %vm764_vm5, %v1374_v43, %v1376_v58  ;;  %v1522_v50 = vld [vmem:[#allocation3] sm:$0x3f] }
 0x1ff   :  { %v1424_v23 = vmul.f32 %v1394_v17, %v1286_v45  ;;  %v1425_v7 = vmul.f32 %v1395_v18, %v1287_v26  ;;  %v1292_v36 = vmax.f32 %v1277_v29, 0.0 }
 0x201   :  { %1464 = vrot.lane.b32.xlu1 %v1425_v7, %s28993_s1  ;;  %v1378_v24 = vpop.permute.xlu1 %1377  ;;  %1462 = vrot.lane.b32.xlu0 %v1424_v23, %s28993_s1  ;;  %v1384_v59 = vpop.permute.xlu0 %1383 }
 0x202   :  { %v1396_v35 = vsel %vm764_vm5, %v1376_v58, %v1378_v24  ;;  %v1397_v51 = vsel %vm764_vm5, %v1378_v24, %v1380_v39 }
 0x203   :  { %v1426_v38 = vmul.f32 %v1396_v35, %v1288_v34  ;;  %v1427_v56 = vmul.f32 %v1397_v51, %v1289_v28  ;;  %v3508_v51 = vld [vmem:[#allocation3] sm:$0x3f] }
 0x205   :  { %1468 = vrot.lane.b32.xlu1 %v1427_v56, %s28993_s1  ;;  %v1382_v46 = vpop.permute.xlu1 %1381  ;;  %1466 = vrot.lane.b32.xlu0 %v1426_v38, %s28993_s1 }
 0x206   :  { %v1398_v5 = vsel %vm764_vm5, %v1380_v39, %v1382_v46  ;;  %v1399_v48 = vsel %vm764_vm5, %v1382_v46, %v1384_v59 }
 0x207   :  { %v1428_v37 = vmul.f32 %v1398_v5, %v1290_v25  ;;  %v1429_v1 = vmul.f32 %v1399_v48, %v1291_v55  ;;  %v30506_v25 = vld [vmem:[%s35375_s6 + $0x8] sm:$0x3f]  ;;  %v30521_v48 = vld [vmem:[#allocation2] sm:$0xff] }
 0x209   :  { %1472 = vrot.lane.b32.xlu1 %v1429_v1, %s28993_s1  ;;  %v1386_v0 = vpop.permute.xlu1 %1385  ;;  %1470 = vrot.lane.b32.xlu0 %v1428_v37, %s28993_s1 }
 0x20a   :  { %v1400_v41 = vsel %vm764_vm5, %v1384_v59, %v1386_v0 }
 0x20b   :  { %v1430_v15 = vmul.f32 %v1400_v41, %v1292_v36 }
 0x20d   :  { %1474 = vrot.lane.b32.xlu0 %v1430_v15, %s28993_s1  ;;  %1555 = vrot.lane.b32.xlu1 %v1522_v50, %s28994_s26 }
 0x211   :  { %2848 = vrot.lane.b32.xlu1 %v1522_v50, %s28995_s27  ;;  %2202 = vrot.lane.b32.xlu0 %v1522_v50, %s28993_s1 }
 0x242   :  { %v1447_v31 = vpop.permute.xlu0 %1446 }
 0x243   :  { %v1449_v60 = vpop.permute.xlu1 %1448 }
 0x244   :  { %v1477_v63 = vsel %vm1476_vm10, %v1447_v31, %v1449_v60 }
 0x245   :  { %1506 = vst [vmem:[#allocation3 + $0x8] sm:$0x3f] %v1477_v63 }
 0x247   :  { %v1451_v16 = vpop.permute.xlu0 %1450 }
 0x248   :  { %v1478_v14 = vsel %vm1476_vm10, %v1449_v60, %v1451_v16 }
 0x249   :  { %1507 = vst [vmem:[#allocation3 + $0x10] sm:$0x3f] %v1478_v14 }
 0x24c   :  { %v30409_v27 = vld [vmem:[#allocation3 + $0x8] sm:$0x3f] }
 0x24d   :  { %1557 = vrot.lane.b32.xlu1 %v30409_v27, %s28994_s26  ;;  %v30492_v35 = vld [vmem:[#allocation3 + $0x8] sm:$0x3f] }
 0x250   :  { %v30413_v8 = vld [vmem:[#allocation3 + $0x10] sm:$0x3f] }
 0x251   :  { %1559 = vrot.lane.b32.xlu0 %v30413_v8, %s28994_s26  ;;  %v30497_v59 = vld [vmem:[#allocation3 + $0x10] sm:$0x3f] }
 0x257   :  { %v1453_v11 = vpop.permute.xlu1 %1452 }
 0x258   :  { %v1479_v40 = vsel %vm1476_vm10, %v1451_v16, %v1453_v11 }
 0x259   :  { %1508 = vst [vmem:[#allocation3 + $0x18] sm:$0x3f] %v1479_v40 }
 0x25f   :  { %v1457_v30 = vpop.permute.xlu1 %1456  ;;  %v1455_v6 = vpop.permute.xlu0 %1454 }
 0x260   :  { %v1480_v10 = vsel %vm1476_vm10, %v1453_v11, %v1455_v6  ;;  %v1481_v3 = vsel %vm1476_vm10, %v1455_v6, %v1457_v30  ;;  %v30420_v61 = vld [vmem:[#allocation3 + $0x18] sm:$0x3f] }
 0x261   :  { %1509 = vst [vmem:[#allocation3 + $0x20] sm:$0x3f] %v1480_v10  ;;  %1510 = vst [vmem:[#allocation3 + $0x28] sm:$0x3f] %v1481_v3  ;;  %1561 = vrot.lane.b32.xlu0 %v30420_v61, %s28994_s26  ;;  %v30513_v5 = vld [vmem:[#allocation3 + $0x18] sm:$0x3f] }
 0x267   :  { %v1459_v12 = vpop.permute.xlu0 %1458 }
 0x268   :  { %v1482_v52 = vsel %vm1476_vm10, %v1457_v30, %v1459_v12  ;;  %v30425_v4 = vld [vmem:[#allocation3 + $0x28] sm:$0x3f]  ;;  %v30427_v33 = vld [vmem:[#allocation3 + $0x20] sm:$0x3f] }
 0x269   :  { %1511 = vst [vmem:[#allocation3 + $0x30] sm:$0x3f] %v1482_v52  ;;  %1565 = vrot.lane.b32.xlu0 %v30425_v4, %s28994_s26  ;;  %1563 = vrot.lane.b32.xlu1 %v30427_v33, %s28994_s26  ;;  %v30511_v46 = vld [vmem:[#allocation3 + $0x20] sm:$0x3f]  ;;  %v30526_v1 = vld [vmem:[#allocation3 + $0x28] sm:$0x3f] }
 0x26b   :  { %v1461_v58 = vpop.permute.xlu1 %1460 }
 0x26c   :  { %v1483_v22 = vsel %vm1476_vm10, %v1459_v12, %v1461_v58 }
 0x26d   :  { %1512 = vst [vmem:[#allocation3 + $0x38] sm:$0x3f] %v1483_v22 }
 0x270   :  { %v1528_v54 = vld [vmem:[#allocation3 + $0x30] sm:$0x3f] }
 0x271   :  { %1567 = vrot.lane.b32.xlu1 %v1528_v54, %s28994_s26  ;;  %v30524_v37 = vld [vmem:[#allocation3 + $0x30] sm:$0x3f] }
 0x273   :  { %v1465_v9 = vpop.permute.xlu1 %1464  ;;  %v1463_v20 = vpop.permute.xlu0 %1462 }
 0x274   :  { %v1484_v47 = vsel %vm1476_vm10, %v1461_v58, %v1463_v20  ;;  %v1485_v42 = vsel %vm1476_vm10, %v1463_v20, %v1465_v9  ;;  %v1529_v57 = vld [vmem:[#allocation3 + $0x38] sm:$0x3f] }
 0x275   :  { %1513 = vst [vmem:[#allocation3 + $0x40] sm:$0x3f] %v1484_v47  ;;  %1514 = vst [vmem:[#allocation3 + $0x48] sm:$0x3f] %v1485_v42  ;;  %1569 = vrot.lane.b32.xlu0 %v1529_v57, %s28994_s26  ;;  %v30534_v0 = vld [vmem:[#allocation3 + $0x38] sm:$0x3f] }
 0x277   :  { %v1469_v13 = vpop.permute.xlu1 %1468  ;;  %v1467_v45 = vpop.permute.xlu0 %1466 }
 0x278   :  { %v1486_v44 = vsel %vm1476_vm10, %v1465_v9, %v1467_v45  ;;  %v1487_v21 = vsel %vm1476_vm10, %v1467_v45, %v1469_v13 }
 0x279   :  { %1515 = vst [vmem:[#allocation3 + $0x50] sm:$0x3f] %v1486_v44  ;;  %1516 = vst [vmem:[#allocation3 + $0x58] sm:$0x3f] %v1487_v21 }
 0x27b   :  { %v1473_v2 = vpop.permute.xlu1 %1472  ;;  %v1471_v26 = vpop.permute.xlu0 %1470 }
 0x27c   :  { %v1488_v43 = vsel %vm1476_vm10, %v1469_v13, %v1471_v26  ;;  %v1489_v39 = vsel %vm1476_vm10, %v1471_v26, %v1473_v2  ;;  %v1531_v53 = vld [vmem:[#allocation3 + $0x48] sm:$0x3f]  ;;  %v1530_v17 = vld [vmem:[#allocation3 + $0x40] sm:$0x3f] }
 0x27d   :  { %1517 = vst [vmem:[#allocation3 + $0x60] sm:$0x3f] %v1488_v43  ;;  %1518 = vst [vmem:[#allocation3 + $0x68] sm:$0x3f] %v1489_v39  ;;  %1573 = vrot.lane.b32.xlu0 %v1531_v53, %s28994_s26  ;;  %1571 = vrot.lane.b32.xlu1 %v1530_v17, %s28994_s26  ;;  %v30532_v36 = vld [vmem:[#allocation3 + $0x40] sm:$0x3f] }
 0x27e   :  { %v30542_v50 = vld [vmem:[#allocation3 + $0x48] sm:$0x3f]  ;;  %v30653_v39 = vld [vmem:[%s35375_s6] sm:$0x3f] }
 0x27f   :  { %v1475_v18 = vpop.permute.xlu0 %1474  ;;  %v1556_v62 = vpop.permute.xlu1 %1555 }
 0x280   :  { %v1490_v49 = vsel %vm1476_vm10, %v1473_v2, %v1475_v18  ;;  %1521 = vst.msk [vmem:[#allocation3 + $0x78] sm:$0x3f] %vm1520_vm11, %v1475_v18  ;;  %v1533_v23 = vld [vmem:[#allocation3 + $0x58] sm:$0x3f]  ;;  %v1532_v7 = vld [vmem:[#allocation3 + $0x50] sm:$0x3f] }
 0x281   :  { %1519 = vst [vmem:[#allocation3 + $0x70] sm:$0x3f] %v1490_v49  ;;  %1577 = vrot.lane.b32.xlu0 %v1533_v23, %s28994_s26  ;;  %1575 = vrot.lane.b32.xlu1 %v1532_v7, %s28994_s26  ;;  %v30540_v41 = vld [vmem:[#allocation3 + $0x50] sm:$0x3f]  ;;  %v30550_v31 = vld [vmem:[#allocation3 + $0x58] sm:$0x3f] }
 0x283   :  { %v30486_v28 = vpop.permute.xlu1 %2848  ;;  %v30490_v24 = vpop.permute.xlu0 %2202 }
 0x284   :  { %v1535_v34 = vld [vmem:[#allocation3 + $0x68] sm:$0x3f]  ;;  %v1534_v19 = vld [vmem:[#allocation3 + $0x60] sm:$0x3f] }
 0x285   :  { %1581 = vrot.lane.b32.xlu0 %v1535_v34, %s28994_s26  ;;  %1579 = vrot.lane.b32.xlu1 %v1534_v19, %s28994_s26  ;;  %v30548_v15 = vld [vmem:[#allocation3 + $0x60] sm:$0x3f]  ;;  %v30558_v14 = vld [vmem:[#allocation3 + $0x68] sm:$0x3f] }
 0x287   :  { %v30568_v11 = vld [vmem:[#allocation3 + $0x78] sm:$0x3f] }
 0x288   :  { %v1536_v32 = vld [vmem:[#allocation3 + $0x70] sm:$0x3f] }
 0x289   :  { %2204 = vrot.lane.b32.xlu0 %v30409_v27, %s28993_s1  ;;  %1583 = vrot.lane.b32.xlu1 %v1536_v32, %s28994_s26  ;;  %v30556_v16 = vld [vmem:[#allocation3 + $0x70] sm:$0x3f]  ;;  %s29002_s26 = smov 2  }
 0x28d   :  { %2210 = vrot.lane.b32.xlu0 %v30427_v33, %s28993_s1  ;;  %2206 = vrot.lane.b32.xlu1 %v30413_v8, %s28993_s1 }
 0x291   :  { %2214 = vrot.lane.b32.xlu0 %v1528_v54, %s28993_s1  ;;  %2208 = vrot.lane.b32.xlu1 %v30420_v61, %s28993_s1 }
 0x295   :  { %2218 = vrot.lane.b32.xlu0 %v1530_v17, %s28993_s1  ;;  %2212 = vrot.lane.b32.xlu1 %v30425_v4, %s28993_s1 }
 0x299   :  { %2222 = vrot.lane.b32.xlu0 %v1532_v7, %s28993_s1  ;;  %2216 = vrot.lane.b32.xlu1 %v1529_v57, %s28993_s1 }
 0x29d   :  { %2226 = vrot.lane.b32.xlu0 %v1534_v19, %s28993_s1  ;;  %2220 = vrot.lane.b32.xlu1 %v1531_v53, %s28993_s1 }
 0x2a1   :  { %2230 = vrot.lane.b32.xlu0 %v1536_v32, %s28993_s1  ;;  %2224 = vrot.lane.b32.xlu1 %v1533_v23, %s28993_s1 }
 0x2a5   :  { %2852 = vrot.lane.b32.xlu0 %v30413_v8, %s28995_s27  ;;  %2228 = vrot.lane.b32.xlu1 %v1535_v34, %s28993_s1  ;;  %s29001_s1 = smov 58  }
 0x2a9   :  { %2854 = vrot.lane.b32.xlu0 %v30420_v61, %s28995_s27  ;;  %2850 = vrot.lane.b32.xlu1 %v30409_v27, %s28995_s27 }
 0x2ad   :  { %2858 = vrot.lane.b32.xlu0 %v30425_v4, %s28995_s27  ;;  %2856 = vrot.lane.b32.xlu1 %v30427_v33, %s28995_s27 }
 0x2b1   :  { %2862 = vrot.lane.b32.xlu0 %v1529_v57, %s28995_s27  ;;  %2860 = vrot.lane.b32.xlu1 %v1528_v54, %s28995_s27 }
 0x2b5   :  { %2866 = vrot.lane.b32.xlu0 %v1531_v53, %s28995_s27  ;;  %2864 = vrot.lane.b32.xlu1 %v1530_v17, %s28995_s27 }
 0x2b9   :  { %2870 = vrot.lane.b32.xlu0 %v1533_v23, %s28995_s27  ;;  %2868 = vrot.lane.b32.xlu1 %v1532_v7, %s28995_s27 }
 0x2bd   :  { %2874 = vrot.lane.b32.xlu0 %v1535_v34, %s28995_s27  ;;  %2872 = vrot.lane.b32.xlu1 %v1534_v19, %s28995_s27 }
 0x2bf   :  { %v1558_v38 = vpop.permute.xlu1 %1557 }
 0x2c0   :  { %v1586_v55 = vsel %vm1585_vm12, %v1556_v62, %v1558_v38 }
 0x2c1   :  { %3544 = vrot.lane.b32.xlu0 %v30492_v35, %s28996_s28  ;;  %2876 = vrot.lane.b32.xlu1 %v1536_v32, %s28995_s27 }
 0x2c3   :  { %v1560_v56 = vpop.permute.xlu0 %1559 }
 0x2c4   :  { %v1587_v29 = vsel %vm1585_vm12, %v1558_v38, %v1560_v56 }
 0x2c5   :  { %3542 = vrot.lane.b32.xlu0 %v3508_v51, %s28996_s28  ;;  %3546 = vrot.lane.b32.xlu1 %v30497_v59, %s28996_s28 }
 0x2c6   :  { %27328 = vmatprep.subr.msk.mxu0 %vm1604_vm13, %v1587_v29 }
 0x2c7   :  { %27329 = vmatpush1.msk.msra.mxu0 %vm1604_vm13, %v1586_v55 }
 0x2c8   :  { %27330 = vmatmul.mubr.msk.f32.vlgmr.msra.gmra.mrb[0].mxu0 %vm1600_vm14, %v30506_v25 }
 0x2c9   :  { %3550 = vrot.lane.b32.xlu0 %v30511_v46, %s28996_s28  ;;  %3548 = vrot.lane.b32.xlu1 %v30513_v5, %s28996_s28 }
 0x2ca   :  { %1841 = vmatprep.mubr.f32.mxu0 %v30521_v48 }
 0x2cd   :  { %3554 = vrot.lane.b32.xlu0 %v30524_v37, %s28996_s28  ;;  %3552 = vrot.lane.b32.xlu1 %v30526_v1, %s28996_s28 }
 0x2d1   :  { %3558 = vrot.lane.b32.xlu0 %v30532_v36, %s28996_s28  ;;  %3556 = vrot.lane.b32.xlu1 %v30534_v0, %s28996_s28 }
 0x2d3   :  { %v1562_v60 = vpop.permute.xlu0 %1561 }
 0x2d4   :  { %v1588_v8 = vsel %vm1585_vm12, %v1560_v56, %v1562_v60 }
 0x2d5   :  { %3562 = vrot.lane.b32.xlu0 %v30540_v41, %s28996_s28  ;;  %3560 = vrot.lane.b32.xlu1 %v30542_v50, %s28996_s28 }
 0x2d9   :  { %3566 = vrot.lane.b32.xlu0 %v30548_v15, %s28996_s28  ;;  %3564 = vrot.lane.b32.xlu1 %v30550_v31, %s28996_s28 }
 0x2db   :  { %v1564_v63 = vpop.permute.xlu1 %1563  ;;  %v1566_v40 = vpop.permute.xlu0 %1565 }
 0x2dc   :  { %v1589_v27 = vsel %vm1585_vm12, %v1562_v60, %v1564_v63  ;;  %v1590_v10 = vsel %vm1585_vm12, %v1564_v63, %v1566_v40 }
 0x2dd   :  { %3570 = vrot.lane.b32.xlu0 %v30556_v16, %s28996_s28  ;;  %3568 = vrot.lane.b32.xlu1 %v30558_v14, %s28996_s28 }
 0x2de   :  { %27331 = vmatprep.subr.msk.mxu1 %vm1604_vm13, %v1589_v27 }
 0x2df   :  { %27332 = vmatpush1.msk.msra.mxu1 %vm1604_vm13, %v1588_v8 }
 0x2e0   :  { %27333 = vmatmul.mubr.msk.f32.vlgmr.msra.gmra.mrb[0].mxu1 %vm1600_vm14, %v30506_v25 }
 0x2e1   :  { %4826 = vrot.lane.b32.xlu0 %v30497_v59, %s28985_s4  ;;  %3572 = vrot.lane.b32.xlu1 %v30568_v11, %s28996_s28  ;;  %s29008_s28 = smov 12  }
 0x2e2   :  { %1912 = vmatprep.mubr.f32.mxu1 %v30521_v48 }
 0x2e3   :  { %v1568_v30 = vpop.permute.xlu1 %1567 }
 0x2e4   :  { %v1591_v6 = vsel %vm1585_vm12, %v1566_v40, %v1568_v30 }
 0x2e5   :  { %4824 = vrot.lane.b32.xlu0 %v30492_v35, %s28985_s4  ;;  %4828 = vrot.lane.b32.xlu1 %v30513_v5, %s28985_s4 }
 0x2e6   :  { %27334 = vmatprep.subr.msk.mxu0 %vm1604_vm13, %v1591_v6 }
 0x2e7   :  { %27335 = vmatpush1.msk.msra.mxu0 %vm1604_vm13, %v1590_v10  ;;  %v1570_v3 = vpop.permute.xlu0 %1569 }
 0x2e8   :  { %27336 = vmatmul.mubr.msk.f32.vlgmr.msra.gmra.mrb[2].mxu0 %vm1600_vm14, %v30506_v25  ;;  %v1592_v4 = vsel %vm1585_vm12, %v1568_v30, %v1570_v3 }
 0x2e9   :  { %4832 = vrot.lane.b32.xlu0 %v30526_v1, %s28985_s4  ;;  %4830 = vrot.lane.b32.xlu1 %v30511_v46, %s28985_s4 }
 0x2ea   :  { %1983 = vmatprep.mubr.f32.mxu0 %v30521_v48 }
 0x2ed   :  { %4836 = vrot.lane.b32.xlu0 %v30534_v0, %s28985_s4  ;;  %4834 = vrot.lane.b32.xlu1 %v30524_v37, %s28985_s4 }
 0x2ef   :  { %v1572_v61 = vpop.permute.xlu1 %1571  ;;  %v1574_v12 = vpop.permute.xlu0 %1573 }
 0x2f0   :  { %v1593_v52 = vsel %vm1585_vm12, %v1570_v3, %v1572_v61  ;;  %v1594_v54 = vsel %vm1585_vm12, %v1572_v61, %v1574_v12 }
 0x2f1   :  { %4840 = vrot.lane.b32.xlu0 %v30542_v50, %s28985_s4  ;;  %4838 = vrot.lane.b32.xlu1 %v30532_v36, %s28985_s4 }
 0x2f2   :  { %27337 = vmatprep.subr.msk.mxu1 %vm1604_vm13, %v1593_v52  ;;  %v30740_v52 = vld [vmem:[%s35375_s6 + $0x10] sm:$0x3f] }
 0x2f3   :  { %27338 = vmatpush1.msk.msra.mxu1 %vm1604_vm13, %v1592_v4  ;;  %v1576_v33 = vpop.permute.xlu1 %1575  ;;  %v1578_v58 = vpop.permute.xlu0 %1577 }
 0x2f4   :  { %v1595_v22 = vsel %vm1585_vm12, %v1574_v12, %v1576_v33  ;;  %27339 = vmatmul.mubr.msk.f32.vlgmr.msra.gmra.mrb[2].mxu1 %vm1600_vm14, %v30506_v25  ;;  %v1596_v42 = vsel %vm1585_vm12, %v1576_v33, %v1578_v58 }
 0x2f5   :  { %4844 = vrot.lane.b32.xlu0 %v30550_v31, %s28985_s4  ;;  %4842 = vrot.lane.b32.xlu1 %v30540_v41, %s28985_s4 }
 0x2f6   :  { %27340 = vmatprep.subr.msk.mxu0 %vm1604_vm13, %v1595_v22  ;;  %2054 = vmatprep.mubr.f32.mxu1 %v30521_v48 }
 0x2f7   :  { %27341 = vmatpush1.msk.msra.mxu0 %vm1604_vm13, %v1594_v54  ;;  %v1580_v9 = vpop.permute.xlu1 %1579  ;;  %v1582_v20 = vpop.permute.xlu0 %1581 }
 0x2f8   :  { %v1597_v47 = vsel %vm1585_vm12, %v1578_v58, %v1580_v9  ;;  %27342 = vmatmul.mubr.msk.f32.vlgmr.msra.gmra.mrb[4].mxu0 %vm1600_vm14, %v30506_v25  ;;  %v1598_v44 = vsel %vm1585_vm12, %v1580_v9, %v1582_v20 }
 0x2f9   :  { %4848 = vrot.lane.b32.xlu0 %v30558_v14, %s28985_s4  ;;  %4846 = vrot.lane.b32.xlu1 %v30548_v15, %s28985_s4 }
 0x2fa   :  { %27343 = vmatprep.subr.msk.mxu1 %vm1604_vm13, %v1597_v47  ;;  %2125 = vmatprep.mubr.f32.mxu0 %v30521_v48 }
 0x2fb   :  { %27344 = vmatpush1.msk.msra.mxu1 %vm1604_vm13, %v1596_v42  ;;  %v1584_v57 = vpop.permute.xlu1 %1583  ;;  %v2205_v13 = vpop.permute.xlu0 %2204 }
 0x2fc   :  { %28110 = vmatprep.subr.mxu1 %v30521_v48  ;;  %27345 = vmatmul.mubr.msk.f32.vlgmr.msra.gmra.mrb[4].mxu1 %vm1600_vm14, %v30506_v25  ;;  %v1599_v45 = vsel %vm1585_vm12, %v1582_v20, %v1584_v57  ;;  %v2232_v43 = vsel %vm1476_vm10, %v30490_v24, %v2205_v13  ;;  %vm22226_vm12 = vcmask 31744  }
 0x2fd   :  { %28111 = vmatpush3.msk.msra.mxu1 %vm1604_vm13, %v1584_v57  ;;  %4852 = vrot.lane.b32.xlu0 %v30568_v11, %s28985_s4 }
 0x2fe   :  { %4850 = vrot.lane.b32.xlu1 %v30556_v16, %s28985_s4  ;;  %27346 = vmatprep.subr.msk.mxu0 %vm1604_vm13, %v1599_v45 }
 0x2ff   :  { %27347 = vmatpush1.msk.msra.mxu0 %vm1604_vm13, %v1598_v44  ;;  %v2207_v21 = vpop.permute.xlu1 %2206  ;;  %v2211_v2 = vpop.permute.xlu0 %2210  ;;  %28112 = vmatprep.mubr.msk.f32.mxu1 %vm28997_vm15, %v30521_v48 }
 0x300   :  { %v2233_v26 = vsel %vm1476_vm10, %v2205_v13, %v2207_v21  ;;  %27348 = vmatmul.mubr.msk.f32.vlgmr.msra.gmra.mrb[6].mxu0 %vm1600_vm14, %v30506_v25  ;;  %28113 = vmatmul.mubr.msk.f32.vlgmr.msra.gmra.mrb[6].mxu1 %vm1600_vm14, %v30506_v25 }
 0x301   :  { %5489 = vrot.lane.b32.xlu0 %v30513_v5, %s28998_s18  ;;  %27351 = vmatprep.subr.msk.mxu0 %vm1604_vm13, %v2233_v26 }
 0x302   :  { %5487 = vrot.lane.b32.xlu1 %v30497_v59, %s28998_s18  ;;  %27352 = vmatpush1.msk.msra.mxu0 %vm1604_vm13, %v2232_v43 }
 0x303   :  { %v2209_v53 = vpop.permute.xlu1 %2208  ;;  %v2215_v17 = vpop.permute.xlu0 %2214  ;;  %2343 = vmatprep.mubr.f32.mxu0 %v30521_v48  ;;  %2414 = vmatprep.mubr.f32.mxu1 %v30521_v48 }
 0x304   :  { %v2234_v18 = vsel %vm1476_vm10, %v2207_v21, %v2209_v53  ;;  %v2235_v49 = vsel %vm1476_vm10, %v2209_v53, %v2211_v2  ;;  %27353 = vmatmul.mubr.msk.f32.vlgmr.msra.gmra.mrb[0].mxu0 %vm1600_vm14, %v30653_v39 }
 0x305   :  { %5491 = vrot.lane.b32.xlu0 %v30511_v46, %s28998_s18  ;;  %27354 = vmatprep.subr.msk.mxu1 %vm1604_vm13, %v2235_v49 }
 0x306   :  { %5485 = vrot.lane.b32.xlu1 %v30492_v35, %s28998_s18  ;;  %27355 = vmatpush1.msk.msra.mxu1 %vm1604_vm13, %v2234_v18 }
 0x307   :  { %v2213_v23 = vpop.permute.xlu1 %2212  ;;  %v2219_v7 = vpop.permute.xlu0 %2218  ;;  %27356 = vmatmul.mubr.msk.f32.vlgmr.msra.gmra.mrb[0].mxu1 %vm1600_vm14, %v30653_v39  ;;  %2485 = vmatprep.mubr.f32.mxu0 %v30521_v48 }
 0x308   :  { %v2236_v34 = vsel %vm1476_vm10, %v2211_v2, %v2213_v23  ;;  %v2237_v19 = vsel %vm1476_vm10, %v2213_v23, %v2215_v17  ;;  %2556 = vmatprep.mubr.f32.mxu1 %v30521_v48 }
 0x309   :  { %5495 = vrot.lane.b32.xlu0 %v30524_v37, %s28998_s18  ;;  %27357 = vmatprep.subr.msk.mxu0 %vm1604_vm13, %v2237_v19 }
 0x30a   :  { %5493 = vrot.lane.b32.xlu1 %v30526_v1, %s28998_s18  ;;  %27358 = vmatpush1.msk.msra.mxu0 %vm1604_vm13, %v2236_v34 }
 0x30b   :  { %v2217_v32 = vpop.permute.xlu1 %2216  ;;  %v2223_v62 = vpop.permute.xlu0 %2222  ;;  %27359 = vmatmul.mubr.msk.f32.vlgmr.msra.gmra.mrb[2].mxu0 %vm1600_vm14, %v30653_v39 }
 0x30c   :  { %v2238_v24 = vsel %vm1476_vm10, %v2215_v17, %v2217_v32  ;;  %v2239_v51 = vsel %vm1476_vm10, %v2217_v32, %v2219_v7  ;;  %2627 = vmatprep.mubr.f32.mxu0 %v30521_v48 }
 0x30d   :  { %5499 = vrot.lane.b32.xlu0 %v30532_v36, %s28998_s18  ;;  %27360 = vmatprep.subr.msk.mxu1 %vm1604_vm13, %v2239_v51 }
 0x30e   :  { %5497 = vrot.lane.b32.xlu1 %v30534_v0, %s28998_s18  ;;  %27361 = vmatpush1.msk.msra.mxu1 %vm1604_vm13, %v2238_v24 }
 0x30f   :  { %v2221_v38 = vpop.permute.xlu1 %2220  ;;  %v2227_v56 = vpop.permute.xlu0 %2226  ;;  %27362 = vmatmul.mubr.msk.f32.vlgmr.msra.gmra.mrb[2].mxu1 %vm1600_vm14, %v30653_v39 }
 0x310   :  { %v2240_v29 = vsel %vm1476_vm10, %v2219_v7, %v2221_v38  ;;  %v2241_v25 = vsel %vm1476_vm10, %v2221_v38, %v2223_v62  ;;  %2698 = vmatprep.mubr.f32.mxu1 %v30521_v48 }
 0x311   :  { %5503 = vrot.lane.b32.xlu0 %v30540_v41, %s28998_s18  ;;  %27363 = vmatprep.subr.msk.mxu0 %vm1604_vm13, %v2241_v25 }
 0x312   :  { %5501 = vrot.lane.b32.xlu1 %v30542_v50, %s28998_s18  ;;  %27364 = vmatpush1.msk.msra.mxu0 %vm1604_vm13, %v2240_v29 }
 0x313   :  { %v2225_v55 = vpop.permute.xlu1 %2224  ;;  %v2231_v60 = vpop.permute.xlu0 %2230  ;;  %27365 = vmatmul.mubr.msk.f32.vlgmr.msra.gmra.mrb[4].mxu0 %vm1600_vm14, %v30653_v39 }
 0x314   :  { %v2242_v63 = vsel %vm1476_vm10, %v2223_v62, %v2225_v55  ;;  %v2243_v27 = vsel %vm1476_vm10, %v2225_v55, %v2227_v56  ;;  %2769 = vmatprep.mubr.f32.mxu0 %v30521_v48  ;;  %v30828_v62 = vld [vmem:[%s35375_s6 + $0x18] sm:$0x3f] }
 0x315   :  { %5507 = vrot.lane.b32.xlu0 %v30548_v15, %s28998_s18  ;;  %27366 = vmatprep.subr.msk.mxu1 %vm1604_vm13, %v2243_v27 }
 0x316   :  { %5505 = vrot.lane.b32.xlu1 %v30550_v31, %s28998_s18  ;;  %27367 = vmatpush1.msk.msra.mxu1 %vm1604_vm13, %v2242_v63 }
 0x317   :  { %v2229_v8 = vpop.permute.xlu1 %2228  ;;  %28115 = vmatprep.subr.mxu1 %v30521_v48  ;;  %v2853_v40 = vpop.permute.xlu0 %2852  ;;  %27368 = vmatmul.mubr.msk.f32.vlgmr.msra.gmra.mrb[4].mxu1 %vm1600_vm14, %v30653_v39 }
 0x318   :  { %v2244_v30 = vsel %vm1476_vm10, %v2227_v56, %v2229_v8  ;;  %28116 = vmatpush3.msk.msra.mxu1 %vm1604_vm13, %v2231_v60  ;;  %v2245_v6 = vsel %vm1476_vm10, %v2229_v8, %v2231_v60  ;;  %28117 = vmatprep.mubr.msk.f32.mxu1 %vm28997_vm15, %v30521_v48  ;;  %vm11812_vm10 = vcmask 572416  }
 0x319   :  { %5511 = vrot.lane.b32.xlu0 %v30556_v16, %s28998_s18  ;;  %27369 = vmatprep.subr.msk.mxu0 %vm1604_vm13, %v2245_v6 }
 0x31a   :  { %5509 = vrot.lane.b32.xlu1 %v30558_v14, %s28998_s18  ;;  %27370 = vmatpush1.msk.msra.mxu0 %vm1604_vm13, %v2244_v30 }
 0x31b   :  { %v2851_v10 = vpop.permute.xlu1 %2850  ;;  %v2855_v3 = vpop.permute.xlu0 %2854  ;;  %27371 = vmatmul.mubr.msk.f32.vlgmr.msra.gmra.mrb[6].mxu0 %vm1600_vm14, %v30653_v39  ;;  %28118 = vmatmul.mubr.msk.f32.vlgmr.msra.gmra.mrb[8].mxu1 %vm1600_vm14, %v30653_v39 }
 0x31c   :  { %v2879_v61 = vsel %vm2878_vm0, %v30486_v28, %v2851_v10  ;;  %v2880_v12 = vsel %vm2878_vm0, %v2851_v10, %v2853_v40  ;;  %2990 = vmatprep.mubr.f32.mxu0 %v30521_v48  ;;  %3061 = vmatprep.mubr.f32.mxu1 %v30521_v48  ;;  %v2881_v58 = vsel %vm2878_vm0, %v2853_v40, %v2855_v3 }
 0x31d   :  { %6149 = vrot.lane.b32.xlu0 %v30497_v59, %s28987_s0  ;;  %27375 = vmatprep.subr.msk.mxu0 %vm1604_vm13, %v2880_v12 }
 0x31e   :  { %5513 = vrot.lane.b32.xlu1 %v30568_v11, %s28998_s18  ;;  %27376 = vmatpush1.msk.msra.mxu0 %vm1604_vm13, %v2879_v61 }
 0x31f   :  { %v2857_v28 = vpop.permute.xlu1 %2856  ;;  %v2859_v4 = vpop.permute.xlu0 %2858  ;;  %27377 = vmatmul.mubr.msk.f32.vlgmr.msra.gmra.mrb[0].mxu0 %vm1600_vm14, %v30740_v52 }
 0x320   :  { %v2882_v33 = vsel %vm2878_vm0, %v2855_v3, %v2857_v28  ;;  %3132 = vmatprep.mubr.f32.mxu0 %v30521_v48  ;;  %v2883_v20 = vsel %vm2878_vm0, %v2857_v28, %v2859_v4 }
 0x321   :  { %6147 = vrot.lane.b32.xlu0 %v30492_v35, %s28987_s0  ;;  %27378 = vmatprep.subr.msk.mxu1 %vm1604_vm13, %v2882_v33 }
 0x322   :  { %6151 = vrot.lane.b32.xlu1 %v30513_v5, %s28987_s0  ;;  %27379 = vmatpush1.msk.msra.mxu1 %vm1604_vm13, %v2881_v58 }
 0x323   :  { %v2861_v22 = vpop.permute.xlu1 %2860  ;;  %v2863_v54 = vpop.permute.xlu0 %2862  ;;  %27380 = vmatmul.mubr.msk.f32.vlgmr.msra.gmra.mrb[0].mxu1 %vm1600_vm14, %v30740_v52 }
 0x324   :  { %v2884_v9 = vsel %vm2878_vm0, %v2859_v4, %v2861_v22  ;;  %3203 = vmatprep.mubr.f32.mxu1 %v30521_v48  ;;  %v2885_v13 = vsel %vm2878_vm0, %v2861_v22, %v2863_v54 }
 0x325   :  { %6155 = vrot.lane.b32.xlu0 %v30526_v1, %s28987_s0  ;;  %27381 = vmatprep.subr.msk.mxu0 %vm1604_vm13, %v2884_v9 }
 0x326   :  { %6153 = vrot.lane.b32.xlu1 %v30511_v46, %s28987_s0  ;;  %27382 = vmatpush1.msk.msra.mxu0 %vm1604_vm13, %v2883_v20 }
 0x327   :  { %v2865_v47 = vpop.permute.xlu1 %2864  ;;  %v2867_v42 = vpop.permute.xlu0 %2866  ;;  %27383 = vmatmul.mubr.msk.f32.vlgmr.msra.gmra.mrb[2].mxu0 %vm1600_vm14, %v30740_v52 }
 0x328   :  { %v2886_v57 = vsel %vm2878_vm0, %v2863_v54, %v2865_v47  ;;  %3274 = vmatprep.mubr.f32.mxu0 %v30521_v48  ;;  %v2887_v2 = vsel %vm2878_vm0, %v2865_v47, %v2867_v42  ;;  %v27422_v47 = vld [vmem:[%s35375_s6 + $0x20] sm:$0x3f] }
 0x329   :  { %6159 = vrot.lane.b32.xlu0 %v30534_v0, %s28987_s0  ;;  %27384 = vmatprep.subr.msk.mxu1 %vm1604_vm13, %v2886_v57 }
 0x32a   :  { %6157 = vrot.lane.b32.xlu1 %v30524_v37, %s28987_s0  ;;  %27385 = vmatpush1.msk.msra.mxu1 %vm1604_vm13, %v2885_v13 }
 0x32b   :  { %v2869_v45 = vpop.permute.xlu1 %2868  ;;  %v2871_v44 = vpop.permute.xlu0 %2870  ;;  %27386 = vmatmul.mubr.msk.f32.vlgmr.msra.gmra.mrb[2].mxu1 %vm1600_vm14, %v30740_v52 }
 0x32c   :  { %v2888_v21 = vsel %vm2878_vm0, %v2867_v42, %v2869_v45  ;;  %3345 = vmatprep.mubr.f32.mxu1 %v30521_v48  ;;  %v2889_v53 = vsel %vm2878_vm0, %v2869_v45, %v2871_v44  ;;  %v7467_v42 = vld [vmem:[%s35376_s7] sm:$0x3f] }
 0x32d   :  { %6163 = vrot.lane.b32.xlu0 %v30542_v50, %s28987_s0  ;;  %27387 = vmatprep.subr.msk.mxu0 %vm1604_vm13, %v2888_v21 }
 0x32e   :  { %6161 = vrot.lane.b32.xlu1 %v30532_v36, %s28987_s0  ;;  %27388 = vmatpush1.msk.msra.mxu0 %vm1604_vm13, %v2887_v2 }
 0x32f   :  { %v2873_v26 = vpop.permute.xlu1 %2872  ;;  %v2875_v43 = vpop.permute.xlu0 %2874  ;;  %27389 = vmatmul.mubr.msk.f32.vlgmr.msra.gmra.mrb[4].mxu0 %vm1600_vm14, %v30740_v52 }
 0x330   :  { %v2890_v39 = vsel %vm2878_vm0, %v2871_v44, %v2873_v26  ;;  %3416 = vmatprep.mubr.f32.mxu0 %v30521_v48  ;;  %v2891_v23 = vsel %vm2878_vm0, %v2873_v26, %v2875_v43 }
 0x331   :  { %6167 = vrot.lane.b32.xlu0 %v30550_v31, %s28987_s0  ;;  %27390 = vmatprep.subr.msk.mxu1 %vm1604_vm13, %v2890_v39 }
 0x332   :  { %6165 = vrot.lane.b32.xlu1 %v30540_v41, %s28987_s0  ;;  %27391 = vmatpush1.msk.msra.mxu1 %vm1604_vm13, %v2889_v53 }
 0x333   :  { %v2877_v17 = vpop.permute.xlu1 %2876  ;;  %28120 = vmatprep.subr.mxu1 %v30521_v48  ;;  %v3545_v18 = vpop.permute.xlu0 %3544  ;;  %27392 = vmatmul.mubr.msk.f32.vlgmr.msra.gmra.mrb[4].mxu1 %vm1600_vm14, %v30740_v52 }
 0x334   :  { %28121 = vmatpush3.msk.msra.mxu1 %vm1604_vm13, %v2877_v17  ;;  %v2892_v49 = vsel %vm2878_vm0, %v2875_v43, %v2877_v17  ;;  %28122 = vmatprep.mubr.msk.f32.mxu1 %vm28997_vm15, %v30521_v48  ;;  %vm27130_vm0 = vcmask 74752  }
 0x335   :  { %6171 = vrot.lane.b32.xlu0 %v30558_v14, %s28987_s0  ;;  %27393 = vmatprep.subr.msk.mxu0 %vm1604_vm13, %v2892_v49 }
 0x336   :  { %6169 = vrot.lane.b32.xlu1 %v30548_v15, %s28987_s0  ;;  %27394 = vmatpush1.msk.msra.mxu0 %vm1604_vm13, %v2891_v23 }
 0x337   :  { %v3547_v7 = vpop.permute.xlu1 %3546  ;;  %v3543_v34 = vpop.permute.xlu0 %3542  ;;  %27395 = vmatmul.mubr.msk.f32.vlgmr.msra.gmra.mrb[6].mxu0 %vm1600_vm14, %v30740_v52  ;;  %28123 = vmatmul.mubr.msk.f32.vlgmr.msra.gmra.mrb[10].mxu1 %vm1600_vm14, %v30740_v52 }
 0x338   :  { %v3575_v19 = vsel %vm3574_vm1, %v3543_v34, %v3545_v18  ;;  %v3576_v32 = vsel %vm3574_vm1, %v3545_v18, %v3547_v7  ;;  %3687 = vmatprep.mubr.f32.mxu0 %v30521_v48  ;;  %3758 = vmatprep.mubr.f32.mxu1 %v30521_v48 }
 0x339   :  { %6175 = vrot.lane.b32.xlu0 %v30568_v11, %s28987_s0  ;;  %27399 = vmatprep.subr.msk.mxu0 %vm1604_vm13, %v3576_v32 }
 0x33a   :  { %6173 = vrot.lane.b32.xlu1 %v30556_v16, %s28987_s0  ;;  %27400 = vmatpush1.msk.msra.mxu0 %vm1604_vm13, %v3575_v19 }
 0x33b   :  { %v3549_v24 = vpop.permute.xlu1 %3548  ;;  %v3551_v51 = vpop.permute.xlu0 %3550  ;;  %27401 = vmatmul.mubr.msk.f32.vlgmr.msra.gmra.mrb[0].mxu0 %vm1600_vm14, %v30828_v62 }
 0x33c   :  { %v3577_v38 = vsel %vm3574_vm1, %v3547_v7, %v3549_v24  ;;  %v3578_v56 = vsel %vm3574_vm1, %v3549_v24, %v3551_v51  ;;  %3829 = vmatprep.mubr.f32.mxu0 %v30521_v48  ;;  %v27470_v24 = vld [vmem:[%s35375_s6 + $0x30] sm:$0x3f] }
 0x33d   :  { %6812 = vrot.lane.b32.xlu0 %v30513_v5, %s28988_s17  ;;  %27402 = vmatprep.subr.msk.mxu1 %vm1604_vm13, %v3578_v56 }
 0x33e   :  { %6810 = vrot.lane.b32.xlu1 %v30497_v59, %s28988_s17  ;;  %27403 = vmatpush1.msk.msra.mxu1 %vm1604_vm13, %v3577_v38 }
 0x33f   :  { %v3553_v29 = vpop.permute.xlu1 %3552  ;;  %v3555_v25 = vpop.permute.xlu0 %3554  ;;  %27404 = vmatmul.mubr.msk.f32.vlgmr.msra.gmra.mrb[0].mxu1 %vm1600_vm14, %v30828_v62 }
 0x340   :  { %v3579_v55 = vsel %vm3574_vm1, %v3551_v51, %v3553_v29  ;;  %v3580_v60 = vsel %vm3574_vm1, %v3553_v29, %v3555_v25  ;;  %3900 = vmatprep.mubr.f32.mxu1 %v30521_v48 }
 0x341   :  { %6814 = vrot.lane.b32.xlu0 %v30511_v46, %s28988_s17  ;;  %27405 = vmatprep.subr.msk.mxu0 %vm1604_vm13, %v3580_v60 }
 0x342   :  { %6808 = vrot.lane.b32.xlu1 %v30492_v35, %s28988_s17  ;;  %27406 = vmatpush1.msk.msra.mxu0 %vm1604_vm13, %v3579_v55 }
 0x343   :  { %v3557_v63 = vpop.permute.xlu1 %3556  ;;  %v3559_v27 = vpop.permute.xlu0 %3558  ;;  %27407 = vmatmul.mubr.msk.f32.vlgmr.msra.gmra.mrb[2].mxu0 %vm1600_vm14, %v30828_v62 }
 0x344   :  { %v3581_v8 = vsel %vm3574_vm1, %v3555_v25, %v3557_v63  ;;  %v3582_v40 = vsel %vm3574_vm1, %v3557_v63, %v3559_v27  ;;  %3971 = vmatprep.mubr.f32.mxu0 %v30521_v48 }
 0x345   :  { %6818 = vrot.lane.b32.xlu0 %v30524_v37, %s28988_s17  ;;  %27408 = vmatprep.subr.msk.mxu1 %vm1604_vm13, %v3582_v40 }
 0x346   :  { %6816 = vrot.lane.b32.xlu1 %v30526_v1, %s28988_s17  ;;  %27409 = vmatpush1.msk.msra.mxu1 %vm1604_vm13, %v3581_v8 }
 0x347   :  { %v3561_v30 = vpop.permute.xlu1 %3560  ;;  %v3563_v6 = vpop.permute.xlu0 %3562  ;;  %27410 = vmatmul.mubr.msk.f32.vlgmr.msra.gmra.mrb[2].mxu1 %vm1600_vm14, %v30828_v62 }
 0x348   :  { %v3583_v10 = vsel %vm3574_vm1, %v3559_v27, %v3561_v30  ;;  %v3584_v3 = vsel %vm3574_vm1, %v3561_v30, %v3563_v6  ;;  %4042 = vmatprep.mubr.f32.mxu1 %v30521_v48 }
 0x349   :  { %6822 = vrot.lane.b32.xlu0 %v30532_v36, %s28988_s17  ;;  %27411 = vmatprep.subr.msk.mxu0 %vm1604_vm13, %v3584_v3 }
 0x34a   :  { %6820 = vrot.lane.b32.xlu1 %v30534_v0, %s28988_s17  ;;  %27412 = vmatpush1.msk.msra.mxu0 %vm1604_vm13, %v3583_v10 }
 0x34b   :  { %v3565_v61 = vpop.permute.xlu1 %3564  ;;  %v3567_v12 = vpop.permute.xlu0 %3566  ;;  %27413 = vmatmul.mubr.msk.f32.vlgmr.msra.gmra.mrb[4].mxu0 %vm1600_vm14, %v30828_v62 }
 0x34c   :  { %v3585_v52 = vsel %vm3574_vm1, %v3563_v6, %v3565_v61  ;;  %v3586_v28 = vsel %vm3574_vm1, %v3565_v61, %v3567_v12  ;;  %4113 = vmatprep.mubr.f32.mxu0 %v30521_v48 }
 0x34d   :  { %6826 = vrot.lane.b32.xlu0 %v30540_v41, %s28988_s17  ;;  %27414 = vmatprep.subr.msk.mxu1 %vm1604_vm13, %v3586_v28 }
 0x34e   :  { %6824 = vrot.lane.b32.xlu1 %v30542_v50, %s28988_s17  ;;  %27415 = vmatpush1.msk.msra.mxu1 %vm1604_vm13, %v3585_v52 }
 0x34f   :  { %v3569_v4 = vpop.permute.xlu1 %3568  ;;  %v3571_v33 = vpop.permute.xlu0 %3570  ;;  %27416 = vmatmul.mubr.msk.f32.vlgmr.msra.gmra.mrb[4].mxu1 %vm1600_vm14, %v30828_v62  ;;  %28125 = vmatprep.subr.mxu1 %v30521_v48 }
 0x350   :  { %v3587_v58 = vsel %vm3574_vm1, %v3567_v12, %v3569_v4  ;;  %v3588_v22 = vsel %vm3574_vm1, %v3569_v4, %v3571_v33  ;;  %28127 = vmatprep.mubr.msk.f32.mxu1 %vm28997_vm15, %v30521_v48 }
 0x351   :  { %6830 = vrot.lane.b32.xlu0 %v30548_v15, %s28988_s17  ;;  %27417 = vmatprep.subr.msk.mxu0 %vm1604_vm13, %v3588_v22 }
 0x352   :  { %6828 = vrot.lane.b32.xlu1 %v30550_v31, %s28988_s17  ;;  %27418 = vmatpush1.msk.msra.mxu0 %vm1604_vm13, %v3587_v58 }
 0x353   :  { %v3573_v54 = vpop.permute.xlu1 %3572  ;;  %27419 = vmatmul.mubr.msk.f32.vlgmr.msra.gmra.mrb[6].mxu0 %vm1600_vm14, %v30828_v62  ;;  %27423 = vmatprep.subr.msk.mxu0 %vm1604_vm13, %v30497_v59  ;;  %v4827_v9 = vpop.permute.xlu0 %4826 }
 0x354   :  { %v3589_v20 = vsel %vm3574_vm1, %v3571_v33, %v3573_v54  ;;  %27424 = vmatpush1.msk.msra.mxu0 %vm1604_vm13, %v30492_v35  ;;  %4304 = vmatprep.mubr.f32.mxu0 %v30521_v48  ;;  %vm27140_vm1 = vcmask 73728  }
 0x355   :  { %6834 = vrot.lane.b32.xlu0 %v30556_v16, %s28988_s17  ;;  %28126 = vmatpush3.msk.msra.mxu1 %vm1604_vm13, %v3589_v20 }
 0x356   :  { %6832 = vrot.lane.b32.xlu1 %v30558_v14, %s28988_s17  ;;  %27429 = vmatprep.subr.msk.mxu0 %vm1604_vm13, %v30524_v37 }
 0x357   :  { %28128 = vmatmul.mubr.msk.f32.vlgmr.msra.gmra.mrb[12].mxu1 %vm1600_vm14, %v30828_v62  ;;  %27426 = vmatprep.subr.msk.mxu1 %vm1604_vm13, %v30511_v46  ;;  %v4829_v35 = vpop.permute.xlu1 %4828  ;;  %v4825_v59 = vpop.permute.xlu0 %4824 }
 0x358   :  { %27425 = vmatmul.mubr.msk.f32.vlgmr.msra.gmra.mrb[0].mxu0 %vm1600_vm14, %v27422_v47  ;;  %27427 = vmatpush1.msk.msra.mxu1 %vm1604_vm13, %v30513_v5 }
 0x359   :  { %27430 = vmatpush1.msk.msra.mxu0 %vm1604_vm13, %v30526_v1  ;;  %27432 = vmatprep.subr.msk.mxu1 %vm1604_vm13, %v30532_v36  ;;  %v4855_v36 = vsel %vm252_vm2, %v4827_v9, %v4829_v35 }
 0x35a   :  { %27435 = vmatprep.subr.msk.mxu0 %vm1604_vm13, %v30540_v41  ;;  %6836 = vrot.lane.b32.xlu1 %v30568_v11, %s28988_s17  ;;  %s29003_s17 = smov 70  }
 0x35b   :  { %7470 = vperm.xlu0 %28908, %v7467_v42   ;;  %4375 = vmatprep.mubr.f32.mxu1 %v30521_v48  ;;  %v4831_v46 = vpop.permute.xlu1 %4830  ;;  %v4833_v5 = vpop.permute.xlu0 %4832  ;;  %v27494_v42 = vld [vmem:[%s35375_s6 + $0x38] sm:$0x3f] }
 0x35c   :  { %27428 = vmatmul.mubr.msk.f32.vlgmr.msra.gmra.mrb[0].mxu1 %vm1600_vm14, %v27422_v47  ;;  %4446 = vmatprep.mubr.f32.mxu0 %v30521_v48  ;;  %v4856_v57 = vsel %vm252_vm2, %v4829_v35, %v4831_v46 }
 0x35d   :  { %27433 = vmatpush1.msk.msra.mxu1 %vm1604_vm13, %v30534_v0  ;;  %27431 = vmatmul.mubr.msk.f32.vlgmr.msra.gmra.mrb[2].mxu0 %vm1600_vm14, %v27422_v47 }
 0x35e   :  { %27436 = vmatpush1.msk.msra.mxu0 %vm1604_vm13, %v30542_v50  ;;  %27438 = vmatprep.subr.msk.mxu1 %vm1604_vm13, %v30548_v15  ;;  %v4854_v50 = vsel %vm252_vm2, %v4825_v59, %v4827_v9  ;;  %v4857_v15 = vsel %vm252_vm2, %v4831_v46, %v4833_v5 }
 0x35f   :  { %27441 = vmatprep.subr.msk.mxu0 %vm1604_vm13, %v30556_v16  ;;  %4517 = vmatprep.mubr.f32.mxu1 %v30521_v48  ;;  %v4835_v37 = vpop.permute.xlu1 %4834  ;;  %v4837_v1 = vpop.permute.xlu0 %4836  ;;  %v27446_v16 = vld [vmem:[%s35375_s6 + $0x28] sm:$0x3f] }
 0x360   :  { %27434 = vmatmul.mubr.msk.f32.vlgmr.msra.gmra.mrb[2].mxu1 %vm1600_vm14, %v27422_v47  ;;  %4588 = vmatprep.mubr.f32.mxu0 %v30521_v48  ;;  %v4858_v45 = vsel %vm252_vm2, %v4833_v5, %v4835_v37 }
 0x361   :  { %27439 = vmatpush1.msk.msra.mxu1 %vm1604_vm13, %v30550_v31  ;;  %27437 = vmatmul.mubr.msk.f32.vlgmr.msra.gmra.mrb[4].mxu0 %vm1600_vm14, %v27422_v47  ;;  %v4859_v31 = vsel %vm252_vm2, %v4835_v37, %v4837_v1 }
 0x362   :  { %27442 = vmatpush1.msk.msra.mxu0 %vm1604_vm13, %v30558_v14  ;;  %4659 = vmatprep.mubr.f32.mxu1 %v30521_v48 }
 0x363   :  { %27447 = vmatprep.subr.msk.mxu0 %vm1604_vm13, %v4855_v36  ;;  %28130 = vmatprep.subr.mxu1 %v30521_v48  ;;  %v4839_v0 = vpop.permute.xlu1 %4838  ;;  %v4841_v41 = vpop.permute.xlu0 %4840 }
 0x364   :  { %27440 = vmatmul.mubr.msk.f32.vlgmr.msra.gmra.mrb[4].mxu1 %vm1600_vm14, %v27422_v47  ;;  %4730 = vmatprep.mubr.f32.mxu0 %v30521_v48  ;;  %v4861_v44 = vsel %vm252_vm2, %v4839_v0, %v4841_v41  ;;  %v4860_v26 = vsel %vm252_vm2, %v4837_v1, %v4839_v0 }
 0x365   :  { %28131 = vmatpush3.msk.msra.mxu1 %vm1604_vm13, %v30568_v11  ;;  %27443 = vmatmul.mubr.msk.f32.vlgmr.msra.gmra.mrb[6].mxu0 %vm1600_vm14, %v27422_v47 }
 0x366   :  { %27448 = vmatpush1.msk.msra.mxu0 %vm1604_vm13, %v4854_v50  ;;  %27450 = vmatprep.subr.msk.mxu1 %vm1604_vm13, %v4857_v15 }
 0x367   :  { %27453 = vmatprep.subr.msk.mxu0 %vm1604_vm13, %v4859_v31  ;;  %28132 = vmatprep.mubr.msk.f32.mxu1 %vm28997_vm15, %v30521_v48  ;;  %v4843_v14 = vpop.permute.xlu1 %4842  ;;  %v4845_v11 = vpop.permute.xlu0 %4844 }
 0x368   :  { %28133 = vmatmul.mubr.msk.f32.vlgmr.msra.gmra.mrb[14].mxu1 %vm1600_vm14, %v27422_v47  ;;  %4965 = vmatprep.mubr.f32.mxu0 %v30521_v48  ;;  %v4863_v13 = vsel %vm252_vm2, %v4843_v14, %v4845_v11  ;;  %v4862_v39 = vsel %vm252_vm2, %v4841_v41, %v4843_v14 }
 0x369   :  { %27451 = vmatpush1.msk.msra.mxu1 %vm1604_vm13, %v4856_v57  ;;  %27449 = vmatmul.mubr.msk.f32.vlgmr.msra.gmra.mrb[0].mxu0 %vm1600_vm14, %v27446_v16 }
 0x36a   :  { %27454 = vmatpush1.msk.msra.mxu0 %vm1604_vm13, %v4858_v45  ;;  %27456 = vmatprep.subr.msk.mxu1 %vm1604_vm13, %v4861_v44 }
 0x36b   :  { %5036 = vmatprep.mubr.f32.mxu1 %v30521_v48  ;;  %27459 = vmatprep.subr.msk.mxu0 %vm1604_vm13, %v4863_v13  ;;  %v4847_v21 = vpop.permute.xlu1 %4846  ;;  %v4849_v2 = vpop.permute.xlu0 %4848 }
 0x36c   :  { %27452 = vmatmul.mubr.msk.f32.vlgmr.msra.gmra.mrb[0].mxu1 %vm1600_vm14, %v27446_v16  ;;  %5107 = vmatprep.mubr.f32.mxu0 %v30521_v48  ;;  %v4865_v43 = vsel %vm252_vm2, %v4847_v21, %v4849_v2  ;;  %v4864_v53 = vsel %vm252_vm2, %v4845_v11, %v4847_v21  ;;  %v31095_v11 = vld [vmem:[#allocation2] sm:$0xff] }
 0x36d   :  { %27457 = vmatpush1.msk.msra.mxu1 %vm1604_vm13, %v4860_v26  ;;  %27455 = vmatmul.mubr.msk.f32.vlgmr.msra.gmra.mrb[2].mxu0 %vm1600_vm14, %v27446_v16 }
 0x36e   :  { %27460 = vmatpush1.msk.msra.mxu0 %vm1604_vm13, %v4862_v39  ;;  %5178 = vmatprep.mubr.f32.mxu1 %v30521_v48 }
 0x36f   :  { %27462 = vmatprep.subr.msk.mxu1 %vm1604_vm13, %v4865_v43  ;;  %v4853_v17 = vpop.permute.xlu0 %4852  ;;  %5249 = vmatprep.mubr.f32.mxu0 %v30521_v48 }
 0x370   :  { %27458 = vmatmul.mubr.msk.f32.vlgmr.msra.gmra.mrb[2].mxu1 %vm1600_vm14, %v27446_v16  ;;  %v4851_v18 = vpop.permute.xlu1 %4850 }
 0x371   :  { %27463 = vmatpush1.msk.msra.mxu1 %vm1604_vm13, %v4864_v53  ;;  %v4866_v49 = vsel %vm252_vm2, %v4849_v2, %v4851_v18  ;;  %5320 = vmatprep.mubr.f32.mxu1 %v30521_v48  ;;  %v4867_v23 = vsel %vm252_vm2, %v4851_v18, %v4853_v17 }
 0x372   :  { %27465 = vmatprep.subr.msk.mxu0 %vm1604_vm13, %v4867_v23  ;;  %28135 = vmatprep.subr.mxu1 %v30521_v48 }
 0x373   :  { %27461 = vmatmul.mubr.msk.f32.vlgmr.msra.gmra.mrb[4].mxu0 %vm1600_vm14, %v27446_v16  ;;  %v5490_v7 = vpop.permute.xlu0 %5489 }
 0x374   :  { %27464 = vmatmul.mubr.msk.f32.vlgmr.msra.gmra.mrb[4].mxu1 %vm1600_vm14, %v27446_v16  ;;  %27466 = vmatpush1.msk.msra.mxu0 %vm1604_vm13, %v4866_v49  ;;  %v5488_v34 = vpop.permute.xlu1 %5487 }
 0x375   :  { %28136 = vmatpush3.msk.msra.mxu1 %vm1604_vm13, %v4853_v17  ;;  %28137 = vmatprep.mubr.msk.f32.mxu1 %vm28997_vm15, %v30521_v48  ;;  %v5517_v19 = vsel %vm5515_vm6, %v5488_v34, %v5490_v7 }
 0x376   :  { %27471 = vmatprep.subr.msk.mxu0 %vm1604_vm13, %v5517_v19  ;;  %5391 = vmatprep.mubr.f32.mxu0 %v30521_v48  ;;  %v27518_v19 = vld [vmem:[%s35375_s6 + $0x40] sm:$0x3f]  ;;  %s28999_s6 = smov 60  }
 0x377   :  { %v5492_v32 = vpop.permute.xlu0 %5491  ;;  %27467 = vmatmul.mubr.msk.f32.vlgmr.msra.gmra.mrb[6].mxu0 %vm1600_vm14, %v27446_v16 }
 0x378   :  { %28138 = vmatmul.mubr.msk.f32.vlgmr.msra.gmra.mrb[16].mxu1 %vm1600_vm14, %v27446_v16  ;;  %v5486_v62 = vpop.permute.xlu1 %5485  ;;  %5627 = vmatprep.mubr.f32.mxu0 %v30521_v48  ;;  %v5518_v25 = vsel %vm5515_vm6, %v5490_v7, %v5492_v32 }
 0x379   :  { %v5516_v51 = vsel %vm5515_vm6, %v5486_v62, %v5488_v34  ;;  %5698 = vmatprep.mubr.f32.mxu1 %v30521_v48 }
 0x37a   :  { %27472 = vmatpush1.msk.msra.mxu0 %vm1604_vm13, %v5516_v51 }
 0x37b   :  { %v5496_v38 = vpop.permute.xlu0 %5495  ;;  %27473 = vmatmul.mubr.msk.f32.vlgmr.msra.gmra.mrb[0].mxu0 %vm1600_vm14, %v27470_v24 }
 0x37c   :  { %v5494_v56 = vpop.permute.xlu1 %5493  ;;  %5769 = vmatprep.mubr.f32.mxu0 %v30521_v48 }
 0x37d   :  { %v5519_v29 = vsel %vm5515_vm6, %v5492_v32, %v5494_v56  ;;  %v5520_v27 = vsel %vm5515_vm6, %v5494_v56, %v5496_v38 }
 0x37e   :  { %27474 = vmatprep.subr.msk.mxu1 %vm1604_vm13, %v5519_v29 }
 0x37f   :  { %27475 = vmatpush1.msk.msra.mxu1 %vm1604_vm13, %v5518_v25  ;;  %v5500_v55 = vpop.permute.xlu0 %5499 }
 0x380   :  { %v5498_v60 = vpop.permute.xlu1 %5497  ;;  %27476 = vmatmul.mubr.msk.f32.vlgmr.msra.gmra.mrb[0].mxu1 %vm1600_vm14, %v27470_v24 }
 0x381   :  { %v5521_v63 = vsel %vm5515_vm6, %v5496_v38, %v5498_v60  ;;  %5840 = vmatprep.mubr.f32.mxu1 %v30521_v48  ;;  %v5522_v6 = vsel %vm5515_vm6, %v5498_v60, %v5500_v55 }
 0x382   :  { %27477 = vmatprep.subr.msk.mxu0 %vm1604_vm13, %v5521_v63 }
 0x383   :  { %27478 = vmatpush1.msk.msra.mxu0 %vm1604_vm13, %v5520_v27  ;;  %v5504_v8 = vpop.permute.xlu0 %5503 }
 0x384   :  { %v5502_v40 = vpop.permute.xlu1 %5501  ;;  %27479 = vmatmul.mubr.msk.f32.vlgmr.msra.gmra.mrb[2].mxu0 %vm1600_vm14, %v27470_v24 }
 0x385   :  { %v5523_v30 = vsel %vm5515_vm6, %v5500_v55, %v5502_v40  ;;  %5911 = vmatprep.mubr.f32.mxu0 %v30521_v48  ;;  %v5524_v12 = vsel %vm5515_vm6, %v5502_v40, %v5504_v8 }
 0x386   :  { %27480 = vmatprep.subr.msk.mxu1 %vm1604_vm13, %v5523_v30 }
 0x387   :  { %27481 = vmatpush1.msk.msra.mxu1 %vm1604_vm13, %v5522_v6  ;;  %v5508_v10 = vpop.permute.xlu0 %5507 }
 0x388   :  { %v5506_v3 = vpop.permute.xlu1 %5505  ;;  %27482 = vmatmul.mubr.msk.f32.vlgmr.msra.gmra.mrb[2].mxu1 %vm1600_vm14, %v27470_v24 }
 0x389   :  { %v5525_v61 = vsel %vm5515_vm6, %v5504_v8, %v5506_v3  ;;  %5982 = vmatprep.mubr.f32.mxu1 %v30521_v48  ;;  %v5526_v33 = vsel %vm5515_vm6, %v5506_v3, %v5508_v10 }
 0x38a   :  { %27483 = vmatprep.subr.msk.mxu0 %vm1604_vm13, %v5525_v61 }
 0x38b   :  { %27484 = vmatpush1.msk.msra.mxu0 %vm1604_vm13, %v5524_v12  ;;  %v5512_v52 = vpop.permute.xlu0 %5511 }
 0x38c   :  { %v5510_v28 = vpop.permute.xlu1 %5509  ;;  %27485 = vmatmul.mubr.msk.f32.vlgmr.msra.gmra.mrb[4].mxu0 %vm1600_vm14, %v27470_v24 }
 0x38d   :  { %v5527_v4 = vsel %vm5515_vm6, %v5508_v10, %v5510_v28  ;;  %6053 = vmatprep.mubr.f32.mxu0 %v30521_v48  ;;  %v5528_v9 = vsel %vm5515_vm6, %v5510_v28, %v5512_v52 }
 0x38e   :  { %27486 = vmatprep.subr.msk.mxu1 %vm1604_vm13, %v5527_v4 }
 0x38f   :  { %27487 = vmatpush1.msk.msra.mxu1 %vm1604_vm13, %v5526_v33  ;;  %v6150_v58 = vpop.permute.xlu0 %6149 }
 0x390   :  { %v5514_v22 = vpop.permute.xlu1 %5513  ;;  %27488 = vmatmul.mubr.msk.f32.vlgmr.msra.gmra.mrb[4].mxu1 %vm1600_vm14, %v27470_v24  ;;  %28140 = vmatprep.subr.mxu1 %v30521_v48 }
 0x391   :  { %28141 = vmatpush3.msk.msra.mxu1 %vm1604_vm13, %v5514_v22  ;;  %v5529_v54 = vsel %vm5515_vm6, %v5512_v52, %v5514_v22  ;;  %28142 = vmatprep.mubr.msk.f32.mxu1 %vm28997_vm15, %v30521_v48 }
 0x392   :  { %27489 = vmatprep.subr.msk.mxu0 %vm1604_vm13, %v5529_v54 }
 0x393   :  { %27490 = vmatpush1.msk.msra.mxu0 %vm1604_vm13, %v5528_v9  ;;  %v6148_v20 = vpop.permute.xlu0 %6147 }
 0x394   :  { %v6152_v47 = vpop.permute.xlu1 %6151  ;;  %28143 = vmatmul.mubr.msk.f32.vlgmr.msra.gmra.mrb[18].mxu1 %vm1600_vm14, %v27470_v24  ;;  %v6177_v35 = vsel %vm568_vm4, %v6148_v20, %v6150_v58  ;;  %27491 = vmatmul.mubr.msk.f32.vlgmr.msra.gmra.mrb[6].mxu0 %vm1600_vm14, %v27470_v24 }
 0x395   :  { %v6178_v59 = vsel %vm568_vm4, %v6150_v58, %v6152_v47  ;;  %6288 = vmatprep.mubr.f32.mxu0 %v30521_v48  ;;  %6359 = vmatprep.mubr.f32.mxu1 %v30521_v48 }
 0x396   :  { %27495 = vmatprep.subr.msk.mxu0 %vm1604_vm13, %v6178_v59 }
 0x397   :  { %27496 = vmatpush1.msk.msra.mxu0 %vm1604_vm13, %v6177_v35  ;;  %v6156_v46 = vpop.permute.xlu0 %6155 }
 0x398   :  { %v6154_v5 = vpop.permute.xlu1 %6153  ;;  %27497 = vmatmul.mubr.msk.f32.vlgmr.msra.gmra.mrb[0].mxu0 %vm1600_vm14, %v27494_v42 }
 0x399   :  { %v6179_v37 = vsel %vm568_vm4, %v6152_v47, %v6154_v5  ;;  %v6180_v1 = vsel %vm568_vm4, %v6154_v5, %v6156_v46  ;;  %6430 = vmatprep.mubr.f32.mxu0 %v30521_v48 }
 0x39a   :  { %27498 = vmatprep.subr.msk.mxu1 %vm1604_vm13, %v6180_v1 }
 0x39b   :  { %27499 = vmatpush1.msk.msra.mxu1 %vm1604_vm13, %v6179_v37  ;;  %v6160_v36 = vpop.permute.xlu0 %6159 }
 0x39c   :  { %v6158_v0 = vpop.permute.xlu1 %6157  ;;  %27500 = vmatmul.mubr.msk.f32.vlgmr.msra.gmra.mrb[0].mxu1 %vm1600_vm14, %v27494_v42 }
 0x39d   :  { %v6181_v41 = vsel %vm568_vm4, %v6156_v46, %v6158_v0  ;;  %v6182_v50 = vsel %vm568_vm4, %v6158_v0, %v6160_v36  ;;  %6501 = vmatprep.mubr.f32.mxu1 %v30521_v48  ;;  %v9805_v46 = vld [vmem:[#allocation3] sm:$0x3f] }
 0x39e   :  { %27501 = vmatprep.subr.msk.mxu0 %vm1604_vm13, %v6182_v50 }
 0x39f   :  { %27502 = vmatpush1.msk.msra.mxu0 %vm1604_vm13, %v6181_v41  ;;  %v6164_v15 = vpop.permute.xlu0 %6163 }
 0x3a0   :  { %v6162_v31 = vpop.permute.xlu1 %6161  ;;  %27503 = vmatmul.mubr.msk.f32.vlgmr.msra.gmra.mrb[2].mxu0 %vm1600_vm14, %v27494_v42 }
 0x3a1   :  { %v6183_v16 = vsel %vm568_vm4, %v6160_v36, %v6162_v31  ;;  %v6184_v14 = vsel %vm568_vm4, %v6162_v31, %v6164_v15  ;;  %6572 = vmatprep.mubr.f32.mxu0 %v31095_v11 }
 0x3a2   :  { %27504 = vmatprep.subr.msk.mxu1 %vm1604_vm13, %v6184_v14 }
 0x3a3   :  { %27505 = vmatpush1.msk.msra.mxu1 %vm1604_vm13, %v6183_v16  ;;  %v6168_v48 = vpop.permute.xlu0 %6167 }
 0x3a4   :  { %v6166_v57 = vpop.permute.xlu1 %6165  ;;  %27506 = vmatmul.mubr.msk.f32.vlgmr.msra.gmra.mrb[2].mxu1 %vm1600_vm14, %v27494_v42 }
 0x3a5   :  { %v6185_v13 = vsel %vm568_vm4, %v6164_v15, %v6166_v57  ;;  %v6186_v45 = vsel %vm568_vm4, %v6166_v57, %v6168_v48  ;;  %6643 = vmatprep.mubr.f32.mxu1 %v31095_v11 }
 0x3a6   :  { %27507 = vmatprep.subr.msk.mxu0 %vm1604_vm13, %v6186_v45 }
 0x3a7   :  { %27508 = vmatpush1.msk.msra.mxu0 %vm1604_vm13, %v6185_v13  ;;  %v6172_v44 = vpop.permute.xlu0 %6171 }
 0x3a8   :  { %v6170_v21 = vpop.permute.xlu1 %6169  ;;  %27509 = vmatmul.mubr.msk.f32.vlgmr.msra.gmra.mrb[4].mxu0 %vm1600_vm14, %v27494_v42 }
 0x3a9   :  { %v6187_v2 = vsel %vm568_vm4, %v6168_v48, %v6170_v21  ;;  %v6188_v26 = vsel %vm568_vm4, %v6170_v21, %v6172_v44  ;;  %6714 = vmatprep.mubr.f32.mxu0 %v31095_v11 }
 0x3aa   :  { %27510 = vmatprep.subr.msk.mxu1 %vm1604_vm13, %v6188_v26 }
 0x3ab   :  { %27511 = vmatpush1.msk.msra.mxu1 %vm1604_vm13, %v6187_v2  ;;  %v6176_v43 = vpop.permute.xlu0 %6175 }
 0x3ac   :  { %v6174_v39 = vpop.permute.xlu1 %6173  ;;  %27512 = vmatmul.mubr.msk.f32.vlgmr.msra.gmra.mrb[4].mxu1 %vm1600_vm14, %v27494_v42  ;;  %28145 = vmatprep.subr.mxu1 %v31095_v11 }
 0x3ad   :  { %v6189_v53 = vsel %vm568_vm4, %v6172_v44, %v6174_v39  ;;  %28146 = vmatpush3.msk.msra.mxu1 %vm1604_vm13, %v6176_v43  ;;  %v6190_v17 = vsel %vm568_vm4, %v6174_v39, %v6176_v43  ;;  %28147 = vmatprep.mubr.msk.f32.mxu1 %vm28997_vm15, %v31095_v11 }
 0x3ae   :  { %27513 = vmatprep.subr.msk.mxu0 %vm1604_vm13, %v6190_v17 }
 0x3af   :  { %27514 = vmatpush1.msk.msra.mxu0 %vm1604_vm13, %v6189_v53  ;;  %v6813_v18 = vpop.permute.xlu0 %6812 }
 0x3b0   :  { %v6811_v49 = vpop.permute.xlu1 %6810  ;;  %28148 = vmatmul.mubr.msk.f32.vlgmr.msra.gmra.mrb[20].mxu1 %vm1600_vm14, %v27494_v42  ;;  %27515 = vmatmul.mubr.msk.f32.vlgmr.msra.gmra.mrb[6].mxu0 %vm1600_vm14, %v27494_v42  ;;  %v7820_v42 = vld [vmem:[#allocation3] sm:$0x3f] }
 0x3b1   :  { %v6839_v23 = vsel %vm764_vm5, %v6811_v49, %v6813_v18  ;;  %6949 = vmatprep.mubr.f32.mxu0 %v31095_v11  ;;  %7020 = vmatprep.mubr.f32.mxu1 %v31095_v11 }
 0x3b2   :  { %27519 = vmatprep.subr.msk.mxu0 %vm1604_vm13, %v6839_v23  ;;  %7853 = vrot.lane.b32.xlu1 %v7820_v42, %s28999_s6 }
 0x3b3   :  { %v6815_v7 = vpop.permute.xlu0 %6814  ;;  %8498 = vrot.lane.b32.xlu0 %v7820_v42, %s29000_s25 }
 0x3b4   :  { %v6809_v34 = vpop.permute.xlu1 %6808  ;;  %v6840_v38 = vsel %vm764_vm5, %v6813_v18, %v6815_v7 }
 0x3b5   :  { %v6838_v32 = vsel %vm764_vm5, %v6809_v34, %v6811_v49 }
 0x3b6   :  { %27520 = vmatpush1.msk.msra.mxu0 %vm1604_vm13, %v6838_v32  ;;  %9145 = vrot.lane.b32.xlu1 %v7820_v42, %s29001_s1 }
 0x3b7   :  { %27521 = vmatmul.mubr.msk.f32.vlgmr.msra.gmra.mrb[0].mxu0 %vm1600_vm14, %v27518_v19  ;;  %v6819_v62 = vpop.permute.xlu0 %6818  ;;  %9839 = vrot.lane.b32.xlu0 %v9805_v46, %s29002_s26 }
 0x3b8   :  { %v6817_v24 = vpop.permute.xlu1 %6816  ;;  %7091 = vmatprep.mubr.f32.mxu0 %v31095_v11 }
 0x3b9   :  { %v6841_v51 = vsel %vm764_vm5, %v6815_v7, %v6817_v24  ;;  %v6842_v55 = vsel %vm764_vm5, %v6817_v24, %v6819_v62 }
 0x3ba   :  { %27522 = vmatprep.subr.msk.mxu1 %vm1604_vm13, %v6841_v51 }
 0x3bb   :  { %27523 = vmatpush1.msk.msra.mxu1 %vm1604_vm13, %v6840_v38  ;;  %v6823_v56 = vpop.permute.xlu0 %6822 }
 0x3bc   :  { %v6821_v29 = vpop.permute.xlu1 %6820  ;;  %27524 = vmatmul.mubr.msk.f32.vlgmr.msra.gmra.mrb[0].mxu1 %vm1600_vm14, %v27518_v19 }
 0x3bd   :  { %v6843_v25 = vsel %vm764_vm5, %v6819_v62, %v6821_v29  ;;  %7162 = vmatprep.mubr.f32.mxu1 %v31095_v11  ;;  %v6844_v8 = vsel %vm764_vm5, %v6821_v29, %v6823_v56 }
 0x3be   :  { %27525 = vmatprep.subr.msk.mxu0 %vm1604_vm13, %v6843_v25 }
 0x3bf   :  { %27526 = vmatpush1.msk.msra.mxu0 %vm1604_vm13, %v6842_v55  ;;  %v6827_v60 = vpop.permute.xlu0 %6826 }
 0x3c0   :  { %v6825_v63 = vpop.permute.xlu1 %6824  ;;  %27527 = vmatmul.mubr.msk.f32.vlgmr.msra.gmra.mrb[2].mxu0 %vm1600_vm14, %v27518_v19 }
 0x3c1   :  { %v6845_v27 = vsel %vm764_vm5, %v6823_v56, %v6825_v63  ;;  %7233 = vmatprep.mubr.f32.mxu0 %v31095_v11  ;;  %v6846_v10 = vsel %vm764_vm5, %v6825_v63, %v6827_v60 }
 0x3c2   :  { %27528 = vmatprep.subr.msk.mxu1 %vm1604_vm13, %v6845_v27 }
 0x3c3   :  { %27529 = vmatpush1.msk.msra.mxu1 %vm1604_vm13, %v6844_v8  ;;  %v6831_v30 = vpop.permute.xlu0 %6830 }
 0x3c4   :  { %v6829_v40 = vpop.permute.xlu1 %6828  ;;  %27530 = vmatmul.mubr.msk.f32.vlgmr.msra.gmra.mrb[2].mxu1 %vm1600_vm14, %v27518_v19 }
 0x3c5   :  { %v6847_v6 = vsel %vm764_vm5, %v6827_v60, %v6829_v40  ;;  %7304 = vmatprep.mubr.f32.mxu1 %v31095_v11  ;;  %v6848_v12 = vsel %vm764_vm5, %v6829_v40, %v6831_v30 }
 0x3c6   :  { %27531 = vmatprep.subr.msk.mxu0 %vm1604_vm13, %v6847_v6 }
 0x3c7   :  { %27532 = vmatpush1.msk.msra.mxu0 %vm1604_vm13, %v6846_v10  ;;  %v6835_v52 = vpop.permute.xlu0 %6834 }
 0x3c8   :  { %v6833_v3 = vpop.permute.xlu1 %6832  ;;  %27533 = vmatmul.mubr.msk.f32.vlgmr.msra.gmra.mrb[4].mxu0 %vm1600_vm14, %v27518_v19 }
 0x3c9   :  { %v6849_v61 = vsel %vm764_vm5, %v6831_v30, %v6833_v3  ;;  %7375 = vmatprep.mubr.f32.mxu0 %v31095_v11  ;;  %v6850_v33 = vsel %vm764_vm5, %v6833_v3, %v6835_v52 }
 0x3ca   :  { %27534 = vmatprep.subr.msk.mxu1 %vm1604_vm13, %v6849_v61 }
 0x3cb   :  { %27535 = vmatpush1.msk.msra.mxu1 %vm1604_vm13, %v6848_v12 }
 0x3cc   :  { %v6837_v28 = vpop.permute.xlu1 %6836  ;;  %27536 = vmatmul.mubr.msk.f32.vlgmr.msra.gmra.mrb[4].mxu1 %vm1600_vm14, %v27518_v19  ;;  %28150 = vmatprep.subr.mxu1 %v31095_v11 }
 0x3cd   :  { %28151 = vmatpush3.msk.msra.mxu1 %vm1604_vm13, %v6837_v28  ;;  %v6851_v4 = vsel %vm764_vm5, %v6835_v52, %v6837_v28  ;;  %28152 = vmatprep.mubr.msk.f32.mxu1 %vm28997_vm15, %v31095_v11  ;;  %vm9175_vm5 = vcmask 474112  }
 0x3ce   :  { %27537 = vmatprep.subr.msk.mxu0 %vm1604_vm13, %v6851_v4 }
 0x3cf   :  { %27538 = vmatpush1.msk.msra.mxu0 %vm1604_vm13, %v6850_v33 }
 0x3d0   :  { %27539 = vmatmul.mubr.msk.f32.vlgmr.msra.gmra.mrb[6].mxu0 %vm1600_vm14, %v27518_v19  ;;  %28153 = vmatmul.mubr.msk.f32.vlgmr.msra.gmra.mrb[22].mxu1 %vm1600_vm14, %v27518_v19 }
 0x3d1   :  { %7995 = vmatprep.mubr.f32.mxu0 %v31095_v11  ;;  %8066 = vmatprep.mubr.f32.mxu1 %v31095_v11 }
 0x3d3   :  { %v2198_v58 = vpop.f32.mrb[6].mxu1 }
 0x3d4   :  { %v28114_v22 = vpop.f32.mrb[7].mxu1 }
 0x3da   :  { %v31181_v44 = vpop.permute.xlu0 %7470 }
 0x3ee   :  { %v2842_v54 = vpop.f32.mrb[8].mxu1 }
 0x3ef   :  { %v2843_v9 = vadd.f32 %v2842_v54, %v2198_v58  ;;  %v28119_v20 = vpop.f32.mrb[9].mxu1 }
 0x40a   :  { %v3489_v47 = vpop.f32.mrb[10].mxu1 }
 0x40b   :  { %v3507_v35 = vadd.f32 %v3489_v47, %v2843_v9  ;;  %v28124_v59 = vpop.f32.mrb[11].mxu1 }
 0x42a   :  { %v4186_v5 = vpop.f32.mrb[12].mxu1 }
 0x42b   :  { %v4204_v37 = vadd.f32 %v4186_v5, %v3507_v35  ;;  %v28129_v1 = vpop.f32.mrb[13].mxu1 }
 0x43b   :  { %v4803_v36 = vpop.f32.mrb[14].mxu1 }
 0x43c   :  { %v4821_v0 = vadd.f32 %v4803_v36, %v4204_v37  ;;  %v28134_v41 = vpop.f32.mrb[15].mxu1 }
 0x44b   :  { %v5464_v50 = vpop.f32.mrb[16].mxu1 }
 0x44c   :  { %v5482_v15 = vadd.f32 %v5464_v50, %v4821_v0  ;;  %v28139_v31 = vpop.f32.mrb[17].mxu1 }
 0x467   :  { %v6126_v16 = vpop.f32.mrb[18].mxu1 }
 0x468   :  { %v6144_v14 = vadd.f32 %v6126_v16, %v5482_v15  ;;  %v28144_v48 = vpop.f32.mrb[19].mxu1 }
 0x483   :  { %v6787_v57 = vpop.f32.mrb[20].mxu1 }
 0x484   :  { %v31179_v13 = vadd.f32 %v6787_v57, %v6144_v14  ;;  %v28149_v45 = vpop.f32.mrb[21].mxu1 }
 0x48a   :  { %v6951_v21 = vpop.f32.mrb[0].mxu0 }
 0x48b   :  { %v7473_v2 = vadd.f32 %v31181_v44, %v6951_v21  ;;  %v6953_v26 = vpop.f32.mrb[1].mxu0  ;;  %v31241_v21 = vpop.permute.xlu0 %8498 }
 0x48c   :  { %v7474_v43 = vadd.f32 %v31181_v44, %v6953_v26 }
 0x48d   :  { %v7488_v39 = vmax.f32 %v7473_v2, 0.0 }
 0x48e   :  { %v7489_v53 = vmax.f32 %v7474_v43, 0.0 }
 0x48f   :  { %7503 = vst [vmem:[#allocation2 + $0x8] sm:$0x3f] %v7488_v39  ;;  %v7022_v17 = vpop.f32.mrb[0].mxu1  ;;  %v31245_v26 = vpop.permute.xlu0 %9839 }
 0x490   :  { %7504 = vst [vmem:[#allocation2 + $0x10] sm:$0x3f] %v7489_v53  ;;  %v7475_v18 = vadd.f32 %v31181_v44, %v7022_v17  ;;  %v7024_v49 = vpop.f32.mrb[1].mxu1 }
 0x491   :  { %v7476_v23 = vadd.f32 %v31181_v44, %v7024_v49 }
 0x492   :  { %v7490_v7 = vmax.f32 %v7475_v18, 0.0 }
 0x493   :  { %v7491_v34 = vmax.f32 %v7476_v23, 0.0  ;;  %v7093_v19 = vpop.f32.mrb[2].mxu0 }
 0x494   :  { %7505 = vst [vmem:[#allocation2 + $0x18] sm:$0x3f] %v7490_v7  ;;  %v7477_v32 = vadd.f32 %v31181_v44, %v7093_v19  ;;  %v7095_v62 = vpop.f32.mrb[3].mxu0 }
 0x495   :  { %7506 = vst [vmem:[#allocation2 + $0x20] sm:$0x3f] %v7491_v34  ;;  %v7478_v24 = vadd.f32 %v31181_v44, %v7095_v62 }
 0x496   :  { %v7492_v51 = vmax.f32 %v7477_v32, 0.0  ;;  %v31189_v38 = vld [vmem:[#allocation2 + $0x8] sm:$0x3f] }
 0x497   :  { %v7493_v56 = vmax.f32 %v7478_v24, 0.0  ;;  %v7164_v29 = vpop.f32.mrb[2].mxu1  ;;  %7548 = vrot.lane.b32.xlu1 %v31189_v38, %s28985_s4  ;;  %v31193_v25 = vld [vmem:[#allocation2 + $0x10] sm:$0x3f] }
 0x498   :  { %7507 = vst [vmem:[#allocation2 + $0x28] sm:$0x3f] %v7492_v51  ;;  %v7479_v55 = vadd.f32 %v31181_v44, %v7164_v29  ;;  %v7166_v60 = vpop.f32.mrb[3].mxu1  ;;  %7550 = vrot.lane.b32.xlu0 %v31193_v25, %s28985_s4 }
 0x499   :  { %7508 = vst [vmem:[#allocation2 + $0x30] sm:$0x3f] %v7493_v56  ;;  %v7480_v63 = vadd.f32 %v31181_v44, %v7166_v60 }
 0x49a   :  { %v7494_v27 = vmax.f32 %v7479_v55, 0.0 }
 0x49b   :  { %v7495_v8 = vmax.f32 %v7480_v63, 0.0  ;;  %v7235_v40 = vpop.f32.mrb[4].mxu0  ;;  %v31199_v30 = vld [vmem:[#allocation2 + $0x18] sm:$0x3f] }
 0x49c   :  { %7509 = vst [vmem:[#allocation2 + $0x38] sm:$0x3f] %v7494_v27  ;;  %v7481_v6 = vadd.f32 %v31181_v44, %v7235_v40  ;;  %v7237_v10 = vpop.f32.mrb[5].mxu0  ;;  %7552 = vrot.lane.b32.xlu1 %v31199_v30, %s28985_s4  ;;  %v31204_v3 = vld [vmem:[#allocation2 + $0x20] sm:$0x3f] }
 0x49d   :  { %7510 = vst [vmem:[#allocation2 + $0x40] sm:$0x3f] %v7495_v8  ;;  %v7482_v61 = vadd.f32 %v31181_v44, %v7237_v10  ;;  %7554 = vrot.lane.b32.xlu0 %v31204_v3, %s28985_s4 }
 0x49e   :  { %v7496_v12 = vmax.f32 %v7481_v6, 0.0 }
 0x49f   :  { %v7497_v52 = vmax.f32 %v7482_v61, 0.0  ;;  %v7306_v28 = vpop.f32.mrb[4].mxu1  ;;  %v31209_v4 = vld [vmem:[#allocation2 + $0x28] sm:$0x3f] }
 0x4a0   :  { %7511 = vst [vmem:[#allocation2 + $0x48] sm:$0x3f] %v7496_v12  ;;  %v7483_v33 = vadd.f32 %v31181_v44, %v7306_v28  ;;  %v7308_v58 = vpop.f32.mrb[5].mxu1  ;;  %7556 = vrot.lane.b32.xlu1 %v31209_v4, %s28985_s4  ;;  %v31214_v22 = vld [vmem:[#allocation2 + $0x30] sm:$0x3f] }
 0x4a1   :  { %7512 = vst [vmem:[#allocation2 + $0x50] sm:$0x3f] %v7497_v52  ;;  %v7484_v54 = vadd.f32 %v31181_v44, %v7308_v58  ;;  %7558 = vrot.lane.b32.xlu0 %v31214_v22, %s28985_s4 }
 0x4a2   :  { %v7498_v9 = vmax.f32 %v7483_v33, 0.0 }
 0x4a3   :  { %v7499_v20 = vmax.f32 %v7484_v54, 0.0  ;;  %v7377_v47 = vpop.f32.mrb[6].mxu0  ;;  %v7448_v35 = vpop.f32.mrb[22].mxu1  ;;  %v31219_v59 = vld [vmem:[#allocation2 + $0x38] sm:$0x3f] }
 0x4a4   :  { %7513 = vst [vmem:[#allocation2 + $0x58] sm:$0x3f] %v7498_v9  ;;  %v7485_v42 = vadd.f32 %v31181_v44, %v7377_v47  ;;  %v7466_v46 = vadd.f32 %v7448_v35, %v31179_v13  ;;  %v7379_v5 = vpop.f32.mrb[7].mxu0  ;;  %7560 = vrot.lane.b32.xlu1 %v31219_v59, %s28985_s4  ;;  %v7525_v37 = vld [vmem:[#allocation2 + $0x40] sm:$0x3f]  ;;  %v28154_v1 = vpop.f32.mrb[23].mxu1 }
 0x4a5   :  { %7514 = vst [vmem:[#allocation2 + $0x60] sm:$0x3f] %v7499_v20  ;;  %v7486_v36 = vadd.f32 %v31181_v44, %v7379_v5  ;;  %7562 = vrot.lane.b32.xlu0 %v7525_v37, %s28985_s4  ;;  %v35616_v1 = vld [vmem:[#allocation8_spill] sm:$0xff] }
 0x4a6   :  { %v7500_v0 = vmax.f32 %v7485_v42, 0.0  ;;  %v7487_v41 = vadd.f32 %v31181_v44, %v7466_v46  ;;  %v31239_v44 = vpop.permute.xlu1 %7853 }
 0x4a7   :  { %v7501_v50 = vmax.f32 %v7486_v36, 0.0  ;;  %v7526_v15 = vld [vmem:[#allocation2 + $0x48] sm:$0x3f] }
 0x4a8   :  { %7515 = vst [vmem:[#allocation2 + $0x68] sm:$0x3f] %v7500_v0  ;;  %v7502_v31 = vmax.f32 %v7487_v41, 0.0  ;;  %7564 = vrot.lane.b32.xlu1 %v7526_v15, %s28985_s4  ;;  %v7527_v16 = vld [vmem:[#allocation2 + $0x50] sm:$0x3f] }
 0x4a9   :  { %7516 = vst [vmem:[#allocation2 + $0x70] sm:$0x3f] %v7501_v50  ;;  %7566 = vrot.lane.b32.xlu0 %v7527_v16, %s28985_s4  ;;  %v35617_v50 = vld [vmem:[#allocation7_spill] sm:$0xff] }
 0x4aa   :  { %7517 = vst.msk [vmem:[#allocation2 + $0x78] sm:$0x3f] %vm1520_vm11, %v7502_v31  ;;  %v31243_v2 = vpop.permute.xlu1 %9145 }
 0x4ab   :  { %v7528_v14 = vld [vmem:[#allocation2 + $0x58] sm:$0x3f] }
 0x4ac   :  { %7568 = vrot.lane.b32.xlu1 %v7528_v14, %s28985_s4  ;;  %v7529_v48 = vld [vmem:[#allocation2 + $0x60] sm:$0x3f] }
 0x4ad   :  { %7570 = vrot.lane.b32.xlu0 %v7529_v48, %s28985_s4 }
 0x4af   :  { %v7530_v57 = vld [vmem:[#allocation2 + $0x68] sm:$0x3f] }
 0x4b0   :  { %7572 = vrot.lane.b32.xlu1 %v7530_v57, %s28985_s4  ;;  %v31234_v13 = vld [vmem:[#allocation2 + $0x70] sm:$0x3f] }
 0x4b1   :  { %7574 = vrot.lane.b32.xlu0 %v31234_v13, %s28985_s4  ;;  %v7532_v45 = vld [vmem:[#allocation2 + $0x78] sm:$0x3f] }
 0x4b4   :  { %7576 = vrot.lane.b32.xlu1 %v7532_v45, %s28985_s4 }
 0x509   :  { %v7549_v43 = vpop.permute.xlu1 %7548 }
 0x50a   :  { %v7551_v39 = vpop.permute.xlu0 %7550 }
 0x50b   :  { %v7578_v53 = vsel %vm252_vm2, %v7549_v43, %v7551_v39 }
 0x50c   :  { %v31249_v17 = vmax.f32 %v31189_v38, %v7578_v53 }
 0x50e   :  { %v7553_v18 = vpop.permute.xlu1 %7552  ;;  %7637 = vrot.lane.b32.xlu0 %v31249_v17, %s28987_s0 }
 0x50f   :  { %v7579_v49 = vsel %vm252_vm2, %v7551_v39, %v7553_v18  ;;  %v7555_v23 = vpop.permute.xlu0 %7554 }
 0x510   :  { %v31255_v7 = vmax.f32 %v31193_v25, %v7579_v49  ;;  %v7580_v34 = vsel %vm252_vm2, %v7553_v18, %v7555_v23  ;;  %v35619_v18 = vld [vmem:[#allocation9_spill] sm:$0xff] }
 0x511   :  { %v31259_v19 = vmax.f32 %v31199_v30, %v7580_v34 }
 0x512   :  { %v7557_v32 = vpop.permute.xlu1 %7556  ;;  %7639 = vrot.lane.b32.xlu1 %v31255_v7, %s28987_s0 }
 0x513   :  { %v7581_v62 = vsel %vm252_vm2, %v7555_v23, %v7557_v32  ;;  %7641 = vrot.lane.b32.xlu0 %v31259_v19, %s28987_s0  ;;  %v7559_v24 = vpop.permute.xlu0 %7558 }
 0x514   :  { %v31267_v51 = vmax.f32 %v31204_v3, %v7581_v62  ;;  %v7582_v38 = vsel %vm252_vm2, %v7557_v32, %v7559_v24 }
 0x515   :  { %v31271_v56 = vmax.f32 %v31209_v4, %v7582_v38 }
 0x516   :  { %v7561_v29 = vpop.permute.xlu1 %7560  ;;  %7643 = vrot.lane.b32.xlu1 %v31267_v51, %s28987_s0 }
 0x517   :  { %v7583_v25 = vsel %vm252_vm2, %v7559_v24, %v7561_v29  ;;  %7645 = vrot.lane.b32.xlu0 %v31271_v56, %s28987_s0  ;;  %v7563_v55 = vpop.permute.xlu0 %7562 }
 0x518   :  { %v31279_v60 = vmax.f32 %v31214_v22, %v7583_v25  ;;  %v7584_v63 = vsel %vm252_vm2, %v7561_v29, %v7563_v55 }
 0x519   :  { %v31283_v27 = vmax.f32 %v31219_v59, %v7584_v63 }
 0x51a   :  { %v7565_v8 = vpop.permute.xlu1 %7564  ;;  %7647 = vrot.lane.b32.xlu1 %v31279_v60, %s28987_s0 }
 0x51b   :  { %v7585_v40 = vsel %vm252_vm2, %v7563_v55, %v7565_v8  ;;  %7649 = vrot.lane.b32.xlu0 %v31283_v27, %s28987_s0  ;;  %v7567_v30 = vpop.permute.xlu0 %7566  ;;  %v35621_v55 = vld [vmem:[#allocation11_spill] sm:$0xff] }
 0x51c   :  { %v31290_v6 = vmax.f32 %v7525_v37, %v7585_v40  ;;  %v7586_v10 = vsel %vm252_vm2, %v7565_v8, %v7567_v30  ;;  %v7711_v37 = vld [vmem:[%s35371_s2] sm:$0xff] }
 0x51d   :  { %v31293_v3 = vmax.f32 %v7526_v15, %v7586_v10  ;;  %v7718_v36 = vrot.slane %v7711_v37, %v35616_v1  ;;  %v7722_v15 = vrot.slane %v7711_v37, %v35617_v50  ;;  %v7730_v49 = vrot.slane %v7711_v37, %v35619_v18 }
 0x51e   :  { %v7569_v61 = vpop.permute.xlu1 %7568  ;;  %7651 = vrot.lane.b32.xlu1 %v31290_v6, %s28987_s0  ;;  %v7738_v63 = vrot.slane %v7711_v37, %v35621_v55 }
 0x51f   :  { %v7587_v12 = vsel %vm252_vm2, %v7567_v30, %v7569_v61  ;;  %7653 = vrot.lane.b32.xlu0 %v31293_v3, %s28987_s0  ;;  %v7571_v52 = vpop.permute.xlu0 %7570 }
 0x520   :  { %v31300_v28 = vmax.f32 %v7527_v16, %v7587_v12  ;;  %v7588_v4 = vsel %vm252_vm2, %v7569_v61, %v7571_v52 }
 0x521   :  { %v31303_v33 = vmax.f32 %v7528_v14, %v7588_v4 }
 0x522   :  { %v7573_v58 = vpop.permute.xlu1 %7572  ;;  %7655 = vrot.lane.b32.xlu1 %v31300_v28, %s28987_s0 }
 0x523   :  { %v7589_v22 = vsel %vm252_vm2, %v7571_v52, %v7573_v58  ;;  %7657 = vrot.lane.b32.xlu0 %v31303_v33, %s28987_s0  ;;  %v7575_v54 = vpop.permute.xlu0 %7574 }
 0x524   :  { %v31310_v9 = vmax.f32 %v7529_v48, %v7589_v22  ;;  %v7590_v20 = vsel %vm252_vm2, %v7573_v58, %v7575_v54  ;;  %v35623_v58 = vld [vmem:[#allocation13_spill] sm:$0xff] }
 0x525   :  { %v31313_v47 = vmax.f32 %v7530_v57, %v7590_v20  ;;  %v7746_v22 = vrot.slane %v7711_v37, %v35623_v58 }
 0x526   :  { %v7577_v35 = vpop.permute.xlu1 %7576  ;;  %7659 = vrot.lane.b32.xlu1 %v31310_v9, %s28987_s0 }
 0x527   :  { %v7591_v59 = vsel %vm252_vm2, %v7575_v54, %v7577_v35  ;;  %7661 = vrot.lane.b32.xlu0 %v31313_v47, %s28987_s0  ;;  %v31323_v46 = vmax.f32 %v7532_v45, %v7577_v35  ;;  %vm7883_vm2 = vcmask 490496  }
 0x528   :  { %v31321_v42 = vmax.f32 %v31234_v13, %v7591_v59  ;;  %v35618_v13 = vld [vmem:[#allocation10_spill] sm:$0xff] }
 0x529   :  { %v7726_v45 = vrot.slane %v7711_v37, %v35618_v13 }
 0x52a   :  { %7663 = vrot.lane.b32.xlu1 %v31321_v42, %s28987_s0 }
 0x52b   :  { %7665 = vrot.lane.b32.xlu0 %v31323_v46, %s28987_s0 }
 0x580   :  { %v7638_v5 = vpop.permute.xlu0 %7637 }
 0x584   :  { %v7640_v0 = vpop.permute.xlu1 %7639 }
 0x585   :  { %v7667_v41 = vsel %vm568_vm4, %v7638_v5, %v7640_v0  ;;  %v7642_v31 = vpop.permute.xlu0 %7641 }
 0x586   :  { %v7696_v16 = vmax.f32 %v31249_v17, %v7667_v41  ;;  %v7668_v14 = vsel %vm568_vm4, %v7640_v0, %v7642_v31 }
 0x587   :  { %v7697_v48 = vmax.f32 %v31255_v7, %v7668_v14  ;;  %v35620_v7 = vld [vmem:[#allocation12_spill] sm:$0xff] }
 0x588   :  { %v7790_v57 = vmul.f32 %v7718_v36, %v7696_v16  ;;  %v7644_v43 = vpop.permute.xlu1 %7643  ;;  %v7734_v24 = vrot.slane %v7711_v37, %v35620_v7 }
 0x589   :  { %v7791_v39 = vmul.f32 %v7722_v15, %v7697_v48  ;;  %v7669_v53 = vsel %vm568_vm4, %v7642_v31, %v7644_v43  ;;  %v7646_v23 = vpop.permute.xlu0 %7645 }
 0x58a   :  { %7805 = vst [vmem:[#allocation3 + $0x8] sm:$0x3f] %v7790_v57  ;;  %v7698_v34 = vmax.f32 %v31259_v19, %v7669_v53  ;;  %v7670_v32 = vsel %vm568_vm4, %v7644_v43, %v7646_v23 }
 0x58b   :  { %7806 = vst [vmem:[#allocation3 + $0x10] sm:$0x3f] %v7791_v39  ;;  %v7699_v17 = vmax.f32 %v31267_v51, %v7670_v32  ;;  %v35622_v51 = vld [vmem:[#allocation14_spill] sm:$0xff] }
 0x58c   :  { %v7792_v62 = vmul.f32 %v7726_v45, %v7698_v34  ;;  %v7648_v38 = vpop.permute.xlu1 %7647  ;;  %v7742_v61 = vrot.slane %v7711_v37, %v35622_v51 }
 0x58d   :  { %v7793_v29 = vmul.f32 %v7730_v49, %v7699_v17  ;;  %v7671_v25 = vsel %vm568_vm4, %v7646_v23, %v7648_v38  ;;  %v7650_v8 = vpop.permute.xlu0 %7649 }
 0x58e   :  { %7807 = vst [vmem:[#allocation3 + $0x18] sm:$0x3f] %v7792_v62  ;;  %v7700_v40 = vmax.f32 %v31271_v56, %v7671_v25  ;;  %v7672_v19 = vsel %vm568_vm4, %v7648_v38, %v7650_v8  ;;  %v7712_v56 = vld [vmem:[%s35371_s2 + $0x8] sm:$0x7f] }
 0x58f   :  { %7808 = vst [vmem:[#allocation3 + $0x20] sm:$0x3f] %v7793_v29  ;;  %v7701_v30 = vmax.f32 %v31279_v60, %v7672_v19  ;;  %v7750_v36 = vrot.slane %v7712_v56, %v35616_v1  ;;  %v7754_v31 = vrot.slane %v7712_v56, %v35617_v50  ;;  %v7758_v57 = vrot.slane %v7712_v56, %v35618_v13 }
 0x590   :  { %v7794_v10 = vmul.f32 %v7734_v24, %v7700_v40  ;;  %v7652_v12 = vpop.permute.xlu1 %7651  ;;  %v7762_v53 = vrot.slane %v7712_v56, %v35619_v18  ;;  %v7766_v32 = vrot.slane %v7712_v56, %v35620_v7  ;;  %v7774_v62 = vrot.slane %v7712_v56, %v35622_v51 }
 0x591   :  { %v7795_v52 = vmul.f32 %v7738_v63, %v7701_v30  ;;  %v7673_v4 = vsel %vm568_vm4, %v7650_v8, %v7652_v12  ;;  %v7654_v54 = vpop.permute.xlu0 %7653  ;;  %v7821_v20 = vld [vmem:[#allocation3 + $0x8] sm:$0x3f] }
 0x592   :  { %7809 = vst [vmem:[#allocation3 + $0x28] sm:$0x3f] %v7794_v10  ;;  %v7702_v35 = vmax.f32 %v31283_v27, %v7673_v4  ;;  %v7674_v60 = vsel %vm568_vm4, %v7652_v12, %v7654_v54  ;;  %7855 = vrot.lane.b32.xlu1 %v7821_v20, %s28999_s6  ;;  %v7822_v59 = vld [vmem:[#allocation3 + $0x10] sm:$0x3f]  ;;  %v31388_v40 = vld [vmem:[#allocation3 + $0x8] sm:$0x3f] }
 0x593   :  { %7810 = vst [vmem:[#allocation3 + $0x30] sm:$0x3f] %v7795_v52  ;;  %v7703_v5 = vmax.f32 %v31290_v6, %v7674_v60  ;;  %7857 = vrot.lane.b32.xlu0 %v7822_v59, %s28999_s6  ;;  %v31381_v25 = vld [vmem:[#allocation3 + $0x10] sm:$0x3f] }
 0x594   :  { %v7796_v37 = vmul.f32 %v7742_v61, %v7702_v35  ;;  %v7656_v0 = vpop.permute.xlu1 %7655 }
 0x595   :  { %v7797_v41 = vmul.f32 %v7746_v22, %v7703_v5  ;;  %v7675_v15 = vsel %vm568_vm4, %v7654_v54, %v7656_v0  ;;  %v7658_v27 = vpop.permute.xlu0 %7657  ;;  %v7823_v12 = vld [vmem:[#allocation3 + $0x18] sm:$0x3f] }
 0x596   :  { %7811 = vst [vmem:[#allocation3 + $0x38] sm:$0x3f] %v7796_v37  ;;  %v7704_v16 = vmax.f32 %v31293_v3, %v7675_v15  ;;  %v7676_v14 = vsel %vm568_vm4, %v7656_v0, %v7658_v27  ;;  %8502 = vrot.lane.b32.xlu1 %v7822_v59, %s29000_s25  ;;  %v31413_v4 = vld [vmem:[#allocation3 + $0x20] sm:$0x3f] }
 0x597   :  { %7812 = vst [vmem:[#allocation3 + $0x40] sm:$0x3f] %v7797_v41  ;;  %v7705_v6 = vmax.f32 %v31300_v28, %v7676_v14  ;;  %8500 = vrot.lane.b32.xlu0 %v7821_v20, %s29000_s25 }
 0x598   :  { %v7798_v48 = vmul.f32 %v7750_v36, %v7704_v16  ;;  %v7660_v45 = vpop.permute.xlu1 %7659 }
 0x599   :  { %v7799_v43 = vmul.f32 %v7754_v31, %v7705_v6  ;;  %v7677_v39 = vsel %vm568_vm4, %v7658_v27, %v7660_v45  ;;  %v7662_v49 = vpop.permute.xlu0 %7661  ;;  %v7825_v52 = vld [vmem:[#allocation3 + $0x28] sm:$0x3f] }
 0x59a   :  { %7813 = vst [vmem:[#allocation3 + $0x48] sm:$0x3f] %v7798_v48  ;;  %v7706_v3 = vmax.f32 %v31303_v33, %v7677_v39  ;;  %v7678_v23 = vsel %vm568_vm4, %v7660_v45, %v7662_v49  ;;  %9147 = vrot.lane.b32.xlu1 %v7821_v20, %s29001_s1  ;;  %v7770_v33 = vrot.slane %v7712_v56, %v35621_v55  ;;  %v31418_v22 = vld [vmem:[#allocation3 + $0x28] sm:$0x3f]  ;;  %v31422_v54 = vld [vmem:[#allocation3 + $0x30] sm:$0x3f] }
 0x59b   :  { %7814 = vst [vmem:[#allocation3 + $0x50] sm:$0x3f] %v7799_v43  ;;  %v7707_v28 = vmax.f32 %v31310_v9, %v7678_v23  ;;  %9149 = vrot.lane.b32.xlu0 %v7822_v59, %s29001_s1  ;;  %v31490_v45 = vld [vmem:[%s35377_s8 + $0x8] sm:$0xff] }
 0x59c   :  { %v7800_v34 = vmul.f32 %v7758_v57, %v7706_v3  ;;  %v7664_v17 = vpop.permute.xlu1 %7663 }
 0x59d   :  { %v7801_v24 = vmul.f32 %v7762_v53, %v7707_v28  ;;  %v7679_v38 = vsel %vm568_vm4, %v7662_v49, %v7664_v17  ;;  %v7666_v29 = vpop.permute.xlu0 %7665  ;;  %v7827_v20 = vld [vmem:[#allocation3 + $0x38] sm:$0x3f] }
 0x59e   :  { %7815 = vst [vmem:[#allocation3 + $0x58] sm:$0x3f] %v7800_v34  ;;  %v7708_v63 = vmax.f32 %v31313_v47, %v7679_v38  ;;  %v7680_v9 = vsel %vm568_vm4, %v7664_v17, %v7666_v29  ;;  %v7710_v8 = vmax.f32 %v31323_v46, %v7666_v29  ;;  %9843 = vrot.lane.b32.xlu1 %v31381_v25, %s29002_s26  ;;  %v31399_v47 = vld [vmem:[#allocation3 + $0x18] sm:$0x3f]  ;;  %v7824_v46 = vld [vmem:[#allocation3 + $0x20] sm:$0x3f] }
 0x59f   :  { %7816 = vst [vmem:[#allocation3 + $0x60] sm:$0x3f] %v7801_v24  ;;  %v7709_v19 = vmax.f32 %v31321_v42, %v7680_v9  ;;  %9841 = vrot.lane.b32.xlu0 %v31388_v40, %s29002_s26  ;;  %v7826_v42 = vld [vmem:[#allocation3 + $0x30] sm:$0x3f]  ;;  %v31428_v56 = vld [vmem:[#allocation3 + $0x38] sm:$0x3f] }
 0x5a0   :  { %v7802_v30 = vmul.f32 %v7766_v32, %v7708_v63  ;;  %v7804_v10 = vmul.f32 %v7774_v62, %v7710_v8  ;;  %v7828_v35 = vld [vmem:[#allocation3 + $0x40] sm:$0x3f]  ;;  %vm8528_vm4 = vcmask 506880  }
 0x5a1   :  { %v7803_v61 = vmul.f32 %v7770_v33, %v7709_v19  ;;  %v7829_v60 = vld [vmem:[#allocation3 + $0x48] sm:$0x3f]  ;;  %v31442_v5 = vld [vmem:[#allocation3 + $0x40] sm:$0x3f] }
 0x5a2   :  { %7817 = vst [vmem:[#allocation3 + $0x68] sm:$0x3f] %v7802_v30  ;;  %7819 = vst.msk [vmem:[#allocation3 + $0x78] sm:$0x3f] %vm1520_vm11, %v7804_v10  ;;  %7859 = vrot.lane.b32.xlu1 %v7823_v12, %s28999_s6  ;;  %v7830_v59 = vld [vmem:[#allocation3 + $0x50] sm:$0x3f] }
 0x5a3   :  { %7818 = vst [vmem:[#allocation3 + $0x70] sm:$0x3f] %v7803_v61  ;;  %11123 = vrot.lane.b32.xlu0 %v31381_v25, %s28986_s5  ;;  %v31446_v37 = vld [vmem:[#allocation3 + $0x48] sm:$0x3f]  ;;  %v31450_v36 = vld [vmem:[#allocation3 + $0x50] sm:$0x3f] }
 0x5a4   :  { %v31561_v10 = vld [vmem:[#allocation2] sm:$0xff]  ;;  %vm58_vm11 = vcmask 64512  }
 0x5a5   :  { %v7831_v0 = vld [vmem:[#allocation3 + $0x58] sm:$0x3f] }
 0x5a6   :  { %9151 = vrot.lane.b32.xlu1 %v7823_v12, %s29001_s1  ;;  %v31456_v41 = vld [vmem:[#allocation3 + $0x58] sm:$0x3f]  ;;  %v7832_v31 = vld [vmem:[#allocation3 + $0x60] sm:$0x3f] }
 0x5a7   :  { %8504 = vrot.lane.b32.xlu0 %v7823_v12, %s29000_s25  ;;  %v31467_v27 = vld [vmem:[#allocation3 + $0x60] sm:$0x3f] }
 0x5a9   :  { %v31461_v15 = vld [vmem:[#allocation3 + $0x78] sm:$0x3f]  ;;  %v7833_v16 = vld [vmem:[#allocation3 + $0x68] sm:$0x3f] }
 0x5aa   :  { %11125 = vrot.lane.b32.xlu1 %v31399_v47, %s28986_s5  ;;  %v7834_v14 = vld [vmem:[#allocation3 + $0x70] sm:$0x3f] }
 0x5ab   :  { %9845 = vrot.lane.b32.xlu0 %v31399_v47, %s29002_s26  ;;  %v31558_v19 = vld [vmem:[#allocation3 + $0x70] sm:$0x3f] }
 0x5ae   :  { %7865 = vrot.lane.b32.xlu1 %v7826_v42, %s28999_s6 }
 0x5af   :  { %7861 = vrot.lane.b32.xlu0 %v7824_v46, %s28999_s6 }
 0x5b2   :  { %8506 = vrot.lane.b32.xlu1 %v7824_v46, %s29000_s25 }
 0x5b3   :  { %7863 = vrot.lane.b32.xlu0 %v7825_v52, %s28999_s6 }
 0x5b6   :  { %8508 = vrot.lane.b32.xlu1 %v7825_v52, %s29000_s25 }
 0x5b7   :  { %8510 = vrot.lane.b32.xlu0 %v7826_v42, %s29000_s25 }
 0x5ba   :  { %9157 = vrot.lane.b32.xlu1 %v7826_v42, %s29001_s1  ;;  %v31572_v42 = vld [vmem:[#allocation3 + $0x68] sm:$0x3f] }
 0x5bb   :  { %9153 = vrot.lane.b32.xlu0 %v7824_v46, %s29001_s1 }
 0x5be   :  { %9847 = vrot.lane.b32.xlu1 %v31413_v4, %s29002_s26 }
 0x5bf   :  { %9155 = vrot.lane.b32.xlu0 %v7825_v52, %s29001_s1 }
 0x5c2   :  { %9849 = vrot.lane.b32.xlu1 %v31418_v22, %s29002_s26 }
 0x5c3   :  { %9851 = vrot.lane.b32.xlu0 %v31422_v54, %s29002_s26 }
 0x5c6   :  { %8512 = vrot.lane.b32.xlu1 %v7827_v20, %s29000_s25 }
 0x5c7   :  { %7867 = vrot.lane.b32.xlu0 %v7827_v20, %s28999_s6 }
 0x5ca   :  { %9853 = vrot.lane.b32.xlu1 %v31428_v56, %s29002_s26 }
 0x5cb   :  { %9159 = vrot.lane.b32.xlu0 %v7827_v20, %s29001_s1 }
 0x5ce   :  { %7869 = vrot.lane.b32.xlu1 %v7828_v35, %s28999_s6 }
 0x5cf   :  { %7871 = vrot.lane.b32.xlu0 %v7829_v60, %s28999_s6 }
 0x5d2   :  { %7873 = vrot.lane.b32.xlu1 %v7830_v59, %s28999_s6 }
 0x5d3   :  { %8514 = vrot.lane.b32.xlu0 %v7828_v35, %s29000_s25 }
 0x5d6   :  { %8516 = vrot.lane.b32.xlu1 %v7829_v60, %s29000_s25 }
 0x5d7   :  { %8518 = vrot.lane.b32.xlu0 %v7830_v59, %s29000_s25 }
 0x5da   :  { %9161 = vrot.lane.b32.xlu1 %v7828_v35, %s29001_s1 }
 0x5db   :  { %9163 = vrot.lane.b32.xlu0 %v7829_v60, %s29001_s1 }
 0x5de   :  { %9165 = vrot.lane.b32.xlu1 %v7830_v59, %s29001_s1 }
 0x5df   :  { %9855 = vrot.lane.b32.xlu0 %v31442_v5, %s29002_s26 }
 0x5e2   :  { %9857 = vrot.lane.b32.xlu1 %v31446_v37, %s29002_s26 }
 0x5e3   :  { %9859 = vrot.lane.b32.xlu0 %v31450_v36, %s29002_s26 }
 0x5e6   :  { %8520 = vrot.lane.b32.xlu1 %v7831_v0, %s29000_s25 }
 0x5e7   :  { %7875 = vrot.lane.b32.xlu0 %v7831_v0, %s28999_s6 }
 0x5ea   :  { %9861 = vrot.lane.b32.xlu1 %v31456_v41, %s29002_s26 }
 0x5eb   :  { %9167 = vrot.lane.b32.xlu0 %v7831_v0, %s29001_s1 }
 0x5ee   :  { %9869 = vrot.lane.b32.xlu1 %v31461_v15, %s29002_s26 }
 0x5ef   :  { %8522 = vrot.lane.b32.xlu0 %v7832_v31, %s29000_s25 }
 0x5f2   :  { %7877 = vrot.lane.b32.xlu1 %v7832_v31, %s28999_s6 }
 0x5f3   :  { %9863 = vrot.lane.b32.xlu0 %v31467_v27, %s29002_s26 }
 0x5f6   :  { %9169 = vrot.lane.b32.xlu1 %v7832_v31, %s29001_s1 }
 0x5f7   :  { %7879 = vrot.lane.b32.xlu0 %v7833_v16, %s28999_s6 }
 0x5fa   :  { %7881 = vrot.lane.b32.xlu1 %v7834_v14, %s28999_s6 }
 0x5fb   :  { %11127 = vrot.lane.b32.xlu0 %v31413_v4, %s28986_s5 }
 0x5fe   :  { %11129 = vrot.lane.b32.xlu1 %v31418_v22, %s28986_s5 }
 0x5ff   :  { %11121 = vrot.lane.b32.xlu0 %v31388_v40, %s28986_s5 }
 0x602   :  { %11131 = vrot.lane.b32.xlu1 %v31422_v54, %s28986_s5 }
 0x603   :  { %11133 = vrot.lane.b32.xlu0 %v31428_v56, %s28986_s5 }
 0x604   :  { %v7856_v6 = vpop.permute.xlu1 %7855 }
 0x605   :  { %v7858_v48 = vpop.permute.xlu0 %7857  ;;  %v7884_v43 = vsel %vm7883_vm2, %v31239_v44, %v7856_v6 }
 0x606   :  { %11135 = vrot.lane.b32.xlu1 %v31442_v5, %s28986_s5  ;;  %v7885_v57 = vsel %vm7883_vm2, %v7856_v6, %v7858_v48 }
 0x607   :  { %8526 = vrot.lane.b32.xlu0 %v7834_v14, %s29000_s25  ;;  %27543 = vmatprep.subr.msk.mxu0 %vm1604_vm13, %v7885_v57 }
 0x608   :  { %v31496_v39 = vpop.permute.xlu1 %8502  ;;  %27544 = vmatpush1.msk.msra.mxu0 %vm1604_vm13, %v7884_v43 }
 0x609   :  { %v31499_v53 = vpop.permute.xlu0 %8500  ;;  %27545 = vmatmul.mubr.msk.f32.vlgmr.msra.gmra.mrb[8].mxu0 %vm1600_vm14, %v31490_v45 }
 0x60a   :  { %8524 = vrot.lane.b32.xlu1 %v7833_v16, %s29000_s25  ;;  %8137 = vmatprep.mubr.f32.mxu0 %v31095_v11 }
 0x60b   :  { %11137 = vrot.lane.b32.xlu0 %v31446_v37, %s28986_s5 }
 0x60c   :  { %v31507_v44 = vpop.permute.xlu1 %9147 }
 0x60d   :  { %v31509_v49 = vpop.permute.xlu0 %9149 }
 0x60e   :  { %11139 = vrot.lane.b32.xlu1 %v31450_v36, %s28986_s5 }
 0x60f   :  { %11141 = vrot.lane.b32.xlu0 %v31456_v41, %s28986_s5 }
 0x610   :  { %v31515_v3 = vpop.permute.xlu1 %9843 }
 0x611   :  { %v31517_v23 = vpop.permute.xlu0 %9841 }
 0x612   :  { %11143 = vrot.lane.b32.xlu1 %v31467_v27, %s28986_s5 }
 0x613   :  { %11149 = vrot.lane.b32.xlu0 %v31461_v15, %s28986_s5 }
 0x614   :  { %v7860_v11 = vpop.permute.xlu1 %7859 }
 0x615   :  { %v31523_v28 = vpop.permute.xlu0 %11123  ;;  %v7886_v29 = vsel %vm7883_vm2, %v7858_v48, %v7860_v11 }
 0x616   :  { %35624 = vst [vmem:[#allocation15_spill] sm:$0xff] %v31523_v28  ;;  %11784 = vrot.lane.b32.xlu1 %v31381_v25, %s29003_s17 }
 0x617   :  { %9171 = vrot.lane.b32.xlu0 %v7833_v16, %s29001_s1 }
 0x618   :  { %v31528_v34 = vpop.permute.xlu1 %9151 }
 0x619   :  { %v31530_v32 = vpop.permute.xlu0 %8504 }
 0x61a   :  { %9173 = vrot.lane.b32.xlu1 %v7834_v14, %s29001_s1 }
 0x61b   :  { %11786 = vrot.lane.b32.xlu0 %v31399_v47, %s29003_s17 }
 0x61c   :  { %v31535_v17 = vpop.permute.xlu1 %11125 }
 0x61d   :  { %35625 = vst [vmem:[#allocation16_spill] sm:$0xff] %v31535_v17  ;;  %v31537_v62 = vpop.permute.xlu0 %9845 }
 0x61e   :  { %11788 = vrot.lane.b32.xlu1 %v31413_v4, %s29003_s17 }
 0x61f   :  { %11790 = vrot.lane.b32.xlu0 %v31418_v22, %s29003_s17 }
 0x620   :  { %v7866_v24 = vpop.permute.xlu1 %7865 }
 0x621   :  { %v7862_v38 = vpop.permute.xlu0 %7861 }
 0x622   :  { %11782 = vrot.lane.b32.xlu1 %v31388_v40, %s29003_s17  ;;  %v7887_v33 = vsel %vm7883_vm2, %v7860_v11, %v7862_v38 }
 0x623   :  { %11792 = vrot.lane.b32.xlu0 %v31422_v54, %s29003_s17  ;;  %27546 = vmatprep.subr.msk.mxu1 %vm1604_vm13, %v7887_v33 }
 0x624   :  { %v31550_v63 = vpop.permute.xlu1 %8506  ;;  %27547 = vmatpush1.msk.msra.mxu1 %vm1604_vm13, %v7886_v29 }
 0x625   :  { %v7864_v9 = vpop.permute.xlu0 %7863  ;;  %27548 = vmatmul.mubr.msk.f32.vlgmr.msra.gmra.mrb[24].mxu1 %vm1600_vm14, %v31490_v45 }
 0x626   :  { %v7888_v8 = vsel %vm7883_vm2, %v7862_v38, %v7864_v9  ;;  %11794 = vrot.lane.b32.xlu1 %v31428_v56, %s29003_s17  ;;  %v7889_v30 = vsel %vm7883_vm2, %v7864_v9, %v7866_v24  ;;  %8208 = vmatprep.mubr.f32.mxu1 %v31561_v10 }
 0x627   :  { %9867 = vrot.lane.b32.xlu0 %v31558_v19, %s29002_s26  ;;  %27549 = vmatprep.subr.msk.mxu0 %vm1604_vm13, %v7889_v30 }
 0x628   :  { %v31567_v61 = vpop.permute.xlu1 %8508  ;;  %27550 = vmatpush1.msk.msra.mxu0 %vm1604_vm13, %v7888_v8 }
 0x629   :  { %v31570_v12 = vpop.permute.xlu0 %8510  ;;  %27551 = vmatmul.mubr.msk.f32.vlgmr.msra.gmra.mrb[10].mxu0 %vm1600_vm14, %v31490_v45 }
 0x62a   :  { %9865 = vrot.lane.b32.xlu1 %v31572_v42, %s29002_s26  ;;  %8279 = vmatprep.mubr.f32.mxu0 %v31561_v10 }
 0x62b   :  { %11796 = vrot.lane.b32.xlu0 %v31442_v5, %s29003_s17 }
 0x62c   :  { %v31581_v46 = vpop.permute.xlu1 %9157 }
 0x62d   :  { %v31583_v52 = vpop.permute.xlu0 %9153 }
 0x62e   :  { %11798 = vrot.lane.b32.xlu1 %v31446_v37, %s29003_s17 }
 0x62f   :  { %11800 = vrot.lane.b32.xlu0 %v31450_v36, %s29003_s17 }
 0x630   :  { %v31589_v20 = vpop.permute.xlu1 %9847 }
 0x631   :  { %v31591_v35 = vpop.permute.xlu0 %9155 }
 0x632   :  { %11802 = vrot.lane.b32.xlu1 %v31456_v41, %s29003_s17 }
 0x633   :  { %11804 = vrot.lane.b32.xlu0 %v31467_v27, %s29003_s17 }
 0x634   :  { %v31597_v60 = vpop.permute.xlu1 %9849 }
 0x635   :  { %v31599_v59 = vpop.permute.xlu0 %9851 }
 0x636   :  { %11810 = vrot.lane.b32.xlu1 %v31461_v15, %s29003_s17 }
 0x637   :  { %12446 = vrot.lane.b32.xlu0 %v31381_v25, %s28990_s19 }
 0x638   :  { %v31605_v0 = vpop.permute.xlu1 %8512 }
 0x639   :  { %v7868_v31 = vpop.permute.xlu0 %7867 }
 0x63a   :  { %12448 = vrot.lane.b32.xlu1 %v31399_v47, %s28990_s19  ;;  %v7890_v43 = vsel %vm7883_vm2, %v7866_v24, %v7868_v31 }
 0x63b   :  { %12450 = vrot.lane.b32.xlu0 %v31413_v4, %s28990_s19 }
 0x63c   :  { %v31611_v16 = vpop.permute.xlu1 %9853 }
 0x63d   :  { %v31613_v14 = vpop.permute.xlu0 %9159 }
 0x63e   :  { %12452 = vrot.lane.b32.xlu1 %v31418_v22, %s28990_s19 }
 0x63f   :  { %12444 = vrot.lane.b32.xlu0 %v31388_v40, %s28990_s19 }
 0x640   :  { %v7870_v6 = vpop.permute.xlu1 %7869 }
 0x641   :  { %v7872_v48 = vpop.permute.xlu0 %7871  ;;  %v7891_v57 = vsel %vm7883_vm2, %v7868_v31, %v7870_v6 }
 0x642   :  { %12454 = vrot.lane.b32.xlu1 %v31422_v54, %s28990_s19  ;;  %27552 = vmatprep.subr.msk.mxu1 %vm1604_vm13, %v7891_v57  ;;  %v7892_v24 = vsel %vm7883_vm2, %v7870_v6, %v7872_v48 }
 0x643   :  { %11145 = vrot.lane.b32.xlu0 %v31572_v42, %s28986_s5  ;;  %27553 = vmatpush1.msk.msra.mxu1 %vm1604_vm13, %v7890_v43 }
 0x644   :  { %v7874_v11 = vpop.permute.xlu1 %7873  ;;  %27554 = vmatmul.mubr.msk.f32.vlgmr.msra.gmra.mrb[26].mxu1 %vm1600_vm14, %v31490_v45 }
 0x645   :  { %v31629_v38 = vpop.permute.xlu0 %8514  ;;  %v7893_v33 = vsel %vm7883_vm2, %v7872_v48, %v7874_v11  ;;  %8350 = vmatprep.mubr.f32.mxu1 %v31561_v10 }
 0x646   :  { %12458 = vrot.lane.b32.xlu1 %v31442_v5, %s28990_s19  ;;  %27555 = vmatprep.subr.msk.mxu0 %vm1604_vm13, %v7893_v33 }
 0x647   :  { %12456 = vrot.lane.b32.xlu0 %v31428_v56, %s28990_s19  ;;  %27556 = vmatpush1.msk.msra.mxu0 %vm1604_vm13, %v7892_v24 }
 0x648   :  { %v31640_v29 = vpop.permute.xlu1 %8516  ;;  %27557 = vmatmul.mubr.msk.f32.vlgmr.msra.gmra.mrb[12].mxu0 %vm1600_vm14, %v31490_v45 }
 0x649   :  { %v31644_v9 = vpop.permute.xlu0 %8518  ;;  %8421 = vmatprep.mubr.f32.mxu0 %v31561_v10 }
 0x64a   :  { %11147 = vrot.lane.b32.xlu1 %v31558_v19, %s28986_s5 }
 0x64b   :  { %12460 = vrot.lane.b32.xlu0 %v31446_v37, %s28990_s19 }
 0x64c   :  { %v31651_v8 = vpop.permute.xlu1 %9161 }
 0x64d   :  { %v31653_v30 = vpop.permute.xlu0 %9163 }
 0x64e   :  { %12462 = vrot.lane.b32.xlu1 %v31450_v36, %s28990_s19 }
 0x64f   :  { %12464 = vrot.lane.b32.xlu0 %v31456_v41, %s28990_s19 }
 0x650   :  { %v31659_v31 = vpop.permute.xlu1 %9165 }
 0x651   :  { %v31661_v6 = vpop.permute.xlu0 %9855 }
 0x652   :  { %12466 = vrot.lane.b32.xlu1 %v31467_v27, %s28990_s19 }
 0x653   :  { %12472 = vrot.lane.b32.xlu0 %v31461_v15, %s28990_s19 }
 0x654   :  { %v31667_v48 = vpop.permute.xlu1 %9857 }
 0x655   :  { %v31669_v57 = vpop.permute.xlu0 %9859 }
 0x656   :  { %11806 = vrot.lane.b32.xlu1 %v31572_v42, %s29003_s17 }
 0x657   :  { %11808 = vrot.lane.b32.xlu0 %v31558_v19, %s29003_s17 }
 0x658   :  { %v31675_v43 = vpop.permute.xlu1 %8520 }
 0x659   :  { %v7876_v33 = vpop.permute.xlu0 %7875 }
 0x65a   :  { %13107 = vrot.lane.b32.xlu1 %v31381_v25, %s28992_s21  ;;  %v7894_v50 = vsel %vm7883_vm2, %v7874_v11, %v7876_v33 }
 0x65b   :  { %13109 = vrot.lane.b32.xlu0 %v31399_v47, %s28992_s21 }
 0x65c   :  { %v31681_v24 = vpop.permute.xlu1 %9861 }
 0x65d   :  { %v31683_v58 = vpop.permute.xlu0 %9167 }
 0x65e   :  { %13111 = vrot.lane.b32.xlu1 %v31413_v4, %s28992_s21 }
 0x65f   :  { %13113 = vrot.lane.b32.xlu0 %v31418_v22, %s28992_s21 }
 0x660   :  { %v31689_v51 = vpop.permute.xlu1 %9869 }
 0x661   :  { %v31691_v55 = vpop.permute.xlu0 %8522 }
 0x662   :  { %13105 = vrot.lane.b32.xlu1 %v31388_v40, %s28992_s21 }
 0x663   :  { %12468 = vrot.lane.b32.xlu0 %v31572_v42, %s28990_s19 }
 0x664   :  { %v7878_v7 = vpop.permute.xlu1 %7877 }
 0x665   :  { %v31697_v18 = vpop.permute.xlu0 %9863  ;;  %v7895_v13 = vsel %vm7883_vm2, %v7876_v33, %v7878_v7  ;;  %v8532_v33 = vsel %vm8528_vm4, %v31530_v32, %v31550_v63 }
 0x666   :  { %13117 = vrot.lane.b32.xlu1 %v31428_v56, %s28992_s21  ;;  %27558 = vmatprep.subr.msk.mxu1 %vm1604_vm13, %v7895_v13 }
 0x667   :  { %13115 = vrot.lane.b32.xlu0 %v31422_v54, %s28992_s21  ;;  %27559 = vmatpush1.msk.msra.mxu1 %vm1604_vm13, %v7894_v50 }
 0x668   :  { %v31707_v1 = vpop.permute.xlu1 %9169  ;;  %27560 = vmatmul.mubr.msk.f32.vlgmr.msra.gmra.mrb[28].mxu1 %vm1600_vm14, %v31490_v45  ;;  %28155 = vmatprep.subr.mxu1 %v31561_v10 }
 0x669   :  { %v7880_v28 = vpop.permute.xlu0 %7879  ;;  %28157 = vmatprep.mubr.msk.f32.mxu1 %vm28997_vm15, %v31561_v10 }
 0x66a   :  { %12470 = vrot.lane.b32.xlu1 %v31558_v19, %s28990_s19  ;;  %v7896_v17 = vsel %vm7883_vm2, %v7878_v7, %v7880_v28  ;;  %v8530_v7 = vsel %vm8528_vm4, %v31499_v53, %v31496_v39 }
 0x66b   :  { %13119 = vrot.lane.b32.xlu0 %v31442_v5, %s28992_s21 }
 0x66c   :  { %v7882_v13 = vpop.permute.xlu1 %7881 }
 0x66d   :  { %28156 = vmatpush3.msk.msra.mxu1 %vm1604_vm13, %v7882_v13  ;;  %v31719_v50 = vpop.permute.xlu0 %11127  ;;  %v7897_v11 = vsel %vm7883_vm2, %v7880_v28, %v7882_v13  ;;  %v8531_v13 = vsel %vm8528_vm4, %v31496_v39, %v31530_v32  ;;  %v8536_v28 = vsel %vm8528_vm4, %v31605_v0, %v31629_v38 }
 0x66e   :  { %13121 = vrot.lane.b32.xlu1 %v31446_v37, %s28992_s21  ;;  %27561 = vmatprep.subr.msk.mxu0 %vm1604_vm13, %v7897_v11 }
 0x66f   :  { %28158 = vmatmul.mubr.msk.f32.vlgmr.msra.gmra.mrb[30].mxu1 %vm1600_vm14, %v31490_v45  ;;  %27569 = vmatprep.subr.msk.mxu1 %vm1604_vm13, %v8532_v33  ;;  %v8529_v33 = vsel %vm8528_vm4, %v31241_v21, %v31499_v53  ;;  %v8534_v21 = vsel %vm8528_vm4, %v31567_v61, %v31570_v12 }
 0x670   :  { %13123 = vrot.lane.b32.xlu0 %v31450_v36, %s28992_s21  ;;  %27562 = vmatpush1.msk.msra.mxu0 %vm1604_vm13, %v7896_v17  ;;  %v31738_v11 = vpop.permute.xlu1 %11129  ;;  %v31754_v17 = vld [vmem:[%s35377_s8] sm:$0xff] }
 0x671   :  { %27570 = vmatpush1.msk.msra.mxu1 %vm1604_vm13, %v8531_v13  ;;  %27563 = vmatmul.mubr.msk.f32.vlgmr.msra.gmra.mrb[14].mxu0 %vm1600_vm14, %v31490_v45  ;;  %v31749_v32 = vpop.permute.xlu0 %11121  ;;  %v8535_v45 = vsel %vm8528_vm4, %v31570_v12, %v31605_v0  ;;  %v8540_v0 = vsel %vm8528_vm4, %v31675_v43, %v31691_v55  ;;  %v8533_v12 = vsel %vm8528_vm4, %v31550_v63, %v31567_v61 }
 0x672   :  { %27566 = vmatprep.subr.msk.mxu0 %vm1604_vm13, %v8530_v7  ;;  %27575 = vmatprep.subr.msk.mxu1 %vm1604_vm13, %v8536_v28  ;;  %v8538_v13 = vsel %vm8528_vm4, %v31640_v29, %v31644_v9  ;;  %v8539_v61 = vsel %vm8528_vm4, %v31644_v9, %v31675_v43  ;;  %v8537_v28 = vsel %vm8528_vm4, %v31629_v38, %v31640_v29  ;;  %v13764_v9 = vld [vmem:[%s35378_s9] sm:$0xff] }
 0x673   :  { %27567 = vmatpush1.msk.msra.mxu0 %vm1604_vm13, %v8529_v33  ;;  %8711 = vmatprep.mubr.f32.mxu1 %v31561_v10  ;;  %v9179_v38 = vsel %vm9175_vm5, %v31528_v34, %v31583_v52 }
 0x674   :  { %13125 = vrot.lane.b32.xlu1 %v31456_v41, %s28992_s21  ;;  %27571 = vmatmul.mubr.msk.f32.vlgmr.msra.gmra.mrb[24].mxu1 %vm1600_vm14, %v31754_v17  ;;  %v31773_v39 = vpop.permute.xlu1 %11131 }
 0x675   :  { %27572 = vmatprep.subr.msk.mxu0 %vm1604_vm13, %v8534_v21  ;;  %27576 = vmatpush1.msk.msra.mxu1 %vm1604_vm13, %v8535_v45  ;;  %v31777_v53 = vpop.permute.xlu0 %11133 }
 0x676   :  { %13127 = vrot.lane.b32.xlu0 %v31467_v27, %s28992_s21  ;;  %8640 = vmatprep.mubr.f32.mxu0 %v31561_v10 }
 0x677   :  { %27581 = vmatprep.subr.msk.mxu1 %vm1604_vm13, %v8540_v0  ;;  %27568 = vmatmul.mubr.msk.f32.vlgmr.msra.gmra.mrb[8].mxu0 %vm1600_vm14, %v31754_v17 }
 0x678   :  { %27573 = vmatpush1.msk.msra.mxu0 %vm1604_vm13, %v8533_v12  ;;  %8853 = vmatprep.mubr.f32.mxu1 %v31561_v10  ;;  %v31796_v7 = vpop.permute.xlu1 %11135  ;;  %v9178_v12 = vsel %vm9175_vm5, %v31509_v49, %v31528_v34  ;;  %v9177_v34 = vsel %vm9175_vm5, %v31507_v44, %v31509_v49  ;;  %v9181_v49 = vsel %vm9175_vm5, %v31591_v35, %v31581_v46 }
 0x679   :  { %27578 = vmatprep.subr.msk.mxu0 %vm1604_vm13, %v8538_v13  ;;  %13129 = vrot.lane.b32.xlu1 %v31572_v42, %s28992_s21  ;;  %v8527_v63 = vpop.permute.xlu0 %8526  ;;  %v27589_v13 = vld [vmem:[%s35377_s8 + $0x10] sm:$0xff] }
 0x67a   :  { %27577 = vmatmul.mubr.msk.f32.vlgmr.msra.gmra.mrb[26].mxu1 %vm1600_vm14, %v31754_v17  ;;  %13131 = vrot.lane.b32.xlu0 %v31558_v19, %s28992_s21 }
 0x67b   :  { %27582 = vmatpush1.msk.msra.mxu1 %vm1604_vm13, %v8539_v61  ;;  %8782 = vmatprep.mubr.f32.mxu0 %v31561_v10  ;;  %v9176_v61 = vsel %vm9175_vm5, %v31243_v2, %v31507_v44  ;;  %v9187_v2 = vsel %vm9175_vm5, %v31683_v58, %v31707_v1 }
 0x67c   :  { %27574 = vmatmul.mubr.msk.f32.vlgmr.msra.gmra.mrb[10].mxu0 %vm1600_vm14, %v31754_v17  ;;  %8995 = vmatprep.mubr.f32.mxu1 %v31561_v10  ;;  %v8525_v43 = vpop.permute.xlu1 %8524 }
 0x67d   :  { %27579 = vmatpush1.msk.msra.mxu0 %vm1604_vm13, %v8537_v28  ;;  %28160 = vmatprep.subr.mxu1 %v31561_v10  ;;  %v31821_v33 = vpop.permute.xlu0 %11137  ;;  %v8542_v29 = vsel %vm8528_vm4, %v8525_v43, %v8527_v63  ;;  %v8541_v45 = vsel %vm8528_vm4, %v31691_v55, %v8525_v43  ;;  %v9183_v55 = vsel %vm9175_vm5, %v31613_v14, %v31651_v8 }
 0x67e   :  { %13133 = vrot.lane.b32.xlu1 %v31461_v15, %s28992_s21  ;;  %27583 = vmatmul.mubr.msk.f32.vlgmr.msra.gmra.mrb[28].mxu1 %vm1600_vm14, %v31754_v17  ;;  %v9186_v43 = vsel %vm9175_vm5, %v31659_v31, %v31683_v58 }
 0x67f   :  { %28161 = vmatpush3.msk.msra.mxu1 %vm1604_vm13, %v8527_v63  ;;  %13767 = vperm.xlu0 %28908, %v13764_v9   ;;  %v9182_v9 = vsel %vm9175_vm5, %v31581_v46, %v31613_v14  ;;  %v9185_v14 = vsel %vm9175_vm5, %v31653_v30, %v31659_v31  ;;  %v9875_v31 = vsel %vm9871_vm8, %v31537_v62, %v31589_v20 }
 0x680   :  { %8924 = vmatprep.mubr.f32.mxu0 %v31561_v10  ;;  %27593 = vmatprep.subr.msk.mxu1 %vm1604_vm13, %v9179_v38  ;;  %v31836_v21 = vpop.permute.xlu1 %11139 }
 0x681   :  { %27580 = vmatmul.mubr.msk.f32.vlgmr.msra.gmra.mrb[12].mxu0 %vm1600_vm14, %v31754_v17  ;;  %28162 = vmatprep.mubr.msk.f32.mxu1 %vm28997_vm15, %v31561_v10  ;;  %v31842_v0 = vpop.permute.xlu0 %11141 }
 0x682   :  { %27584 = vmatprep.subr.msk.mxu0 %vm1604_vm13, %v8542_v29  ;;  %28163 = vmatmul.mubr.msk.f32.vlgmr.msra.gmra.mrb[32].mxu1 %vm1600_vm14, %v31754_v17 }
 0x683   :  { %27594 = vmatpush1.msk.msra.mxu1 %vm1604_vm13, %v9178_v12  ;;  %27585 = vmatpush1.msk.msra.mxu0 %vm1604_vm13, %v8541_v45  ;;  %v9874_v45 = vsel %vm9871_vm8, %v31515_v3, %v31537_v62  ;;  %v9879_v12 = vsel %vm9871_vm8, %v31611_v16, %v31661_v6  ;;  %v27613_v62 = vld [vmem:[%s35377_s8 + $0x18] sm:$0xff] }
 0x684   :  { %9066 = vmatprep.mubr.f32.mxu0 %v31561_v10  ;;  %27599 = vmatprep.subr.msk.mxu1 %vm1604_vm13, %v9183_v55  ;;  %v31863_v63 = vpop.permute.xlu1 %11143 }
 0x685   :  { %27586 = vmatmul.mubr.msk.f32.vlgmr.msra.gmra.mrb[14].mxu0 %vm1600_vm14, %v31754_v17  ;;  %27590 = vmatprep.subr.msk.mxu0 %vm1604_vm13, %v9177_v34  ;;  %v31871_v28 = vpop.permute.xlu0 %11149  ;;  %v9180_v17 = vsel %vm9175_vm5, %v31583_v52, %v31591_v35  ;;  %v9184_v35 = vsel %vm9175_vm5, %v31651_v8, %v31653_v30  ;;  %v9872_v34 = vsel %vm9871_vm8, %v31245_v26, %v31517_v23 }
 0x686   :  { %27591 = vmatpush1.msk.msra.mxu0 %vm1604_vm13, %v9176_v61  ;;  %9358 = vmatprep.mubr.f32.mxu1 %v31561_v10  ;;  %v9877_v61 = vsel %vm9871_vm8, %v31597_v60, %v31599_v59  ;;  %v9883_v26 = vsel %vm9871_vm8, %v31681_v24, %v31697_v18 }
 0x687   :  { %27595 = vmatmul.mubr.msk.f32.vlgmr.msra.gmra.mrb[24].mxu1 %vm1600_vm14, %v27589_v13  ;;  %27596 = vmatprep.subr.msk.mxu0 %vm1604_vm13, %v9181_v49  ;;  %v9878_v49 = vsel %vm9871_vm8, %v31599_v59, %v31611_v16  ;;  %v9881_v16 = vsel %vm9871_vm8, %v31667_v48, %v31669_v57 }
 0x688   :  { %27600 = vmatpush1.msk.msra.mxu1 %vm1604_vm13, %v9182_v9  ;;  %9287 = vmatprep.mubr.f32.mxu0 %v31561_v10  ;;  %v31888_v44 = vpop.permute.xlu1 %11784  ;;  %v9882_v9 = vsel %vm9871_vm8, %v31669_v57, %v31681_v24 }
 0x689   :  { %27605 = vmatprep.subr.msk.mxu1 %vm1604_vm13, %v9187_v2  ;;  %27592 = vmatmul.mubr.msk.f32.vlgmr.msra.gmra.mrb[8].mxu0 %vm1600_vm14, %v27589_v13  ;;  %v9172_v46 = vpop.permute.xlu0 %9171 }
 0x68a   :  { %27597 = vmatpush1.msk.msra.mxu0 %vm1604_vm13, %v9180_v17  ;;  %9500 = vmatprep.mubr.f32.mxu1 %v31561_v10  ;;  %v9188_v30 = vsel %vm9175_vm5, %v31707_v1, %v9172_v46  ;;  %v9873_v1 = vsel %vm9871_vm8, %v31517_v23, %v31515_v3 }
 0x68b   :  { %27602 = vmatprep.subr.msk.mxu0 %vm1604_vm13, %v9185_v14  ;;  %27601 = vmatmul.mubr.msk.f32.vlgmr.msra.gmra.mrb[26].mxu1 %vm1600_vm14, %v27589_v13  ;;  %v11156_v14 = vsel %vm364_vm3, %v31773_v39, %v31777_v53 }
 0x68c   :  { %27606 = vmatpush1.msk.msra.mxu1 %vm1604_vm13, %v9186_v43  ;;  %9429 = vmatprep.mubr.f32.mxu0 %v31561_v10  ;;  %v9174_v52 = vpop.permute.xlu1 %9173  ;;  %v11157_v43 = vsel %vm364_vm3, %v31777_v53, %v31796_v7 }
 0x68d   :  { %27598 = vmatmul.mubr.msk.f32.vlgmr.msra.gmra.mrb[10].mxu0 %vm1600_vm14, %v27589_v13  ;;  %9642 = vmatprep.mubr.f32.mxu1 %v31561_v10  ;;  %v31912_v38 = vpop.permute.xlu0 %11786  ;;  %v9189_v58 = vsel %vm9175_vm5, %v9172_v46, %v9174_v52 }
 0x68e   :  { %27603 = vmatpush1.msk.msra.mxu0 %vm1604_vm13, %v9184_v35  ;;  %9571 = vmatprep.mubr.f32.mxu0 %v31561_v10  ;;  %v11160_v35 = vsel %vm364_vm3, %v31836_v21, %v31842_v0 }
 0x68f   :  { %27607 = vmatmul.mubr.msk.f32.vlgmr.msra.gmra.mrb[28].mxu1 %vm1600_vm14, %v27589_v13  ;;  %28165 = vmatprep.subr.mxu1 %v31561_v10 }
 0x690   :  { %28166 = vmatpush3.msk.msra.mxu1 %vm1604_vm13, %v9174_v52  ;;  %28167 = vmatprep.mubr.msk.f32.mxu1 %vm28997_vm15, %v31561_v10  ;;  %v31922_v8 = vpop.permute.xlu1 %11788  ;;  %v11155_v52 = vsel %vm364_vm3, %v31738_v11, %v31773_v39 }
 0x691   :  { %27604 = vmatmul.mubr.msk.f32.vlgmr.msra.gmra.mrb[12].mxu0 %vm1600_vm14, %v27589_v13  ;;  %27608 = vmatprep.subr.msk.mxu0 %vm1604_vm13, %v9189_v58  ;;  %v31931_v29 = vpop.permute.xlu0 %11790  ;;  %v11159_v58 = vsel %vm364_vm3, %v31821_v33, %v31836_v21 }
 0x692   :  { %27617 = vmatprep.subr.msk.mxu1 %vm1604_vm13, %v9875_v31  ;;  %27609 = vmatpush1.msk.msra.mxu0 %vm1604_vm13, %v9188_v30 }
 0x693   :  { %28168 = vmatmul.mubr.msk.f32.vlgmr.msra.gmra.mrb[34].mxu1 %vm1600_vm14, %v27589_v13  ;;  %9713 = vmatprep.mubr.f32.mxu0 %v31561_v10 }
 0x694   :  { %27618 = vmatpush1.msk.msra.mxu1 %vm1604_vm13, %v9874_v45  ;;  %27614 = vmatprep.subr.msk.mxu0 %vm1604_vm13, %v9873_v1  ;;  %v31951_v55 = vpop.permute.xlu1 %11782  ;;  %v11814_v45 = vsel %vm11812_vm10, %v31888_v44, %v31912_v38 }
 0x695   :  { %27610 = vmatmul.mubr.msk.f32.vlgmr.msra.gmra.mrb[14].mxu0 %vm1600_vm14, %v27589_v13  ;;  %27623 = vmatprep.subr.msk.mxu1 %vm1604_vm13, %v9879_v12  ;;  %v31958_v3 = vpop.permute.xlu0 %11792  ;;  %v9876_v13 = vsel %vm9871_vm8, %v31589_v20, %v31597_v60  ;;  %v9880_v60 = vsel %vm9871_vm8, %v31661_v6, %v31667_v48 }
 0x696   :  { %27615 = vmatpush1.msk.msra.mxu0 %vm1604_vm13, %v9872_v34  ;;  %10055 = vmatprep.mubr.f32.mxu1 %v31561_v10 }
 0x697   :  { %27619 = vmatmul.mubr.msk.f32.vlgmr.msra.gmra.mrb[24].mxu1 %vm1600_vm14, %v27613_v62  ;;  %27620 = vmatprep.subr.msk.mxu0 %vm1604_vm13, %v9877_v61 }
 0x698   :  { %27624 = vmatpush1.msk.msra.mxu1 %vm1604_vm13, %v9878_v49  ;;  %9984 = vmatprep.mubr.f32.mxu0 %v31561_v10  ;;  %v31975_v23 = vpop.permute.xlu1 %11794 }
 0x699   :  { %27629 = vmatprep.subr.msk.mxu1 %vm1604_vm13, %v9883_v26  ;;  %27616 = vmatmul.mubr.msk.f32.vlgmr.msra.gmra.mrb[8].mxu0 %vm1600_vm14, %v27613_v62  ;;  %v9868_v59 = vpop.permute.xlu0 %9867  ;;  %v11818_v34 = vsel %vm11812_vm10, %v31958_v3, %v31975_v23 }
 0x69a   :  { %27621 = vmatpush1.msk.msra.mxu0 %vm1604_vm13, %v9876_v13  ;;  %10197 = vmatprep.mubr.f32.mxu1 %v31561_v10  ;;  %v9886_v57 = vsel %vm9871_vm8, %v9868_v59, %v31689_v51 }
 0x69b   :  { %27626 = vmatprep.subr.msk.mxu0 %vm1604_vm13, %v9881_v16  ;;  %27625 = vmatmul.mubr.msk.f32.vlgmr.msra.gmra.mrb[26].mxu1 %vm1600_vm14, %v27613_v62 }
 0x69c   :  { %27630 = vmatpush1.msk.msra.mxu1 %vm1604_vm13, %v9882_v9  ;;  %10126 = vmatprep.mubr.f32.mxu0 %v31561_v10  ;;  %v9866_v20 = vpop.permute.xlu1 %9865 }
 0x69d   :  { %27622 = vmatmul.mubr.msk.f32.vlgmr.msra.gmra.mrb[10].mxu0 %vm1600_vm14, %v27613_v62  ;;  %10339 = vmatprep.mubr.f32.mxu1 %v31561_v10  ;;  %v32001_v24 = vpop.permute.xlu0 %11796  ;;  %v9885_v2 = vsel %vm9871_vm8, %v9866_v20, %v9868_v59  ;;  %v9884_v6 = vsel %vm9871_vm8, %v31697_v18, %v9866_v20  ;;  %v27637_v18 = vld [vmem:[%s35377_s8 + $0x20] sm:$0xff] }
 0x69e   :  { %27627 = vmatpush1.msk.msra.mxu0 %vm1604_vm13, %v9880_v60  ;;  %28170 = vmatprep.subr.mxu1 %v31561_v10  ;;  %v11819_v61 = vsel %vm11812_vm10, %v31975_v23, %v32001_v24 }
 0x69f   :  { %27631 = vmatmul.mubr.msk.f32.vlgmr.msra.gmra.mrb[28].mxu1 %vm1600_vm14, %v27613_v62  ;;  %10268 = vmatprep.mubr.f32.mxu0 %v31561_v10 }
 0x6a0   :  { %28171 = vmatpush3.msk.msra.mxu1 %vm1604_vm13, %v9886_v57  ;;  %28172 = vmatprep.mubr.msk.f32.mxu1 %vm28997_vm15, %v31561_v10  ;;  %v32013_v51 = vpop.permute.xlu1 %11798 }
 0x6a1   :  { %27628 = vmatmul.mubr.msk.f32.vlgmr.msra.gmra.mrb[12].mxu0 %vm1600_vm14, %v27613_v62  ;;  %27641 = vmatprep.subr.msk.mxu1 %vm1604_vm13, %v31413_v4  ;;  %v32018_v48 = vpop.permute.xlu0 %11800  ;;  %v11820_v1 = vsel %vm11812_vm10, %v32001_v24, %v32013_v51 }
 0x6a2   :  { %27632 = vmatprep.subr.msk.mxu0 %vm1604_vm13, %v9885_v2  ;;  %10410 = vmatprep.mubr.f32.mxu0 %v31561_v10  ;;  %v11821_v59 = vsel %vm11812_vm10, %v32013_v51, %v32018_v48 }
 0x6a3   :  { %28173 = vmatmul.mubr.msk.f32.vlgmr.msra.gmra.mrb[36].mxu1 %vm1600_vm14, %v27613_v62  ;;  %27633 = vmatpush1.msk.msra.mxu0 %vm1604_vm13, %v9884_v6 }
 0x6a4   :  { %27642 = vmatpush1.msk.msra.mxu1 %vm1604_vm13, %v31399_v47  ;;  %27638 = vmatprep.subr.msk.mxu0 %vm1604_vm13, %v31381_v25  ;;  %v32031_v4 = vpop.permute.xlu1 %11802 }
 0x6a5   :  { %27647 = vmatprep.subr.msk.mxu1 %vm1604_vm13, %v31442_v5  ;;  %27634 = vmatmul.mubr.msk.f32.vlgmr.msra.gmra.mrb[14].mxu0 %vm1600_vm14, %v27613_v62  ;;  %v32036_v17 = vpop.permute.xlu0 %11804  ;;  %v11813_v62 = vsel %vm11812_vm10, %v31951_v55, %v31888_v44  ;;  %v11817_v55 = vsel %vm11812_vm10, %v31931_v29, %v31958_v3  ;;  %v11822_v23 = vsel %vm11812_vm10, %v32018_v48, %v32031_v4 }
 0x6a6   :  { %27639 = vmatpush1.msk.msra.mxu0 %vm1604_vm13, %v31388_v40  ;;  %10672 = vmatprep.mubr.f32.mxu1 %v31561_v10 }
 0x6a7   :  { %27643 = vmatmul.mubr.msk.f32.vlgmr.msra.gmra.mrb[24].mxu1 %vm1600_vm14, %v27637_v18  ;;  %27644 = vmatprep.subr.msk.mxu0 %vm1604_vm13, %v31422_v54 }
 0x6a8   :  { %27648 = vmatpush1.msk.msra.mxu1 %vm1604_vm13, %v31428_v56  ;;  %10601 = vmatprep.mubr.f32.mxu0 %v31561_v10  ;;  %v32047_v25 = vpop.permute.xlu1 %11810 }
 0x6a9   :  { %27653 = vmatprep.subr.msk.mxu1 %vm1604_vm13, %v31467_v27  ;;  %27640 = vmatmul.mubr.msk.f32.vlgmr.msra.gmra.mrb[8].mxu0 %vm1600_vm14, %v27637_v18  ;;  %v32052_v40 = vpop.permute.xlu0 %12446  ;;  %v11158_v27 = vsel %vm364_vm3, %v31796_v7, %v31821_v33  ;;  %v11816_v33 = vsel %vm11812_vm10, %v31922_v8, %v31931_v29  ;;  %v11823_v29 = vsel %vm11812_vm10, %v32031_v4, %v32036_v17 }
 0x6aa   :  { %27645 = vmatpush1.msk.msra.mxu0 %vm1604_vm13, %v31418_v22  ;;  %10814 = vmatprep.mubr.f32.mxu1 %v31561_v10  ;;  %v11154_v22 = vsel %vm364_vm3, %v31719_v50, %v31738_v11  ;;  %v11161_v11 = vsel %vm364_vm3, %v31842_v0, %v31863_v63 }
 0x6ab   :  { %27650 = vmatprep.subr.msk.mxu0 %vm1604_vm13, %v31450_v36  ;;  %27649 = vmatmul.mubr.msk.f32.vlgmr.msra.gmra.mrb[26].mxu1 %vm1600_vm14, %v27637_v18  ;;  %v35627_v36 = vld [vmem:[#allocation15_spill] sm:$0xff] }
 0x6ac   :  { %27654 = vmatpush1.msk.msra.mxu1 %vm1604_vm13, %v31456_v41  ;;  %10743 = vmatprep.mubr.f32.mxu0 %v31561_v10  ;;  %v32063_v47 = vpop.permute.xlu1 %12448 }
 0x6ad   :  { %27646 = vmatmul.mubr.msk.f32.vlgmr.msra.gmra.mrb[10].mxu0 %vm1600_vm14, %v27637_v18  ;;  %10956 = vmatprep.mubr.f32.mxu1 %v31561_v10  ;;  %v32067_v54 = vpop.permute.xlu0 %12450  ;;  %v12475_v24 = vsel %vm988_vm7, %v32052_v40, %v32063_v47 }
 0x6ae   :  { %27651 = vmatpush1.msk.msra.mxu0 %vm1604_vm13, %v31446_v37  ;;  %28175 = vmatprep.subr.mxu1 %v31561_v10  ;;  %v35626_v37 = vld [vmem:[#allocation16_spill] sm:$0xff]  ;;  %v12476_v2 = vsel %vm988_vm7, %v32063_v47, %v32067_v54 }
 0x6af   :  { %27656 = vmatprep.subr.msk.mxu0 %vm1604_vm13, %v31558_v19  ;;  %27655 = vmatmul.mubr.msk.f32.vlgmr.msra.gmra.mrb[28].mxu1 %vm1600_vm14, %v27637_v18  ;;  %v11152_v41 = vsel %vm364_vm3, %v35627_v36, %v35626_v37  ;;  %v27661_v19 = vld [vmem:[%s35377_s8 + $0x28] sm:$0xff] }
 0x6b0   :  { %28176 = vmatpush3.msk.msra.mxu1 %vm1604_vm13, %v31461_v15  ;;  %10885 = vmatprep.mubr.f32.mxu0 %v31561_v10  ;;  %v32081_v56 = vpop.permute.xlu1 %12452  ;;  %v11153_v15 = vsel %vm364_vm3, %v35626_v37, %v31719_v50  ;;  %v11151_v50 = vsel %vm364_vm3, %v31749_v32, %v35627_v36 }
 0x6b1   :  { %27665 = vmatprep.subr.msk.mxu1 %vm1604_vm13, %v11154_v22  ;;  %27652 = vmatmul.mubr.msk.f32.vlgmr.msra.gmra.mrb[12].mxu0 %vm1600_vm14, %v27637_v18  ;;  %v32085_v5 = vpop.permute.xlu0 %12444  ;;  %v12477_v60 = vsel %vm988_vm7, %v32067_v54, %v32081_v56 }
 0x6b2   :  { %27657 = vmatpush1.msk.msra.mxu0 %vm1604_vm13, %v31572_v42  ;;  %28177 = vmatprep.mubr.msk.f32.mxu1 %vm28997_vm15, %v31561_v10  ;;  %v12474_v51 = vsel %vm988_vm7, %v32085_v5, %v32052_v40 }
 0x6b3   :  { %27662 = vmatprep.subr.msk.mxu0 %vm1604_vm13, %v11152_v41  ;;  %28178 = vmatmul.mubr.msk.f32.vlgmr.msra.gmra.mrb[38].mxu1 %vm1600_vm14, %v27637_v18 }
 0x6b4   :  { %27666 = vmatpush1.msk.msra.mxu1 %vm1604_vm13, %v11153_v15  ;;  %11027 = vmatprep.mubr.f32.mxu0 %v31561_v10  ;;  %v32107_v42 = vpop.permute.xlu1 %12454 }
 0x6b5   :  { %27671 = vmatprep.subr.msk.mxu1 %vm1604_vm13, %v11158_v27  ;;  %27658 = vmatmul.mubr.msk.f32.vlgmr.msra.gmra.mrb[14].mxu0 %vm1600_vm14, %v27637_v18  ;;  %v11146_v46 = vpop.permute.xlu0 %11145  ;;  %v12478_v40 = vsel %vm988_vm7, %v32081_v56, %v32107_v42 }
 0x6b6   :  { %27663 = vmatpush1.msk.msra.mxu0 %vm1604_vm13, %v11151_v50  ;;  %11333 = vmatprep.mubr.f32.mxu1 %v31561_v10  ;;  %v11162_v53 = vsel %vm364_vm3, %v31863_v63, %v11146_v46 }
 0x6b7   :  { %27668 = vmatprep.subr.msk.mxu0 %vm1604_vm13, %v11156_v14  ;;  %27667 = vmatmul.mubr.msk.f32.vlgmr.msra.gmra.mrb[24].mxu1 %vm1600_vm14, %v27661_v19 }
 0x6b8   :  { %27672 = vmatpush1.msk.msra.mxu1 %vm1604_vm13, %v11157_v43  ;;  %11262 = vmatprep.mubr.f32.mxu0 %v31561_v10  ;;  %v32126_v32 = vpop.permute.xlu1 %12458 }
 0x6b9   :  { %27664 = vmatmul.mubr.msk.f32.vlgmr.msra.gmra.mrb[8].mxu0 %vm1600_vm14, %v27661_v19  ;;  %11475 = vmatprep.mubr.f32.mxu1 %v31561_v10  ;;  %v32135_v7 = vpop.permute.xlu0 %12456 }
 0x6ba   :  { %27669 = vmatpush1.msk.msra.mxu0 %vm1604_vm13, %v11155_v52  ;;  %11404 = vmatprep.mubr.f32.mxu0 %v31561_v10  ;;  %v12479_v4 = vsel %vm988_vm7, %v32107_v42, %v32135_v7  ;;  %v12480_v47 = vsel %vm988_vm7, %v32135_v7, %v32126_v32  ;;  %v27733_v7 = vld [vmem:[%s35377_s8 + $0x40] sm:$0xff] }
 0x6bb   :  { %27674 = vmatprep.subr.msk.mxu0 %vm1604_vm13, %v11160_v35  ;;  %27673 = vmatmul.mubr.msk.f32.vlgmr.msra.gmra.mrb[26].mxu1 %vm1600_vm14, %v27661_v19 }
 0x6bc   :  { %27677 = vmatprep.subr.msk.mxu1 %vm1604_vm13, %v11162_v53  ;;  %11617 = vmatprep.mubr.f32.mxu1 %v31561_v10  ;;  %v11148_v39 = vpop.permute.xlu1 %11147 }
 0x6bd   :  { %27670 = vmatmul.mubr.msk.f32.vlgmr.msra.gmra.mrb[10].mxu0 %vm1600_vm14, %v27661_v19  ;;  %27678 = vmatpush1.msk.msra.mxu1 %vm1604_vm13, %v11161_v11  ;;  %v32154_v30 = vpop.permute.xlu0 %12460  ;;  %v11164_v0 = vsel %vm364_vm3, %v11148_v39, %v31871_v28  ;;  %v11163_v21 = vsel %vm364_vm3, %v11146_v46, %v11148_v39 }
 0x6be   :  { %27675 = vmatpush1.msk.msra.mxu0 %vm1604_vm13, %v11159_v58  ;;  %28180 = vmatprep.subr.mxu1 %v31561_v10  ;;  %v12481_v48 = vsel %vm988_vm7, %v32126_v32, %v32154_v30 }
 0x6bf   :  { %27679 = vmatmul.mubr.msk.f32.vlgmr.msra.gmra.mrb[28].mxu1 %vm1600_vm14, %v27661_v19  ;;  %11546 = vmatprep.mubr.f32.mxu0 %v31561_v10 }
 0x6c0   :  { %28181 = vmatpush3.msk.msra.mxu1 %vm1604_vm13, %v31871_v28  ;;  %28182 = vmatprep.mubr.msk.f32.mxu1 %vm28997_vm15, %v31561_v10  ;;  %v32170_v63 = vpop.permute.xlu1 %12462  ;;  %v11815_v28 = vsel %vm11812_vm10, %v31912_v38, %v31922_v8  ;;  %v27685_v8 = vld [vmem:[%s35377_s8 + $0x30] sm:$0xff] }
 0x6c1   :  { %27689 = vmatprep.subr.msk.mxu1 %vm1604_vm13, %v11816_v33  ;;  %27676 = vmatmul.mubr.msk.f32.vlgmr.msra.gmra.mrb[12].mxu0 %vm1600_vm14, %v27661_v19  ;;  %v32174_v31 = vpop.permute.xlu0 %12464  ;;  %v12482_v37 = vsel %vm988_vm7, %v32154_v30, %v32170_v63  ;;  %v32376_v30 = vld [vmem:[#allocation2] sm:$0xff] }
 0x6c2   :  { %27680 = vmatprep.subr.msk.mxu0 %vm1604_vm13, %v11164_v0  ;;  %11688 = vmatprep.mubr.f32.mxu0 %v31561_v10  ;;  %v12483_v56 = vsel %vm988_vm7, %v32170_v63, %v32174_v31  ;;  %59 = vst.msk [vmem:[#allocation2 + $0x80] sm:$0xff] %vm58_vm11, %v32376_v30  ;;  %65 = vst.msk [vmem:[#allocation3 + $0x80] sm:$0xff] %vm58_vm11, %v32376_v30 }
 0x6c3   :  { %28183 = vmatmul.mubr.msk.f32.vlgmr.msra.gmra.mrb[40].mxu1 %vm1600_vm14, %v27661_v19  ;;  %27681 = vmatpush1.msk.msra.mxu0 %vm1604_vm13, %v11163_v21  ;;  %67 = vst.msk [vmem:[#allocation3 + $0x108] sm:$0xff] %vm58_vm11, %v32376_v30 }
 0x6c4   :  { %27690 = vmatpush1.msk.msra.mxu1 %vm1604_vm13, %v11815_v28  ;;  %27686 = vmatprep.subr.msk.mxu0 %vm1604_vm13, %v11814_v45  ;;  %v32194_v12 = vpop.permute.xlu1 %12466 }
 0x6c5   :  { %27695 = vmatprep.subr.msk.mxu1 %vm1604_vm13, %v11820_v1  ;;  %27682 = vmatmul.mubr.msk.f32.vlgmr.msra.gmra.mrb[14].mxu0 %vm1600_vm14, %v27661_v19  ;;  %v32201_v38 = vpop.permute.xlu0 %12472  ;;  %v12484_v36 = vsel %vm988_vm7, %v32174_v31, %v32194_v12 }
 0x6c6   :  { %27687 = vmatpush1.msk.msra.mxu0 %vm1604_vm13, %v11813_v62  ;;  %11995 = vmatprep.mubr.f32.mxu1 %v31561_v10 }
 0x6c7   :  { %27691 = vmatmul.mubr.msk.f32.vlgmr.msra.gmra.mrb[24].mxu1 %vm1600_vm14, %v27685_v8  ;;  %27692 = vmatprep.subr.msk.mxu0 %vm1604_vm13, %v11818_v34 }
 0x6c8   :  { %27696 = vmatpush1.msk.msra.mxu1 %vm1604_vm13, %v11819_v61  ;;  %11924 = vmatprep.mubr.f32.mxu0 %v31561_v10  ;;  %v11807_v44 = vpop.permute.xlu1 %11806 }
 0x6c9   :  { %27688 = vmatmul.mubr.msk.f32.vlgmr.msra.gmra.mrb[8].mxu0 %vm1600_vm14, %v27685_v8  ;;  %12137 = vmatprep.mubr.f32.mxu1 %v31561_v10  ;;  %v11809_v49 = vpop.permute.xlu0 %11808  ;;  %v11824_v26 = vsel %vm11812_vm10, %v32036_v17, %v11807_v44  ;;  %v27709_v17 = vld [vmem:[%s35377_s8 + $0x38] sm:$0xff] }
 0x6ca   :  { %27693 = vmatpush1.msk.msra.mxu0 %vm1604_vm13, %v11817_v55  ;;  %12066 = vmatprep.mubr.f32.mxu0 %v31561_v10  ;;  %v11826_v3 = vsel %vm11812_vm10, %v11809_v49, %v32047_v25  ;;  %v11825_v9 = vsel %vm11812_vm10, %v11807_v44, %v11809_v49 }
 0x6cb   :  { %27698 = vmatprep.subr.msk.mxu0 %vm1604_vm13, %v11822_v23  ;;  %27697 = vmatmul.mubr.msk.f32.vlgmr.msra.gmra.mrb[26].mxu1 %vm1600_vm14, %v27685_v8 }
 0x6cc   :  { %27701 = vmatprep.subr.msk.mxu1 %vm1604_vm13, %v11824_v26  ;;  %12279 = vmatprep.mubr.f32.mxu1 %v31561_v10  ;;  %v32236_v13 = vpop.permute.xlu1 %13107 }
 0x6cd   :  { %27694 = vmatmul.mubr.msk.f32.vlgmr.msra.gmra.mrb[10].mxu0 %vm1600_vm14, %v27685_v8  ;;  %27702 = vmatpush1.msk.msra.mxu1 %vm1604_vm13, %v11823_v29  ;;  %v32243_v16 = vpop.permute.xlu0 %13109 }
 0x6ce   :  { %27699 = vmatpush1.msk.msra.mxu0 %vm1604_vm13, %v11821_v59  ;;  %12208 = vmatprep.mubr.f32.mxu0 %v31561_v10  ;;  %v13136_v50 = vsel %vm1212_vm9, %v32236_v13, %v32243_v16 }
 0x6cf   :  { %27704 = vmatprep.subr.msk.mxu0 %vm1604_vm13, %v11826_v3  ;;  %27703 = vmatmul.mubr.msk.f32.vlgmr.msra.gmra.mrb[28].mxu1 %vm1600_vm14, %v27685_v8 }
 0x6d0   :  { %28185 = vmatprep.subr.mxu1 %v31561_v10  ;;  %28187 = vmatprep.mubr.msk.f32.mxu1 %vm28997_vm15, %v31561_v10  ;;  %v32253_v20 = vpop.permute.xlu1 %13111 }
 0x6d1   :  { %27700 = vmatmul.mubr.msk.f32.vlgmr.msra.gmra.mrb[12].mxu0 %vm1600_vm14, %v27685_v8  ;;  %28186 = vmatpush3.msk.msra.mxu1 %vm1604_vm13, %v32047_v25  ;;  %v32261_v57 = vpop.permute.xlu0 %13113  ;;  %v13137_v43 = vsel %vm1212_vm9, %v32243_v16, %v32253_v20 }
 0x6d2   :  { %27705 = vmatpush1.msk.msra.mxu0 %vm1604_vm13, %v11825_v9  ;;  %27713 = vmatprep.subr.msk.mxu1 %vm1604_vm13, %v12477_v60  ;;  %v13138_v42 = vsel %vm1212_vm9, %v32253_v20, %v32261_v57 }
 0x6d3   :  { %27710 = vmatprep.subr.msk.mxu0 %vm1604_vm13, %v12475_v24  ;;  %12350 = vmatprep.mubr.f32.mxu0 %v31561_v10 }
 0x6d4   :  { %28188 = vmatmul.mubr.msk.f32.vlgmr.msra.gmra.mrb[42].mxu1 %vm1600_vm14, %v27685_v8  ;;  %v13106_v6 = vpop.permute.xlu1 %13105  ;;  %13942 = vrot.lane.b32.xlu1 %v31561_v10, %s28999_s6 }
 0x6d5   :  { %27706 = vmatmul.mubr.msk.f32.vlgmr.msra.gmra.mrb[14].mxu0 %vm1600_vm14, %v27685_v8  ;;  %27714 = vmatpush1.msk.msra.mxu1 %vm1604_vm13, %v12476_v2  ;;  %v12469_v18 = vpop.permute.xlu0 %12468  ;;  %v13135_v32 = vsel %vm1212_vm9, %v13106_v6, %v32236_v13  ;;  %v32418_v6 = vld [vmem:[%s35371_s2] sm:$0xff] }
 0x6d6   :  { %27711 = vmatpush1.msk.msra.mxu0 %vm1604_vm13, %v12474_v51  ;;  %27719 = vmatprep.subr.msk.mxu1 %vm1604_vm13, %v12481_v48  ;;  %v12485_v54 = vsel %vm988_vm7, %v32194_v12, %v12469_v18 }
 0x6d7   :  { %27716 = vmatprep.subr.msk.mxu0 %vm1604_vm13, %v12479_v4  ;;  %12585 = vmatprep.mubr.f32.mxu0 %v31561_v10 }
 0x6d8   :  { %12656 = vmatprep.mubr.f32.mxu1 %v31561_v10  ;;  %v13118_v25 = vpop.permute.xlu1 %13117  ;;  %14571 = vrot.lane.b32.xlu0 %v31561_v10, %s29000_s25 }
 0x6d9   :  { %27712 = vmatmul.mubr.msk.f32.vlgmr.msra.gmra.mrb[8].mxu0 %vm1600_vm14, %v27709_v17  ;;  %27715 = vmatmul.mubr.msk.f32.vlgmr.msra.gmra.mrb[24].mxu1 %vm1600_vm14, %v27709_v17  ;;  %v13116_v22 = vpop.permute.xlu0 %13115 }
 0x6da   :  { %27717 = vmatpush1.msk.msra.mxu0 %vm1604_vm13, %v12478_v40  ;;  %27720 = vmatpush1.msk.msra.mxu1 %vm1604_vm13, %v12480_v47  ;;  %v13140_v52 = vsel %vm1212_vm9, %v13116_v22, %v13118_v25  ;;  %v13139_v11 = vsel %vm1212_vm9, %v32261_v57, %v13116_v22 }
 0x6db   :  { %27722 = vmatprep.subr.msk.mxu0 %vm1604_vm13, %v12483_v56  ;;  %12727 = vmatprep.mubr.f32.mxu0 %v31561_v10 }
 0x6dc   :  { %12798 = vmatprep.mubr.f32.mxu1 %v31561_v10  ;;  %27725 = vmatprep.subr.msk.mxu1 %vm1604_vm13, %v12485_v54  ;;  %v12471_v5 = vpop.permute.xlu1 %12470 }
 0x6dd   :  { %27718 = vmatmul.mubr.msk.f32.vlgmr.msra.gmra.mrb[10].mxu0 %vm1600_vm14, %v27709_v17  ;;  %27721 = vmatmul.mubr.msk.f32.vlgmr.msra.gmra.mrb[26].mxu1 %vm1600_vm14, %v27709_v17  ;;  %v13120_v41 = vpop.permute.xlu0 %13119  ;;  %v12487_v15 = vsel %vm988_vm7, %v12471_v5, %v32201_v38  ;;  %v12486_v27 = vsel %vm988_vm7, %v12469_v18, %v12471_v5 }
 0x6de   :  { %27723 = vmatpush1.msk.msra.mxu0 %vm1604_vm13, %v12482_v37  ;;  %27726 = vmatpush1.msk.msra.mxu1 %vm1604_vm13, %v12484_v36  ;;  %v13141_v39 = vsel %vm1212_vm9, %v13118_v25, %v13120_v41 }
 0x6df   :  { %12869 = vmatprep.mubr.f32.mxu0 %v31561_v10  ;;  %12940 = vmatprep.mubr.f32.mxu1 %v31561_v10 }
 0x6e0   :  { %28190 = vmatprep.subr.mxu1 %v31561_v10  ;;  %27728 = vmatprep.subr.msk.mxu0 %vm1604_vm13, %v12487_v15  ;;  %v13122_v19 = vpop.permute.xlu1 %13121  ;;  %v32437_v15 = vld [vmem:[%s35371_s2 + $0x8] sm:$0x7f]  ;;  %s29006_s2 = smov 116  }
 0x6e1   :  { %27724 = vmatmul.mubr.msk.f32.vlgmr.msra.gmra.mrb[12].mxu0 %vm1600_vm14, %v27709_v17  ;;  %27727 = vmatmul.mubr.msk.f32.vlgmr.msra.gmra.mrb[28].mxu1 %vm1600_vm14, %v27709_v17  ;;  %v13142_v14 = vsel %vm1212_vm9, %v13120_v41, %v13122_v19 }
 0x6e2   :  { %28191 = vmatpush3.msk.msra.mxu1 %vm1604_vm13, %v32201_v38  ;;  %27729 = vmatpush1.msk.msra.mxu0 %vm1604_vm13, %v12486_v27  ;;  %v13124_v46 = vpop.permute.xlu0 %13123 }
 0x6e3   :  { %27737 = vmatprep.subr.msk.mxu1 %vm1604_vm13, %v13138_v42  ;;  %13011 = vmatprep.mubr.f32.mxu0 %v31561_v10  ;;  %v13143_v33 = vsel %vm1212_vm9, %v13122_v19, %v13124_v46 }
 0x6e4   :  { %28192 = vmatprep.mubr.msk.f32.mxu1 %vm28997_vm15, %v31561_v10  ;;  %27734 = vmatprep.subr.msk.mxu0 %vm1604_vm13, %v13136_v50  ;;  %v35629_v50 = vld [vmem:[#allocation7_spill] sm:$0xff] }
 0x6e5   :  { %27730 = vmatmul.mubr.msk.f32.vlgmr.msra.gmra.mrb[14].mxu0 %vm1600_vm14, %v27709_v17  ;;  %28193 = vmatmul.mubr.msk.f32.vlgmr.msra.gmra.mrb[44].mxu1 %vm1600_vm14, %v27709_v17  ;;  %v35628_v17 = vld [vmem:[#allocation8_spill] sm:$0xff] }
 0x6e6   :  { %27738 = vmatpush1.msk.msra.mxu1 %vm1604_vm13, %v13137_v43  ;;  %27735 = vmatpush1.msk.msra.mxu0 %vm1604_vm13, %v13135_v32  ;;  %v13126_v53 = vpop.permute.xlu1 %13125  ;;  %v13807_v25 = vrot.slane %v32418_v6, %v35628_v17  ;;  %v35630_v43 = vld [vmem:[#allocation10_spill] sm:$0xff] }
 0x6e7   :  { %27740 = vmatprep.subr.msk.mxu0 %vm1604_vm13, %v13140_v52  ;;  %27743 = vmatprep.subr.msk.mxu1 %vm1604_vm13, %v13142_v14  ;;  %v13144_v35 = vsel %vm1212_vm9, %v13124_v46, %v13126_v53  ;;  %v13811_v46 = vrot.slane %v32418_v6, %v35629_v50  ;;  %v13847_v32 = vrot.slane %v32437_v15, %v35630_v43 }
 0x6e8   :  { %13246 = vmatprep.mubr.f32.mxu0 %v31561_v10  ;;  %13317 = vmatprep.mubr.f32.mxu1 %v31561_v10  ;;  %v13128_v58 = vpop.permute.xlu0 %13127 }
 0x6e9   :  { %27736 = vmatmul.mubr.msk.f32.vlgmr.msra.gmra.mrb[8].mxu0 %vm1600_vm14, %v27733_v7  ;;  %27739 = vmatmul.mubr.msk.f32.vlgmr.msra.gmra.mrb[24].mxu1 %vm1600_vm14, %v27733_v7  ;;  %v13145_v21 = vsel %vm1212_vm9, %v13126_v53, %v13128_v58 }
 0x6ea   :  { %27741 = vmatpush1.msk.msra.mxu0 %vm1604_vm13, %v13139_v11  ;;  %27744 = vmatpush1.msk.msra.mxu1 %vm1604_vm13, %v13141_v39 }
 0x6eb   :  { %27746 = vmatprep.subr.msk.mxu0 %vm1604_vm13, %v13144_v35  ;;  %13388 = vmatprep.mubr.f32.mxu0 %v32376_v30  ;;  %v13130_v10 = vpop.permute.xlu1 %13129  ;;  %v35631_v35 = vld [vmem:[#allocation9_spill] sm:$0xff] }
 0x6ec   :  { %13459 = vmatprep.mubr.f32.mxu1 %v32376_v30  ;;  %v13146_v0 = vsel %vm1212_vm9, %v13128_v58, %v13130_v10  ;;  %15202 = vrot.lane.b32.xlu1 %v32376_v30, %s29001_s1  ;;  %v13132_v63 = vpop.permute.xlu0 %13131  ;;  %v13851_v11 = vrot.slane %v32437_v15, %v35631_v35 }
 0x6ed   :  { %27742 = vmatmul.mubr.msk.f32.vlgmr.msra.gmra.mrb[10].mxu0 %vm1600_vm14, %v27733_v7  ;;  %27745 = vmatmul.mubr.msk.f32.vlgmr.msra.gmra.mrb[26].mxu1 %vm1600_vm14, %v27733_v7  ;;  %v13147_v45 = vsel %vm1212_vm9, %v13130_v10, %v13132_v63 }
 0x6ee   :  { %27747 = vmatpush1.msk.msra.mxu0 %vm1604_vm13, %v13143_v33  ;;  %27749 = vmatprep.subr.msk.mxu1 %vm1604_vm13, %v13146_v0  ;;  %v35632_v33 = vld [vmem:[#allocation12_spill] sm:$0xff] }
 0x6ef   :  { %13530 = vmatprep.mubr.f32.mxu0 %v32376_v30  ;;  %27750 = vmatpush1.msk.msra.mxu1 %vm1604_vm13, %v13145_v21  ;;  %v13855_v21 = vrot.slane %v32437_v15, %v35632_v33 }
 0x6f0   :  { %13601 = vmatprep.mubr.f32.mxu1 %v32376_v30  ;;  %v13134_v31 = vpop.permute.xlu1 %13133  ;;  %28195 = vmatprep.subr.mxu1 %v32376_v30 }
 0x6f1   :  { %27748 = vmatmul.mubr.msk.f32.vlgmr.msra.gmra.mrb[12].mxu0 %vm1600_vm14, %v27733_v7  ;;  %27751 = vmatmul.mubr.msk.f32.vlgmr.msra.gmra.mrb[28].mxu1 %vm1600_vm14, %v27733_v7  ;;  %v13148_v28 = vsel %vm1212_vm9, %v13132_v63, %v13134_v31 }
 0x6f2   :  { %28196 = vmatpush3.msk.msra.mxu1 %vm1604_vm13, %v13134_v31  ;;  %27752 = vmatprep.subr.msk.mxu0 %vm1604_vm13, %v13148_v28 }
 0x6f3   :  { %27753 = vmatpush1.msk.msra.mxu0 %vm1604_vm13, %v13147_v45  ;;  %13672 = vmatprep.mubr.f32.mxu0 %v32376_v30  ;;  %vm24305_vm13 = vcmask 97280  }
 0x6f4   :  { %28197 = vmatprep.mubr.msk.f32.mxu1 %vm28997_vm15, %v32376_v30  ;;  %15880 = vrot.lane.b32.xlu0 %v32376_v30, %s29002_s26 }
 0x6f5   :  { %27754 = vmatmul.mubr.msk.f32.vlgmr.msra.gmra.mrb[14].mxu0 %vm1600_vm14, %v27733_v7  ;;  %28198 = vmatmul.mubr.msk.f32.vlgmr.msra.gmra.mrb[46].mxu1 %vm1600_vm14, %v27733_v7  ;;  %vm26545_vm14 = vcmask 58368  }
 0x6f6   :  { %14068 = vmatprep.mubr.f32.mxu0 %v32376_v30  ;;  %14139 = vmatprep.mubr.f32.mxu1 %v32376_v30 }
 0x6fe   :  { %v32420_v51 = vpop.permute.xlu0 %13767 }
 0x742   :  { %v8494_v1 = vpop.f32.mrb[30].mxu1 }
 0x743   :  { %v28159_v8 = vpop.f32.mrb[31].mxu1 }
 0x755   :  { %v9139_v12 = vpop.f32.mrb[32].mxu1 }
 0x756   :  { %v9140_v62 = vadd.f32 %v9139_v12, %v8494_v1  ;;  %v28164_v38 = vpop.f32.mrb[33].mxu1 }
 0x766   :  { %v9786_v34 = vpop.f32.mrb[34].mxu1 }
 0x767   :  { %v9804_v61 = vadd.f32 %v9786_v34, %v9140_v62  ;;  %v28169_v44 = vpop.f32.mrb[35].mxu1  ;;  %v35633_v34 = vld [vmem:[#allocation11_spill] sm:$0xff] }
 0x776   :  { %v10483_v55 = vpop.f32.mrb[36].mxu1 }
 0x777   :  { %v10501_v49 = vadd.f32 %v10483_v55, %v9804_v61  ;;  %v28174_v26 = vpop.f32.mrb[37].mxu1  ;;  %v13859_v61 = vrot.slane %v32437_v15, %v35633_v34 }
 0x786   :  { %v11100_v23 = vpop.f32.mrb[38].mxu1 }
 0x787   :  { %v11118_v29 = vadd.f32 %v11100_v23, %v10501_v49  ;;  %v28179_v3 = vpop.f32.mrb[39].mxu1  ;;  %v35634_v49 = vld [vmem:[#allocation14_spill] sm:$0xff] }
 0x788   :  { %v13863_v26 = vrot.slane %v32437_v15, %v35634_v49  ;;  %v13815_v3 = vrot.slane %v32418_v6, %v35630_v43 }
 0x796   :  { %v11761_v13 = vpop.f32.mrb[40].mxu1 }
 0x797   :  { %v11779_v59 = vadd.f32 %v11761_v13, %v11118_v29  ;;  %v28184_v16 = vpop.f32.mrb[41].mxu1 }
 0x7a7   :  { %v12423_v9 = vpop.f32.mrb[42].mxu1 }
 0x7a8   :  { %v12441_v20 = vadd.f32 %v12423_v9, %v11779_v59  ;;  %v28189_v60 = vpop.f32.mrb[43].mxu1 }
 0x7b8   :  { %v13084_v57 = vpop.f32.mrb[44].mxu1 }
 0x7b9   :  { %v13102_v24 = vadd.f32 %v13084_v57, %v12441_v20  ;;  %v28194_v2 = vpop.f32.mrb[45].mxu1 }
 0x7bc   :  { %v13248_v48 = vpop.f32.mrb[8].mxu0  ;;  %v13319_v18 = vpop.f32.mrb[24].mxu1 }
 0x7bd   :  { %v13770_v4 = vadd.f32 %v32420_v51, %v13248_v48  ;;  %v13250_v40 = vpop.f32.mrb[9].mxu0  ;;  %v13321_v47 = vpop.f32.mrb[25].mxu1  ;;  %v13772_v58 = vadd.f32 %v32420_v51, %v13319_v18 }
 0x7be   :  { %v13771_v37 = vadd.f32 %v32420_v51, %v13250_v40  ;;  %v13773_v60 = vadd.f32 %v32420_v51, %v13321_v47 }
 0x7bf   :  { %v13785_v54 = vmax.f32 %v13770_v4, 0.0  ;;  %v13787_v29 = vmax.f32 %v13772_v58, 0.0  ;;  %v13823_v4 = vrot.slane %v32418_v6, %v35632_v33  ;;  %v13843_v58 = vrot.slane %v32437_v15, %v35629_v50 }
 0x7c0   :  { %v13390_v22 = vpop.f32.mrb[10].mxu0  ;;  %v32425_v56 = vpop.f32.mrb[26].mxu1  ;;  %v13786_v42 = vmax.f32 %v13771_v37, 0.0  ;;  %v13788_v57 = vmax.f32 %v13773_v60, 0.0 }
 0x7c1   :  { %v32427_v5 = vmul.f32 %v13807_v25, %v13785_v54  ;;  %v32430_v36 = vpop.f32.mrb[11].mxu0  ;;  %v32432_v41 = vpop.f32.mrb[27].mxu1  ;;  %v32489_v20 = vmul.f32 %v13815_v3, %v13787_v29  ;;  %v13774_v2 = vadd.f32 %v32420_v51, %v13390_v22  ;;  %v13827_v54 = vrot.slane %v32418_v6, %v35633_v34 }
 0x7c2   :  { %v32462_v31 = vmul.f32 %v13811_v46, %v13786_v42  ;;  %v13775_v40 = vadd.f32 %v32420_v51, %v32430_v36  ;;  %v13776_v22 = vadd.f32 %v32420_v51, %v32425_v56  ;;  %v13777_v56 = vadd.f32 %v32420_v51, %v32432_v41 }
 0x7c3   :  { %14573 = vrot.lane.b32.xlu0 %v32427_v5, %s29000_s25  ;;  %13944 = vrot.lane.b32.xlu1 %v32427_v5, %s28999_s6  ;;  %v13789_v18 = vmax.f32 %v13774_v2, 0.0 }
 0x7c4   :  { %v32443_v27 = vpop.f32.mrb[12].mxu0  ;;  %v13603_v19 = vpop.f32.mrb[28].mxu1  ;;  %v13790_v47 = vmax.f32 %v13775_v40, 0.0  ;;  %v13791_v36 = vmax.f32 %v13776_v22, 0.0  ;;  %v13792_v46 = vmax.f32 %v13777_v56, 0.0 }
 0x7c5   :  { %v13780_v14 = vadd.f32 %v32420_v51, %v13603_v19  ;;  %v32450_v52 = vpop.f32.mrb[13].mxu0  ;;  %v13605_v53 = vpop.f32.mrb[29].mxu1  ;;  %v32512_v25 = vmul.f32 %v13823_v4, %v13789_v18  ;;  %v13831_v19 = vrot.slane %v32418_v6, %v35634_v49 }
 0x7c6   :  { %v13781_v7 = vadd.f32 %v32420_v51, %v13605_v53  ;;  %v32532_v37 = vmul.f32 %v13827_v54, %v13790_v47  ;;  %v13778_v53 = vadd.f32 %v32420_v51, %v32443_v27  ;;  %v13779_v27 = vadd.f32 %v32420_v51, %v32450_v52 }
 0x7c7   :  { %v13795_v39 = vmax.f32 %v13780_v14, 0.0  ;;  %15882 = vrot.lane.b32.xlu0 %v32427_v5, %s29002_s26  ;;  %15204 = vrot.lane.b32.xlu1 %v32427_v5, %s29001_s1  ;;  %35635 = vst [vmem:[#allocation22_spill] sm:$0xff] %v32512_v25  ;;  %v32544_v42 = vmul.f32 %v13831_v19, %v13791_v36  ;;  %v35637_v14 = vld [vmem:[#allocation13_spill] sm:$0xff] }
 0x7c8   :  { %v13796_v10 = vmax.f32 %v13781_v7, 0.0  ;;  %v13674_v0 = vpop.f32.mrb[14].mxu0  ;;  %v13745_v63 = vpop.f32.mrb[46].mxu1  ;;  %v13793_v7 = vmax.f32 %v13778_v53, 0.0 }
 0x7c9   :  { %v32464_v28 = vmul.f32 %v13847_v32, %v13795_v39  ;;  %v13782_v45 = vadd.f32 %v32420_v51, %v13674_v0  ;;  %v13763_v1 = vadd.f32 %v13745_v63, %v13102_v24  ;;  %v13676_v8 = vpop.f32.mrb[15].mxu0  ;;  %v28199_v12 = vpop.f32.mrb[47].mxu1  ;;  %v13819_v24 = vrot.slane %v32418_v6, %v35631_v35  ;;  %35636 = vst [vmem:[#allocation21_spill] sm:$0xff] %v32544_v42 }
 0x7ca   :  { %v32467_v62 = vmul.f32 %v13851_v11, %v13796_v10  ;;  %v13783_v38 = vadd.f32 %v32420_v51, %v13676_v8  ;;  %v13835_v32 = vrot.slane %v32418_v6, %v35637_v14  ;;  %v13839_v11 = vrot.slane %v32437_v15, %v35628_v17  ;;  %v32620_v15 = vpop.permute.xlu0 %14571 }
 0x7cb   :  { %v13797_v44 = vmax.f32 %v13782_v45, 0.0  ;;  %v13784_v55 = vadd.f32 %v32420_v51, %v13763_v1  ;;  %13946 = vrot.lane.b32.xlu0 %v32462_v31, %s28999_s6  ;;  %14575 = vrot.lane.b32.xlu1 %v32462_v31, %s29000_s25  ;;  %v32504_v48 = vmul.f32 %v13819_v24, %v13788_v57  ;;  %v13794_v39 = vmax.f32 %v13779_v27, 0.0  ;;  %v13943_v51 = vpop.permute.xlu1 %13942 }
 0x7cc   :  { %v13798_v23 = vmax.f32 %v13783_v38, 0.0  ;;  %v32560_v41 = vmul.f32 %v13835_v32, %v13792_v46  ;;  %v32568_v6 = vmul.f32 %v13839_v11, %v13793_v7 }
 0x7cd   :  { %v32481_v13 = vmul.f32 %v13855_v21, %v13797_v44  ;;  %v13799_v59 = vmax.f32 %v13784_v55, 0.0  ;;  %v32586_v10 = vmul.f32 %v13843_v58, %v13794_v39 }
 0x7ce   :  { %v32483_v16 = vmul.f32 %v13859_v61, %v13798_v23  ;;  %35638 = vst [vmem:[#allocation24_spill] sm:$0xff] %v32568_v6  ;;  %v32632_v0 = vpop.permute.xlu0 %15880  ;;  %v32662_v61 = vld [vmem:[%s35379_s10 + $0x8] sm:$0xff] }
 0x7cf   :  { %v13893_v9 = vmul.f32 %v13863_v26, %v13799_v59  ;;  %15206 = vrot.lane.b32.xlu0 %v32462_v31, %s29001_s1  ;;  %15884 = vrot.lane.b32.xlu1 %v32462_v31, %s29002_s26  ;;  %v32630_v52 = vpop.permute.xlu1 %15202 }
 0x7d1   :  { %13908 = vst.msk [vmem:[#allocation2 + $0x78] sm:$0xff] %vm58_vm11, %v13893_v9 }
 0x7d3   :  { %17118 = vrot.lane.b32.xlu0 %v32462_v31, %s28986_s5  ;;  %13948 = vrot.lane.b32.xlu1 %v32489_v20, %s28999_s6 }
 0x7d7   :  { %14577 = vrot.lane.b32.xlu0 %v32489_v20, %s29000_s25  ;;  %15208 = vrot.lane.b32.xlu1 %v32489_v20, %s29001_s1 }
 0x7d8   :  { %v32719_v22 = vld [vmem:[#allocation2 + $0x78] sm:$0xff] }
 0x7db   :  { %15886 = vrot.lane.b32.xlu0 %v32489_v20, %s29002_s26  ;;  %14579 = vrot.lane.b32.xlu1 %v32504_v48, %s29000_s25 }
 0x7df   :  { %13950 = vrot.lane.b32.xlu0 %v32504_v48, %s28999_s6  ;;  %14581 = vrot.lane.b32.xlu1 %v32512_v25, %s29000_s25 }
 0x7e3   :  { %13952 = vrot.lane.b32.xlu0 %v32512_v25, %s28999_s6  ;;  %15888 = vrot.lane.b32.xlu1 %v32504_v48, %s29002_s26 }
 0x7e7   :  { %15210 = vrot.lane.b32.xlu0 %v32504_v48, %s29001_s1  ;;  %15890 = vrot.lane.b32.xlu1 %v32512_v25, %s29002_s26 }
 0x7eb   :  { %15212 = vrot.lane.b32.xlu0 %v32512_v25, %s29001_s1  ;;  %13954 = vrot.lane.b32.xlu1 %v32532_v37, %s28999_s6 }
 0x7ef   :  { %14583 = vrot.lane.b32.xlu0 %v32532_v37, %s29000_s25  ;;  %15214 = vrot.lane.b32.xlu1 %v32532_v37, %s29001_s1 }
 0x7f3   :  { %15892 = vrot.lane.b32.xlu0 %v32532_v37, %s29002_s26  ;;  %14585 = vrot.lane.b32.xlu1 %v32544_v42, %s29000_s25 }
 0x7f7   :  { %13956 = vrot.lane.b32.xlu0 %v32544_v42, %s28999_s6  ;;  %15894 = vrot.lane.b32.xlu1 %v32544_v42, %s29002_s26 }
 0x7fb   :  { %15216 = vrot.lane.b32.xlu0 %v32544_v42, %s29001_s1  ;;  %13958 = vrot.lane.b32.xlu1 %v32560_v41, %s28999_s6 }
 0x7ff   :  { %13960 = vrot.lane.b32.xlu0 %v32568_v6, %s28999_s6  ;;  %14589 = vrot.lane.b32.xlu1 %v32568_v6, %s29000_s25 }
 0x803   :  { %14587 = vrot.lane.b32.xlu0 %v32560_v41, %s29000_s25  ;;  %15218 = vrot.lane.b32.xlu1 %v32560_v41, %s29001_s1 }
 0x807   :  { %15220 = vrot.lane.b32.xlu0 %v32568_v6, %s29001_s1  ;;  %15898 = vrot.lane.b32.xlu1 %v32568_v6, %s29002_s26 }
 0x80b   :  { %15896 = vrot.lane.b32.xlu0 %v32560_v41, %s29002_s26  ;;  %13962 = vrot.lane.b32.xlu1 %v32586_v10, %s28999_s6 }
 0x80f   :  { %14591 = vrot.lane.b32.xlu0 %v32586_v10, %s29000_s25  ;;  %15222 = vrot.lane.b32.xlu1 %v32586_v10, %s29001_s1 }
 0x813   :  { %15900 = vrot.lane.b32.xlu0 %v32586_v10, %s29002_s26  ;;  %14593 = vrot.lane.b32.xlu1 %v32464_v28, %s29000_s25 }
 0x817   :  { %13964 = vrot.lane.b32.xlu0 %v32464_v28, %s28999_s6  ;;  %15902 = vrot.lane.b32.xlu1 %v32464_v28, %s29002_s26 }
 0x81b   :  { %15224 = vrot.lane.b32.xlu0 %v32464_v28, %s29001_s1  ;;  %13966 = vrot.lane.b32.xlu1 %v32467_v62, %s28999_s6 }
 0x81f   :  { %13968 = vrot.lane.b32.xlu0 %v32481_v13, %s28999_s6  ;;  %14597 = vrot.lane.b32.xlu1 %v32481_v13, %s29000_s25 }
 0x823   :  { %14595 = vrot.lane.b32.xlu0 %v32467_v62, %s29000_s25  ;;  %15226 = vrot.lane.b32.xlu1 %v32467_v62, %s29001_s1 }
 0x827   :  { %15228 = vrot.lane.b32.xlu0 %v32481_v13, %s29001_s1  ;;  %15906 = vrot.lane.b32.xlu1 %v32481_v13, %s29002_s26 }
 0x82b   :  { %15904 = vrot.lane.b32.xlu0 %v32467_v62, %s29002_s26  ;;  %13970 = vrot.lane.b32.xlu1 %v32483_v16, %s28999_s6  ;;  %s29007_s6 = smov 4  }
 0x82f   :  { %17122 = vrot.lane.b32.xlu0 %v32504_v48, %s28986_s5  ;;  %17120 = vrot.lane.b32.xlu1 %v32489_v20, %s28986_s5 }
 0x833   :  { %17116 = vrot.lane.b32.xlu0 %v32427_v5, %s28986_s5  ;;  %17124 = vrot.lane.b32.xlu1 %v32512_v25, %s28986_s5 }
 0x835   :  { %v13945_v21 = vpop.permute.xlu1 %13944  ;;  %v32638_v63 = vpop.permute.xlu0 %14573 }
 0x836   :  { %v13972_v44 = vsel %vm7883_vm2, %v13943_v51, %v13945_v21 }
 0x837   :  { %14599 = vrot.lane.b32.xlu0 %v32483_v16, %s29000_s25  ;;  %17126 = vrot.lane.b32.xlu1 %v32532_v37, %s28986_s5 }
 0x839   :  { %v32644_v45 = vpop.permute.xlu1 %15204  ;;  %v32646_v1 = vpop.permute.xlu0 %15882 }
 0x83b   :  { %17128 = vrot.lane.b32.xlu0 %v32544_v42, %s28986_s5  ;;  %17130 = vrot.lane.b32.xlu1 %v32560_v41, %s28986_s5 }
 0x83d   :  { %v32652_v8 = vpop.permute.xlu1 %14575  ;;  %v13947_v12 = vpop.permute.xlu0 %13946 }
 0x83e   :  { %v13973_v38 = vsel %vm7883_vm2, %v13945_v21, %v13947_v12 }
 0x83f   :  { %17132 = vrot.lane.b32.xlu0 %v32568_v6, %s28986_s5  ;;  %17134 = vrot.lane.b32.xlu1 %v32586_v10, %s28986_s5 }
 0x840   :  { %14004 = vmatprep.subr.mxu0 %v13973_v38 }
 0x841   :  { %14005 = vmatpush1.msra.mxu0 %v13972_v44  ;;  %v32665_v55 = vpop.permute.xlu1 %15884  ;;  %v32667_v26 = vpop.permute.xlu0 %15206 }
 0x842   :  { %27758 = vmatmul.mubr.msk.f32.vlgmr.msra.gmra.mrb[16].mxu0 %vm58_vm11, %v32662_v61 }
 0x843   :  { %17136 = vrot.lane.b32.xlu0 %v32464_v28, %s28986_s5  ;;  %17138 = vrot.lane.b32.xlu1 %v32467_v62, %s28986_s5 }
 0x844   :  { %14210 = vmatprep.mubr.f32.mxu0 %v32376_v30 }
 0x845   :  { %v13949_v23 = vpop.permute.xlu1 %13948  ;;  %v32676_v29 = vpop.permute.xlu0 %17118 }
 0x846   :  { %35639 = vst [vmem:[#allocation23_spill] sm:$0xff] %v32676_v29  ;;  %v13974_v18 = vsel %vm7883_vm2, %v13947_v12, %v13949_v23 }
 0x847   :  { %17140 = vrot.lane.b32.xlu0 %v32481_v13, %s28986_s5  ;;  %17764 = vrot.lane.b32.xlu1 %v32462_v31, %s29003_s17 }
 0x849   :  { %v32682_v3 = vpop.permute.xlu1 %15208  ;;  %v32684_v59 = vpop.permute.xlu0 %14577 }
 0x84b   :  { %17766 = vrot.lane.b32.xlu0 %v32489_v20, %s29003_s17  ;;  %15230 = vrot.lane.b32.xlu1 %v32483_v16, %s29001_s1 }
 0x84d   :  { %v32690_v9 = vpop.permute.xlu1 %14579  ;;  %v32692_v60 = vpop.permute.xlu0 %15886 }
 0x84e   :  { %v14604_v29 = vsel %vm8528_vm4, %v32684_v59, %v32690_v9 }
 0x84f   :  { %17770 = vrot.lane.b32.xlu0 %v32512_v25, %s29003_s17  ;;  %17768 = vrot.lane.b32.xlu1 %v32504_v48, %s29003_s17 }
 0x851   :  { %v32698_v57 = vpop.permute.xlu1 %14581  ;;  %v13951_v24 = vpop.permute.xlu0 %13950 }
 0x852   :  { %v13975_v2 = vsel %vm7883_vm2, %v13949_v23, %v13951_v24 }
 0x853   :  { %17772 = vrot.lane.b32.xlu0 %v32532_v37, %s29003_s17  ;;  %17762 = vrot.lane.b32.xlu1 %v32427_v5, %s29003_s17 }
 0x854   :  { %14075 = vmatprep.subr.mxu1 %v13975_v2 }
 0x855   :  { %14076 = vmatpush1.msra.mxu1 %v13974_v18  ;;  %v32706_v4 = vpop.permute.xlu1 %15888  ;;  %v13953_v40 = vpop.permute.xlu0 %13952 }
 0x856   :  { %27759 = vmatmul.mubr.msk.f32.vlgmr.msra.gmra.mrb[48].mxu1 %vm58_vm11, %v32662_v61  ;;  %v13976_v46 = vsel %vm7883_vm2, %v13951_v24, %v13953_v40 }
 0x857   :  { %15908 = vrot.lane.b32.xlu0 %v32483_v16, %s29002_s26  ;;  %17142 = vrot.lane.b32.xlu1 %v32483_v16, %s28986_s5 }
 0x858   :  { %14281 = vmatprep.mubr.f32.mxu1 %v32376_v30 }
 0x859   :  { %v32715_v47 = vpop.permute.xlu1 %15890  ;;  %v32717_v54 = vpop.permute.xlu0 %15210 }
 0x85b   :  { %17776 = vrot.lane.b32.xlu0 %v32560_v41, %s29003_s17  ;;  %15910 = vrot.lane.b32.xlu1 %v32719_v22, %s29002_s26 }
 0x85d   :  { %v13955_v36 = vpop.permute.xlu1 %13954  ;;  %v32725_v19 = vpop.permute.xlu0 %15212 }
 0x85e   :  { %v13977_v56 = vsel %vm7883_vm2, %v13953_v40, %v13955_v36 }
 0x85f   :  { %17780 = vrot.lane.b32.xlu0 %v32586_v10, %s29003_s17  ;;  %17774 = vrot.lane.b32.xlu1 %v32544_v42, %s29003_s17 }
 0x860   :  { %14146 = vmatprep.subr.mxu0 %v13977_v56 }
 0x861   :  { %14147 = vmatpush1.msra.mxu0 %v13976_v46  ;;  %v32733_v32 = vpop.permute.xlu1 %15214  ;;  %v32735_v53 = vpop.permute.xlu0 %14583 }
 0x862   :  { %27760 = vmatmul.mubr.msk.f32.vlgmr.msra.gmra.mrb[18].mxu0 %vm58_vm11, %v32662_v61 }
 0x863   :  { %17784 = vrot.lane.b32.xlu0 %v32467_v62, %s29003_s17  ;;  %17778 = vrot.lane.b32.xlu1 %v32568_v6, %s29003_s17 }
 0x864   :  { %14352 = vmatprep.mubr.f32.mxu0 %v32376_v30 }
 0x865   :  { %v32744_v7 = vpop.permute.xlu1 %14585  ;;  %v32746_v11 = vpop.permute.xlu0 %15892 }
 0x867   :  { %17788 = vrot.lane.b32.xlu0 %v32483_v16, %s29003_s17  ;;  %17782 = vrot.lane.b32.xlu1 %v32464_v28, %s29003_s17 }
 0x869   :  { %v32752_v27 = vpop.permute.xlu1 %15894  ;;  %v13957_v39 = vpop.permute.xlu0 %13956 }
 0x86a   :  { %v13978_v12 = vsel %vm7883_vm2, %v13955_v36, %v13957_v39 }
 0x86b   :  { %18410 = vrot.lane.b32.xlu0 %v32462_v31, %s28990_s19  ;;  %17786 = vrot.lane.b32.xlu1 %v32481_v13, %s29003_s17 }
 0x86d   :  { %v13959_v58 = vpop.permute.xlu1 %13958  ;;  %v32758_v51 = vpop.permute.xlu0 %15216 }
 0x86e   :  { %v13979_v21 = vsel %vm7883_vm2, %v13957_v39, %v13959_v58 }
 0x86f   :  { %18414 = vrot.lane.b32.xlu0 %v32504_v48, %s28990_s19  ;;  %18412 = vrot.lane.b32.xlu1 %v32489_v20, %s28990_s19 }
 0x870   :  { %14217 = vmatprep.subr.mxu1 %v13979_v21 }
 0x871   :  { %14218 = vmatpush1.msra.mxu1 %v13978_v12  ;;  %v32766_v38 = vpop.permute.xlu1 %14589  ;;  %v13961_v44 = vpop.permute.xlu0 %13960 }
 0x872   :  { %27761 = vmatmul.mubr.msk.f32.vlgmr.msra.gmra.mrb[50].mxu1 %vm58_vm11, %v32662_v61  ;;  %v13980_v46 = vsel %vm7883_vm2, %v13959_v58, %v13961_v44 }
 0x873   :  { %18408 = vrot.lane.b32.xlu0 %v32427_v5, %s28990_s19  ;;  %18416 = vrot.lane.b32.xlu1 %v32512_v25, %s28990_s19 }
 0x874   :  { %14423 = vmatprep.mubr.f32.mxu1 %v32376_v30 }
 0x875   :  { %v32775_v23 = vpop.permute.xlu1 %15218  ;;  %v32777_v24 = vpop.permute.xlu0 %14587 }
 0x877   :  { %17144 = vrot.lane.b32.xlu0 %v32719_v22, %s28986_s5  ;;  %18418 = vrot.lane.b32.xlu1 %v32532_v37, %s28990_s19 }
 0x879   :  { %v32783_v2 = vpop.permute.xlu1 %15898  ;;  %v32785_v18 = vpop.permute.xlu0 %15220 }
 0x87b   :  { %18420 = vrot.lane.b32.xlu0 %v32544_v42, %s28990_s19  ;;  %18422 = vrot.lane.b32.xlu1 %v32560_v41, %s28990_s19 }
 0x87d   :  { %v13963_v40 = vpop.permute.xlu1 %13962  ;;  %v32791_v36 = vpop.permute.xlu0 %15896 }
 0x87e   :  { %v13981_v56 = vsel %vm7883_vm2, %v13961_v44, %v13963_v40 }
 0x87f   :  { %18426 = vrot.lane.b32.xlu1 %v32586_v10, %s28990_s19  ;;  %18424 = vrot.lane.b32.xlu0 %v32568_v6, %s28990_s19 }
 0x880   :  { %14288 = vmatprep.subr.mxu0 %v13981_v56 }
 0x881   :  { %14289 = vmatpush1.msra.mxu0 %v13980_v46  ;;  %v32799_v39 = vpop.permute.xlu1 %15222  ;;  %v32801_v21 = vpop.permute.xlu0 %14591 }
 0x882   :  { %27762 = vmatmul.mubr.msk.f32.vlgmr.msra.gmra.mrb[20].mxu0 %vm58_vm11, %v32662_v61 }
 0x883   :  { %18430 = vrot.lane.b32.xlu1 %v32467_v62, %s28990_s19  ;;  %18428 = vrot.lane.b32.xlu0 %v32464_v28, %s28990_s19 }
 0x884   :  { %14494 = vmatprep.mubr.f32.mxu0 %v32376_v30 }
 0x885   :  { %v32810_v12 = vpop.permute.xlu1 %14593  ;;  %v32812_v56 = vpop.permute.xlu0 %15900 }
 0x887   :  { %18434 = vrot.lane.b32.xlu1 %v32483_v16, %s28990_s19  ;;  %18432 = vrot.lane.b32.xlu0 %v32481_v13, %s28990_s19 }
 0x889   :  { %v32818_v58 = vpop.permute.xlu1 %15902  ;;  %v13965_v44 = vpop.permute.xlu0 %13964 }
 0x88a   :  { %v13982_v35 = vsel %vm7883_vm2, %v13963_v40, %v13965_v44 }
 0x88b   :  { %17790 = vrot.lane.b32.xlu1 %v32719_v22, %s29003_s17  ;;  %19058 = vrot.lane.b32.xlu0 %v32489_v20, %s28992_s21 }
 0x88d   :  { %v13967_v46 = vpop.permute.xlu1 %13966  ;;  %v32824_v34 = vpop.permute.xlu0 %15224 }
 0x88e   :  { %v13983_v33 = vsel %vm7883_vm2, %v13965_v44, %v13967_v46 }
 0x88f   :  { %19056 = vrot.lane.b32.xlu1 %v32462_v31, %s28992_s21  ;;  %19062 = vrot.lane.b32.xlu0 %v32512_v25, %s28992_s21 }
 0x890   :  { %14359 = vmatprep.subr.mxu1 %v13983_v33 }
 0x891   :  { %14360 = vmatpush1.msra.mxu1 %v13982_v35  ;;  %v32832_v43 = vpop.permute.xlu1 %14597  ;;  %v13969_v49 = vpop.permute.xlu0 %13968 }
 0x892   :  { %27763 = vmatmul.mubr.msk.f32.vlgmr.msra.gmra.mrb[52].mxu1 %vm58_vm11, %v32662_v61  ;;  %28200 = vmatprep.subr.mxu1 %v32376_v30  ;;  %v13984_v25 = vsel %vm7883_vm2, %v13967_v46, %v13969_v49  ;;  %v14605_v46 = vsel %vm8528_vm4, %v32690_v9, %v32698_v57  ;;  %v14611_v9 = vsel %vm8528_vm4, %v32801_v21, %v32810_v12 }
 0x893   :  { %19060 = vrot.lane.b32.xlu1 %v32504_v48, %s28992_s21  ;;  %19064 = vrot.lane.b32.xlu0 %v32532_v37, %s28992_s21 }
 0x894   :  { %28202 = vmatprep.mubr.msk.f32.mxu1 %vm28997_vm15, %v32376_v30 }
 0x895   :  { %v32843_v33 = vpop.permute.xlu1 %15226  ;;  %v32845_v35 = vpop.permute.xlu0 %14595 }
 0x897   :  { %19054 = vrot.lane.b32.xlu1 %v32427_v5, %s28992_s21  ;;  %18436 = vrot.lane.b32.xlu0 %v32719_v22, %s28990_s19 }
 0x899   :  { %v32851_v40 = vpop.permute.xlu1 %15906  ;;  %v32853_v44 = vpop.permute.xlu0 %15228 }
 0x89b   :  { %19066 = vrot.lane.b32.xlu1 %v32544_v42, %s28992_s21  ;;  %19068 = vrot.lane.b32.xlu0 %v32560_v41, %s28992_s21 }
 0x89d   :  { %v13971_v14 = vpop.permute.xlu1 %13970  ;;  %v32859_v50 = vpop.permute.xlu0 %15904 }
 0x89e   :  { %28201 = vmatpush3.msra.mxu1 %v13971_v14  ;;  %v13985_v17 = vsel %vm7883_vm2, %v13969_v49, %v13971_v14  ;;  %v14603_v14 = vsel %vm8528_vm4, %v32652_v8, %v32684_v59  ;;  %v14608_v49 = vsel %vm8528_vm4, %v32744_v7, %v32777_v24  ;;  %v14612_v59 = vsel %vm8528_vm4, %v32810_v12, %v32845_v35 }
 0x89f   :  { %19070 = vrot.lane.b32.xlu1 %v32568_v6, %s28992_s21  ;;  %19072 = vrot.lane.b32.xlu0 %v32586_v10, %s28992_s21 }
 0x8a0   :  { %14430 = vmatprep.subr.mxu0 %v13985_v17  ;;  %28203 = vmatmul.mubr.msk.f32.vlgmr.msra.gmra.mrb[54].mxu1 %vm58_vm11, %v32662_v61  ;;  %v14602_v17 = vsel %vm8528_vm4, %v32638_v63, %v32652_v8  ;;  %v14606_v8 = vsel %vm8528_vm4, %v32698_v57, %v32735_v53  ;;  %v19698_v57 = vld [vmem:[%s35380_s11] sm:$0xff] }
 0x8a1   :  { %14704 = vmatprep.subr.mxu1 %v14604_v29  ;;  %14431 = vmatpush1.msra.mxu0 %v13984_v25  ;;  %v32875_v6 = vpop.permute.xlu1 %17120  ;;  %v32877_v42 = vpop.permute.xlu0 %17122  ;;  %v14601_v25 = vsel %vm8528_vm4, %v32620_v15, %v32638_v63  ;;  %v32893_v29 = vld [vmem:[%s35379_s10] sm:$0xff]  ;;  %v14607_v63 = vsel %vm8528_vm4, %v32735_v53, %v32744_v7  ;;  %v14610_v53 = vsel %vm8528_vm4, %v32766_v38, %v32801_v21 }
 0x8a2   :  { %14705 = vmatpush1.msra.mxu1 %v14603_v14  ;;  %27764 = vmatmul.mubr.msk.f32.vlgmr.msra.gmra.mrb[22].mxu0 %vm58_vm11, %v32662_v61 }
 0x8a3   :  { %14633 = vmatprep.subr.mxu0 %v14602_v17  ;;  %14846 = vmatprep.subr.mxu1 %v14608_v49  ;;  %v14609_v17 = vsel %vm8528_vm4, %v32777_v24, %v32766_v38  ;;  %v15235_v38 = vsel %vm9175_vm5, %v32682_v3, %v32717_v54 }
 0x8a4   :  { %14634 = vmatpush1.msra.mxu0 %v14601_v25  ;;  %14768 = vmatprep.mubr.f32.mxu1 %v32376_v30 }
 0x8a5   :  { %19074 = vrot.lane.b32.xlu1 %v32464_v28, %s28992_s21  ;;  %19076 = vrot.lane.b32.xlu0 %v32467_v62, %s28992_s21  ;;  %v32903_v61 = vpop.permute.xlu1 %17124  ;;  %v32905_v15 = vpop.permute.xlu0 %17116 }
 0x8a6   :  { %27767 = vmatmul.mubr.msk.f32.vlgmr.msra.gmra.mrb[48].mxu1 %vm58_vm11, %v32893_v29  ;;  %14775 = vmatprep.subr.mxu0 %v14606_v8  ;;  %v14613_v8 = vsel %vm8528_vm4, %v32845_v35, %v32832_v43  ;;  %v27774_v35 = vld [vmem:[%s35379_s10 + $0x10] sm:$0xff] }
 0x8a7   :  { %14847 = vmatpush1.msra.mxu1 %v14607_v63  ;;  %14697 = vmatprep.mubr.f32.mxu0 %v32376_v30  ;;  %v15233_v63 = vsel %vm9175_vm5, %v32644_v45, %v32667_v26 }
 0x8a8   :  { %14988 = vmatprep.subr.mxu1 %v14612_v59  ;;  %27766 = vmatmul.mubr.msk.f32.vlgmr.msra.gmra.mrb[16].mxu0 %vm58_vm11, %v32893_v29  ;;  %v15234_v59 = vsel %vm9175_vm5, %v32667_v26, %v32682_v3  ;;  %v15232_v26 = vsel %vm9175_vm5, %v32630_v52, %v32644_v45  ;;  %v15237_v3 = vsel %vm9175_vm5, %v32725_v19, %v32733_v32 }
 0x8a9   :  { %14776 = vmatpush1.msra.mxu0 %v14605_v46  ;;  %14910 = vmatprep.mubr.f32.mxu1 %v32376_v30  ;;  %v32925_v7 = vpop.permute.xlu1 %17126  ;;  %v14600_v14 = vpop.permute.xlu0 %14599  ;;  %v15243_v52 = vsel %vm9175_vm5, %v32824_v34, %v32843_v33 }
 0x8aa   :  { %14917 = vmatprep.subr.mxu0 %v14610_v53  ;;  %19078 = vrot.lane.b32.xlu1 %v32481_v13, %s28992_s21  ;;  %v14614_v49 = vsel %vm8528_vm4, %v32832_v43, %v14600_v14  ;;  %v15239_v43 = vsel %vm9175_vm5, %v32758_v51, %v32775_v23 }
 0x8ab   :  { %19080 = vrot.lane.b32.xlu0 %v32483_v16, %s28992_s21  ;;  %27769 = vmatmul.mubr.msk.f32.vlgmr.msra.gmra.mrb[50].mxu1 %vm58_vm11, %v32893_v29 }
 0x8ac   :  { %14989 = vmatpush1.msra.mxu1 %v14611_v9  ;;  %14839 = vmatprep.mubr.f32.mxu0 %v32376_v30  ;;  %v15236_v9 = vsel %vm9175_vm5, %v32717_v54, %v32725_v19  ;;  %v15240_v54 = vsel %vm9175_vm5, %v32775_v23, %v32785_v18  ;;  %v15915_v23 = vsel %vm9871_vm8, %v32692_v60, %v32706_v4 }
 0x8ad   :  { %27768 = vmatmul.mubr.msk.f32.vlgmr.msra.gmra.mrb[18].mxu0 %vm58_vm11, %v32893_v29  ;;  %15052 = vmatprep.mubr.f32.mxu1 %v32376_v30  ;;  %v32948_v21 = vpop.permute.xlu1 %17130  ;;  %v32950_v12 = vpop.permute.xlu0 %17128 }
 0x8ae   :  { %14918 = vmatpush1.msra.mxu0 %v14609_v17  ;;  %28205 = vmatprep.subr.mxu1 %v32376_v30 }
 0x8af   :  { %19082 = vrot.lane.b32.xlu1 %v32719_v22, %s28992_s21  ;;  %19701 = vperm.xlu0 %28908, %v19698_v57  }
 0x8b0   :  { %27771 = vmatmul.mubr.msk.f32.vlgmr.msra.gmra.mrb[52].mxu1 %vm58_vm11, %v32893_v29  ;;  %15059 = vmatprep.subr.mxu0 %v14614_v49  ;;  %v15914_v49 = vsel %vm9871_vm8, %v32665_v55, %v32692_v60  ;;  %v15917_v60 = vsel %vm9871_vm8, %v32715_v47, %v32746_v11 }
 0x8b1   :  { %28206 = vmatpush3.msra.mxu1 %v14600_v14  ;;  %14981 = vmatprep.mubr.f32.mxu0 %v32376_v30  ;;  %v32961_v24 = vpop.permute.xlu1 %17134  ;;  %v32963_v25 = vpop.permute.xlu0 %17132  ;;  %v15238_v14 = vsel %vm9175_vm5, %v32733_v32, %v32758_v51  ;;  %v15241_v32 = vsel %vm9175_vm5, %v32785_v18, %v32799_v39  ;;  %v15242_v51 = vsel %vm9175_vm5, %v32799_v39, %v32824_v34 }
 0x8b2   :  { %15335 = vmatprep.subr.mxu1 %v15235_v38  ;;  %27770 = vmatmul.mubr.msk.f32.vlgmr.msra.gmra.mrb[20].mxu0 %vm58_vm11, %v32893_v29  ;;  %v15244_v18 = vsel %vm9175_vm5, %v32843_v33, %v32853_v44  ;;  %v15913_v38 = vsel %vm9871_vm8, %v32646_v1, %v32665_v55  ;;  %v15919_v33 = vsel %vm9871_vm8, %v32752_v27, %v32791_v36 }
 0x8b3   :  { %15060 = vmatpush1.msra.mxu0 %v14613_v8  ;;  %28207 = vmatprep.mubr.msk.f32.mxu1 %vm28997_vm15, %v32376_v30  ;;  %v15912_v55 = vsel %vm9871_vm8, %v32632_v0, %v32646_v1  ;;  %v15923_v0 = vsel %vm9871_vm8, %v32818_v58, %v32859_v50 }
 0x8b4   :  { %15264 = vmatprep.subr.mxu0 %v15233_v63  ;;  %28208 = vmatmul.mubr.msk.f32.vlgmr.msra.gmra.mrb[56].mxu1 %vm58_vm11, %v32893_v29 }
 0x8b5   :  { %15336 = vmatpush1.msra.mxu1 %v15234_v59  ;;  %15123 = vmatprep.mubr.f32.mxu0 %v32376_v30  ;;  %v32987_v46 = vpop.permute.xlu1 %17138  ;;  %v32989_v53 = vpop.permute.xlu0 %17136  ;;  %v15918_v59 = vsel %vm9871_vm8, %v32746_v11, %v32752_v27  ;;  %v15921_v11 = vsel %vm9871_vm8, %v32783_v2, %v32812_v56  ;;  %v15922_v27 = vsel %vm9871_vm8, %v32812_v56, %v32818_v58 }
 0x8b6   :  { %15477 = vmatprep.subr.mxu1 %v15239_v43  ;;  %27772 = vmatmul.mubr.msk.f32.vlgmr.msra.gmra.mrb[22].mxu0 %vm58_vm11, %v32893_v29 }
 0x8b7   :  { %15265 = vmatpush1.msra.mxu0 %v15232_v26  ;;  %15399 = vmatprep.mubr.f32.mxu1 %v32376_v30 }
 0x8b8   :  { %15406 = vmatprep.subr.mxu0 %v15237_v3  ;;  %27776 = vmatmul.mubr.msk.f32.vlgmr.msra.gmra.mrb[48].mxu1 %vm58_vm11, %v27774_v35  ;;  %v15920_v3 = vsel %vm9871_vm8, %v32791_v36, %v32783_v2  ;;  %v15924_v36 = vsel %vm9871_vm8, %v32859_v50, %v32851_v40  ;;  %v27792_v50 = vld [vmem:[%s35379_s10 + $0x20] sm:$0xff] }
 0x8b9   :  { %15478 = vmatpush1.msra.mxu1 %v15238_v14  ;;  %15328 = vmatprep.mubr.f32.mxu0 %v32376_v30  ;;  %v33008_v45 = vpop.permute.xlu1 %17764  ;;  %v33010_v29 = vpop.permute.xlu0 %17140  ;;  %v33107_v14 = vld [vmem:[#allocation2] sm:$0xff] }
 0x8ba   :  { %15619 = vmatprep.subr.mxu1 %v15243_v52  ;;  %27775 = vmatmul.mubr.msk.f32.vlgmr.msra.gmra.mrb[16].mxu0 %vm58_vm11, %v27774_v35 }
 0x8bb   :  { %15407 = vmatpush1.msra.mxu0 %v15236_v9  ;;  %15541 = vmatprep.mubr.f32.mxu1 %v32376_v30 }
 0x8bc   :  { %15548 = vmatprep.subr.mxu0 %v15241_v32  ;;  %27778 = vmatmul.mubr.msk.f32.vlgmr.msra.gmra.mrb[50].mxu1 %vm58_vm11, %v27774_v35 }
 0x8bd   :  { %15620 = vmatpush1.msra.mxu1 %v15242_v51  ;;  %15470 = vmatprep.mubr.f32.mxu0 %v32376_v30  ;;  %v15231_v57 = vpop.permute.xlu1 %15230  ;;  %v33025_v17 = vpop.permute.xlu0 %17766 }
 0x8be   :  { %27777 = vmatmul.mubr.msk.f32.vlgmr.msra.gmra.mrb[18].mxu0 %vm58_vm11, %v27774_v35  ;;  %15683 = vmatprep.mubr.f32.mxu1 %v32376_v30  ;;  %v15245_v34 = vsel %vm9175_vm5, %v32853_v44, %v15231_v57  ;;  %v27783_v44 = vld [vmem:[%s35379_s10 + $0x18] sm:$0xff] }
 0x8bf   :  { %15549 = vmatpush1.msra.mxu0 %v15240_v54  ;;  %15612 = vmatprep.mubr.f32.mxu0 %v32376_v30  ;;  %v27801_v54 = vld [vmem:[%s35379_s10 + $0x28] sm:$0xff] }
 0x8c0   :  { %27780 = vmatmul.mubr.msk.f32.vlgmr.msra.gmra.mrb[52].mxu1 %vm58_vm11, %v27774_v35  ;;  %28210 = vmatprep.subr.mxu1 %v32376_v30 }
 0x8c1   :  { %28211 = vmatpush3.msra.mxu1 %v15231_v57  ;;  %28212 = vmatprep.mubr.msk.f32.mxu1 %vm28997_vm15, %v32376_v30  ;;  %v33039_v19 = vpop.permute.xlu1 %17768  ;;  %v33041_v39 = vpop.permute.xlu0 %17770  ;;  %v17153_v57 = vsel %vm364_vm3, %v32948_v21, %v32963_v25 }
 0x8c2   :  { %27779 = vmatmul.mubr.msk.f32.vlgmr.msra.gmra.mrb[20].mxu0 %vm58_vm11, %v27774_v35  ;;  %15690 = vmatprep.subr.mxu0 %v15245_v34 }
 0x8c3   :  { %16016 = vmatprep.subr.mxu1 %v15915_v23  ;;  %15691 = vmatpush1.msra.mxu0 %v15244_v18  ;;  %v17150_v23 = vsel %vm364_vm3, %v32903_v61, %v32925_v7  ;;  %v17157_v18 = vsel %vm364_vm3, %v32987_v46, %v33010_v29 }
 0x8c4   :  { %28213 = vmatmul.mubr.msk.f32.vlgmr.msra.gmra.mrb[58].mxu1 %vm58_vm11, %v27774_v35  ;;  %15754 = vmatprep.mubr.f32.mxu0 %v32376_v30 }
 0x8c5   :  { %16017 = vmatpush1.msra.mxu1 %v15914_v49  ;;  %15945 = vmatprep.subr.mxu0 %v15913_v38  ;;  %v33064_v8 = vpop.permute.xlu1 %17762  ;;  %v33066_v63 = vpop.permute.xlu0 %17772  ;;  %v17154_v38 = vsel %vm364_vm3, %v32963_v25, %v32961_v24  ;;  %v17795_v25 = vsel %vm11812_vm10, %v33039_v19, %v33041_v39 }
 0x8c6   :  { %27781 = vmatmul.mubr.msk.f32.vlgmr.msra.gmra.mrb[22].mxu0 %vm58_vm11, %v27774_v35  ;;  %16158 = vmatprep.subr.mxu1 %v15919_v33  ;;  %v15916_v35 = vsel %vm9871_vm8, %v32706_v4, %v32715_v47  ;;  %v17793_v33 = vsel %vm11812_vm10, %v33008_v45, %v33025_v17 }
 0x8c7   :  { %15946 = vmatpush1.msra.mxu0 %v15912_v55  ;;  %16080 = vmatprep.mubr.f32.mxu1 %v32376_v30 }
 0x8c8   :  { %27785 = vmatmul.mubr.msk.f32.vlgmr.msra.gmra.mrb[48].mxu1 %vm58_vm11, %v27783_v44  ;;  %16087 = vmatprep.subr.mxu0 %v15917_v60  ;;  %v17792_v60 = vsel %vm11812_vm10, %v33064_v8, %v33008_v45 }
 0x8c9   :  { %16159 = vmatpush1.msra.mxu1 %v15918_v59  ;;  %16009 = vmatprep.mubr.f32.mxu0 %v32376_v30  ;;  %v33084_v1 = vpop.permute.xlu1 %17142  ;;  %v15909_v43 = vpop.permute.xlu0 %15908 }
 0x8ca   :  { %16300 = vmatprep.subr.mxu1 %v15923_v0  ;;  %27784 = vmatmul.mubr.msk.f32.vlgmr.msra.gmra.mrb[16].mxu0 %vm58_vm11, %v27783_v44  ;;  %v15925_v4 = vsel %vm9871_vm8, %v32851_v40, %v15909_v43  ;;  %v35640_v40 = vld [vmem:[#allocation21_spill] sm:$0xff] }
 0x8cb   :  { %16088 = vmatpush1.msra.mxu0 %v15916_v35  ;;  %16222 = vmatprep.mubr.f32.mxu1 %v32376_v30  ;;  %v27810_v0 = vld [vmem:[%s35379_s10 + $0x30] sm:$0xff] }
 0x8cc   :  { %16229 = vmatprep.subr.mxu0 %v15921_v11  ;;  %27787 = vmatmul.mubr.msk.f32.vlgmr.msra.gmra.mrb[50].mxu1 %vm58_vm11, %v27783_v44 }
 0x8cd   :  { %16301 = vmatpush1.msra.mxu1 %v15922_v27  ;;  %16151 = vmatprep.mubr.f32.mxu0 %v32376_v30  ;;  %v15911_v47 = vpop.permute.xlu1 %15910  ;;  %v33101_v26 = vpop.permute.xlu0 %17776 }
 0x8ce   :  { %27786 = vmatmul.mubr.msk.f32.vlgmr.msra.gmra.mrb[18].mxu0 %vm58_vm11, %v27783_v44  ;;  %16364 = vmatprep.mubr.f32.mxu1 %v33107_v14  ;;  %v15926_v30 = vsel %vm9871_vm8, %v15909_v43, %v15911_v47 }
 0x8cf   :  { %16230 = vmatpush1.msra.mxu0 %v15920_v3  ;;  %16293 = vmatprep.mubr.f32.mxu0 %v33107_v14 }
 0x8d0   :  { %16371 = vmatprep.subr.mxu0 %v15925_v4  ;;  %27789 = vmatmul.mubr.msk.f32.vlgmr.msra.gmra.mrb[52].mxu1 %vm58_vm11, %v27783_v44 }
 0x8d1   :  { %28215 = vmatprep.subr.mxu1 %v33107_v14  ;;  %28217 = vmatprep.mubr.msk.f32.mxu1 %vm28997_vm15, %v33107_v14  ;;  %v33116_v56 = vpop.permute.xlu1 %17774  ;;  %v33118_v2 = vpop.permute.xlu0 %17780 }
 0x8d2   :  { %27788 = vmatmul.mubr.msk.f32.vlgmr.msra.gmra.mrb[20].mxu0 %vm58_vm11, %v27783_v44  ;;  %28216 = vmatpush3.msra.mxu1 %v15926_v30  ;;  %v17798_v45 = vsel %vm11812_vm10, %v33116_v56, %v33101_v26 }
 0x8d3   :  { %16372 = vmatpush1.msra.mxu0 %v15924_v36  ;;  %16435 = vmatprep.mubr.f32.mxu0 %v33107_v14 }
 0x8d4   :  { %16532 = vmatprep.subr.mxu0 %v32462_v31  ;;  %28218 = vmatmul.mubr.msk.f32.vlgmr.msra.gmra.mrb[60].mxu1 %vm58_vm11, %v27783_v44 }
 0x8d5   :  { %16603 = vmatprep.subr.mxu1 %v32504_v48  ;;  %16667 = vmatprep.mubr.f32.mxu1 %v33107_v14  ;;  %v33129_v58 = vpop.permute.xlu1 %17778  ;;  %v33131_v52 = vpop.permute.xlu0 %17784 }
 0x8d6   :  { %27790 = vmatmul.mubr.msk.f32.vlgmr.msra.gmra.mrb[22].mxu0 %vm58_vm11, %v27783_v44  ;;  %16604 = vmatpush1.msra.mxu1 %v32489_v20  ;;  %v35641_v20 = vld [vmem:[#allocation22_spill] sm:$0xff]  ;;  %v17799_v59 = vsel %vm11812_vm10, %v33101_v26, %v33129_v58  ;;  %v17800_v27 = vsel %vm11812_vm10, %v33129_v58, %v33118_v2 }
 0x8d7   :  { %16533 = vmatpush1.msra.mxu0 %v32427_v5  ;;  %16745 = vmatprep.subr.mxu1 %v32560_v41  ;;  %v35642_v41 = vld [vmem:[#allocation24_spill] sm:$0xff] }
 0x8d8   :  { %16674 = vmatprep.subr.mxu0 %v32532_v37  ;;  %16596 = vmatprep.mubr.f32.mxu0 %v33107_v14 }
 0x8d9   :  { %27794 = vmatmul.mubr.msk.f32.vlgmr.msra.gmra.mrb[48].mxu1 %vm58_vm11, %v27792_v50  ;;  %v33143_v31 = vpop.permute.xlu1 %17782  ;;  %v33145_v48 = vpop.permute.xlu0 %17788 }
 0x8da   :  { %16746 = vmatpush1.msra.mxu1 %v35640_v40  ;;  %27793 = vmatmul.mubr.msk.f32.vlgmr.msra.gmra.mrb[16].mxu0 %vm58_vm11, %v27792_v50  ;;  %v17801_v35 = vsel %vm11812_vm10, %v33118_v2, %v33143_v31 }
 0x8db   :  { %16675 = vmatpush1.msra.mxu0 %v35641_v20  ;;  %16887 = vmatprep.subr.mxu1 %v32467_v62 }
 0x8dc   :  { %16816 = vmatprep.subr.mxu0 %v32586_v10  ;;  %16809 = vmatprep.mubr.f32.mxu1 %v33107_v14 }
 0x8dd   :  { %16738 = vmatprep.mubr.f32.mxu0 %v33107_v14  ;;  %27796 = vmatmul.mubr.msk.f32.vlgmr.msra.gmra.mrb[50].mxu1 %vm58_vm11, %v27792_v50  ;;  %v33155_v5 = vpop.permute.xlu1 %17786  ;;  %v33157_v37 = vpop.permute.xlu0 %18410 }
 0x8de   :  { %16888 = vmatpush1.msra.mxu1 %v32464_v28  ;;  %27795 = vmatmul.mubr.msk.f32.vlgmr.msra.gmra.mrb[18].mxu0 %vm58_vm11, %v27792_v50  ;;  %v17149_v28 = vsel %vm364_vm3, %v32877_v42, %v32903_v61  ;;  %v17156_v61 = vsel %vm364_vm3, %v32989_v53, %v32987_v46  ;;  %v17803_v43 = vsel %vm11812_vm10, %v33131_v52, %v33155_v5 }
 0x8df   :  { %16817 = vmatpush1.msra.mxu0 %v35642_v41  ;;  %16951 = vmatprep.mubr.f32.mxu1 %v33107_v14  ;;  %v17804_v30 = vsel %vm11812_vm10, %v33155_v5, %v33145_v48 }
 0x8e0   :  { %16958 = vmatprep.subr.mxu0 %v32483_v16  ;;  %28220 = vmatprep.subr.mxu1 %v33107_v14  ;;  %v35643_v16 = vld [vmem:[#allocation23_spill] sm:$0xff] }
 0x8e1   :  { %16880 = vmatprep.mubr.f32.mxu0 %v33107_v14  ;;  %27798 = vmatmul.mubr.msk.f32.vlgmr.msra.gmra.mrb[52].mxu1 %vm58_vm11, %v27792_v50  ;;  %v33167_v62 = vpop.permute.xlu1 %18412  ;;  %v33169_v10 = vpop.permute.xlu0 %18414  ;;  %v17147_v9 = vsel %vm364_vm3, %v35643_v16, %v32875_v6  ;;  %v17146_v51 = vsel %vm364_vm3, %v32905_v15, %v35643_v16 }
 0x8e2   :  { %28221 = vmatpush3.msra.mxu1 %v32719_v22  ;;  %27797 = vmatmul.mubr.msk.f32.vlgmr.msra.gmra.mrb[20].mxu0 %vm58_vm11, %v27792_v50  ;;  %v17148_v22 = vsel %vm364_vm3, %v32875_v6, %v32877_v42  ;;  %v17151_v42 = vsel %vm364_vm3, %v32925_v7, %v32950_v12  ;;  %v17152_v6 = vsel %vm364_vm3, %v32950_v12, %v32948_v21 }
 0x8e3   :  { %16959 = vmatpush1.msra.mxu0 %v32481_v13  ;;  %17249 = vmatprep.subr.mxu1 %v17149_v28  ;;  %v17155_v21 = vsel %vm364_vm3, %v32961_v24, %v32989_v53  ;;  %v17158_v24 = vsel %vm364_vm3, %v33010_v29, %v33084_v1  ;;  %v17794_v29 = vsel %vm11812_vm10, %v33025_v17, %v33039_v19 }
 0x8e4   :  { %17178 = vmatprep.subr.mxu0 %v17147_v9  ;;  %28222 = vmatprep.mubr.msk.f32.mxu1 %vm28997_vm15, %v33107_v14  ;;  %v17797_v17 = vsel %vm11812_vm10, %v33066_v63, %v33116_v56  ;;  %v18439_v56 = vsel %vm988_vm7, %v33157_v37, %v33167_v62  ;;  %v18440_v2 = vsel %vm988_vm7, %v33167_v62, %v33169_v10 }
 0x8e5   :  { %17022 = vmatprep.mubr.f32.mxu0 %v33107_v14  ;;  %28223 = vmatmul.mubr.msk.f32.vlgmr.msra.gmra.mrb[62].mxu1 %vm58_vm11, %v27792_v50  ;;  %v33187_v32 = vpop.permute.xlu1 %18416  ;;  %v33189_v13 = vpop.permute.xlu0 %18408 }
 0x8e6   :  { %17250 = vmatpush1.msra.mxu1 %v17148_v22  ;;  %27799 = vmatmul.mubr.msk.f32.vlgmr.msra.gmra.mrb[22].mxu0 %vm58_vm11, %v27792_v50  ;;  %v18441_v3 = vsel %vm988_vm7, %v33169_v10, %v33187_v32 }
 0x8e7   :  { %17179 = vmatpush1.msra.mxu0 %v17146_v51  ;;  %17391 = vmatprep.subr.mxu1 %v17153_v57 }
 0x8e8   :  { %17320 = vmatprep.subr.mxu0 %v17151_v42  ;;  %17313 = vmatprep.mubr.f32.mxu1 %v33107_v14 }
 0x8e9   :  { %17242 = vmatprep.mubr.f32.mxu0 %v33107_v14  ;;  %27803 = vmatmul.mubr.msk.f32.vlgmr.msra.gmra.mrb[48].mxu1 %vm58_vm11, %v27801_v54  ;;  %v33210_v15 = vpop.permute.xlu1 %18418  ;;  %v17145_v34 = vpop.permute.xlu0 %17144 }
 0x8ea   :  { %17392 = vmatpush1.msra.mxu1 %v17152_v6  ;;  %27802 = vmatmul.mubr.msk.f32.vlgmr.msra.gmra.mrb[16].mxu0 %vm58_vm11, %v27801_v54  ;;  %v17159_v7 = vsel %vm364_vm3, %v33084_v1, %v17145_v34  ;;  %v17796_v1 = vsel %vm11812_vm10, %v33041_v39, %v33066_v63  ;;  %v17802_v39 = vsel %vm11812_vm10, %v33143_v31, %v33131_v52  ;;  %v27819_v31 = vld [vmem:[%s35379_s10 + $0x38] sm:$0xff] }
 0x8eb   :  { %17321 = vmatpush1.msra.mxu0 %v17150_v23  ;;  %17533 = vmatprep.subr.mxu1 %v17157_v18  ;;  %v18438_v52 = vsel %vm988_vm7, %v33189_v13, %v33157_v37  ;;  %v18442_v37 = vsel %vm988_vm7, %v33187_v32, %v33210_v15 }
 0x8ec   :  { %17462 = vmatprep.subr.mxu0 %v17155_v21  ;;  %17455 = vmatprep.mubr.f32.mxu1 %v33107_v14 }
 0x8ed   :  { %17384 = vmatprep.mubr.f32.mxu0 %v33107_v14  ;;  %27805 = vmatmul.mubr.msk.f32.vlgmr.msra.gmra.mrb[50].mxu1 %vm58_vm11, %v27801_v54  ;;  %v33230_v12 = vpop.permute.xlu1 %18422  ;;  %v33232_v49 = vpop.permute.xlu0 %18420 }
 0x8ee   :  { %17534 = vmatpush1.msra.mxu1 %v17156_v61  ;;  %27804 = vmatmul.mubr.msk.f32.vlgmr.msra.gmra.mrb[18].mxu0 %vm58_vm11, %v27801_v54  ;;  %v18444_v40 = vsel %vm988_vm7, %v33232_v49, %v33230_v12 }
 0x8ef   :  { %17463 = vmatpush1.msra.mxu0 %v17154_v38  ;;  %17597 = vmatprep.mubr.f32.mxu1 %v33107_v14 }
 0x8f0   :  { %17604 = vmatprep.subr.mxu0 %v17159_v7  ;;  %28225 = vmatprep.subr.mxu1 %v33107_v14 }
 0x8f1   :  { %17526 = vmatprep.mubr.f32.mxu0 %v33107_v14  ;;  %27807 = vmatmul.mubr.msk.f32.vlgmr.msra.gmra.mrb[52].mxu1 %vm58_vm11, %v27801_v54  ;;  %v33242_v46 = vpop.permute.xlu1 %18426  ;;  %v33244_v53 = vpop.permute.xlu0 %18424 }
 0x8f2   :  { %28226 = vmatpush3.msra.mxu1 %v17145_v34  ;;  %27806 = vmatmul.mubr.msk.f32.vlgmr.msra.gmra.mrb[20].mxu0 %vm58_vm11, %v27801_v54  ;;  %v18445_v50 = vsel %vm988_vm7, %v33230_v12, %v33244_v53  ;;  %v18446_v9 = vsel %vm988_vm7, %v33244_v53, %v33242_v46  ;;  %v27828_v34 = vld [vmem:[%s35379_s10 + $0x40] sm:$0xff]  ;;  %s29004_s10 = smov 120  }
 0x8f3   :  { %17605 = vmatpush1.msra.mxu0 %v17158_v24  ;;  %17895 = vmatprep.subr.mxu1 %v17795_v25 }
 0x8f4   :  { %17824 = vmatprep.subr.mxu0 %v17793_v33  ;;  %28227 = vmatprep.mubr.msk.f32.mxu1 %vm28997_vm15, %v33107_v14 }
 0x8f5   :  { %17668 = vmatprep.mubr.f32.mxu0 %v33107_v14  ;;  %28228 = vmatmul.mubr.msk.f32.vlgmr.msra.gmra.mrb[64].mxu1 %vm58_vm11, %v27801_v54  ;;  %v33263_v44 = vpop.permute.xlu1 %18430  ;;  %v33265_v55 = vpop.permute.xlu0 %18428 }
 0x8f6   :  { %17896 = vmatpush1.msra.mxu1 %v17794_v29  ;;  %27808 = vmatmul.mubr.msk.f32.vlgmr.msra.gmra.mrb[22].mxu0 %vm58_vm11, %v27801_v54  ;;  %v18447_v62 = vsel %vm988_vm7, %v33242_v46, %v33265_v55  ;;  %v18448_v10 = vsel %vm988_vm7, %v33265_v55, %v33263_v44 }
 0x8f7   :  { %17825 = vmatpush1.msra.mxu0 %v17792_v60  ;;  %18037 = vmatprep.subr.mxu1 %v17799_v59 }
 0x8f8   :  { %17966 = vmatprep.subr.mxu0 %v17797_v17  ;;  %17959 = vmatprep.mubr.f32.mxu1 %v33107_v14 }
 0x8f9   :  { %17888 = vmatprep.mubr.f32.mxu0 %v33107_v14  ;;  %27812 = vmatmul.mubr.msk.f32.vlgmr.msra.gmra.mrb[48].mxu1 %vm58_vm11, %v27810_v0  ;;  %v33286_v19 = vpop.permute.xlu1 %18434  ;;  %v33288_v8 = vpop.permute.xlu0 %18432 }
 0x8fa   :  { %18038 = vmatpush1.msra.mxu1 %v17798_v45  ;;  %27811 = vmatmul.mubr.msk.f32.vlgmr.msra.gmra.mrb[16].mxu0 %vm58_vm11, %v27810_v0  ;;  %v18449_v41 = vsel %vm988_vm7, %v33263_v44, %v33288_v8  ;;  %v18450_v13 = vsel %vm988_vm7, %v33288_v8, %v33286_v19 }
 0x8fb   :  { %17967 = vmatpush1.msra.mxu0 %v17796_v1  ;;  %18179 = vmatprep.subr.mxu1 %v17803_v43 }
 0x8fc   :  { %18108 = vmatprep.subr.mxu0 %v17801_v35  ;;  %18101 = vmatprep.mubr.f32.mxu1 %v33107_v14 }
 0x8fd   :  { %18030 = vmatprep.mubr.f32.mxu0 %v33107_v14  ;;  %27814 = vmatmul.mubr.msk.f32.vlgmr.msra.gmra.mrb[50].mxu1 %vm58_vm11, %v27810_v0  ;;  %v17791_v63 = vpop.permute.xlu1 %17790  ;;  %v33306_v11 = vpop.permute.xlu0 %19058 }
 0x8fe   :  { %18180 = vmatpush1.msra.mxu1 %v17802_v39  ;;  %27813 = vmatmul.mubr.msk.f32.vlgmr.msra.gmra.mrb[18].mxu0 %vm58_vm11, %v27810_v0  ;;  %v17805_v4 = vsel %vm11812_vm10, %v33145_v48, %v17791_v63  ;;  %v18443_v48 = vsel %vm988_vm7, %v33210_v15, %v33232_v49 }
 0x8ff   :  { %18109 = vmatpush1.msra.mxu0 %v17800_v27  ;;  %18243 = vmatprep.mubr.f32.mxu1 %v33107_v14 }
 0x900   :  { %18172 = vmatprep.mubr.f32.mxu0 %v33107_v14  ;;  %28230 = vmatprep.subr.mxu1 %v33107_v14 }
 0x901   :  { %27816 = vmatmul.mubr.msk.f32.vlgmr.msra.gmra.mrb[52].mxu1 %vm58_vm11, %v27810_v0  ;;  %18250 = vmatprep.subr.mxu0 %v17805_v4  ;;  %v33318_v47 = vpop.permute.xlu1 %19056  ;;  %v33320_v26 = vpop.permute.xlu0 %19062 }
 0x902   :  { %27815 = vmatmul.mubr.msk.f32.vlgmr.msra.gmra.mrb[20].mxu0 %vm58_vm11, %v27810_v0  ;;  %28231 = vmatpush3.msra.mxu1 %v17791_v63  ;;  %v19085_v57 = vsel %vm1212_vm9, %v33318_v47, %v33306_v11 }
 0x903   :  { %28232 = vmatprep.mubr.msk.f32.mxu1 %vm28997_vm15, %v33107_v14  ;;  %18541 = vmatprep.subr.mxu1 %v18441_v3 }
 0x904   :  { %18251 = vmatpush1.msra.mxu0 %v17804_v30  ;;  %18314 = vmatprep.mubr.f32.mxu0 %v33107_v14 }
 0x905   :  { %28233 = vmatmul.mubr.msk.f32.vlgmr.msra.gmra.mrb[66].mxu1 %vm58_vm11, %v27810_v0  ;;  %18470 = vmatprep.subr.mxu0 %v18439_v56  ;;  %v19061_v36 = vpop.permute.xlu1 %19060  ;;  %v33339_v58 = vpop.permute.xlu0 %19064 }
 0x906   :  { %18542 = vmatpush1.msra.mxu1 %v18440_v2  ;;  %27817 = vmatmul.mubr.msk.f32.vlgmr.msra.gmra.mrb[22].mxu0 %vm58_vm11, %v27810_v0  ;;  %v19087_v51 = vsel %vm1212_vm9, %v19061_v36, %v33320_v26  ;;  %v19086_v42 = vsel %vm1212_vm9, %v33306_v11, %v19061_v36  ;;  %v19088_v7 = vsel %vm1212_vm9, %v33320_v26, %v33339_v58 }
 0x907   :  { %18683 = vmatprep.subr.mxu1 %v18445_v50  ;;  %18471 = vmatpush1.msra.mxu0 %v18438_v52 }
 0x908   :  { %18605 = vmatprep.mubr.f32.mxu1 %v33107_v14  ;;  %18612 = vmatprep.subr.mxu0 %v18443_v48 }
 0x909   :  { %18534 = vmatprep.mubr.f32.mxu0 %v33107_v14  ;;  %27821 = vmatmul.mubr.msk.f32.vlgmr.msra.gmra.mrb[48].mxu1 %vm58_vm11, %v27819_v31  ;;  %v19055_v20 = vpop.permute.xlu1 %19054  ;;  %v18437_v5 = vpop.permute.xlu0 %18436 }
 0x90a   :  { %18684 = vmatpush1.msra.mxu1 %v18444_v40  ;;  %27820 = vmatmul.mubr.msk.f32.vlgmr.msra.gmra.mrb[16].mxu0 %vm58_vm11, %v27819_v31  ;;  %v18451_v28 = vsel %vm988_vm7, %v33286_v19, %v18437_v5  ;;  %v19084_v15 = vsel %vm1212_vm9, %v19055_v20, %v33318_v47 }
 0x90b   :  { %18613 = vmatpush1.msra.mxu0 %v18442_v37  ;;  %18825 = vmatprep.subr.mxu1 %v18449_v41 }
 0x90c   :  { %18754 = vmatprep.subr.mxu0 %v18447_v62  ;;  %18747 = vmatprep.mubr.f32.mxu1 %v33107_v14 }
 0x90d   :  { %18676 = vmatprep.mubr.f32.mxu0 %v33107_v14  ;;  %27823 = vmatmul.mubr.msk.f32.vlgmr.msra.gmra.mrb[50].mxu1 %vm58_vm11, %v27819_v31  ;;  %v19067_v16 = vpop.permute.xlu1 %19066  ;;  %v19069_v22 = vpop.permute.xlu0 %19068 }
 0x90e   :  { %18826 = vmatpush1.msra.mxu1 %v18448_v10  ;;  %27822 = vmatmul.mubr.msk.f32.vlgmr.msra.gmra.mrb[18].mxu0 %vm58_vm11, %v27819_v31  ;;  %v19089_v23 = vsel %vm1212_vm9, %v33339_v58, %v19067_v16  ;;  %v19090_v21 = vsel %vm1212_vm9, %v19067_v16, %v19069_v22 }
 0x90f   :  { %18755 = vmatpush1.msra.mxu0 %v18446_v9  ;;  %18889 = vmatprep.mubr.f32.mxu1 %v33107_v14 }
 0x910   :  { %18896 = vmatprep.subr.mxu0 %v18451_v28  ;;  %28235 = vmatprep.subr.mxu1 %v33107_v14 }
 0x911   :  { %18818 = vmatprep.mubr.f32.mxu0 %v33107_v14  ;;  %27825 = vmatmul.mubr.msk.f32.vlgmr.msra.gmra.mrb[52].mxu1 %vm58_vm11, %v27819_v31  ;;  %v19071_v32 = vpop.permute.xlu1 %19070  ;;  %v19073_v54 = vpop.permute.xlu0 %19072 }
 0x912   :  { %28236 = vmatpush3.msra.mxu1 %v18437_v5  ;;  %27824 = vmatmul.mubr.msk.f32.vlgmr.msra.gmra.mrb[20].mxu0 %vm58_vm11, %v27819_v31  ;;  %v19091_v6 = vsel %vm1212_vm9, %v19069_v22, %v19071_v32  ;;  %v19092_v46 = vsel %vm1212_vm9, %v19071_v32, %v19073_v54 }
 0x913   :  { %18897 = vmatpush1.msra.mxu0 %v18450_v13  ;;  %19187 = vmatprep.subr.mxu1 %v19087_v51 }
 0x914   :  { %19116 = vmatprep.subr.mxu0 %v19085_v57  ;;  %28237 = vmatprep.mubr.msk.f32.mxu1 %vm28997_vm15, %v33107_v14 }
 0x915   :  { %18960 = vmatprep.mubr.f32.mxu0 %v33107_v14  ;;  %28238 = vmatmul.mubr.msk.f32.vlgmr.msra.gmra.mrb[68].mxu1 %vm58_vm11, %v27819_v31 }
 0x916   :  { %19188 = vmatpush1.msra.mxu1 %v19086_v42  ;;  %27826 = vmatmul.mubr.msk.f32.vlgmr.msra.gmra.mrb[22].mxu0 %vm58_vm11, %v27819_v31 }
 0x917   :  { %19117 = vmatpush1.msra.mxu0 %v19084_v15  ;;  %19251 = vmatprep.mubr.f32.mxu1 %v33107_v14  ;;  %v19075_v18 = vpop.permute.xlu1 %19074  ;;  %v19077_v12 = vpop.permute.xlu0 %19076 }
 0x918   :  { %19258 = vmatprep.subr.mxu0 %v19089_v23  ;;  %19329 = vmatprep.subr.mxu1 %v19091_v6  ;;  %v19093_v61 = vsel %vm1212_vm9, %v19073_v54, %v19075_v18  ;;  %v19094_v53 = vsel %vm1212_vm9, %v19075_v18, %v19077_v12 }
 0x919   :  { %19180 = vmatprep.mubr.f32.mxu0 %v33107_v14  ;;  %27830 = vmatmul.mubr.msk.f32.vlgmr.msra.gmra.mrb[48].mxu1 %vm58_vm11, %v27828_v34 }
 0x91a   :  { %19330 = vmatpush1.msra.mxu1 %v19090_v21  ;;  %27829 = vmatmul.mubr.msk.f32.vlgmr.msra.gmra.mrb[16].mxu0 %vm58_vm11, %v27828_v34 }
 0x91b   :  { %19259 = vmatpush1.msra.mxu0 %v19088_v7  ;;  %19393 = vmatprep.mubr.f32.mxu1 %v33107_v14 }
 0x91c   :  { %19400 = vmatprep.subr.mxu0 %v19093_v61  ;;  %19322 = vmatprep.mubr.f32.mxu0 %v33107_v14  ;;  %v19079_v49 = vpop.permute.xlu1 %19078 }
 0x91d   :  { %27832 = vmatmul.mubr.msk.f32.vlgmr.msra.gmra.mrb[50].mxu1 %vm58_vm11, %v27828_v34  ;;  %v19095_v38 = vsel %vm1212_vm9, %v19077_v12, %v19079_v49  ;;  %v19081_v24 = vpop.permute.xlu0 %19080 }
 0x91e   :  { %27831 = vmatmul.mubr.msk.f32.vlgmr.msra.gmra.mrb[18].mxu0 %vm58_vm11, %v27828_v34  ;;  %19471 = vmatprep.subr.mxu1 %v19095_v38  ;;  %v19096_v29 = vsel %vm1212_vm9, %v19079_v49, %v19081_v24 }
 0x91f   :  { %19401 = vmatpush1.msra.mxu0 %v19092_v46  ;;  %19464 = vmatprep.mubr.f32.mxu0 %v33107_v14 }
 0x920   :  { %19472 = vmatpush1.msra.mxu1 %v19094_v53  ;;  %19535 = vmatprep.mubr.f32.mxu1 %v33107_v14 }
 0x921   :  { %v19083_v25 = vpop.permute.xlu1 %19082  ;;  %27834 = vmatmul.mubr.msk.f32.vlgmr.msra.gmra.mrb[52].mxu1 %vm58_vm11, %v27828_v34  ;;  %28240 = vmatprep.subr.mxu1 %v33107_v14 }
 0x922   :  { %27833 = vmatmul.mubr.msk.f32.vlgmr.msra.gmra.mrb[20].mxu0 %vm58_vm11, %v27828_v34  ;;  %28241 = vmatpush3.msra.mxu1 %v19083_v25  ;;  %v19097_v33 = vsel %vm1212_vm9, %v19081_v24, %v19083_v25  ;;  %vm21479_vm9 = vcmask 949248  }
 0x923   :  { %19542 = vmatprep.subr.mxu0 %v19097_v33  ;;  %19606 = vmatprep.mubr.f32.mxu0 %v33107_v14 }
 0x924   :  { %19543 = vmatpush1.msra.mxu0 %v19096_v29  ;;  %28242 = vmatprep.mubr.msk.f32.mxu1 %vm28997_vm15, %v33107_v14  ;;  %vm27128_vm15 = vcmask 80896  }
 0x925   :  { %28243 = vmatmul.mubr.msk.f32.vlgmr.msra.gmra.mrb[70].mxu1 %vm58_vm11, %v27828_v34 }
 0x926   :  { %27835 = vmatmul.mubr.msk.f32.vlgmr.msra.gmra.mrb[22].mxu0 %vm58_vm11, %v27828_v34  ;;  %20216 = vmatprep.mubr.f32.mxu1 %v33107_v14 }
 0x927   :  { %20524 = vmatprep.mubr.f32.mxu0 %v33107_v14 }
 0x92e   :  { %v19702_v36 = vpop.permute.xlu0 %19701 }
 0x973   :  { %v14567_v44 = vpop.f32.mrb[54].mxu1 }
 0x974   :  { %v28204_v55 = vpop.f32.mrb[55].mxu1 }
 0x987   :  { %v15196_v60 = vpop.f32.mrb[56].mxu1 }
 0x988   :  { %v15197_v59 = vadd.f32 %v15196_v60, %v14567_v44  ;;  %v28209_v0 = vpop.f32.mrb[57].mxu1 }
 0x997   :  { %v15827_v17 = vpop.f32.mrb[58].mxu1 }
 0x998   :  { %v15845_v45 = vadd.f32 %v15827_v17, %v15197_v59  ;;  %v28214_v19 = vpop.f32.mrb[59].mxu1 }
 0x9a7   :  { %v16508_v8 = vpop.f32.mrb[60].mxu1 }
 0x9a8   :  { %v16526_v1 = vadd.f32 %v16508_v8, %v15845_v45  ;;  %v28219_v43 = vpop.f32.mrb[61].mxu1 }
 0x9b8   :  { %v17095_v35 = vpop.f32.mrb[62].mxu1 }
 0x9b9   :  { %v17113_v39 = vadd.f32 %v17095_v35, %v16526_v1  ;;  %v28224_v63 = vpop.f32.mrb[63].mxu1 }
 0x9c8   :  { %v17741_v11 = vpop.f32.mrb[64].mxu1 }
 0x9c9   :  { %v17759_v27 = vadd.f32 %v17741_v11, %v17113_v39  ;;  %v28229_v4 = vpop.f32.mrb[65].mxu1 }
 0x9d8   :  { %v18387_v47 = vpop.f32.mrb[66].mxu1 }
 0x9d9   :  { %v18405_v26 = vadd.f32 %v18387_v47, %v17759_v27  ;;  %v28234_v3 = vpop.f32.mrb[67].mxu1 }
 0x9e8   :  { %v19033_v30 = vpop.f32.mrb[68].mxu1 }
 0x9e9   :  { %v19051_v56 = vadd.f32 %v19033_v30, %v18405_v26  ;;  %v28239_v2 = vpop.f32.mrb[69].mxu1 }
 0x9ec   :  { %v19253_v58 = vpop.f32.mrb[48].mxu1 }
 0x9ed   :  { %v19182_v52 = vpop.f32.mrb[16].mxu0  ;;  %v19255_v50 = vpop.f32.mrb[49].mxu1  ;;  %v33444_v20 = vadd.f32 %v19702_v36, %v19253_v58 }
 0x9ee   :  { %v33440_v31 = vadd.f32 %v19702_v36, %v19182_v52  ;;  %v19184_v48 = vpop.f32.mrb[17].mxu0  ;;  %v33471_v24 = vadd.f32 %v19702_v36, %v19255_v50 }
 0x9ef   :  { %v33442_v40 = vadd.f32 %v19702_v36, %v19184_v48  ;;  %v19721_v16 = vmax.f32 %v33444_v20, 0.0 }
 0x9f0   :  { %v19719_v5 = vmax.f32 %v33440_v31, 0.0  ;;  %v19395_v37 = vpop.f32.mrb[50].mxu1  ;;  %v19722_v29 = vmax.f32 %v33471_v24, 0.0 }
 0x9f1   :  { %v19720_v41 = vmax.f32 %v33442_v40, 0.0  ;;  %v19324_v62 = vpop.f32.mrb[18].mxu0  ;;  %v19397_v10 = vpop.f32.mrb[51].mxu1  ;;  %v33489_v45 = vadd.f32 %v19702_v36, %v19395_v37 }
 0x9f2   :  { %v19326_v28 = vpop.f32.mrb[19].mxu0  ;;  %19779 = vrot.lane.b32.xlu0 %v19719_v5, %s28986_s5  ;;  %v19711_v54 = vadd.f32 %v19702_v36, %v19397_v10  ;;  %v33483_v59 = vadd.f32 %v19702_v36, %v19324_v62 }
 0x9f3   :  { %19781 = vrot.lane.b32.xlu1 %v19720_v41, %s28986_s5  ;;  %v33479_v55 = vadd.f32 %v19702_v36, %v19326_v28  ;;  %v19725_v8 = vmax.f32 %v33489_v45, 0.0 }
 0x9f4   :  { %v19537_v9 = vpop.f32.mrb[52].mxu1  ;;  %v19726_v12 = vmax.f32 %v19711_v54, 0.0  ;;  %v19723_v19 = vmax.f32 %v33483_v59, 0.0 }
 0x9f5   :  { %v19466_v22 = vpop.f32.mrb[20].mxu0  ;;  %v19539_v32 = vpop.f32.mrb[53].mxu1  ;;  %v33463_v49 = vadd.f32 %v19702_v36, %v19537_v9  ;;  %v19724_v17 = vmax.f32 %v33479_v55, 0.0 }
 0x9f6   :  { %v33451_v13 = vadd.f32 %v19702_v36, %v19466_v22  ;;  %v19468_v51 = vpop.f32.mrb[21].mxu0  ;;  %19783 = vrot.lane.b32.xlu0 %v19721_v16, %s28986_s5  ;;  %v33457_v34 = vadd.f32 %v19702_v36, %v19539_v32 }
 0x9f7   :  { %v19713_v57 = vadd.f32 %v19702_v36, %v19468_v51  ;;  %v19729_v25 = vmax.f32 %v33463_v49, 0.0  ;;  %v35644_v49 = vld [vmem:[#allocation8_spill] sm:$0xff] }
 0x9f8   :  { %v19727_v42 = vmax.f32 %v33451_v13, 0.0  ;;  %v19679_v6 = vpop.f32.mrb[70].mxu1  ;;  %v19730_v38 = vmax.f32 %v33457_v34, 0.0 }
 0x9f9   :  { %v19728_v15 = vmax.f32 %v19713_v57, 0.0  ;;  %v19608_v23 = vpop.f32.mrb[22].mxu0  ;;  %v19697_v18 = vadd.f32 %v19679_v6, %v19051_v56  ;;  %v28244_v21 = vpop.f32.mrb[71].mxu1 }
 0x9fa   :  { %v19610_v61 = vpop.f32.mrb[23].mxu0  ;;  %19795 = vrot.lane.b32.xlu1 %v19727_v42, %s28986_s5  ;;  %v19716_v46 = vadd.f32 %v19702_v36, %v19608_v23 }
 0x9fb   :  { %v19718_v7 = vadd.f32 %v19702_v36, %v19697_v18  ;;  %19797 = vrot.lane.b32.xlu0 %v19728_v15, %s28986_s5  ;;  %v33477_v44 = vadd.f32 %v19702_v36, %v19610_v61 }
 0x9fc   :  { %v19731_v33 = vmax.f32 %v19716_v46, 0.0 }
 0x9fd   :  { %v19733_v53 = vmax.f32 %v19718_v7, 0.0  ;;  %v19732_v0 = vmax.f32 %v33477_v44, 0.0  ;;  %v33577_v7 = vld [vmem:[%s35372_s3] sm:$0xff] }
 0x9fe   :  { %19793 = vrot.lane.b32.xlu1 %v19726_v12, %s28986_s5  ;;  %v35645_v44 = vld [vmem:[#allocation7_spill] sm:$0xff] }
 0x9ff   :  { %19748 = vst.msk [vmem:[#allocation3 + $0x78] sm:$0xff] %vm58_vm11, %v19733_v53  ;;  %19801 = vrot.lane.b32.xlu0 %v19730_v38, %s28986_s5  ;;  %v19953_v55 = vrot.slane %v33577_v7, %v35645_v44 }
 0xa02   :  { %19799 = vrot.lane.b32.xlu1 %v19729_v25, %s28986_s5 }
 0xa03   :  { %19803 = vrot.lane.b32.xlu0 %v19731_v33, %s28986_s5 }
 0xa06   :  { %19785 = vrot.lane.b32.xlu1 %v19722_v29, %s28986_s5  ;;  %v19763_v60 = vld [vmem:[#allocation3 + $0x78] sm:$0xff] }
 0xa07   :  { %19807 = vrot.lane.b32.xlu0 %v19763_v60, %s28986_s5 }
 0xa0a   :  { %19805 = vrot.lane.b32.xlu1 %v19732_v0, %s28986_s5 }
 0xa0b   :  { %19789 = vrot.lane.b32.xlu0 %v19724_v17, %s28986_s5 }
 0xa0e   :  { %19787 = vrot.lane.b32.xlu1 %v19723_v19, %s28986_s5 }
 0xa12   :  { %19791 = vrot.lane.b32.xlu1 %v19725_v8, %s28986_s5 }
 0xa64   :  { %v19780_v1 = vpop.permute.xlu0 %19779 }
 0xa65   :  { %v19782_v43 = vpop.permute.xlu1 %19781 }
 0xa66   :  { %v19809_v35 = vsel %vm364_vm3, %v19780_v1, %v19782_v43 }
 0xa67   :  { %v33496_v39 = vmax.f32 %v19719_v5, %v19809_v35 }
 0xa68   :  { %v19784_v63 = vpop.permute.xlu0 %19783 }
 0xa69   :  { %v19810_v11 = vsel %vm364_vm3, %v19782_v43, %v19784_v63  ;;  %19868 = vrot.lane.b32.xlu0 %v33496_v39, %s28990_s19  ;;  %v33600_v43 = vld [vmem:[%s35372_s3 + $0x8] sm:$0x7f]  ;;  %s29005_s3 = smov 124  }
 0xa6a   :  { %v33501_v27 = vmax.f32 %v19720_v41, %v19810_v11  ;;  %v35647_v11 = vld [vmem:[#allocation14_spill] sm:$0xff] }
 0xa6c   :  { %v19796_v4 = vpop.permute.xlu1 %19795  ;;  %19870 = vrot.lane.b32.xlu1 %v33501_v27, %s28990_s19 }
 0xa6d   :  { %v19798_v47 = vpop.permute.xlu0 %19797 }
 0xa6e   :  { %v19817_v40 = vsel %vm364_vm3, %v19796_v4, %v19798_v47 }
 0xa6f   :  { %v33526_v41 = vmax.f32 %v19727_v42, %v19817_v40 }
 0xa70   :  { %v19794_v26 = vpop.permute.xlu1 %19793 }
 0xa71   :  { %v19816_v3 = vsel %vm364_vm3, %v19794_v26, %v19796_v4  ;;  %v19802_v56 = vpop.permute.xlu0 %19801  ;;  %v19981_v4 = vrot.slane %v33600_v43, %v35644_v49 }
 0xa72   :  { %v33506_v30 = vmax.f32 %v19726_v12, %v19816_v3 }
 0xa74   :  { %v19800_v2 = vpop.permute.xlu1 %19799  ;;  %19882 = vrot.lane.b32.xlu1 %v33506_v30, %s28990_s19 }
 0xa75   :  { %v19818_v36 = vsel %vm364_vm3, %v19798_v47, %v19800_v2  ;;  %v19804_v50 = vpop.permute.xlu0 %19803  ;;  %v19819_v10 = vsel %vm364_vm3, %v19800_v2, %v19802_v56 }
 0xa76   :  { %v33511_v58 = vmax.f32 %v19728_v15, %v19818_v36  ;;  %v19820_v22 = vsel %vm364_vm3, %v19802_v56, %v19804_v50  ;;  %v19985_v56 = vrot.slane %v33600_v43, %v35645_v44 }
 0xa77   :  { %v33544_v51 = vmax.f32 %v19730_v38, %v19820_v22  ;;  %v19949_v38 = vrot.slane %v33577_v7, %v35644_v49 }
 0xa78   :  { %v19786_v52 = vpop.permute.xlu1 %19785  ;;  %19886 = vrot.lane.b32.xlu1 %v33511_v58, %s28990_s19 }
 0xa79   :  { %v19811_v31 = vsel %vm364_vm3, %v19784_v63, %v19786_v52  ;;  %v19808_v28 = vpop.permute.xlu0 %19807 }
 0xa7a   :  { %v33518_v48 = vmax.f32 %v19721_v16, %v19811_v31  ;;  %v33535_v16 = vmax.f32 %v19729_v25, %v19819_v10  ;;  %v19852_v9 = vmax.f32 %v19763_v60, %v19808_v28  ;;  %v35649_v10 = vld [vmem:[#allocation9_spill] sm:$0xff] }
 0xa7c   :  { %v19806_v5 = vpop.permute.xlu1 %19805  ;;  %19872 = vrot.lane.b32.xlu0 %v33518_v48, %s28990_s19 }
 0xa7d   :  { %v19821_v37 = vsel %vm364_vm3, %v19804_v50, %v19806_v5  ;;  %v19790_v57 = vpop.permute.xlu0 %19789  ;;  %v19822_v42 = vsel %vm364_vm3, %v19806_v5, %v19808_v28  ;;  %v35648_v5 = vld [vmem:[#allocation10_spill] sm:$0xff]  ;;  %v19993_v28 = vrot.slane %v33600_v43, %v35649_v10 }
 0xa7e   :  { %v33528_v62 = vmax.f32 %v19731_v33, %v19821_v37  ;;  %v33554_v15 = vmax.f32 %v19732_v0, %v19822_v42  ;;  %v19957_v37 = vrot.slane %v33577_v7, %v35648_v5  ;;  %v35650_v42 = vld [vmem:[#allocation12_spill] sm:$0xff] }
 0xa80   :  { %v19788_v20 = vpop.permute.xlu1 %19787  ;;  %19884 = vrot.lane.b32.xlu0 %v33526_v41, %s28990_s19  ;;  %19892 = vrot.lane.b32.xlu1 %v33528_v62, %s28990_s19 }
 0xa81   :  { %v19812_v32 = vsel %vm364_vm3, %v19786_v52, %v19788_v20  ;;  %v19813_v34 = vsel %vm364_vm3, %v19788_v20, %v19790_v57 }
 0xa82   :  { %v33546_v54 = vmax.f32 %v19722_v29, %v19812_v32  ;;  %v33563_v18 = vmax.f32 %v19723_v19, %v19813_v34  ;;  %v35646_v19 = vld [vmem:[#allocation13_spill] sm:$0xff]  ;;  %v35651_v34 = vld [vmem:[#allocation11_spill] sm:$0xff] }
 0xa84   :  { %v19792_v13 = vpop.permute.xlu1 %19791  ;;  %19888 = vrot.lane.b32.xlu0 %v33535_v16, %s28990_s19  ;;  %19896 = vrot.lane.b32.xlu1 %v19852_v9, %s28990_s19 }
 0xa85   :  { %v19814_v6 = vsel %vm364_vm3, %v19790_v57, %v19792_v13  ;;  %v19815_v21 = vsel %vm364_vm3, %v19792_v13, %v19794_v26  ;;  %vm20116_vm3 = vcmask 982016  }
 0xa86   :  { %v33556_v23 = vmax.f32 %v19724_v17, %v19814_v6  ;;  %v33568_v61 = vmax.f32 %v19725_v8, %v19815_v21  ;;  %v19977_v8 = vrot.slane %v33577_v7, %v35646_v19  ;;  %v19997_v6 = vrot.slane %v33600_v43, %v35650_v42 }
 0xa87   :  { %v20001_v21 = vrot.slane %v33600_v43, %v35651_v34  ;;  %v19969_v19 = vrot.slane %v33577_v7, %v35651_v34 }
 0xa88   :  { %19890 = vrot.lane.b32.xlu0 %v33544_v51, %s28990_s19  ;;  %19874 = vrot.lane.b32.xlu1 %v33546_v54, %s28990_s19 }
 0xa8c   :  { %19894 = vrot.lane.b32.xlu0 %v33554_v15, %s28990_s19  ;;  %19878 = vrot.lane.b32.xlu1 %v33556_v23, %s28990_s19 }
 0xa90   :  { %19876 = vrot.lane.b32.xlu0 %v33563_v18, %s28990_s19 }
 0xa94   :  { %19880 = vrot.lane.b32.xlu0 %v33568_v61, %s28990_s19 }
 0xa98   :  { %20086 = vrot.lane.b32.xlu0 %v33107_v14, %s29004_s10 }
 0xadb   :  { %v19869_v12 = vpop.permute.xlu0 %19868 }
 0xade   :  { %v19871_v46 = vpop.permute.xlu1 %19870 }
 0xadf   :  { %v19898_v53 = vsel %vm988_vm7, %v19869_v12, %v19871_v46 }
 0xae0   :  { %v19927_v24 = vmax.f32 %v33496_v39, %v19898_v53 }
 0xae2   :  { %v33583_v25 = vmul.f32 %v19949_v38, %v19927_v24  ;;  %v19961_v24 = vrot.slane %v33577_v7, %v35649_v10 }
 0xae4   :  { %20088 = vrot.lane.b32.xlu0 %v33583_v25, %s29004_s10 }
 0xae6   :  { %v33587_v33 = vpop.permute.xlu1 %19882 }
 0xaea   :  { %v19887_v29 = vpop.permute.xlu1 %19886 }
 0xaee   :  { %v19873_v60 = vpop.permute.xlu0 %19872 }
 0xaef   :  { %v19899_v59 = vsel %vm988_vm7, %v19871_v46, %v19873_v60 }
 0xaf0   :  { %v19928_v0 = vmax.f32 %v33501_v27, %v19899_v59  ;;  %v20005_v27 = vrot.slane %v33600_v43, %v35647_v11 }
 0xaf2   :  { %v33593_v17 = vmul.f32 %v19953_v55, %v19928_v0  ;;  %v19893_v45 = vpop.permute.xlu1 %19892  ;;  %v19885_v1 = vpop.permute.xlu0 %19884 }
 0xaf3   :  { %v19905_v35 = vsel %vm988_vm7, %v33587_v33, %v19885_v1  ;;  %v19906_v39 = vsel %vm988_vm7, %v19885_v1, %v19887_v29 }
 0xaf4   :  { %v19934_v63 = vmax.f32 %v33506_v30, %v19905_v35  ;;  %20090 = vrot.lane.b32.xlu1 %v33593_v17, %s29004_s10  ;;  %v19935_v47 = vmax.f32 %v33526_v41, %v19906_v39 }
 0xaf6   :  { %v33613_v26 = vmul.f32 %v19977_v8, %v19934_v63  ;;  %v19897_v3 = vpop.permute.xlu1 %19896  ;;  %v33617_v2 = vpop.permute.xlu0 %19888  ;;  %v33624_v31 = vmul.f32 %v19981_v4, %v19935_v47  ;;  %v33788_v47 = vld [vmem:[%s35381_s12 + $0x10] sm:$0xff] }
 0xaf7   :  { %v19941_v30 = vmax.f32 %v19852_v9, %v19897_v3  ;;  %v19907_v36 = vsel %vm988_vm7, %v19887_v29, %v33617_v2 }
 0xaf8   :  { %v19936_v52 = vmax.f32 %v33511_v58, %v19907_v36  ;;  %20102 = vrot.lane.b32.xlu1 %v33613_v26, %s29004_s10 }
 0xaf9   :  { %v20035_v50 = vmul.f32 %v20005_v27, %v19941_v30  ;;  %v33804_v30 = vld [vmem:[%s35381_s12 + $0x18] sm:$0x3] }
 0xafa   :  { %v33626_v40 = vmul.f32 %v19985_v56, %v19936_v52  ;;  %v19875_v41 = vpop.permute.xlu1 %19874  ;;  %v19891_v20 = vpop.permute.xlu0 %19890 }
 0xafb   :  { %20050 = vst.msk [vmem:[#allocation2 + $0x78] sm:$0xff] %vm58_vm11, %v20035_v50  ;;  %v19900_v58 = vsel %vm988_vm7, %v19873_v60, %v19875_v41  ;;  %v19909_v9 = vsel %vm988_vm7, %v19891_v20, %v19893_v45 }
 0xafc   :  { %v19929_v22 = vmax.f32 %v33518_v48, %v19900_v58  ;;  %v19938_v32 = vmax.f32 %v33544_v51, %v19909_v9  ;;  %20104 = vrot.lane.b32.xlu1 %v33624_v31, %s29004_s10  ;;  %20106 = vrot.lane.b32.xlu0 %v33626_v40, %s29004_s10 }
 0xafe   :  { %v33641_v13 = vmul.f32 %v19957_v37, %v19929_v22  ;;  %v33643_v57 = vmul.f32 %v19993_v28, %v19938_v32  ;;  %v19895_v12 = vpop.permute.xlu0 %19894 }
 0xaff   :  { %v19910_v48 = vsel %vm988_vm7, %v19893_v45, %v19895_v12  ;;  %v19911_v51 = vsel %vm988_vm7, %v19895_v12, %v19897_v3 }
 0xb00   :  { %v19939_v49 = vmax.f32 %v33528_v62, %v19910_v48  ;;  %v19940_v38 = vmax.f32 %v33554_v15, %v19911_v51  ;;  %20092 = vrot.lane.b32.xlu0 %v33641_v13, %s29004_s10  ;;  %20110 = vrot.lane.b32.xlu1 %v33643_v57, %s29004_s10  ;;  %v19879_v15 = vpop.permute.xlu1 %19878  ;;  %v33867_v48 = vld [vmem:[%s35381_s12] sm:$0xff] }
 0xb02   :  { %v33657_v46 = vmul.f32 %v19997_v6, %v19939_v49  ;;  %v33659_v53 = vmul.f32 %v20001_v21, %v19940_v38  ;;  %v19877_v29 = vpop.permute.xlu0 %19876 }
 0xb03   :  { %v19901_v44 = vsel %vm988_vm7, %v19875_v41, %v19877_v29  ;;  %v19902_v59 = vsel %vm988_vm7, %v19877_v29, %v19879_v15  ;;  %v33884_v29 = vld [vmem:[%s35381_s12 + $0x8] sm:$0x3] }
 0xb04   :  { %v19930_v62 = vmax.f32 %v33546_v54, %v19901_v44  ;;  %20114 = vrot.lane.b32.xlu0 %v33659_v53, %s29004_s10  ;;  %20112 = vrot.lane.b32.xlu1 %v33657_v46, %s29004_s10  ;;  %v19965_v54 = vrot.slane %v33577_v7, %v35650_v42  ;;  %v19931_v45 = vmax.f32 %v33563_v18, %v19902_v59 }
 0xb06   :  { %v33669_v55 = vmul.f32 %v19961_v24, %v19930_v62  ;;  %v19881_v60 = vpop.permute.xlu0 %19880  ;;  %v33687_v1 = vmul.f32 %v19965_v54, %v19931_v45 }
 0xb07   :  { %v19903_v0 = vsel %vm988_vm7, %v19879_v15, %v19881_v60  ;;  %v19904_v39 = vsel %vm988_vm7, %v19881_v60, %v33587_v33  ;;  %v19908_v33 = vsel %vm988_vm7, %v33617_v2, %v19891_v20  ;;  %v33793_v2 = vld [vmem:[#allocation2 + $0x78] sm:$0xff]  ;;  %vm20796_vm7 = vcmask 1014784  }
 0xb08   :  { %20768 = vrot.lane.b32.xlu0 %v33583_v25, %s29005_s3  ;;  %20094 = vrot.lane.b32.xlu1 %v33669_v55, %s29004_s10  ;;  %v19932_v8 = vmax.f32 %v33556_v23, %v19903_v0  ;;  %v19973_v23 = vrot.slane %v33577_v7, %v35647_v11  ;;  %v19937_v7 = vmax.f32 %v33535_v16, %v19908_v33  ;;  %v33735_v16 = vld [vmem:[#allocation2] sm:$0xff] }
 0xb0a   :  { %v33689_v35 = vmul.f32 %v19969_v19, %v19932_v8 }
 0xb0c   :  { %20766 = vrot.lane.b32.xlu0 %v33107_v14, %s29005_s3  ;;  %20770 = vrot.lane.b32.xlu1 %v33593_v17, %s29005_s3  ;;  %v19933_v14 = vmax.f32 %v33568_v61, %v19904_v39  ;;  %v19989_v61 = vrot.slane %v33600_v43, %v35648_v5  ;;  %v20087_v43 = vpop.permute.xlu0 %20086 }
 0xb0e   :  { %v33704_v18 = vmul.f32 %v19973_v23, %v19933_v14  ;;  %v33719_v63 = vmul.f32 %v19989_v61, %v19937_v7 }
 0xb10   :  { %20096 = vrot.lane.b32.xlu1 %v33687_v1, %s29004_s10  ;;  %20098 = vrot.lane.b32.xlu0 %v33689_v35, %s29004_s10 }
 0xb14   :  { %20776 = vrot.lane.b32.xlu1 %v33687_v1, %s29005_s3  ;;  %20778 = vrot.lane.b32.xlu0 %v33689_v35, %s29005_s3 }
 0xb18   :  { %20774 = vrot.lane.b32.xlu1 %v33669_v55, %s29005_s3  ;;  %20100 = vrot.lane.b32.xlu0 %v33704_v18, %s29004_s10 }
 0xb1c   :  { %20784 = vrot.lane.b32.xlu1 %v33624_v31, %s29005_s3  ;;  %20786 = vrot.lane.b32.xlu0 %v33626_v40, %s29005_s3 }
 0xb20   :  { %20782 = vrot.lane.b32.xlu1 %v33613_v26, %s29005_s3  ;;  %20108 = vrot.lane.b32.xlu0 %v33719_v63, %s29004_s10 }
 0xb24   :  { %20792 = vrot.lane.b32.xlu1 %v33657_v46, %s29005_s3  ;;  %20794 = vrot.lane.b32.xlu0 %v33659_v53, %s29005_s3 }
 0xb28   :  { %20790 = vrot.lane.b32.xlu1 %v33643_v57, %s29005_s3  ;;  %20772 = vrot.lane.b32.xlu0 %v33641_v13, %s29005_s3 }
 0xb2c   :  { %21451 = vrot.lane.b32.xlu1 %v33583_v25, %s29006_s2  ;;  %21453 = vrot.lane.b32.xlu0 %v33593_v17, %s29006_s2 }
 0xb30   :  { %21449 = vrot.lane.b32.xlu1 %v33735_v16, %s29006_s2  ;;  %20780 = vrot.lane.b32.xlu0 %v33704_v18, %s29005_s3 }
 0xb34   :  { %21459 = vrot.lane.b32.xlu1 %v33687_v1, %s29006_s2  ;;  %21461 = vrot.lane.b32.xlu0 %v33689_v35, %s29006_s2 }
 0xb38   :  { %21457 = vrot.lane.b32.xlu1 %v33669_v55, %s29006_s2  ;;  %20788 = vrot.lane.b32.xlu0 %v33719_v63, %s29005_s3 }
 0xb3c   :  { %21467 = vrot.lane.b32.xlu1 %v33624_v31, %s29006_s2  ;;  %21469 = vrot.lane.b32.xlu0 %v33626_v40, %s29006_s2 }
 0xb40   :  { %21465 = vrot.lane.b32.xlu1 %v33613_v26, %s29006_s2  ;;  %21475 = vrot.lane.b32.xlu0 %v33657_v46, %s29006_s2 }
 0xb44   :  { %21477 = vrot.lane.b32.xlu1 %v33659_v53, %s29006_s2  ;;  %21473 = vrot.lane.b32.xlu0 %v33643_v57, %s29006_s2 }
 0xb48   :  { %21455 = vrot.lane.b32.xlu1 %v33641_v13, %s29006_s2  ;;  %22196 = vrot.lane.b32.xlu0 %v33583_v25, %s29007_s6 }
 0xb4c   :  { %22198 = vrot.lane.b32.xlu1 %v33593_v17, %s29007_s6  ;;  %22194 = vrot.lane.b32.xlu0 %v33735_v16, %s29007_s6 }
 0xb50   :  { %21463 = vrot.lane.b32.xlu1 %v33704_v18, %s29006_s2  ;;  %22204 = vrot.lane.b32.xlu0 %v33687_v1, %s29007_s6 }
 0xb54   :  { %22206 = vrot.lane.b32.xlu1 %v33689_v35, %s29007_s6  ;;  %22202 = vrot.lane.b32.xlu0 %v33669_v55, %s29007_s6 }
 0xb56   :  { %v20089_v11 = vpop.permute.xlu0 %20088 }
 0xb57   :  { %v20117_v3 = vsel %vm20116_vm3, %v20087_v43, %v20089_v11 }
 0xb58   :  { %21471 = vrot.lane.b32.xlu1 %v33719_v63, %s29006_s2  ;;  %22212 = vrot.lane.b32.xlu0 %v33624_v31, %s29007_s6 }
 0xb5c   :  { %22214 = vrot.lane.b32.xlu1 %v33626_v40, %s29007_s6  ;;  %22210 = vrot.lane.b32.xlu0 %v33613_v26, %s29007_s6 }
 0xb60   :  { %22200 = vrot.lane.b32.xlu1 %v33641_v13, %s29007_s6  ;;  %22220 = vrot.lane.b32.xlu0 %v33657_v46, %s29007_s6 }
 0xb64   :  { %22222 = vrot.lane.b32.xlu1 %v33659_v53, %s29007_s6  ;;  %22218 = vrot.lane.b32.xlu0 %v33643_v57, %s29007_s6 }
 0xb66   :  { %v20091_v27 = vpop.permute.xlu1 %20090 }
 0xb67   :  { %v20118_v4 = vsel %vm20116_vm3, %v20089_v11, %v20091_v27 }
 0xb68   :  { %22208 = vrot.lane.b32.xlu1 %v33704_v18, %s29007_s6  ;;  %22216 = vrot.lane.b32.xlu0 %v33719_v63, %s29007_s6 }
 0xb69   :  { %20152 = vmatprep.subr.mxu1 %v20118_v4 }
 0xb6a   :  { %20153 = vmatpush1.msra.mxu1 %v20117_v3  ;;  %v33791_v56 = vpop.permute.xlu1 %20102 }
 0xb6b   :  { %27839 = vmatmul.mubr.msk.f32.vlgmr.msra.gmra.mrb[72].mxu1 %vm58_vm11, %v33788_v47 }
 0xb6c   :  { %22224 = vrot.lane.b32.xlu1 %v33793_v2, %s29007_s6  ;;  %23565 = vrot.lane.b32.xlu0 %v33593_v17, %s29005_s3 }
 0xb6d   :  { %20222 = vmatprep.mubr.f32.mxu1 %v33735_v16 }
 0xb6e   :  { %v20105_v36 = vpop.permute.xlu1 %20104  ;;  %v33807_v52 = vpop.permute.xlu0 %20106 }
 0xb6f   :  { %v20126_v50 = vsel %vm20116_vm3, %v20105_v36, %v33807_v52  ;;  %v20125_v5 = vsel %vm20116_vm3, %v33791_v56, %v20105_v36  ;;  %27840 = vmatmul.mubr.msk.f32.gmra.mrb[74].mxu1 %vm58_vm11, %v33804_v30 }
 0xb70   :  { %23567 = vrot.lane.b32.xlu1 %v33641_v13, %s29005_s3  ;;  %23563 = vrot.lane.b32.xlu0 %v33583_v25, %s29005_s3 }
 0xb71   :  { %20460 = vmatprep.subr.mxu0 %v20126_v50  ;;  %20293 = vmatprep.mubr.f32.mxu1 %v33735_v16 }
 0xb72   :  { %20461 = vmatpush1.msra.mxu0 %v20125_v5  ;;  %v33820_v37 = vpop.permute.xlu1 %20110  ;;  %v20093_v41 = vpop.permute.xlu0 %20092 }
 0xb73   :  { %27847 = vmatmul.mubr.msk.f32.vlgmr.msra.gmra.mrb[24].mxu0 %vm58_vm11, %v33788_v47  ;;  %v20119_v42 = vsel %vm20116_vm3, %v20091_v27, %v20093_v41 }
 0xb74   :  { %23573 = vrot.lane.b32.xlu1 %v33689_v35, %s29005_s3  ;;  %23575 = vrot.lane.b32.xlu0 %v33704_v18, %s29005_s3 }
 0xb75   :  { %20530 = vmatprep.mubr.f32.mxu0 %v33735_v16 }
 0xb76   :  { %v20113_v10 = vpop.permute.xlu1 %20112  ;;  %v33829_v28 = vpop.permute.xlu0 %20114 }
 0xb77   :  { %v20130_v20 = vsel %vm20116_vm3, %v20113_v10, %v33829_v28  ;;  %27848 = vmatmul.mubr.msk.f32.gmra.mrb[26].mxu0 %vm58_vm11, %v33804_v30  ;;  %v20129_v58 = vsel %vm20116_vm3, %v33820_v37, %v20113_v10 }
 0xb78   :  { %23571 = vrot.lane.b32.xlu1 %v33687_v1, %s29005_s3  ;;  %23569 = vrot.lane.b32.xlu0 %v33669_v55, %s29005_s3 }
 0xb79   :  { %20614 = vmatprep.subr.mxu0 %v20130_v20  ;;  %20678 = vmatprep.mubr.f32.mxu0 %v33735_v16  ;;  %v34000_v20 = vld [vmem:[%s35381_s12 + $0x20] sm:$0xff] }
 0xb7a   :  { %20615 = vmatpush1.msra.mxu0 %v20129_v58  ;;  %v20095_v9 = vpop.permute.xlu1 %20094  ;;  %v20769_v22 = vpop.permute.xlu0 %20768 }
 0xb7b   :  { %v20120_v32 = vsel %vm20116_vm3, %v20093_v41, %v20095_v9  ;;  %27851 = vmatmul.mubr.msk.f32.vlgmr.msra.gmra.mrb[28].mxu0 %vm58_vm11, %v33788_v47 }
 0xb7c   :  { %23581 = vrot.lane.b32.xlu1 %v33626_v40, %s29005_s3  ;;  %23583 = vrot.lane.b32.xlu0 %v33719_v63, %s29005_s3 }
 0xb7d   :  { %20229 = vmatprep.subr.mxu1 %v20120_v32  ;;  %20684 = vmatprep.mubr.f32.mxu0 %v33735_v16  ;;  %v34019_v32 = vld [vmem:[%s35381_s12 + $0x28] sm:$0x3] }
 0xb7e   :  { %20230 = vmatpush1.msra.mxu1 %v20119_v42  ;;  %v33851_v6 = vpop.permute.xlu1 %20770  ;;  %v20767_v34 = vpop.permute.xlu0 %20766 }
 0xb7f   :  { %27841 = vmatmul.mubr.msk.f32.vlgmr.msra.gmra.mrb[76].mxu1 %vm58_vm11, %v33788_v47  ;;  %v20797_v21 = vsel %vm20796_vm7, %v20767_v34, %v20769_v22  ;;  %v20798_v12 = vsel %vm20796_vm7, %v20769_v22, %v33851_v6  ;;  %27852 = vmatmul.mubr.msk.f32.gmra.mrb[30].mxu0 %vm58_vm11, %v33804_v30 }
 0xb80   :  { %23579 = vrot.lane.b32.xlu1 %v33624_v31, %s29005_s3  ;;  %23577 = vrot.lane.b32.xlu0 %v33613_v26, %s29005_s3 }
 0xb81   :  { %20832 = vmatprep.subr.mxu0 %v20798_v12  ;;  %20299 = vmatprep.mubr.f32.mxu1 %v33735_v16 }
 0xb82   :  { %20833 = vmatpush1.msra.mxu0 %v20797_v21  ;;  %v20097_v51 = vpop.permute.xlu1 %20096  ;;  %v20099_v49 = vpop.permute.xlu0 %20098  ;;  %20896 = vmatprep.mubr.f32.mxu0 %v33735_v16 }
 0xb83   :  { %27842 = vmatmul.mubr.msk.f32.gmra.mrb[78].mxu1 %vm58_vm11, %v33804_v30  ;;  %v20122_v38 = vsel %vm20116_vm3, %v20097_v51, %v20099_v49  ;;  %v20121_v24 = vsel %vm20116_vm3, %v20095_v9, %v20097_v51  ;;  %27855 = vmatmul.mubr.msk.f32.vlgmr.msra.gmra.mrb[32].mxu0 %vm58_vm11, %v33867_v48 }
 0xb84   :  { %23589 = vrot.lane.b32.xlu1 %v33659_v53, %s29005_s3  ;;  %23591 = vrot.lane.b32.xlu0 %v33793_v2, %s29005_s3 }
 0xb85   :  { %20306 = vmatprep.subr.mxu1 %v20122_v38  ;;  %20370 = vmatprep.mubr.f32.mxu1 %v33735_v16 }
 0xb86   :  { %20307 = vmatpush1.msra.mxu1 %v20121_v24  ;;  %v20777_v44 = vpop.permute.xlu1 %20776  ;;  %v33887_v62 = vpop.permute.xlu0 %20778  ;;  %20902 = vmatprep.mubr.f32.mxu0 %v33735_v16 }
 0xb87   :  { %27843 = vmatmul.mubr.msk.f32.vlgmr.msra.gmra.mrb[80].mxu1 %vm58_vm11, %v33788_v47  ;;  %v20802_v15 = vsel %vm20796_vm7, %v20777_v44, %v33887_v62  ;;  %27856 = vmatmul.mubr.msk.f32.gmra.mrb[34].mxu0 %vm58_vm11, %v33884_v29 }
 0xb88   :  { %23587 = vrot.lane.b32.xlu1 %v33657_v46, %s29005_s3  ;;  %23585 = vrot.lane.b32.xlu0 %v33643_v57, %s29005_s3 }
 0xb89   :  { %20986 = vmatprep.subr.mxu0 %v20802_v15  ;;  %20376 = vmatprep.mubr.f32.mxu1 %v33735_v16 }
 0xb8a   :  { %v20775_v60 = vpop.permute.xlu1 %20774  ;;  %v20101_v59 = vpop.permute.xlu0 %20100  ;;  %21050 = vmatprep.mubr.f32.mxu0 %v33735_v16 }
 0xb8b   :  { %27844 = vmatmul.mubr.msk.f32.gmra.mrb[82].mxu1 %vm58_vm11, %v33804_v30  ;;  %v20124_v0 = vsel %vm20116_vm3, %v20101_v59, %v33791_v56  ;;  %v20801_v54 = vsel %vm20796_vm7, %v20775_v60, %v20777_v44  ;;  %v20123_v45 = vsel %vm20116_vm3, %v20099_v49, %v20101_v59 }
 0xb8c   :  { %24277 = vrot.lane.b32.xlu1 %v33593_v17, %s29008_s28  ;;  %24279 = vrot.lane.b32.xlu0 %v33641_v13, %s29008_s28 }
 0xb8d   :  { %20383 = vmatprep.subr.mxu1 %v20124_v0  ;;  %20987 = vmatpush1.msra.mxu0 %v20801_v54 }
 0xb8e   :  { %20384 = vmatpush1.msra.mxu1 %v20123_v45  ;;  %20447 = vmatprep.mubr.f32.mxu1 %v33735_v16  ;;  %v20785_v19 = vpop.permute.xlu1 %20784  ;;  %v33913_v8 = vpop.permute.xlu0 %20786 }
 0xb8f   :  { %27859 = vmatmul.mubr.msk.f32.vlgmr.msra.gmra.mrb[36].mxu0 %vm58_vm11, %v33867_v48  ;;  %27845 = vmatmul.mubr.msk.f32.vlgmr.msra.gmra.mrb[84].mxu1 %vm58_vm11, %v33788_v47  ;;  %v20806_v39 = vsel %vm20796_vm7, %v20785_v19, %v33913_v8 }
 0xb90   :  { %24275 = vrot.lane.b32.xlu1 %v33583_v25, %s29008_s28  ;;  %24285 = vrot.lane.b32.xlu0 %v33689_v35, %s29008_s28 }
 0xb91   :  { %21056 = vmatprep.mubr.f32.mxu0 %v33735_v16  ;;  %21140 = vmatprep.subr.mxu0 %v20806_v39 }
 0xb92   :  { %20453 = vmatprep.mubr.f32.mxu1 %v33735_v16  ;;  %v20783_v23 = vpop.permute.xlu1 %20782  ;;  %v20109_v14 = vpop.permute.xlu0 %20108 }
 0xb93   :  { %27860 = vmatmul.mubr.msk.f32.gmra.mrb[38].mxu0 %vm58_vm11, %v33884_v29  ;;  %27846 = vmatmul.mubr.msk.f32.gmra.mrb[86].mxu1 %vm58_vm11, %v33804_v30  ;;  %v20128_v33 = vsel %vm20116_vm3, %v20109_v14, %v33820_v37  ;;  %v20805_v61 = vsel %vm20796_vm7, %v20783_v23, %v20785_v19  ;;  %v20127_v7 = vsel %vm20116_vm3, %v33807_v52, %v20109_v14 }
 0xb94   :  { %24287 = vrot.lane.b32.xlu1 %v33704_v18, %s29008_s28  ;;  %24283 = vrot.lane.b32.xlu0 %v33687_v1, %s29008_s28 }
 0xb95   :  { %20537 = vmatprep.subr.mxu1 %v20128_v33  ;;  %21141 = vmatpush1.msra.mxu0 %v20805_v61 }
 0xb96   :  { %21204 = vmatprep.mubr.f32.mxu0 %v33735_v16  ;;  %20538 = vmatpush1.msra.mxu1 %v20127_v7  ;;  %v20793_v43 = vpop.permute.xlu1 %20792  ;;  %v33941_v11 = vpop.permute.xlu0 %20794 }
 0xb97   :  { %20601 = vmatprep.mubr.f32.mxu1 %v33735_v16  ;;  %27863 = vmatmul.mubr.msk.f32.vlgmr.msra.gmra.mrb[24].mxu0 %vm58_vm11, %v33867_v48  ;;  %v20810_v27 = vsel %vm20796_vm7, %v20793_v43, %v33941_v11 }
 0xb98   :  { %27849 = vmatmul.mubr.msk.f32.vlgmr.msra.gmra.mrb[88].mxu1 %vm58_vm11, %v33788_v47  ;;  %28245 = vmatprep.subr.mxu1 %v33829_v28 }
 0xb99   :  { %28246 = vmatpush3.msra.mxu1 %v33829_v28  ;;  %24281 = vrot.lane.b32.xlu1 %v33669_v55, %s29008_s28 }
 0xb9a   :  { %24293 = vrot.lane.b32.xlu0 %v33626_v40, %s29008_s28  ;;  %21210 = vmatprep.mubr.f32.mxu0 %v33735_v16  ;;  %v20791_v4 = vpop.permute.xlu1 %20790  ;;  %v20773_v3 = vpop.permute.xlu0 %20772 }
 0xb9b   :  { %21294 = vmatprep.subr.mxu0 %v20810_v27  ;;  %20607 = vmatprep.mubr.f32.mxu1 %v33735_v16  ;;  %v20800_v56 = vsel %vm20796_vm7, %v20773_v3, %v20775_v60  ;;  %v20809_v36 = vsel %vm20796_vm7, %v20791_v4, %v20793_v43  ;;  %v20799_v5 = vsel %vm20796_vm7, %v33851_v6, %v20773_v3  ;;  %v34123_v43 = vld [vmem:[%s35381_s12 + $0x30] sm:$0xff]  ;;  %v34143_v3 = vld [vmem:[%s35381_s12 + $0x38] sm:$0x3] }
 0xb9c   :  { %27864 = vmatmul.mubr.msk.f32.gmra.mrb[26].mxu0 %vm58_vm11, %v33884_v29  ;;  %27850 = vmatmul.mubr.msk.f32.gmra.mrb[90].mxu1 %vm58_vm11, %v33804_v30 }
 0xb9d   :  { %24295 = vrot.lane.b32.xlu1 %v33719_v63, %s29008_s28  ;;  %20909 = vmatprep.subr.mxu1 %v20800_v56 }
 0xb9e   :  { %24291 = vrot.lane.b32.xlu0 %v33624_v31, %s29008_s28  ;;  %21295 = vmatpush1.msra.mxu0 %v20809_v36  ;;  %v21452_v52 = vpop.permute.xlu1 %21451  ;;  %v33968_v50 = vpop.permute.xlu0 %21453 }
 0xb9f   :  { %21358 = vmatprep.mubr.f32.mxu0 %v33735_v16  ;;  %28247 = vmatprep.mubr.msk.f32.mxu1 %vm58_vm11, %v33788_v47  ;;  %v21481_v37 = vsel %vm21479_vm9, %v21452_v52, %v33968_v50 }
 0xba0   :  { %27867 = vmatmul.mubr.msk.f32.vlgmr.msra.gmra.mrb[28].mxu0 %vm58_vm11, %v33867_v48  ;;  %28248 = vmatmul.mubr.msk.f32.vlgmr.msra.gmra.mrb[92].mxu1 %vm58_vm11, %v33804_v30 }
 0xba1   :  { %20910 = vmatpush1.msra.mxu1 %v20799_v5  ;;  %24289 = vrot.lane.b32.xlu1 %v33613_v26, %s29008_s28 }
 0xba2   :  { %24301 = vrot.lane.b32.xlu0 %v33659_v53, %s29008_s28  ;;  %21364 = vmatprep.mubr.f32.mxu0 %v33735_v16  ;;  %v21450_v47 = vpop.permute.xlu1 %21449  ;;  %v20781_v41 = vpop.permute.xlu0 %20780 }
 0xba3   :  { %21515 = vmatprep.subr.mxu0 %v21481_v37  ;;  %20973 = vmatprep.mubr.f32.mxu1 %v33735_v16  ;;  %v21480_v30 = vsel %vm21479_vm9, %v21450_v47, %v21452_v52  ;;  %v20804_v10 = vsel %vm20796_vm7, %v20781_v41, %v20783_v23  ;;  %v20803_v28 = vsel %vm20796_vm7, %v33887_v62, %v20781_v41 }
 0xba4   :  { %27868 = vmatmul.mubr.msk.f32.gmra.mrb[30].mxu0 %vm58_vm11, %v33884_v29  ;;  %27857 = vmatmul.mubr.msk.f32.vlgmr.msra.gmra.mrb[76].mxu1 %vm58_vm11, %v33867_v48 }
 0xba5   :  { %24303 = vrot.lane.b32.xlu1 %v33793_v2, %s29008_s28  ;;  %21063 = vmatprep.subr.mxu1 %v20804_v10 }
 0xba6   :  { %24299 = vrot.lane.b32.xlu0 %v33657_v46, %s29008_s28  ;;  %21516 = vmatpush1.msra.mxu0 %v21480_v30  ;;  %v21460_v58 = vpop.permute.xlu1 %21459  ;;  %v34004_v9 = vpop.permute.xlu0 %21461 }
 0xba7   :  { %21579 = vmatprep.mubr.f32.mxu0 %v33735_v16  ;;  %20979 = vmatprep.mubr.f32.mxu1 %v33735_v16  ;;  %v21485_v22 = vsel %vm21479_vm9, %v21460_v58, %v34004_v9 }
 0xba8   :  { %21064 = vmatpush1.msra.mxu1 %v20803_v28  ;;  %27873 = vmatmul.mubr.msk.f32.vlgmr.msra.gmra.mrb[32].mxu0 %vm58_vm11, %v34000_v20 }
 0xba9   :  { %27858 = vmatmul.mubr.msk.f32.gmra.mrb[78].mxu1 %vm58_vm11, %v33884_v29  ;;  %24297 = vrot.lane.b32.xlu1 %v33643_v57, %s29008_s28 }
 0xbaa   :  { %24990 = vrot.lane.b32.xlu0 %v33593_v17, %s29009_s20  ;;  %21585 = vmatprep.mubr.f32.mxu0 %v33735_v16  ;;  %v21458_v42 = vpop.permute.xlu1 %21457  ;;  %v20789_v6 = vpop.permute.xlu0 %20788 }
 0xbab   :  { %21669 = vmatprep.subr.mxu0 %v21485_v22  ;;  %21127 = vmatprep.mubr.f32.mxu1 %v33735_v16  ;;  %v20808_v34 = vsel %vm20796_vm7, %v20789_v6, %v20791_v4  ;;  %v21484_v21 = vsel %vm21479_vm9, %v21458_v42, %v21460_v58  ;;  %v20807_v12 = vsel %vm20796_vm7, %v33913_v8, %v20789_v6 }
 0xbac   :  { %27874 = vmatmul.mubr.msk.f32.gmra.mrb[34].mxu0 %vm58_vm11, %v34019_v32  ;;  %21217 = vmatprep.subr.mxu1 %v20808_v34 }
 0xbad   :  { %27861 = vmatmul.mubr.msk.f32.vlgmr.msra.gmra.mrb[84].mxu1 %vm58_vm11, %v33867_v48  ;;  %24992 = vrot.lane.b32.xlu1 %v33641_v13, %s29009_s20 }
 0xbae   :  { %24988 = vrot.lane.b32.xlu0 %v33583_v25, %s29009_s20  ;;  %21670 = vmatpush1.msra.mxu0 %v21484_v21  ;;  %v21468_v51 = vpop.permute.xlu1 %21467  ;;  %v34037_v49 = vpop.permute.xlu0 %21469 }
 0xbaf   :  { %21733 = vmatprep.mubr.f32.mxu0 %v33735_v16  ;;  %21133 = vmatprep.mubr.f32.mxu1 %v33735_v16  ;;  %v21489_v38 = vsel %vm21479_vm9, %v21468_v51, %v34037_v49 }
 0xbb0   :  { %21218 = vmatpush1.msra.mxu1 %v20807_v12  ;;  %27877 = vmatmul.mubr.msk.f32.vlgmr.msra.gmra.mrb[36].mxu0 %vm58_vm11, %v34000_v20 }
 0xbb1   :  { %27862 = vmatmul.mubr.msk.f32.gmra.mrb[86].mxu1 %vm58_vm11, %v33884_v29  ;;  %28250 = vmatprep.subr.mxu1 %v33941_v11 }
 0xbb2   :  { %24994 = vrot.lane.b32.xlu1 %v33669_v55, %s29009_s20  ;;  %24996 = vrot.lane.b32.xlu0 %v33687_v1, %s29009_s20  ;;  %v21466_v24 = vpop.permute.xlu1 %21465  ;;  %v21476_v44 = vpop.permute.xlu0 %21475 }
 0xbb3   :  { %21739 = vmatprep.mubr.f32.mxu0 %v33735_v16  ;;  %21823 = vmatprep.subr.mxu0 %v21489_v38  ;;  %v21488_v62 = vsel %vm21479_vm9, %v21466_v24, %v21468_v51 }
 0xbb4   :  { %21281 = vmatprep.mubr.f32.mxu1 %v33735_v16  ;;  %27878 = vmatmul.mubr.msk.f32.gmra.mrb[38].mxu0 %vm58_vm11, %v34019_v32 }
 0xbb5   :  { %27865 = vmatmul.mubr.msk.f32.vlgmr.msra.gmra.mrb[88].mxu1 %vm58_vm11, %v33867_v48  ;;  %21824 = vmatpush1.msra.mxu0 %v21488_v62 }
 0xbb6   :  { %28251 = vmatpush3.msra.mxu1 %v33941_v11  ;;  %24998 = vrot.lane.b32.xlu1 %v33689_v35, %s29009_s20  ;;  %v34062_v15 = vpop.permute.xlu1 %21477  ;;  %v34064_v60 = vpop.permute.xlu0 %21473 }
 0xbb7   :  { %25000 = vrot.lane.b32.xlu0 %v33704_v18, %s29009_s20  ;;  %21887 = vmatprep.mubr.f32.mxu0 %v33735_v16  ;;  %v21493_v59 = vsel %vm21479_vm9, %v21476_v44, %v34062_v15  ;;  %v21492_v0 = vsel %vm21479_vm9, %v34064_v60, %v21476_v44 }
 0xbb8   :  { %21287 = vmatprep.mubr.f32.mxu1 %v33735_v16  ;;  %27881 = vmatmul.mubr.msk.f32.vlgmr.msra.gmra.mrb[24].mxu0 %vm58_vm11, %v34000_v20 }
 0xbb9   :  { %27866 = vmatmul.mubr.msk.f32.gmra.mrb[90].mxu1 %vm58_vm11, %v33884_v29  ;;  %21893 = vmatprep.mubr.f32.mxu0 %v33735_v16 }
 0xbba   :  { %25002 = vrot.lane.b32.xlu1 %v33613_v26, %s29009_s20  ;;  %21977 = vmatprep.subr.mxu0 %v21493_v59  ;;  %v21456_v54 = vpop.permute.xlu1 %21455  ;;  %v22197_v45 = vpop.permute.xlu0 %22196  ;;  %v26445_v59 = vld [vmem:[%s35382_s13 + $0x8] sm:$0x3] }
 0xbbb   :  { %25004 = vrot.lane.b32.xlu0 %v33624_v31, %s29009_s20  ;;  %28252 = vmatprep.mubr.msk.f32.mxu1 %vm58_vm11, %v33867_v48  ;;  %v21483_v19 = vsel %vm21479_vm9, %v21456_v54, %v21458_v42  ;;  %v21482_v8 = vsel %vm21479_vm9, %v33968_v50, %v21456_v54 }
 0xbbc   :  { %27882 = vmatmul.mubr.msk.f32.gmra.mrb[26].mxu0 %vm58_vm11, %v34019_v32  ;;  %21592 = vmatprep.subr.mxu1 %v21483_v19  ;;  %v25712_v19 = vld [vmem:[#allocation2 + $0x80] sm:$0xff] }
 0xbbd   :  { %21978 = vmatpush1.msra.mxu0 %v21492_v0  ;;  %28253 = vmatmul.mubr.msk.f32.vlgmr.msra.gmra.mrb[92].mxu1 %vm58_vm11, %v33884_v29 }
 0xbbe   :  { %25006 = vrot.lane.b32.xlu1 %v33626_v40, %s29009_s20  ;;  %22041 = vmatprep.mubr.f32.mxu0 %v33735_v16  ;;  %v34095_v48 = vpop.permute.xlu1 %22198  ;;  %v22195_v39 = vpop.permute.xlu0 %22194 }
 0xbbf   :  { %25008 = vrot.lane.b32.xlu0 %v33719_v63, %s29009_s20  ;;  %21593 = vmatpush1.msra.mxu1 %v21482_v8  ;;  %v22228_v23 = vsel %vm22226_vm12, %v22197_v45, %v34095_v48  ;;  %v22227_v29 = vsel %vm22226_vm12, %v22195_v39, %v22197_v45  ;;  %v34279_v45 = vld [vmem:[%s35381_s12 + $0x48] sm:$0x3] }
 0xbc0   :  { %21656 = vmatprep.mubr.f32.mxu1 %v33735_v16  ;;  %27885 = vmatmul.mubr.msk.f32.vlgmr.msra.gmra.mrb[28].mxu0 %vm58_vm11, %v34000_v20 }
 0xbc1   :  { %27875 = vmatmul.mubr.msk.f32.vlgmr.msra.gmra.mrb[76].mxu1 %vm58_vm11, %v34000_v20  ;;  %22047 = vmatprep.mubr.f32.mxu0 %v33735_v16 }
 0xbc2   :  { %25010 = vrot.lane.b32.xlu1 %v33643_v57, %s29009_s20  ;;  %22263 = vmatprep.subr.mxu0 %v22228_v23  ;;  %v21464_v14 = vpop.permute.xlu1 %21463  ;;  %v22205_v33 = vpop.permute.xlu0 %22204 }
 0xbc3   :  { %25012 = vrot.lane.b32.xlu0 %v33657_v46, %s29009_s20  ;;  %21662 = vmatprep.mubr.f32.mxu1 %v33735_v16  ;;  %v21487_v61 = vsel %vm21479_vm9, %v21464_v14, %v21466_v24  ;;  %v21486_v7 = vsel %vm21479_vm9, %v34004_v9, %v21464_v14 }
 0xbc4   :  { %27886 = vmatmul.mubr.msk.f32.gmra.mrb[30].mxu0 %vm58_vm11, %v34019_v32  ;;  %21746 = vmatprep.subr.mxu1 %v21487_v61 }
 0xbc5   :  { %22264 = vmatpush1.msra.mxu0 %v22227_v29  ;;  %27876 = vmatmul.mubr.msk.f32.gmra.mrb[78].mxu1 %vm58_vm11, %v34019_v32 }
 0xbc6   :  { %25014 = vrot.lane.b32.xlu1 %v33659_v53, %s29009_s20  ;;  %22327 = vmatprep.mubr.f32.mxu0 %v33735_v16  ;;  %v34128_v11 = vpop.permute.xlu1 %22206  ;;  %v22203_v27 = vpop.permute.xlu0 %22202 }
 0xbc7   :  { %25016 = vrot.lane.b32.xlu0 %v33793_v2, %s29009_s20  ;;  %21747 = vmatpush1.msra.mxu1 %v21486_v7  ;;  %v22232_v4 = vsel %vm22226_vm12, %v22205_v33, %v34128_v11  ;;  %v22231_v56 = vsel %vm22226_vm12, %v22203_v27, %v22205_v33 }
 0xbc8   :  { %21810 = vmatprep.mubr.f32.mxu1 %v33735_v16  ;;  %27891 = vmatmul.mubr.msk.f32.vlgmr.msra.gmra.mrb[32].mxu0 %vm58_vm11, %v34123_v43 }
 0xbc9   :  { %27879 = vmatmul.mubr.msk.f32.vlgmr.msra.gmra.mrb[84].mxu1 %vm58_vm11, %v34000_v20  ;;  %22333 = vmatprep.mubr.f32.mxu0 %v33735_v16 }
 0xbca   :  { %25734 = vrot.lane.b32.xlu1 %v33593_v17, %s29007_s6  ;;  %22417 = vmatprep.subr.mxu0 %v22232_v4  ;;  %v21472_v36 = vpop.permute.xlu1 %21471  ;;  %v22213_v52 = vpop.permute.xlu0 %22212 }
 0xbcb   :  { %25736 = vrot.lane.b32.xlu0 %v33641_v13, %s29007_s6  ;;  %21816 = vmatprep.mubr.f32.mxu1 %v33735_v16  ;;  %v21491_v50 = vsel %vm21479_vm9, %v21472_v36, %v34064_v60  ;;  %v21490_v5 = vsel %vm21479_vm9, %v34037_v49, %v21472_v36 }
 0xbcc   :  { %27892 = vmatmul.mubr.msk.f32.gmra.mrb[34].mxu0 %vm58_vm11, %v34143_v3  ;;  %21900 = vmatprep.subr.mxu1 %v21491_v50 }
 0xbcd   :  { %22418 = vmatpush1.msra.mxu0 %v22231_v56  ;;  %27880 = vmatmul.mubr.msk.f32.gmra.mrb[86].mxu1 %vm58_vm11, %v34019_v32 }
 0xbce   :  { %25732 = vrot.lane.b32.xlu1 %v33583_v25, %s29007_s6  ;;  %22481 = vmatprep.mubr.f32.mxu0 %v33735_v16  ;;  %v34162_v37 = vpop.permute.xlu1 %22214  ;;  %v22211_v47 = vpop.permute.xlu0 %22210 }
 0xbcf   :  { %25738 = vrot.lane.b32.xlu0 %v33669_v55, %s29007_s6  ;;  %21901 = vmatpush1.msra.mxu1 %v21490_v5  ;;  %v22236_v41 = vsel %vm22226_vm12, %v22213_v52, %v34162_v37  ;;  %v22235_v28 = vsel %vm22226_vm12, %v22211_v47, %v22213_v52 }
 0xbd0   :  { %21964 = vmatprep.mubr.f32.mxu1 %v33735_v16  ;;  %27895 = vmatmul.mubr.msk.f32.vlgmr.msra.gmra.mrb[36].mxu0 %vm58_vm11, %v34123_v43 }
 0xbd1   :  { %27883 = vmatmul.mubr.msk.f32.vlgmr.msra.gmra.mrb[88].mxu1 %vm58_vm11, %v34000_v20  ;;  %28255 = vmatprep.subr.mxu1 %v34062_v15 }
 0xbd2   :  { %28256 = vmatpush3.msra.mxu1 %v34062_v15  ;;  %25740 = vrot.lane.b32.xlu1 %v33687_v1, %s29007_s6  ;;  %v22201_v30 = vpop.permute.xlu1 %22200  ;;  %v22221_v10 = vpop.permute.xlu0 %22220  ;;  %v34258_v15 = vld [vmem:[%s35381_s12 + $0x40] sm:$0xff] }
 0xbd3   :  { %25742 = vrot.lane.b32.xlu0 %v33689_v35, %s29007_s6  ;;  %22487 = vmatprep.mubr.f32.mxu0 %v33735_v16  ;;  %v22230_v58 = vsel %vm22226_vm12, %v22201_v30, %v22203_v27  ;;  %v22229_v42 = vsel %vm22226_vm12, %v34095_v48, %v22201_v30 }
 0xbd4   :  { %22571 = vmatprep.subr.mxu0 %v22236_v41  ;;  %21970 = vmatprep.mubr.f32.mxu1 %v33735_v16 }
 0xbd5   :  { %27896 = vmatmul.mubr.msk.f32.gmra.mrb[38].mxu0 %vm58_vm11, %v34143_v3  ;;  %27884 = vmatmul.mubr.msk.f32.gmra.mrb[90].mxu1 %vm58_vm11, %v34019_v32 }
 0xbd6   :  { %22572 = vmatpush1.msra.mxu0 %v22235_v28  ;;  %25744 = vrot.lane.b32.xlu1 %v33704_v18, %s29007_s6  ;;  %v22223_v9 = vpop.permute.xlu1 %22222  ;;  %v22219_v22 = vpop.permute.xlu0 %22218 }
 0xbd7   :  { %25746 = vrot.lane.b32.xlu0 %v33613_v26, %s29007_s6  ;;  %22340 = vmatprep.subr.mxu1 %v22230_v58  ;;  %v22240_v6 = vsel %vm22226_vm12, %v22221_v10, %v22223_v9 }
 0xbd8   :  { %22635 = vmatprep.mubr.f32.mxu0 %v33735_v16  ;;  %28257 = vmatprep.mubr.msk.f32.mxu1 %vm58_vm11, %v34000_v20  ;;  %v22239_v20 = vsel %vm22226_vm12, %v22219_v22, %v22221_v10 }
 0xbd9   :  { %27899 = vmatmul.mubr.msk.f32.vlgmr.msra.gmra.mrb[24].mxu0 %vm58_vm11, %v34123_v43  ;;  %28258 = vmatmul.mubr.msk.f32.vlgmr.msra.gmra.mrb[92].mxu1 %vm58_vm11, %v34019_v32 }
 0xbda   :  { %22341 = vmatpush1.msra.mxu1 %v22229_v42  ;;  %25748 = vrot.lane.b32.xlu1 %v33624_v31, %s29007_s6  ;;  %v22209_v34 = vpop.permute.xlu1 %22208  ;;  %v22217_v21 = vpop.permute.xlu0 %22216 }
 0xbdb   :  { %25750 = vrot.lane.b32.xlu0 %v33626_v40, %s29007_s6  ;;  %22641 = vmatprep.mubr.f32.mxu0 %v33735_v16  ;;  %v22234_v32 = vsel %vm22226_vm12, %v22209_v34, %v22211_v47  ;;  %v22233_v12 = vsel %vm22226_vm12, %v34128_v11, %v22209_v34  ;;  %v22238_v38 = vsel %vm22226_vm12, %v22217_v21, %v22219_v22 }
 0xbdc   :  { %22725 = vmatprep.subr.mxu0 %v22240_v6  ;;  %22404 = vmatprep.mubr.f32.mxu1 %v33735_v16  ;;  %v22237_v62 = vsel %vm22226_vm12, %v34162_v37, %v22217_v21  ;;  %v34436_v37 = vld [vmem:[#allocation2] sm:$0xff] }
 0xbdd   :  { %27900 = vmatmul.mubr.msk.f32.gmra.mrb[26].mxu0 %vm58_vm11, %v34143_v3  ;;  %27893 = vmatmul.mubr.msk.f32.vlgmr.msra.gmra.mrb[76].mxu1 %vm58_vm11, %v34123_v43 }
 0xbde   :  { %22726 = vmatpush1.msra.mxu0 %v22239_v20  ;;  %25752 = vrot.lane.b32.xlu1 %v33719_v63, %s29007_s6  ;;  %v22225_v51 = vpop.permute.xlu1 %22224  ;;  %v34217_v49 = vpop.permute.xlu0 %23565 }
 0xbdf   :  { %22916 = vmatprep.subr.mxu0 %v33593_v17  ;;  %25754 = vrot.lane.b32.xlu0 %v33643_v57, %s29007_s6  ;;  %v22241_v60 = vsel %vm22226_vm12, %v22223_v9, %v22225_v51  ;;  %v34510_v51 = vld [vmem:[%s35381_s12 + $0x60] sm:$0xff] }
 0xbe0   :  { %22494 = vmatprep.subr.mxu1 %v22234_v32  ;;  %22789 = vmatprep.mubr.f32.mxu0 %v33735_v16 }
 0xbe1   :  { %22410 = vmatprep.mubr.f32.mxu1 %v33735_v16  ;;  %22495 = vmatpush1.msra.mxu1 %v22233_v12 }
 0xbe2   :  { %27903 = vmatmul.mubr.msk.f32.vlgmr.msra.gmra.mrb[28].mxu0 %vm58_vm11, %v34123_v43  ;;  %27894 = vmatmul.mubr.msk.f32.gmra.mrb[78].mxu1 %vm58_vm11, %v34143_v3  ;;  %v34229_v24 = vpop.permute.xlu1 %23567  ;;  %v34231_v17 = vpop.permute.xlu0 %23563 }
 0xbe3   :  { %22917 = vmatpush1.msra.mxu0 %v33583_v25  ;;  %22648 = vmatprep.subr.mxu1 %v22238_v38  ;;  %v26444_v25 = vld [vmem:[%s35382_s13] sm:$0xff] }
 0xbe4   :  { %23070 = vmatprep.subr.mxu0 %v33689_v35  ;;  %25756 = vrot.lane.b32.xlu1 %v33657_v46, %s29007_s6 }
 0xbe5   :  { %25758 = vrot.lane.b32.xlu0 %v33659_v53, %s29007_s6  ;;  %22795 = vmatprep.mubr.f32.mxu0 %v33735_v16 }
 0xbe6   :  { %22558 = vmatprep.mubr.f32.mxu1 %v33735_v16  ;;  %27904 = vmatmul.mubr.msk.f32.gmra.mrb[30].mxu0 %vm58_vm11, %v34143_v3  ;;  %v34246_v44 = vpop.permute.xlu1 %23573  ;;  %v34248_v35 = vpop.permute.xlu0 %23575 }
 0xbe7   :  { %27897 = vmatmul.mubr.msk.f32.vlgmr.msra.gmra.mrb[84].mxu1 %vm58_vm11, %v34123_v43  ;;  %22980 = vmatprep.mubr.f32.mxu0 %v33735_v16  ;;  %v23598_v29 = vsel %vm20796_vm7, %v34246_v44, %v34248_v35 }
 0xbe8   :  { %22649 = vmatpush1.msra.mxu1 %v22237_v62  ;;  %25760 = vrot.lane.b32.xlu1 %v33793_v2, %s29007_s6 }
 0xbe9   :  { %28260 = vmatprep.subr.mxu1 %v22241_v60  ;;  %26448 = vperm.xlu0 %28908, %v26444_v25  }
 0xbea   :  { %22564 = vmatprep.mubr.f32.mxu1 %v33735_v16  ;;  %27909 = vmatmul.mubr.msk.f32.vlgmr.msra.gmra.mrb[32].mxu0 %vm58_vm11, %v34258_v15  ;;  %v34269_v0 = vpop.permute.xlu1 %23571  ;;  %v34271_v54 = vpop.permute.xlu0 %23569 }
 0xbeb   :  { %23071 = vmatpush1.msra.mxu0 %v33687_v1  ;;  %27898 = vmatmul.mubr.msk.f32.gmra.mrb[86].mxu1 %vm58_vm11, %v34143_v3  ;;  %v23597_v61 = vsel %vm20796_vm7, %v34269_v0, %v34246_v44  ;;  %v23596_v27 = vsel %vm20796_vm7, %v34271_v54, %v34269_v0  ;;  %v34534_v44 = vld [vmem:[%s35381_s12 + $0x68] sm:$0x3] }
 0xbec   :  { %23224 = vmatprep.subr.mxu0 %v33626_v40  ;;  %26453 = vperm.xlu1 %28909, %v26445_v59  }
 0xbed   :  { %22986 = vmatprep.mubr.f32.mxu0 %v33735_v16  ;;  %22712 = vmatprep.mubr.f32.mxu1 %v33735_v16 }
 0xbee   :  { %27910 = vmatmul.mubr.msk.f32.gmra.mrb[34].mxu0 %vm58_vm11, %v34279_v45  ;;  %v34286_v1 = vpop.permute.xlu1 %23581  ;;  %v34288_v8 = vpop.permute.xlu0 %23583  ;;  %25762 = vrot.lane.b32.xlu0 %v25712_v19, %s29007_s6 }
 0xbef   :  { %27901 = vmatmul.mubr.msk.f32.vlgmr.msra.gmra.mrb[88].mxu1 %vm58_vm11, %v34123_v43  ;;  %23134 = vmatprep.mubr.f32.mxu0 %v33735_v16  ;;  %v23602_v7 = vsel %vm20796_vm7, %v34286_v1, %v34288_v8 }
 0xbf0   :  { %28261 = vmatpush3.msra.mxu1 %v22241_v60  ;;  %22718 = vmatprep.mubr.f32.mxu1 %v33735_v16 }
 0xbf1   :  { %22993 = vmatprep.subr.mxu1 %v33669_v55 }
 0xbf2   :  { %27913 = vmatmul.mubr.msk.f32.vlgmr.msra.gmra.mrb[36].mxu0 %vm58_vm11, %v34258_v15  ;;  %v34298_v40 = vpop.permute.xlu1 %23579  ;;  %v34300_v48 = vpop.permute.xlu0 %23577 }
 0xbf3   :  { %23225 = vmatpush1.msra.mxu0 %v33624_v31  ;;  %27902 = vmatmul.mubr.msk.f32.gmra.mrb[90].mxu1 %vm58_vm11, %v34143_v3  ;;  %v23601_v56 = vsel %vm20796_vm7, %v34298_v40, %v34286_v1  ;;  %v23600_v50 = vsel %vm20796_vm7, %v34300_v48, %v34298_v40  ;;  %v23599_v47 = vsel %vm20796_vm7, %v34248_v35, %v34300_v48 }
 0xbf4   :  { %23378 = vmatprep.subr.mxu0 %v33659_v53  ;;  %23140 = vmatprep.mubr.f32.mxu0 %v33735_v16 }
 0xbf5   :  { %28262 = vmatprep.mubr.msk.f32.mxu1 %vm58_vm11, %v34123_v43  ;;  %v34393_v43 = vld [vmem:[%s35381_s12 + $0x58] sm:$0x3] }
 0xbf6   :  { %27914 = vmatmul.mubr.msk.f32.gmra.mrb[38].mxu0 %vm58_vm11, %v34279_v45  ;;  %v34311_v55 = vpop.permute.xlu1 %23589  ;;  %v34313_v39 = vpop.permute.xlu0 %23591 }
 0xbf7   :  { %28263 = vmatmul.mubr.msk.f32.vlgmr.msra.gmra.mrb[92].mxu1 %vm58_vm11, %v34143_v3  ;;  %23288 = vmatprep.mubr.f32.mxu0 %v33735_v16  ;;  %v23606_v36 = vsel %vm20796_vm7, %v34311_v55, %v34313_v39 }
 0xbf8   :  { %22994 = vmatpush1.msra.mxu1 %v33641_v13  ;;  %23057 = vmatprep.mubr.f32.mxu1 %v33735_v16  ;;  %v23594_v13 = vsel %vm20796_vm7, %v34217_v49, %v34229_v24 }
 0xbf9   :  { %23147 = vmatprep.subr.mxu1 %v33613_v26 }
 0xbfa   :  { %27917 = vmatmul.mubr.msk.f32.vlgmr.msra.gmra.mrb[24].mxu0 %vm58_vm11, %v34258_v15  ;;  %v34323_v31 = vpop.permute.xlu1 %23587  ;;  %v34325_v53 = vpop.permute.xlu0 %23585 }
 0xbfb   :  { %23379 = vmatpush1.msra.mxu0 %v33657_v46  ;;  %27911 = vmatmul.mubr.msk.f32.vlgmr.msra.gmra.mrb[76].mxu1 %vm58_vm11, %v34258_v15  ;;  %v23604_v30 = vsel %vm20796_vm7, %v34325_v53, %v34323_v31  ;;  %v23605_v28 = vsel %vm20796_vm7, %v34323_v31, %v34311_v55  ;;  %v23603_v42 = vsel %vm20796_vm7, %v34288_v8, %v34325_v53 }
 0xbfc   :  { %23148 = vmatpush1.msra.mxu1 %v33704_v18  ;;  %23628 = vmatprep.subr.mxu0 %v23594_v13 }
 0xbfd   :  { %23301 = vmatprep.subr.mxu1 %v33643_v57  ;;  %23294 = vmatprep.mubr.f32.mxu0 %v33735_v16  ;;  %v23593_v57 = vsel %vm20796_vm7, %v34231_v17, %v34217_v49 }
 0xbfe   :  { %23063 = vmatprep.mubr.f32.mxu1 %v33735_v16  ;;  %27918 = vmatmul.mubr.msk.f32.gmra.mrb[26].mxu0 %vm58_vm11, %v34279_v45  ;;  %v34339_v26 = vpop.permute.xlu1 %24277  ;;  %v34341_v46 = vpop.permute.xlu0 %24279 }
 0xbff   :  { %27912 = vmatmul.mubr.msk.f32.gmra.mrb[78].mxu1 %vm58_vm11, %v34279_v45  ;;  %23442 = vmatprep.mubr.f32.mxu0 %v33735_v16  ;;  %v24307_v58 = vsel %vm24305_vm13, %v34339_v26, %v34341_v46 }
 0xc00   :  { %23211 = vmatprep.mubr.f32.mxu1 %v33735_v16 }
 0xc02   :  { %27921 = vmatmul.mubr.msk.f32.vlgmr.msra.gmra.mrb[28].mxu0 %vm58_vm11, %v34258_v15  ;;  %v34352_v18 = vpop.permute.xlu1 %24275  ;;  %v34354_v23 = vpop.permute.xlu0 %24285 }
 0xc03   :  { %23629 = vmatpush1.msra.mxu0 %v23593_v57  ;;  %27915 = vmatmul.mubr.msk.f32.vlgmr.msra.gmra.mrb[84].mxu1 %vm58_vm11, %v34258_v15  ;;  %v24306_v21 = vsel %vm24305_vm13, %v34352_v18, %v34339_v26 }
 0xc04   :  { %23302 = vmatpush1.msra.mxu1 %v33719_v63  ;;  %23782 = vmatprep.subr.mxu0 %v23598_v29  ;;  %v34377_v63 = vld [vmem:[%s35381_s12 + $0x50] sm:$0xff] }
 0xc05   :  { %28265 = vmatprep.subr.mxu1 %v33793_v2  ;;  %23448 = vmatprep.mubr.f32.mxu0 %v33735_v16 }
 0xc06   :  { %23217 = vmatprep.mubr.f32.mxu1 %v33735_v16  ;;  %27922 = vmatmul.mubr.msk.f32.gmra.mrb[30].mxu0 %vm58_vm11, %v34279_v45  ;;  %v34367_v14 = vpop.permute.xlu1 %24287  ;;  %v34369_v33 = vpop.permute.xlu0 %24283 }
 0xc07   :  { %27916 = vmatmul.mubr.msk.f32.gmra.mrb[86].mxu1 %vm58_vm11, %v34279_v45  ;;  %23692 = vmatprep.mubr.f32.mxu0 %v33735_v16  ;;  %v24311_v20 = vsel %vm24305_vm13, %v34354_v23, %v34367_v14  ;;  %v24310_v17 = vsel %vm24305_vm13, %v34369_v33, %v34354_v23 }
 0xc08   :  { %23365 = vmatprep.mubr.f32.mxu1 %v33735_v16 }
 0xc0a   :  { %27927 = vmatmul.mubr.msk.f32.vlgmr.msra.gmra.mrb[32].mxu0 %vm58_vm11, %v34377_v63 }
 0xc0b   :  { %23783 = vmatpush1.msra.mxu0 %v23597_v61  ;;  %27919 = vmatmul.mubr.msk.f32.vlgmr.msra.gmra.mrb[88].mxu1 %vm58_vm11, %v34258_v15  ;;  %v34395_v11 = vpop.permute.xlu1 %24281 }
 0xc0c   :  { %28266 = vmatpush3.msra.mxu1 %v33793_v2  ;;  %23936 = vmatprep.subr.mxu0 %v23602_v7  ;;  %v34401_v4 = vpop.permute.xlu0 %24293  ;;  %v24309_v49 = vsel %vm24305_vm13, %v34395_v11, %v34369_v33 }
 0xc0d   :  { %23705 = vmatprep.subr.mxu1 %v23596_v27  ;;  %23698 = vmatprep.mubr.f32.mxu0 %v33735_v16 }
 0xc0e   :  { %23371 = vmatprep.mubr.f32.mxu1 %v33735_v16  ;;  %27928 = vmatmul.mubr.msk.f32.gmra.mrb[34].mxu0 %vm58_vm11, %v34393_v43 }
 0xc0f   :  { %27920 = vmatmul.mubr.msk.f32.gmra.mrb[90].mxu1 %vm58_vm11, %v34279_v45  ;;  %23846 = vmatprep.mubr.f32.mxu0 %v33735_v16  ;;  %v34410_v2 = vpop.permute.xlu1 %24295  ;;  %v23595_v16 = vsel %vm20796_vm7, %v34229_v24, %v34271_v54 }
 0xc10   :  { %28267 = vmatprep.mubr.msk.f32.mxu1 %vm58_vm11, %v34258_v15  ;;  %v34414_v3 = vpop.permute.xlu0 %24291  ;;  %v24315_v25 = vsel %vm24305_vm13, %v34401_v4, %v34410_v2  ;;  %v24308_v15 = vsel %vm24305_vm13, %v34341_v46, %v34395_v11 }
 0xc11   :  { %v24314_v0 = vsel %vm24305_vm13, %v34414_v3, %v34401_v4  ;;  %v34671_v4 = vld [vmem:[%s35381_s12 + $0x78] sm:$0x3] }
 0xc12   :  { %27931 = vmatmul.mubr.msk.f32.vlgmr.msra.gmra.mrb[36].mxu0 %vm58_vm11, %v34377_v63 }
 0xc13   :  { %23937 = vmatpush1.msra.mxu0 %v23601_v56  ;;  %28268 = vmatmul.mubr.msk.f32.vlgmr.msra.gmra.mrb[92].mxu1 %vm58_vm11, %v34279_v45  ;;  %v34429_v52 = vpop.permute.xlu1 %24289 }
 0xc14   :  { %23706 = vmatpush1.msra.mxu1 %v23595_v16  ;;  %24090 = vmatprep.subr.mxu0 %v23606_v36  ;;  %v34434_v5 = vpop.permute.xlu0 %24301  ;;  %v24313_v60 = vsel %vm24305_vm13, %v34429_v52, %v34414_v3  ;;  %v24312_v45 = vsel %vm24305_vm13, %v34367_v14, %v34429_v52 }
 0xc15   :  { %23859 = vmatprep.subr.mxu1 %v23600_v50  ;;  %23852 = vmatprep.mubr.f32.mxu0 %v34436_v37 }
 0xc16   :  { %23769 = vmatprep.mubr.f32.mxu1 %v34436_v37  ;;  %27932 = vmatmul.mubr.msk.f32.gmra.mrb[38].mxu0 %vm58_vm11, %v34393_v43 }
 0xc17   :  { %27929 = vmatmul.mubr.msk.f32.vlgmr.msra.gmra.mrb[76].mxu1 %vm58_vm11, %v34377_v63  ;;  %24000 = vmatprep.mubr.f32.mxu0 %v34436_v37  ;;  %v34448_v41 = vpop.permute.xlu1 %24303 }
 0xc18   :  { %23860 = vmatpush1.msra.mxu1 %v23599_v47  ;;  %23775 = vmatprep.mubr.f32.mxu1 %v34436_v37  ;;  %v34454_v10 = vpop.permute.xlu0 %24299  ;;  %v24319_v19 = vsel %vm24305_vm13, %v34434_v5, %v34448_v41 }
 0xc19   :  { %24013 = vmatprep.subr.mxu1 %v23604_v30  ;;  %v24318_v48 = vsel %vm24305_vm13, %v34454_v10, %v34434_v5 }
 0xc1a   :  { %27935 = vmatmul.mubr.msk.f32.vlgmr.msra.gmra.mrb[24].mxu0 %vm58_vm11, %v34377_v63 }
 0xc1b   :  { %24091 = vmatpush1.msra.mxu0 %v23605_v28  ;;  %27930 = vmatmul.mubr.msk.f32.gmra.mrb[78].mxu1 %vm58_vm11, %v34393_v43  ;;  %v34466_v9 = vpop.permute.xlu1 %24297 }
 0xc1c   :  { %24341 = vmatprep.subr.mxu0 %v24307_v58  ;;  %24006 = vmatprep.mubr.f32.mxu0 %v34436_v37  ;;  %v34469_v22 = vpop.permute.xlu0 %24990  ;;  %v24317_v1 = vsel %vm24305_vm13, %v34466_v9, %v34454_v10  ;;  %v24316_v55 = vsel %vm24305_vm13, %v34410_v2, %v34466_v9 }
 0xc1d   :  { %23923 = vmatprep.mubr.f32.mxu1 %v34436_v37 }
 0xc1e   :  { %27936 = vmatmul.mubr.msk.f32.gmra.mrb[26].mxu0 %vm58_vm11, %v34393_v43 }
 0xc1f   :  { %27933 = vmatmul.mubr.msk.f32.vlgmr.msra.gmra.mrb[84].mxu1 %vm58_vm11, %v34377_v63  ;;  %24154 = vmatprep.mubr.f32.mxu0 %v34436_v37  ;;  %v34480_v6 = vpop.permute.xlu1 %24992 }
 0xc20   :  { %24014 = vmatpush1.msra.mxu1 %v23603_v42  ;;  %23929 = vmatprep.mubr.f32.mxu1 %v34436_v37  ;;  %v34483_v34 = vpop.permute.xlu0 %24988 }
 0xc21   :  { %28270 = vmatprep.subr.mxu1 %v34313_v39  ;;  %v25018_v46 = vsel %vm58_vm11, %v34483_v34, %v34469_v22 }
 0xc22   :  { %27939 = vmatmul.mubr.msk.f32.vlgmr.msra.gmra.mrb[28].mxu0 %vm58_vm11, %v34377_v63 }
 0xc23   :  { %24342 = vmatpush1.msra.mxu0 %v24306_v21  ;;  %27934 = vmatmul.mubr.msk.f32.gmra.mrb[86].mxu1 %vm58_vm11, %v34393_v43 }
 0xc24   :  { %24495 = vmatprep.subr.mxu0 %v24311_v20  ;;  %24160 = vmatprep.mubr.f32.mxu0 %v34436_v37  ;;  %v34497_v32 = vpop.permute.xlu1 %24994  ;;  %v34499_v12 = vpop.permute.xlu0 %24996 }
 0xc25   :  { %24077 = vmatprep.mubr.f32.mxu1 %v34436_v37  ;;  %v25021_v14 = vsel %vm58_vm11, %v34497_v32, %v34499_v12  ;;  %v25020_v11 = vsel %vm58_vm11, %v34480_v6, %v34497_v32 }
 0xc26   :  { %27940 = vmatmul.mubr.msk.f32.gmra.mrb[30].mxu0 %vm58_vm11, %v34393_v43 }
 0xc27   :  { %27937 = vmatmul.mubr.msk.f32.vlgmr.msra.gmra.mrb[88].mxu1 %vm58_vm11, %v34377_v63  ;;  %24405 = vmatprep.mubr.f32.mxu0 %v34436_v37 }
 0xc28   :  { %28271 = vmatpush3.msra.mxu1 %v34313_v39  ;;  %24083 = vmatprep.mubr.f32.mxu1 %v34436_v37  ;;  %v34517_v38 = vpop.permute.xlu1 %24998  ;;  %v25019_v39 = vsel %vm58_vm11, %v34469_v22, %v34480_v6 }
 0xc29   :  { %24418 = vmatprep.subr.mxu1 %v24309_v49  ;;  %v34519_v24 = vpop.permute.xlu0 %25000  ;;  %v25022_v7 = vsel %vm58_vm11, %v34499_v12, %v34517_v38 }
 0xc2a   :  { %27945 = vmatmul.mubr.msk.f32.vlgmr.msra.gmra.mrb[32].mxu0 %vm58_vm11, %v34510_v51  ;;  %v25023_v23 = vsel %vm58_vm11, %v34517_v38, %v34519_v24  ;;  %v27979_v38 = vld [vmem:[%s35381_s12 + $0x80] sm:$0xff] }
 0xc2b   :  { %24496 = vmatpush1.msra.mxu0 %v24310_v17  ;;  %27938 = vmatmul.mubr.msk.f32.gmra.mrb[90].mxu1 %vm58_vm11, %v34393_v43 }
 0xc2c   :  { %24649 = vmatprep.subr.mxu0 %v24315_v25  ;;  %24411 = vmatprep.mubr.f32.mxu0 %v34436_v37  ;;  %v34539_v35 = vpop.permute.xlu1 %25002 }
 0xc2d   :  { %28272 = vmatprep.mubr.msk.f32.mxu1 %vm58_vm11, %v34377_v63  ;;  %v34541_v62 = vpop.permute.xlu0 %25004  ;;  %v34649_v63 = vld [vmem:[%s35381_s12 + $0x70] sm:$0xff]  ;;  %v25024_v56 = vsel %vm58_vm11, %v34519_v24, %v34539_v35 }
 0xc2e   :  { %27946 = vmatmul.mubr.msk.f32.gmra.mrb[34].mxu0 %vm58_vm11, %v34534_v44  ;;  %v25025_v2 = vsel %vm58_vm11, %v34539_v35, %v34541_v62 }
 0xc2f   :  { %28273 = vmatmul.mubr.msk.f32.vlgmr.msra.gmra.mrb[92].mxu1 %vm58_vm11, %v34393_v43  ;;  %24559 = vmatprep.mubr.f32.mxu0 %v34436_v37 }
 0xc30   :  { %24419 = vmatpush1.msra.mxu1 %v24308_v15  ;;  %24482 = vmatprep.mubr.f32.mxu1 %v34436_v37  ;;  %v34562_v54 = vpop.permute.xlu1 %25006  ;;  %v27980_v15 = vld [vmem:[%s35381_s12 + $0x88] sm:$0x3] }
 0xc31   :  { %24572 = vmatprep.subr.mxu1 %v24313_v60  ;;  %v34555_v59 = vpop.permute.xlu0 %25008  ;;  %v25026_v52 = vsel %vm58_vm11, %v34541_v62, %v34562_v54 }
 0xc32   :  { %27949 = vmatmul.mubr.msk.f32.vlgmr.msra.gmra.mrb[36].mxu0 %vm58_vm11, %v34510_v51  ;;  %v25027_v27 = vsel %vm58_vm11, %v34562_v54, %v34555_v59 }
 0xc33   :  { %24650 = vmatpush1.msra.mxu0 %v24314_v0  ;;  %27947 = vmatmul.mubr.msk.f32.vlgmr.msra.gmra.mrb[76].mxu1 %vm58_vm11, %v34510_v51 }
 0xc34   :  { %24573 = vmatpush1.msra.mxu1 %v24312_v45  ;;  %24803 = vmatprep.subr.mxu0 %v24319_v19  ;;  %v34585_v40 = vpop.permute.xlu1 %25010 }
 0xc35   :  { %24726 = vmatprep.subr.mxu1 %v24317_v1  ;;  %24565 = vmatprep.mubr.f32.mxu0 %v34436_v37  ;;  %v34581_v8 = vpop.permute.xlu0 %25012 }
 0xc36   :  { %24488 = vmatprep.mubr.f32.mxu1 %v34436_v37  ;;  %27950 = vmatmul.mubr.msk.f32.gmra.mrb[38].mxu0 %vm58_vm11, %v34534_v44  ;;  %v25029_v16 = vsel %vm58_vm11, %v34585_v40, %v34581_v8 }
 0xc37   :  { %27948 = vmatmul.mubr.msk.f32.gmra.mrb[78].mxu1 %vm58_vm11, %v34534_v44  ;;  %24713 = vmatprep.mubr.f32.mxu0 %v34436_v37 }
 0xc38   :  { %24636 = vmatprep.mubr.f32.mxu1 %v34436_v37  ;;  %v34609_v13 = vpop.permute.xlu1 %25014 }
 0xc39   :  { %v34600_v31 = vpop.permute.xlu0 %25016  ;;  %v25030_v30 = vsel %vm58_vm11, %v34581_v8, %v34609_v13 }
 0xc3a   :  { %27953 = vmatmul.mubr.msk.f32.vlgmr.msra.gmra.mrb[24].mxu0 %vm58_vm11, %v34510_v51  ;;  %v25031_v50 = vsel %vm58_vm11, %v34609_v13, %v34600_v31 }
 0xc3b   :  { %24804 = vmatpush1.msra.mxu0 %v24318_v48  ;;  %27951 = vmatmul.mubr.msk.f32.vlgmr.msra.gmra.mrb[84].mxu1 %vm58_vm11, %v34510_v51 }
 0xc3c   :  { %24727 = vmatpush1.msra.mxu1 %v24316_v55  ;;  %25053 = vmatprep.subr.mxu0 %v25019_v39  ;;  %v34637_v33 = vpop.permute.xlu1 %25734 }
 0xc3d   :  { %28275 = vmatprep.subr.mxu1 %v34448_v41  ;;  %24719 = vmatprep.mubr.f32.mxu0 %v34436_v37  ;;  %v34624_v18 = vpop.permute.xlu0 %25736 }
 0xc3e   :  { %24642 = vmatprep.mubr.f32.mxu1 %v34436_v37  ;;  %27954 = vmatmul.mubr.msk.f32.gmra.mrb[26].mxu0 %vm58_vm11, %v34534_v44  ;;  %v34607_v53 = vpop.f32.mrb[72].mxu1  ;;  %v25765_v58 = vsel %vm22226_vm12, %v34637_v33, %v34624_v18 }
 0xc3f   :  { %27952 = vmatmul.mubr.msk.f32.gmra.mrb[86].mxu1 %vm58_vm11, %v34534_v44  ;;  %24867 = vmatprep.mubr.f32.mxu0 %v34436_v37  ;;  %v34614_v26 = vpop.f32.mrb[73].mxu1 }
 0xc40   :  { %24790 = vmatprep.mubr.f32.mxu1 %v34436_v37  ;;  %v25733_v43 = vpop.permute.xlu1 %25732 }
 0xc41   :  { %v34653_v61 = vpop.permute.xlu0 %25738  ;;  %v25764_v20 = vsel %vm22226_vm12, %v25733_v43, %v34637_v33 }
 0xc42   :  { %27957 = vmatmul.mubr.msk.f32.vlgmr.msra.gmra.mrb[28].mxu0 %vm58_vm11, %v34510_v51  ;;  %v34622_v57 = vpop.f32.mrb[74].mxu1  ;;  %v25766_v49 = vsel %vm22226_vm12, %v34624_v18, %v34653_v61 }
 0xc43   :  { %25054 = vmatpush1.msra.mxu0 %v25018_v46  ;;  %27955 = vmatmul.mubr.msk.f32.vlgmr.msra.gmra.mrb[88].mxu1 %vm58_vm11, %v34510_v51  ;;  %v34631_v29 = vpop.f32.mrb[75].mxu1 }
 0xc44   :  { %28276 = vmatpush3.msra.mxu1 %v34448_v41  ;;  %25207 = vmatprep.subr.mxu0 %v25023_v23  ;;  %v34692_v36 = vpop.permute.xlu1 %25740  ;;  %v25028_v41 = vsel %vm58_vm11, %v34555_v59, %v34585_v40 }
 0xc45   :  { %25130 = vmatprep.subr.mxu1 %v25021_v14  ;;  %24873 = vmatprep.mubr.f32.mxu0 %v34436_v37  ;;  %v34680_v3 = vpop.permute.xlu0 %25742  ;;  %v25767_v34 = vsel %vm22226_vm12, %v34653_v61, %v34692_v36 }
 0xc46   :  { %24796 = vmatprep.mubr.f32.mxu1 %v34436_v37  ;;  %27958 = vmatmul.mubr.msk.f32.gmra.mrb[30].mxu0 %vm58_vm11, %v34534_v44  ;;  %v25768_v25 = vsel %vm22226_vm12, %v34692_v36, %v34680_v3 }
 0xc47   :  { %27956 = vmatmul.mubr.msk.f32.gmra.mrb[90].mxu1 %vm58_vm11, %v34534_v44  ;;  %25117 = vmatprep.mubr.f32.mxu0 %v34436_v37 }
 0xc48   :  { %28277 = vmatprep.mubr.msk.f32.mxu1 %vm58_vm11, %v34510_v51  ;;  %v25745_v47 = vpop.permute.xlu1 %25744 }
 0xc49   :  { %v25747_v5 = vpop.permute.xlu0 %25746  ;;  %v25769_v12 = vsel %vm22226_vm12, %v34680_v3, %v25745_v47 }
 0xc4a   :  { %27963 = vmatmul.mubr.msk.f32.vlgmr.msra.gmra.mrb[32].mxu0 %vm58_vm11, %v34649_v63  ;;  %v25770_v35 = vsel %vm22226_vm12, %v25745_v47, %v25747_v5 }
 0xc4b   :  { %25208 = vmatpush1.msra.mxu0 %v25022_v7  ;;  %28278 = vmatmul.mubr.msk.f32.vlgmr.msra.gmra.mrb[92].mxu1 %vm58_vm11, %v34534_v44 }
 0xc4c   :  { %25131 = vmatpush1.msra.mxu1 %v25020_v11  ;;  %25361 = vmatprep.subr.mxu0 %v25027_v27  ;;  %v25749_v22 = vpop.permute.xlu1 %25748 }
 0xc4d   :  { %25284 = vmatprep.subr.mxu1 %v25025_v2  ;;  %25123 = vmatprep.mubr.f32.mxu0 %v34436_v37  ;;  %v25751_v28 = vpop.permute.xlu0 %25750  ;;  %v25771_v24 = vsel %vm22226_vm12, %v25747_v5, %v25749_v22 }
 0xc4e   :  { %27964 = vmatmul.mubr.msk.f32.gmra.mrb[34].mxu0 %vm58_vm11, %v34671_v4  ;;  %25194 = vmatprep.mubr.f32.mxu1 %v34436_v37  ;;  %v25772_v54 = vsel %vm22226_vm12, %v25749_v22, %v25751_v28 }
 0xc4f   :  { %27965 = vmatmul.mubr.msk.f32.vlgmr.msra.gmra.mrb[76].mxu1 %vm58_vm11, %v34649_v63  ;;  %25271 = vmatprep.mubr.f32.mxu0 %v34436_v37 }
 0xc50   :  { %25285 = vmatpush1.msra.mxu1 %v25024_v56  ;;  %25200 = vmatprep.mubr.f32.mxu1 %v34436_v37  ;;  %v25753_v32 = vpop.permute.xlu1 %25752 }
 0xc51   :  { %25438 = vmatprep.subr.mxu1 %v25029_v16  ;;  %v25755_v21 = vpop.permute.xlu0 %25754  ;;  %v25773_v62 = vsel %vm22226_vm12, %v25751_v28, %v25753_v32 }
 0xc52   :  { %27967 = vmatmul.mubr.msk.f32.vlgmr.msra.gmra.mrb[36].mxu0 %vm58_vm11, %v34649_v63  ;;  %v25774_v45 = vsel %vm22226_vm12, %v25753_v32, %v25755_v21 }
 0xc53   :  { %25362 = vmatpush1.msra.mxu0 %v25026_v52  ;;  %27966 = vmatmul.mubr.msk.f32.gmra.mrb[78].mxu1 %vm58_vm11, %v34671_v4 }
 0xc54   :  { %25515 = vmatprep.subr.mxu0 %v25031_v50  ;;  %25277 = vmatprep.mubr.f32.mxu0 %v34436_v37 }
 0xc55   :  { %25348 = vmatprep.mubr.f32.mxu1 %v34436_v37 }
 0xc56   :  { %27968 = vmatmul.mubr.msk.f32.gmra.mrb[38].mxu0 %vm58_vm11, %v34671_v4  ;;  %v25757_v17 = vpop.permute.xlu1 %25756 }
 0xc57   :  { %27969 = vmatmul.mubr.msk.f32.vlgmr.msra.gmra.mrb[84].mxu1 %vm58_vm11, %v34649_v63  ;;  %25425 = vmatprep.mubr.f32.mxu0 %v34436_v37  ;;  %v25759_v51 = vpop.permute.xlu0 %25758  ;;  %v25775_v60 = vsel %vm22226_vm12, %v25755_v21, %v25757_v17 }
 0xc58   :  { %25439 = vmatpush1.msra.mxu1 %v25028_v41  ;;  %25354 = vmatprep.mubr.f32.mxu1 %v34436_v37  ;;  %v25776_v8 = vsel %vm22226_vm12, %v25757_v17, %v25759_v51 }
 0xc59   :  { %28280 = vmatprep.subr.mxu1 %v34600_v31 }
 0xc5a   :  { %27971 = vmatmul.mubr.msk.f32.vlgmr.msra.gmra.mrb[24].mxu0 %vm58_vm11, %v34649_v63  ;;  %v34721_v10 = vpop.f32.mrb[80].mxu1  ;;  %v25761_v59 = vpop.permute.xlu1 %25760 }
 0xc5b   :  { %25516 = vmatpush1.msra.mxu0 %v25030_v30  ;;  %27970 = vmatmul.mubr.msk.f32.gmra.mrb[86].mxu1 %vm58_vm11, %v34671_v4  ;;  %v34728_v9 = vpop.f32.mrb[81].mxu1  ;;  %v25777_v19 = vsel %vm22226_vm12, %v25759_v51, %v25761_v59 }
 0xc5c   :  { %25800 = vmatprep.subr.mxu0 %v25765_v58  ;;  %25431 = vmatprep.mubr.f32.mxu0 %v34436_v37 }
 0xc5d   :  { %25502 = vmatprep.mubr.f32.mxu1 %v34436_v37 }
 0xc5e   :  { %27972 = vmatmul.mubr.msk.f32.gmra.mrb[26].mxu0 %vm58_vm11, %v34671_v4  ;;  %v34734_v42 = vpop.f32.mrb[82].mxu1 }
 0xc5f   :  { %27973 = vmatmul.mubr.msk.f32.vlgmr.msra.gmra.mrb[88].mxu1 %vm58_vm11, %v34649_v63  ;;  %25579 = vmatprep.mubr.f32.mxu0 %v34436_v37  ;;  %v34739_v6 = vpop.f32.mrb[83].mxu1 }
 0xc60   :  { %28281 = vmatpush3.msra.mxu1 %v34600_v31  ;;  %25508 = vmatprep.mubr.f32.mxu1 %v34436_v37 }
 0xc61   :  { %25877 = vmatprep.subr.mxu1 %v25767_v34 }
 0xc62   :  { %27975 = vmatmul.mubr.msk.f32.vlgmr.msra.gmra.mrb[28].mxu0 %vm58_vm11, %v34649_v63 }
 0xc63   :  { %25801 = vmatpush1.msra.mxu0 %v25764_v20  ;;  %27974 = vmatmul.mubr.msk.f32.gmra.mrb[90].mxu1 %vm58_vm11, %v34671_v4 }
 0xc64   :  { %25954 = vmatprep.subr.mxu0 %v25769_v12  ;;  %25585 = vmatprep.mubr.f32.mxu0 %v34436_v37 }
 0xc65   :  { %28282 = vmatprep.mubr.msk.f32.mxu1 %vm58_vm11, %v34649_v63 }
 0xc66   :  { %27976 = vmatmul.mubr.msk.f32.gmra.mrb[30].mxu0 %vm58_vm11, %v34671_v4 }
 0xc67   :  { %28283 = vmatmul.mubr.msk.f32.vlgmr.msra.gmra.mrb[92].mxu1 %vm58_vm11, %v34671_v4  ;;  %25864 = vmatprep.mubr.f32.mxu0 %v34436_v37 }
 0xc68   :  { %25878 = vmatpush1.msra.mxu1 %v25766_v49  ;;  %25941 = vmatprep.mubr.f32.mxu1 %v34436_v37  ;;  %v34774_v44 = vpop.permute.xlu0 %26448 }
 0xc69   :  { %26031 = vmatprep.subr.mxu1 %v25771_v24 }
 0xc6a   :  { %27981 = vmatmul.mubr.msk.f32.vlgmr.msra.gmra.mrb[32].mxu0 %vm58_vm11, %v27979_v38 }
 0xc6b   :  { %25955 = vmatpush1.msra.mxu0 %v25768_v25  ;;  %27983 = vmatmul.mubr.msk.f32.vlgmr.msra.gmra.mrb[76].mxu1 %vm58_vm11, %v27979_v38  ;;  %v34819_v14 = vpop.permute.xlu1 %26453 }
 0xc6c   :  { %26032 = vmatpush1.msra.mxu1 %v25770_v35  ;;  %26108 = vmatprep.subr.mxu0 %v25773_v62  ;;  %v25763_v0 = vpop.permute.xlu0 %25762 }
 0xc6d   :  { %26185 = vmatprep.subr.mxu1 %v25775_v60  ;;  %25870 = vmatprep.mubr.f32.mxu0 %v34436_v37  ;;  %v25778_v1 = vsel %vm22226_vm12, %v25761_v59, %v25763_v0 }
 0xc6e   :  { %27982 = vmatmul.mubr.msk.f32.gmra.mrb[34].mxu0 %vm58_vm11, %v27980_v15  ;;  %25947 = vmatprep.mubr.f32.mxu1 %v34436_v37 }
 0xc6f   :  { %27984 = vmatmul.mubr.msk.f32.gmra.mrb[78].mxu1 %vm58_vm11, %v27980_v15  ;;  %26018 = vmatprep.mubr.f32.mxu0 %v34436_v37 }
 0xc70   :  { %26095 = vmatprep.mubr.f32.mxu1 %v34436_v37 }
 0xc72   :  { %27985 = vmatmul.mubr.msk.f32.vlgmr.msra.gmra.mrb[36].mxu0 %vm58_vm11, %v27979_v38 }
 0xc73   :  { %26109 = vmatpush1.msra.mxu0 %v25772_v54  ;;  %27987 = vmatmul.mubr.msk.f32.vlgmr.msra.gmra.mrb[84].mxu1 %vm58_vm11, %v27979_v38 }
 0xc74   :  { %26186 = vmatpush1.msra.mxu1 %v25774_v45  ;;  %26262 = vmatprep.subr.mxu0 %v25777_v19 }
 0xc75   :  { %28285 = vmatprep.subr.mxu1 %v25778_v1  ;;  %26024 = vmatprep.mubr.f32.mxu0 %v34436_v37 }
 0xc76   :  { %27986 = vmatmul.mubr.msk.f32.gmra.mrb[38].mxu0 %vm58_vm11, %v27980_v15  ;;  %26101 = vmatprep.mubr.f32.mxu1 %v34436_v37 }
 0xc77   :  { %27988 = vmatmul.mubr.msk.f32.gmra.mrb[86].mxu1 %vm58_vm11, %v27980_v15  ;;  %26172 = vmatprep.mubr.f32.mxu0 %v34436_v37 }
 0xc78   :  { %26249 = vmatprep.mubr.f32.mxu1 %v34436_v37 }
 0xc7a   :  { %27989 = vmatmul.mubr.msk.f32.vlgmr.msra.gmra.mrb[24].mxu0 %vm58_vm11, %v27979_v38 }
 0xc7b   :  { %26263 = vmatpush1.msra.mxu0 %v25776_v8  ;;  %27991 = vmatmul.mubr.msk.f32.vlgmr.msra.gmra.mrb[88].mxu1 %vm58_vm11, %v27979_v38 }
 0xc7c   :  { %28286 = vmatpush3.msra.mxu1 %v25778_v1  ;;  %26178 = vmatprep.mubr.f32.mxu0 %v34436_v37 }
 0xc7d   :  { %26255 = vmatprep.mubr.f32.mxu1 %v34436_v37 }
 0xc7e   :  { %27990 = vmatmul.mubr.msk.f32.gmra.mrb[26].mxu0 %vm58_vm11, %v27980_v15 }
 0xc7f   :  { %27992 = vmatmul.mubr.msk.f32.gmra.mrb[90].mxu1 %vm58_vm11, %v27980_v15  ;;  %26326 = vmatprep.mubr.f32.mxu0 %v34436_v37 }
 0xc80   :  { %28287 = vmatprep.mubr.msk.f32.mxu1 %vm58_vm11, %v27979_v38 }
 0xc82   :  { %27993 = vmatmul.mubr.msk.f32.vlgmr.msra.gmra.mrb[28].mxu0 %vm58_vm11, %v27979_v38 }
 0xc83   :  { %28288 = vmatmul.mubr.msk.f32.vlgmr.msra.gmra.mrb[92].mxu1 %vm58_vm11, %v27980_v15  ;;  %26332 = vmatprep.mubr.f32.mxu0 %v34436_v37 }
 0xc86   :  { %27994 = vmatmul.mubr.msk.f32.gmra.mrb[30].mxu0 %vm58_vm11, %v27980_v15 }
 0xd3d   :  { %v25866_v40 = vpop.f32.mrb[32].mxu0 }
 0xd3e   :  { %v28290_v48 = vadd.f32 %v25866_v40, %v34607_v53  ;;  %v25868_v55 = vpop.f32.mrb[33].mxu0  ;;  %v25943_v39 = vpop.f32.mrb[76].mxu1 }
 0xd3f   :  { %v28291_v31 = vadd.f32 %v25868_v55, %v34614_v26  ;;  %v26458_v13 = vadd.f32 %v34774_v44, %v25943_v39  ;;  %v25945_v46 = vpop.f32.mrb[77].mxu1 }
 0xd40   :  { %v26456_v18 = vadd.f32 %v28290_v48, %v34774_v44  ;;  %v26459_v23 = vadd.f32 %v34774_v44, %v25945_v46 }
 0xd41   :  { %v26457_v37 = vadd.f32 %v28291_v31, %v34774_v44  ;;  %v34822_v33 = vmax.f32 %v26458_v13, 0.0  ;;  %v25872_v63 = vpop.f32.mrb[34].mxu0 }
 0xd42   :  { %v34824_v61 = vmax.f32 %v26456_v18, 0.0  ;;  %v34826_v53 = vmax.f32 %v26459_v23, 0.0  ;;  %v28292_v26 = vadd.f32 %v25872_v63, %v34622_v57  ;;  %v25874_v7 = vpop.f32.mrb[35].mxu0  ;;  %v25949_v43 = vpop.f32.mrb[78].mxu1 }
 0xd43   :  { %v34829_v11 = vmax.f32 %v26457_v37, 0.0  ;;  %26518 = vst [vmem:[#allocation3 + $0x18] sm:$0xff] %v34822_v33  ;;  %v28293_v27 = vadd.f32 %v25874_v7, %v34631_v29  ;;  %v26473_v4 = vadd.f32 %v34819_v14, %v25949_v43  ;;  %v25951_v2 = vpop.f32.mrb[79].mxu1  ;;  %26613 = vrot.lane.b32.xlu0 %v34822_v33, %s29005_s3 }
 0xd44   :  { %26516 = vst [vmem:[#allocation3 + $0x8] sm:$0xff] %v34824_v61  ;;  %26519 = vst [vmem:[#allocation3 + $0x20] sm:$0xff] %v34826_v53  ;;  %v26471_v57 = vadd.f32 %v28292_v26, %v34819_v14  ;;  %v26474_v3 = vadd.f32 %v34819_v14, %v25951_v2 }
 0xd45   :  { %26517 = vst [vmem:[#allocation3 + $0x10] sm:$0xff] %v34829_v11  ;;  %v26472_v56 = vadd.f32 %v28293_v27, %v34819_v14  ;;  %v26503_v16 = vmax.f32 %v26473_v4, 0.0  ;;  %v26020_v29 = vpop.f32.mrb[36].mxu0 }
 0xd46   :  { %v26501_v36 = vmax.f32 %v26471_v57, 0.0  ;;  %v26504_v52 = vmax.f32 %v26474_v3, 0.0  ;;  %v28294_v50 = vadd.f32 %v26020_v29, %v34721_v10  ;;  %v26022_v5 = vpop.f32.mrb[37].mxu0  ;;  %v26097_v47 = vpop.f32.mrb[84].mxu1 }
 0xd47   :  { %v26502_v41 = vmax.f32 %v26472_v56, 0.0  ;;  %26533 = vst [vmem:[#allocation3 + $0xa0] sm:$0x3] %v26503_v16  ;;  %v28295_v30 = vadd.f32 %v26022_v5, %v34728_v9  ;;  %v26462_v28 = vadd.f32 %v34774_v44, %v26097_v47  ;;  %v26099_v58 = vpop.f32.mrb[85].mxu1  ;;  %26615 = vrot.lane.b32.xlu0 %v34826_v53, %s29005_s3 }
 0xd48   :  { %26531 = vst [vmem:[#allocation3 + $0x90] sm:$0x3] %v26501_v36  ;;  %26534 = vst [vmem:[#allocation3 + $0xa8] sm:$0x3] %v26504_v52  ;;  %v26460_v22 = vadd.f32 %v28294_v50, %v34774_v44  ;;  %v26463_v34 = vadd.f32 %v34774_v44, %v26099_v58 }
 0xd49   :  { %26532 = vst [vmem:[#allocation3 + $0x98] sm:$0x3] %v26502_v41  ;;  %v26461_v10 = vadd.f32 %v28295_v30, %v34774_v44  ;;  %v26492_v21 = vmax.f32 %v26462_v28, 0.0  ;;  %v26026_v20 = vpop.f32.mrb[38].mxu0 }
 0xd4a   :  { %v34850_v32 = vmax.f32 %v26460_v22, 0.0  ;;  %v34852_v9 = vmax.f32 %v26463_v34, 0.0  ;;  %v28296_v12 = vadd.f32 %v26026_v20, %v34734_v42  ;;  %v26028_v51 = vpop.f32.mrb[39].mxu0  ;;  %v26103_v49 = vpop.f32.mrb[86].mxu1 }
 0xd4b   :  { %v34855_v38 = vmax.f32 %v26461_v10, 0.0  ;;  %26522 = vst [vmem:[#allocation3 + $0x38] sm:$0xff] %v26492_v21  ;;  %v28297_v24 = vadd.f32 %v26028_v51, %v34739_v6  ;;  %v26477_v17 = vadd.f32 %v34819_v14, %v26103_v49  ;;  %v26105_v25 = vpop.f32.mrb[87].mxu1  ;;  %26621 = vrot.lane.b32.xlu1 %v26492_v21, %s29005_s3 }
 0xd4c   :  { %26520 = vst [vmem:[#allocation3 + $0x28] sm:$0xff] %v34850_v32  ;;  %26523 = vst [vmem:[#allocation3 + $0x40] sm:$0xff] %v34852_v9  ;;  %v26475_v35 = vadd.f32 %v28296_v12, %v34819_v14  ;;  %v26478_v42 = vadd.f32 %v34819_v14, %v26105_v25 }
 0xd4d   :  { %26521 = vst [vmem:[#allocation3 + $0x30] sm:$0xff] %v34855_v38  ;;  %v26476_v62 = vadd.f32 %v28297_v24, %v34819_v14  ;;  %v26507_v15 = vmax.f32 %v26477_v17, 0.0  ;;  %v26174_v60 = vpop.f32.mrb[24].mxu0 }
 0xd4e   :  { %v26505_v6 = vmax.f32 %v26475_v35, 0.0  ;;  %v26508_v59 = vmax.f32 %v26478_v42, 0.0  ;;  %v26464_v0 = vadd.f32 %v34774_v44, %v26174_v60  ;;  %v26176_v54 = vpop.f32.mrb[25].mxu0  ;;  %v26251_v45 = vpop.f32.mrb[88].mxu1  ;;  %v34867_v19 = vld [vmem:[#allocation3 + $0xa0] sm:$0x3] }
 0xd4f   :  { %v26506_v1 = vmax.f32 %v26476_v62, 0.0  ;;  %26537 = vst [vmem:[#allocation3 + $0xc0] sm:$0x3] %v26507_v15  ;;  %v26465_v8 = vadd.f32 %v34774_v44, %v26176_v54  ;;  %v26466_v40 = vadd.f32 %v34774_v44, %v26251_v45  ;;  %v26253_v48 = vpop.f32.mrb[89].mxu1  ;;  %26643 = vrot.lane.b32.xlu0 %v34867_v19, %s29005_s3  ;;  %26623 = vrot.lane.b32.xlu1 %v34852_v9, %s29005_s3  ;;  %v34886_v26 = vld [vmem:[#allocation3 + $0xa8] sm:$0x3] }
 0xd50   :  { %26535 = vst [vmem:[#allocation3 + $0xb0] sm:$0x3] %v26505_v6  ;;  %26538 = vst [vmem:[#allocation3 + $0xc8] sm:$0x3] %v26508_v59  ;;  %v34875_v55 = vmax.f32 %v26464_v0, 0.0  ;;  %v26467_v39 = vadd.f32 %v34774_v44, %v26253_v48 }
 0xd51   :  { %26536 = vst [vmem:[#allocation3 + $0xb8] sm:$0x3] %v26506_v1  ;;  %v34878_v31 = vmax.f32 %v26465_v8, 0.0  ;;  %v34880_v13 = vmax.f32 %v26466_v40, 0.0  ;;  %v26180_v46 = vpop.f32.mrb[26].mxu0 }
 0xd52   :  { %26524 = vst [vmem:[#allocation3 + $0x48] sm:$0xff] %v34875_v55  ;;  %v34883_v18 = vmax.f32 %v26467_v39, 0.0  ;;  %v26479_v23 = vadd.f32 %v34819_v14, %v26180_v46  ;;  %v26182_v37 = vpop.f32.mrb[27].mxu0  ;;  %v26257_v63 = vpop.f32.mrb[90].mxu1  ;;  %v26562_v17 = vld [vmem:[#allocation3 + $0x90] sm:$0x3] }
 0xd53   :  { %26525 = vst [vmem:[#allocation3 + $0x50] sm:$0xff] %v34878_v31  ;;  %26526 = vst [vmem:[#allocation3 + $0x58] sm:$0xff] %v34880_v13  ;;  %v26480_v7 = vadd.f32 %v34819_v14, %v26182_v37  ;;  %v26481_v43 = vadd.f32 %v34819_v14, %v26257_v63  ;;  %v26259_v27 = vpop.f32.mrb[91].mxu1  ;;  %26645 = vrot.lane.b32.xlu0 %v34886_v26, %s29005_s3  ;;  %26611 = vrot.lane.b32.xlu1 %v34829_v11, %s29005_s3 }
 0xd54   :  { %26527 = vst [vmem:[#allocation3 + $0x60] sm:$0xff] %v34883_v18  ;;  %v26509_v4 = vmax.f32 %v26479_v23, 0.0  ;;  %v26482_v2 = vadd.f32 %v34819_v14, %v26259_v27  ;;  %v29010_v27 = vmov 31  }
 0xd55   :  { %v26510_v57 = vmax.f32 %v26480_v7, 0.0  ;;  %v26511_v3 = vmax.f32 %v26481_v43, 0.0  ;;  %v26328_v56 = vpop.f32.mrb[28].mxu0  ;;  %28910 = vset.pattern.permute.xlu1 %v29010_v27  ;;  %28913 = vset.pattern.permute.xlu0 %v29010_v27 }
 0xd56   :  { %26539 = vst [vmem:[#allocation3 + $0xd0] sm:$0x3] %v26509_v4  ;;  %v26512_v16 = vmax.f32 %v26482_v2, 0.0  ;;  %v26468_v29 = vadd.f32 %v34774_v44, %v26328_v56  ;;  %v26330_v36 = vpop.f32.mrb[29].mxu0  ;;  %v28289_v52 = vpop.f32.mrb[92].mxu1 }
 0xd57   :  { %26540 = vst [vmem:[#allocation3 + $0xd8] sm:$0x3] %v26510_v57  ;;  %26541 = vst [vmem:[#allocation3 + $0xe0] sm:$0x3] %v26511_v3  ;;  %v26469_v50 = vadd.f32 %v34774_v44, %v26330_v36  ;;  %v26485_v5 = vadd.f32 %v28289_v52, %v34819_v14  ;;  %v26405_v47 = vpop.f32.mrb[93].mxu1  ;;  %26609 = vrot.lane.b32.xlu0 %v34824_v61, %s29005_s3 }
 0xd58   :  { %v34903_v41 = vld [vmem:[#allocation3 + $0xc8] sm:$0x3]  ;;  %26542 = vst [vmem:[#allocation3 + $0xe8] sm:$0x3] %v26512_v16  ;;  %v34905_v30 = vmax.f32 %v26468_v29, 0.0  ;;  %v26470_v28 = vadd.f32 %v34774_v44, %v26405_v47 }
 0xd59   :  { %26653 = vrot.lane.b32.xlu1 %v34903_v41, %s29005_s3  ;;  %v26499_v58 = vmax.f32 %v26469_v50, 0.0  ;;  %v26515_v22 = vmax.f32 %v26485_v5, 0.0  ;;  %v26334_v34 = vpop.f32.mrb[30].mxu0  ;;  %v34912_v12 = vld [vmem:[#allocation3 + $0xc0] sm:$0x3] }
 0xd5a   :  { %26528 = vst [vmem:[#allocation3 + $0x68] sm:$0xff] %v34905_v30  ;;  %v26500_v10 = vmax.f32 %v26470_v28, 0.0  ;;  %v26483_v21 = vadd.f32 %v34819_v14, %v26334_v34  ;;  %v26336_v20 = vpop.f32.mrb[31].mxu0  ;;  %v34917_v44 = vld [vmem:[#allocation3 + $0x98] sm:$0x3] }
 0xd5b   :  { %26529 = vst [vmem:[#allocation3 + $0x70] sm:$0xff] %v26499_v58  ;;  %26546 = vst.msk [vmem:[#allocation3 + $0x100] sm:$0x3] %vm26545_vm14, %v26515_v22  ;;  %v26484_v51 = vadd.f32 %v34819_v14, %v26336_v20  ;;  %26651 = vrot.lane.b32.xlu0 %v34912_v12, %s29005_s3  ;;  %v34935_v25 = vld [vmem:[#allocation3 + $0xb8] sm:$0x3] }
 0xd5c   :  { %26530 = vst.msk [vmem:[#allocation3 + $0x78] sm:$0xff] %vm58_vm11, %v26500_v10  ;;  %v26513_v49 = vmax.f32 %v26483_v21, 0.0  ;;  %v34945_v42 = vld [vmem:[#allocation3 + $0xb0] sm:$0x3] }
 0xd5d   :  { %26641 = vrot.lane.b32.xlu1 %v34917_v44, %s29005_s3  ;;  %v26514_v24 = vmax.f32 %v26484_v51, 0.0  ;;  %v34949_v62 = vld [vmem:[#allocation3 + $0xd0] sm:$0x3] }
 0xd5e   :  { %26543 = vst [vmem:[#allocation3 + $0xf0] sm:$0x3] %v26513_v49  ;;  %v34929_v14 = vld [vmem:[#allocation3 + $0xe0] sm:$0x3]  ;;  %v34957_v15 = vld [vmem:[#allocation3 + $0xd8] sm:$0x3] }
 0xd5f   :  { %26544 = vst [vmem:[#allocation3 + $0xf8] sm:$0x3] %v26514_v24  ;;  %26639 = vrot.lane.b32.xlu0 %v26562_v17, %s29005_s3  ;;  %v34939_v35 = vld [vmem:[#allocation3 + $0xe8] sm:$0x3] }
 0xd61   :  { %26631 = vrot.lane.b32.xlu1 %v34883_v18, %s29005_s3 }
 0xd63   :  { %26629 = vrot.lane.b32.xlu0 %v34880_v13, %s29005_s3 }
 0xd65   :  { %26617 = vrot.lane.b32.xlu1 %v34850_v32, %s29005_s3  ;;  %v34966_v6 = vld [vmem:[#allocation3 + $0xf0] sm:$0x3] }
 0xd66   :  { %v34961_v60 = vld [vmem:[#allocation3 + $0xf8] sm:$0x3] }
 0xd67   :  { %26659 = vrot.lane.b32.xlu0 %v34929_v14, %s29005_s3 }
 0xd69   :  { %26619 = vrot.lane.b32.xlu1 %v34855_v38, %s29005_s3 }
 0xd6b   :  { %26649 = vrot.lane.b32.xlu0 %v34935_v25, %s29005_s3 }
 0xd6d   :  { %26661 = vrot.lane.b32.xlu1 %v34939_v35, %s29005_s3 }
 0xd6f   :  { %26625 = vrot.lane.b32.xlu0 %v34875_v55, %s29005_s3 }
 0xd71   :  { %26647 = vrot.lane.b32.xlu1 %v34945_v42, %s29005_s3 }
 0xd73   :  { %26655 = vrot.lane.b32.xlu0 %v34949_v62, %s29005_s3 }
 0xd75   :  { %26627 = vrot.lane.b32.xlu1 %v34878_v31, %s29005_s3 }
 0xd77   :  { %26633 = vrot.lane.b32.xlu0 %v34905_v30, %s29005_s3 }
 0xd79   :  { %26657 = vrot.lane.b32.xlu1 %v34957_v15, %s29005_s3 }
 0xd7b   :  { %26665 = vrot.lane.b32.xlu0 %v34961_v60, %s29005_s3 }
 0xd7d   :  { %26635 = vrot.lane.b32.xlu1 %v26499_v58, %s29005_s3 }
 0xd81   :  { %26663 = vrot.lane.b32.xlu1 %v34966_v6, %s29005_s3 }
 0xdb5   :  { %v26614_v59 = vpop.permute.xlu0 %26613 }
 0xdb9   :  { %v26616_v0 = vpop.permute.xlu0 %26615 }
 0xdba   :  { %v26671_v54 = vsel %vm20796_vm7, %v26614_v59, %v26616_v0 }
 0xdbb   :  { %v34972_v45 = vmax.f32 %v34822_v33, %v26671_v54 }
 0xdbd   :  { %v34974_v1 = vpop.permute.xlu1 %26621  ;;  %26803 = vrot.lane.b32.xlu1 %v34972_v45, %s29009_s20 }
 0xdc1   :  { %v26644_v8 = vpop.permute.xlu0 %26643  ;;  %v34978_v40 = vpop.permute.xlu1 %26623 }
 0xdc5   :  { %v26646_v48 = vpop.permute.xlu0 %26645  ;;  %v26612_v39 = vpop.permute.xlu1 %26611 }
 0xdc6   :  { %v26685_v46 = vsel %vm20796_vm7, %v26644_v8, %v26646_v48  ;;  %v26670_v23 = vsel %vm20796_vm7, %v26612_v39, %v26614_v59 }
 0xdc7   :  { %v34983_v37 = vmax.f32 %v34867_v19, %v26685_v46  ;;  %v34986_v33 = vmax.f32 %v34829_v11, %v26670_v23 }
 0xdc9   :  { %26833 = vrot.lane.b32.xlu1 %v34983_v37, %s29009_s20  ;;  %v26610_v63 = vpop.permute.xlu0 %26609  ;;  %26801 = vrot.lane.b32.xlu0 %v34986_v33, %s29009_s20 }
 0xdca   :  { %v26669_v7 = vsel %vm20796_vm7, %v26610_v63, %v26612_v39 }
 0xdcb   :  { %v34993_v43 = vpop.permute.xlu1 %26653  ;;  %v34998_v19 = vmax.f32 %v34824_v61, %v26669_v7 }
 0xdcd   :  { %26799 = vrot.lane.b32.xlu1 %v34998_v19, %s29009_s20  ;;  %v35002_v11 = vpop.permute.xlu0 %26651 }
 0xdcf   :  { %v26642_v4 = vpop.permute.xlu1 %26641 }
 0xdd0   :  { %v26684_v2 = vsel %vm20796_vm7, %v26642_v4, %v26644_v8 }
 0xdd1   :  { %v26743_v57 = vmax.f32 %v34917_v44, %v26684_v2  ;;  %v26640_v3 = vpop.permute.xlu0 %26639 }
 0xdd2   :  { %v26683_v56 = vsel %vm20796_vm7, %v26640_v3, %v26642_v4 }
 0xdd3   :  { %v26632_v16 = vpop.permute.xlu1 %26631  ;;  %26831 = vrot.lane.b32.xlu0 %v26743_v57, %s29009_s20  ;;  %v35008_v29 = vmax.f32 %v26562_v17, %v26683_v56 }
 0xdd5   :  { %26829 = vrot.lane.b32.xlu1 %v35008_v29, %s29009_s20  ;;  %v26630_v61 = vpop.permute.xlu0 %26629 }
 0xdd6   :  { %v26679_v36 = vsel %vm20796_vm7, %v26630_v61, %v26632_v16 }
 0xdd7   :  { %v26618_v52 = vpop.permute.xlu1 %26617  ;;  %v35014_v50 = vmax.f32 %v34880_v13, %v26679_v36 }
 0xdd8   :  { %v26672_v5 = vsel %vm20796_vm7, %v26616_v0, %v26618_v52 }
 0xdd9   :  { %26819 = vrot.lane.b32.xlu0 %v35014_v50, %s29009_s20  ;;  %v26660_v47 = vpop.permute.xlu0 %26659  ;;  %v35020_v58 = vmax.f32 %v34826_v53, %v26672_v5 }
 0xddb   :  { %v26620_v28 = vpop.permute.xlu1 %26619 }
 0xddc   :  { %v26673_v22 = vsel %vm20796_vm7, %v26618_v52, %v26620_v28  ;;  %v26674_v10 = vsel %vm20796_vm7, %v26620_v28, %v34974_v1 }
 0xddd   :  { %v35024_v34 = vmax.f32 %v34850_v32, %v26673_v22  ;;  %26805 = vrot.lane.b32.xlu0 %v35020_v58, %s29009_s20  ;;  %v26650_v13 = vpop.permute.xlu0 %26649  ;;  %v35034_v53 = vmax.f32 %v34855_v38, %v26674_v10 }
 0xddf   :  { %v26662_v21 = vpop.permute.xlu1 %26661  ;;  %26807 = vrot.lane.b32.xlu1 %v35024_v34, %s29009_s20 }
 0xde0   :  { %v26693_v20 = vsel %vm20796_vm7, %v26660_v47, %v26662_v21 }
 0xde1   :  { %v26752_v51 = vmax.f32 %v34929_v14, %v26693_v20  ;;  %v26626_v32 = vpop.permute.xlu0 %26625 }
 0xde2   :  { %v26676_v44 = vsel %vm20796_vm7, %v34978_v40, %v26626_v32 }
 0xde3   :  { %v26648_v49 = vpop.permute.xlu1 %26647  ;;  %26809 = vrot.lane.b32.xlu1 %v35034_v53, %s29009_s20  ;;  %26849 = vrot.lane.b32.xlu0 %v26752_v51, %s29009_s20  ;;  %v35043_v24 = vmax.f32 %v34852_v9, %v26676_v44 }
 0xde4   :  { %v26686_v17 = vsel %vm20796_vm7, %v26646_v48, %v26648_v49  ;;  %v26687_v14 = vsel %vm20796_vm7, %v26648_v49, %v26650_v13 }
 0xde5   :  { %v35047_v38 = vmax.f32 %v34886_v26, %v26686_v17  ;;  %v26656_v59 = vpop.permute.xlu0 %26655  ;;  %v35056_v9 = vmax.f32 %v34945_v42, %v26687_v14  ;;  %v26688_v26 = vsel %vm20796_vm7, %v26650_v13, %v35002_v11 }
 0xde6   :  { %v26690_v48 = vsel %vm20796_vm7, %v34993_v43, %v26656_v59  ;;  %v26747_v46 = vmax.f32 %v34935_v25, %v26688_v26 }
 0xde7   :  { %v26628_v0 = vpop.permute.xlu1 %26627  ;;  %26835 = vrot.lane.b32.xlu0 %v35047_v38, %s29009_s20  ;;  %26813 = vrot.lane.b32.xlu1 %v35043_v24, %s29009_s20  ;;  %v35071_v42 = vmax.f32 %v34903_v41, %v26690_v48 }
 0xde8   :  { %v26678_v54 = vsel %vm20796_vm7, %v26628_v0, %v26630_v61 }
 0xde9   :  { %v35059_v8 = vmax.f32 %v34878_v31, %v26678_v54  ;;  %v26677_v31 = vsel %vm20796_vm7, %v26626_v32, %v26628_v0  ;;  %v26634_v4 = vpop.permute.xlu0 %26633 }
 0xdea   :  { %v35081_v7 = vmax.f32 %v34875_v55, %v26677_v31 }
 0xdeb   :  { %v26658_v39 = vpop.permute.xlu1 %26657  ;;  %26837 = vrot.lane.b32.xlu0 %v35056_v9, %s29009_s20  ;;  %26817 = vrot.lane.b32.xlu1 %v35059_v8, %s29009_s20 }
 0xdec   :  { %v26692_v23 = vsel %vm20796_vm7, %v26658_v39, %v26660_v47  ;;  %v26691_v41 = vsel %vm20796_vm7, %v26656_v59, %v26658_v39  ;;  %v29013_v39 = vmov 23  }
 0xded   :  { %v35084_v25 = vmax.f32 %v34957_v15, %v26692_v23  ;;  %v26750_v3 = vmax.f32 %v34949_v62, %v26691_v41  ;;  %v26680_v15 = vsel %vm20796_vm7, %v26632_v16, %v26634_v4  ;;  %v35105_v36 = vpop.permute.xlu0 %26665  ;;  %v29014_v41 = vmov 7  }
 0xdee   :  { %v35103_v61 = vmax.f32 %v34883_v18, %v26680_v15 }
 0xdef   :  { %v35075_v63 = vpop.permute.xlu1 %26635  ;;  %26839 = vrot.lane.b32.xlu0 %v26747_v46, %s29009_s20  ;;  %26843 = vrot.lane.b32.xlu1 %v35071_v42, %s29009_s20 }
 0xdf0   :  { %v26681_v2 = vsel %vm20796_vm7, %v26634_v4, %v35075_v63 }
 0xdf1   :  { %v35095_v55 = vmax.f32 %v34905_v30, %v26681_v2 }
 0xdf3   :  { %v26664_v57 = vpop.permute.xlu1 %26663  ;;  %26815 = vrot.lane.b32.xlu0 %v35081_v7, %s29009_s20  ;;  %26847 = vrot.lane.b32.xlu1 %v35084_v25, %s29009_s20 }
 0xdf4   :  { %v26694_v56 = vsel %vm20796_vm7, %v26662_v21, %v26664_v57  ;;  %v26695_v30 = vsel %vm20796_vm7, %v26664_v57, %v35105_v36 }
 0xdf5   :  { %v35108_v52 = vmax.f32 %v34939_v35, %v26694_v56  ;;  %v26754_v62 = vmax.f32 %v34966_v6, %v26695_v30  ;;  %v29011_v6 = vmov 39  }
 0xdf7   :  { %26845 = vrot.lane.b32.xlu0 %v26750_v3, %s29009_s20  ;;  %26823 = vrot.lane.b32.xlu1 %v35095_v55, %s29009_s20 }
 0xdfb   :  { %26851 = vrot.lane.b32.xlu1 %v35108_v52, %s29009_s20  ;;  %26821 = vrot.lane.b32.xlu0 %v35103_v61, %s29009_s20 }
 0xdff   :  { %26853 = vrot.lane.b32.xlu0 %v26754_v62, %s29009_s20 }
 0xe2f   :  { %v26804_v18 = vpop.permute.xlu1 %26803 }
 0xe3b   :  { %v26834_v16 = vpop.permute.xlu1 %26833  ;;  %v26802_v5 = vpop.permute.xlu0 %26801 }
 0xe3c   :  { %v26860_v47 = vsel %vm58_vm11, %v26802_v5, %v26804_v18 }
 0xe3d   :  { %v26918_v35 = vmax.f32 %v34986_v33, %v26860_v47  ;;  %v29012_v33 = vmov 47  }
 0xe3f   :  { %v26800_v28 = vpop.permute.xlu1 %26799  ;;  %26948 = vst [vmem:[#allocation2 + $0x10] sm:$0xff] %v26918_v35 }
 0xe40   :  { %v26859_v22 = vsel %vm58_vm11, %v26800_v28, %v26802_v5 }
 0xe41   :  { %v26917_v10 = vmax.f32 %v34998_v19, %v26859_v22 }
 0xe43   :  { %26947 = vst [vmem:[#allocation2 + $0x8] sm:$0xff] %v26917_v10  ;;  %26984 = vperm.xlu1 %28910, %v26917_v10  }
 0xe45   :  { %v26832_v13 = vpop.permute.xlu0 %26831 }
 0xe47   :  { %v26830_v21 = vpop.permute.xlu1 %26829  ;;  %28911 = vset.pattern.permute.xlu1 %v29011_v6 }
 0xe48   :  { %v26873_v20 = vsel %vm58_vm11, %v26830_v21, %v26832_v13  ;;  %27000 = vperm.xlu1 %28911, %v26917_v10  }
 0xe49   :  { %v26932_v51 = vmax.f32 %v35008_v29, %v26873_v20 }
 0xe4b   :  { %26962 = vst [vmem:[#allocation2 + $0x90] sm:$0x3] %v26932_v51  ;;  %v35124_v32 = vpop.permute.xlu0 %26819 }
 0xe4c   :  { %28912 = vset.pattern.permute.xlu1 %v29012_v33 }
 0xe4d   :  { %27015 = vperm.xlu1 %28912, %v26917_v10  }
 0xe4f   :  { %v26806_v44 = vpop.permute.xlu0 %26805 }
 0xe50   :  { %v26861_v19 = vsel %vm58_vm11, %v26804_v18, %v26806_v44 }
 0xe51   :  { %v26808_v49 = vpop.permute.xlu1 %26807  ;;  %v26919_v17 = vmax.f32 %v34972_v45, %v26861_v19  ;;  %28914 = vset.pattern.permute.xlu1 %v29011_v6 }
 0xe52   :  { %v26862_v14 = vsel %vm58_vm11, %v26806_v44, %v26808_v49  ;;  %v26979_v0 = vld [vmem:[#allocation2 + $0x90] sm:$0x3] }
 0xe53   :  { %v26920_v59 = vmax.f32 %v35020_v58, %v26862_v14  ;;  %26949 = vst [vmem:[#allocation2 + $0x18] sm:$0xff] %v26919_v17  ;;  %26989 = vperm.xlu0 %28913, %v26979_v0   ;;  %27004 = vperm.xlu1 %28914, %v26979_v0  }
 0xe55   :  { %26950 = vst [vmem:[#allocation2 + $0x20] sm:$0xff] %v26920_v59  ;;  %v35130_v29 = vpop.permute.xlu1 %26809  ;;  %v26850_v54 = vpop.permute.xlu0 %26849 }
 0xe56   :  { %v26863_v26 = vsel %vm58_vm11, %v26808_v49, %v35130_v29 }
 0xe57   :  { %v26921_v48 = vmax.f32 %v35024_v34, %v26863_v26  ;;  %28917 = vset.pattern.permute.xlu0 %v29013_v39  ;;  %28915 = vset.pattern.permute.xlu1 %v29012_v33  ;;  %v29015_v34 = vmov 15   ;;  %v29017_v33 = vmov 35   ;;  %v35180_v26 = vld [vmem:[#allocation3 + $0x78] sm:$0xff] }
 0xe58   :  { %27049 = vperm.xlu0 %28917, %v26919_v17   ;;  %27019 = vperm.xlu1 %28915, %v26979_v0  }
 0xe59   :  { %26951 = vst [vmem:[#allocation2 + $0x28] sm:$0xff] %v26921_v48  ;;  %v35136_v45 = vpop.permute.xlu1 %26813  ;;  %v26836_v58 = vpop.permute.xlu0 %26835 }
 0xe5a   :  { %v26875_v46 = vsel %vm58_vm11, %v26834_v16, %v26836_v58 }
 0xe5b   :  { %v26934_v31 = vmax.f32 %v34983_v37, %v26875_v46  ;;  %v29023_v46 = vmov 3  }
 0xe5c   :  { %28920 = vset.pattern.permute.xlu0 %v29014_v41  ;;  %28916 = vset.pattern.permute.xlu1 %v29015_v34 }
 0xe5d   :  { %26964 = vst [vmem:[#allocation2 + $0xa0] sm:$0x3] %v26934_v31  ;;  %v26818_v23 = vpop.permute.xlu1 %26817  ;;  %v26838_v4 = vpop.permute.xlu0 %26837  ;;  %27101 = vperm.xlu0 %28920, %v26921_v48   ;;  %27033 = vperm.xlu1 %28916, %v26919_v17  }
 0xe5e   :  { %v26868_v2 = vsel %vm58_vm11, %v26818_v23, %v35124_v32  ;;  %v26876_v57 = vsel %vm58_vm11, %v26836_v58, %v26838_v4  ;;  %v26578_v58 = vld [vmem:[#allocation3 + $0x108] sm:$0x3] }
 0xe5f   :  { %v35146_v3 = vmax.f32 %v35059_v8, %v26868_v2  ;;  %v26935_v37 = vmax.f32 %v35047_v38, %v26876_v57 }
 0xe61   :  { %26956 = vst [vmem:[#allocation2 + $0x50] sm:$0xff] %v35146_v3  ;;  %26965 = vst [vmem:[#allocation2 + $0xa8] sm:$0x3] %v26935_v37  ;;  %v26844_v15 = vpop.permute.xlu1 %26843  ;;  %v26840_v56 = vpop.permute.xlu0 %26839  ;;  %28922 = vset.pattern.permute.xlu0 %v29015_v34  ;;  %28918 = vset.pattern.permute.xlu1 %v29010_v27  ;;  %v35194_v37 = vld [vmem:[%s35383_s14 + $0x10] sm:$0xff] }
 0xe62   :  { %v26877_v30 = vsel %vm58_vm11, %v26838_v4, %v26840_v56  ;;  %27064 = vperm.xlu1 %28918, %v26919_v17   ;;  %v29018_v17 = vmov 51   ;;  %v35199_v56 = vld [vmem:[%s35383_s14] sm:$0xff] }
 0xe63   :  { %v26936_v62 = vmax.f32 %v35056_v9, %v26877_v30  ;;  %v29016_v9 = vmov 127   ;;  %v35204_v30 = vld [vmem:[%s35383_s14 + $0x20] sm:$0xff] }
 0xe64   :  { %v27027_v18 = vld [vmem:[#allocation2 + $0xa0] sm:$0x3] }
 0xe65   :  { %26966 = vst [vmem:[#allocation2 + $0xb0] sm:$0x3] %v26936_v62  ;;  %v26848_v8 = vpop.permute.xlu1 %26847  ;;  %v26816_v16 = vpop.permute.xlu0 %26815  ;;  %27038 = vperm.xlu0 %28922, %v27027_v18  }
 0xe66   :  { %v26882_v38 = vsel %vm58_vm11, %v26848_v8, %v26850_v54  ;;  %v26866_v5 = vsel %vm58_vm11, %v35136_v45, %v26816_v16  ;;  %v26867_v47 = vsel %vm58_vm11, %v26816_v16, %v26818_v23  ;;  %28919 = vset.pattern.permute.xlu1 %v29016_v9  ;;  %v29022_v54 = vmov 19   ;;  %v35210_v8 = vld [vmem:[%s35383_s14 + $0x30] sm:$0xff] }
 0xe67   :  { %v26941_v35 = vmax.f32 %v35084_v25, %v26882_v38  ;;  %v26924_v28 = vmax.f32 %v35043_v24, %v26866_v5  ;;  %v26925_v22 = vmax.f32 %v35081_v7, %v26867_v47  ;;  %27082 = vperm.xlu1 %28919, %v26920_v59   ;;  %v26981_v5 = vld [vmem:[%s35383_s14 + $0x8] sm:$0x3]  ;;  %v27998_v47 = vld [vmem:[%s35383_s14 + $0x18] sm:$0x3] }
 0xe68   :  { %v27076_v10 = vld [vmem:[#allocation2 + $0xa8] sm:$0x3] }
 0xe69   :  { %26971 = vst [vmem:[#allocation2 + $0xd8] sm:$0x3] %v26941_v35  ;;  %26954 = vst [vmem:[#allocation2 + $0x40] sm:$0xff] %v26924_v28  ;;  %v35161_v13 = vpop.permute.xlu1 %26823  ;;  %v26846_v21 = vpop.permute.xlu0 %26845  ;;  %28925 = vset.pattern.permute.xlu0 %v29016_v9  ;;  %v28000_v9 = vld [vmem:[%s35383_s14 + $0x28] sm:$0x3] }
 0xe6a   :  { %26955 = vst [vmem:[#allocation2 + $0x48] sm:$0xff] %v26925_v22  ;;  %v26880_v6 = vsel %vm58_vm11, %v26844_v15, %v26846_v21  ;;  %27087 = vperm.xlu0 %28925, %v27076_v10  }
 0xe6b   :  { %v26939_v25 = vmax.f32 %v35071_v42, %v26880_v6  ;;  %28921 = vset.pattern.permute.xlu1 %v29015_v34 }
 0xe6c   :  { %27117 = vperm.xlu1 %28921, %v26921_v48   ;;  %v35185_v48 = vld [vmem:[#allocation3 + $0x100] sm:$0x3] }
 0xe6d   :  { %26969 = vst [vmem:[#allocation2 + $0xc8] sm:$0x3] %v26939_v25  ;;  %v26852_v24 = vpop.permute.xlu1 %26851  ;;  %v26822_v7 = vpop.permute.xlu0 %26821 }
 0xe6e   :  { %v26869_v20 = vsel %vm58_vm11, %v35124_v32, %v26822_v7  ;;  %v26870_v51 = vsel %vm58_vm11, %v26822_v7, %v35161_v13  ;;  %28928 = vset.pattern.permute.xlu0 %v29017_v33  ;;  %v28002_v7 = vld [vmem:[%s35383_s14 + $0x38] sm:$0x3] }
 0xe6f   :  { %v26927_v44 = vmax.f32 %v35014_v50, %v26869_v20  ;;  %v26928_v19 = vmax.f32 %v35103_v61, %v26870_v51  ;;  %27148 = vperm.xlu0 %28928, %v26924_v28   ;;  %v27095_v50 = vld [vmem:[#allocation2 + $0xb0] sm:$0x3]  ;;  %v29019_v61 = vmov 43  }
 0xe70   :  { %28923 = vset.pattern.permute.xlu1 %v29013_v39  ;;  %v27189_v59 = vld [vmem:[#allocation2 + $0xd8] sm:$0x3]  ;;  %v26577_v39 = vld [vmem:[#allocation3 + $0x80] sm:$0xff] }
 0xe71   :  { %26957 = vst [vmem:[#allocation2 + $0x58] sm:$0xff] %v26927_v44  ;;  %26958 = vst [vmem:[#allocation2 + $0x60] sm:$0xff] %v26928_v19  ;;  %v26854_v42 = vpop.permute.xlu0 %26853  ;;  %27053 = vperm.xlu1 %28923, %v27027_v18   ;;  %v35235_v44 = vld [vmem:[%s35383_s14 + $0x50] sm:$0xff] }
 0xe72   :  { %v26884_v49 = vsel %vm58_vm11, %v26852_v24, %v26854_v42  ;;  %v35227_v24 = vld [vmem:[%s35383_s14 + $0x40] sm:$0xff] }
 0xe73   :  { %v26943_v32 = vmax.f32 %v35108_v52, %v26884_v49  ;;  %28930 = vset.pattern.permute.xlu0 %v29018_v17  ;;  %v29020_v52 = vmov 27  }
 0xe74   :  { %27177 = vperm.xlu0 %28930, %v26924_v28   ;;  %v27143_v14 = vld [vmem:[#allocation2 + $0xc8] sm:$0x3] }
 0xe75   :  { %26973 = vst [vmem:[#allocation2 + $0xe8] sm:$0x3] %v26943_v32  ;;  %28924 = vset.pattern.permute.xlu1 %v29010_v27  ;;  %v29021_v27 = vmov 11  }
 0xe76   :  { %27068 = vperm.xlu1 %28924, %v27027_v18  }
 0xe78   :  { %28933 = vset.pattern.permute.xlu0 %v29017_v33 }
 0xe79   :  { %27223 = vperm.xlu0 %28933, %v35146_v3  }
 0xe7a   :  { %28926 = vset.pattern.permute.xlu1 %v29014_v41 }
 0xe7b   :  { %27106 = vperm.xlu1 %28926, %v27095_v50  }
 0xe7c   :  { %v27235_v0 = vld [vmem:[#allocation2 + $0xe8] sm:$0x3] }
 0xe7d   :  { %28935 = vset.pattern.permute.xlu0 %v29019_v61 }
 0xe7e   :  { %27167 = vperm.xlu0 %28935, %v27143_v14  }
 0xe7f   :  { %28927 = vset.pattern.permute.xlu1 %v29015_v34 }
 0xe80   :  { %27121 = vperm.xlu1 %28927, %v27095_v50   ;;  %v35244_v50 = vld [vmem:[%s35383_s14 + $0x60] sm:$0xff] }
 0xe82   :  { %28938 = vset.pattern.permute.xlu0 %v29020_v52 }
 0xe83   :  { %27213 = vperm.xlu0 %28938, %v27189_v59  }
 0xe84   :  { %28929 = vset.pattern.permute.xlu1 %v29019_v61 }
 0xe85   :  { %27163 = vperm.xlu1 %28929, %v26924_v28  }
 0xe87   :  { %28943 = vset.pattern.permute.xlu0 %v29021_v27 }
 0xe88   :  { %27259 = vperm.xlu0 %28943, %v27235_v0  }
 0xe89   :  { %28931 = vset.pattern.permute.xlu1 %v29022_v54 }
 0xe8a   :  { %27194 = vperm.xlu1 %28931, %v35146_v3  }
 0xe8c   :  { %28944 = vset.pattern.permute.xlu0 %v29022_v54 }
 0xe8d   :  { %27269 = vperm.xlu0 %28944, %v26928_v19  }
 0xe8e   :  { %28932 = vset.pattern.permute.xlu1 %v29020_v52 }
 0xe8f   :  { %27209 = vperm.xlu1 %28932, %v35146_v3  }
 0xe91   :  { %26637 = vrot.lane.b32.xlu0 %v35180_v26, %s29005_s3 }
 0xe93   :  { %28934 = vset.pattern.permute.xlu1 %v29017_v33 }
 0xe94   :  { %27153 = vperm.xlu1 %28934, %v27143_v14  }
 0xe95   :  { %26667 = vrot.lane.b32.xlu0 %v35185_v48, %s29005_s3 }
 0xe98   :  { %28936 = vset.pattern.permute.xlu1 %v29018_v17 }
 0xe99   :  { %26759 = vrot.lane.b32.xlu0 %v26577_v39, %s29005_s3  ;;  %27181 = vperm.xlu1 %28936, %v27143_v14  }
 0xe9d   :  { %26761 = vrot.lane.b32.xlu0 %v26578_v58, %s29005_s3  ;;  %28937 = vset.pattern.permute.xlu1 %v29022_v54 }
 0xe9e   :  { %27199 = vperm.xlu1 %28937, %v27189_v59  }
 0xea2   :  { %28939 = vset.pattern.permute.xlu1 %v29017_v33 }
 0xea3   :  { %27227 = vperm.xlu1 %28939, %v27189_v59  }
 0xea7   :  { %28940 = vset.pattern.permute.xlu1 %v29023_v46 }
 0xea8   :  { %27240 = vperm.xlu1 %28940, %v26928_v19  }
 0xeac   :  { %28941 = vset.pattern.permute.xlu1 %v29021_v27  ;;  %v28006_v27 = vld [vmem:[%s35383_s14 + $0x58] sm:$0x3] }
 0xead   :  { %27255 = vperm.xlu1 %28941, %v26928_v19   ;;  %v28004_v19 = vld [vmem:[%s35383_s14 + $0x48] sm:$0x3] }
 0xeb1   :  { %28942 = vset.pattern.permute.xlu1 %v29023_v46 }
 0xeb2   :  { %27245 = vperm.xlu1 %28942, %v27235_v0  }
 0xeb6   :  { %28945 = vset.pattern.permute.xlu1 %v29022_v54 }
 0xeb7   :  { %27273 = vperm.xlu1 %28945, %v27235_v0  }
 0xec2   :  { %v26985_v31 = vpop.permute.xlu1 %26984 }
 0xec3   :  { %v26992_v16 = vmul.f32 %v26985_v31, %v35199_v56 }
 0xec7   :  { %v27001_v23 = vpop.permute.xlu1 %27000 }
 0xec8   :  { %v27007_v62 = vmul.f32 %v35194_v37, %v27001_v23  ;;  %v35254_v23 = vld [vmem:[%s35383_s14 + $0x70] sm:$0xff] }
 0xeca   :  { %v27009_v28 = vadd.f32 %v27007_v62, %v26992_v16 }
 0xecc   :  { %v27016_v4 = vpop.permute.xlu1 %27015 }
 0xecd   :  { %v27022_v38 = vmul.f32 %v35204_v30, %v27016_v4  ;;  %v28008_v4 = vld [vmem:[%s35383_s14 + $0x68] sm:$0x3] }
 0xecf   :  { %v27024_v6 = vadd.f32 %v27022_v38, %v27009_v28  ;;  %v28012_v28 = vld [vmem:[%s35383_s14 + $0x88] sm:$0x3] }
 0xed2   :  { %v27005_v41 = vpop.permute.xlu1 %27004  ;;  %v26990_v57 = vpop.permute.xlu0 %26989 }
 0xed3   :  { %v26993_v21 = vmul.f32 %v26990_v57, %v26981_v5  ;;  %v27008_v25 = vmul.f32 %v27998_v47, %v27005_v41  ;;  %v35262_v57 = vld [vmem:[%s35383_s14 + $0x80] sm:$0xff] }
 0xed5   :  { %v27010_v42 = vadd.f32 %v27008_v25, %v26993_v21 }
 0xed7   :  { %v27020_v34 = vpop.permute.xlu1 %27019  ;;  %v27050_v15 = vpop.permute.xlu0 %27049 }
 0xed8   :  { %v27023_v51 = vmul.f32 %v28000_v9, %v27020_v34  ;;  %v27056_v49 = vmul.f32 %v35227_v24, %v27050_v15 }
 0xeda   :  { %v27025_v61 = vadd.f32 %v27023_v51, %v27010_v42 }
 0xedc   :  { %v27034_v2 = vpop.permute.xlu1 %27033  ;;  %v27102_v35 = vpop.permute.xlu0 %27101 }
 0xedd   :  { %v27041_v22 = vmul.f32 %v35210_v8, %v27034_v2  ;;  %v27109_v15 = vmul.f32 %v35254_v23, %v27102_v35 }
 0xedf   :  { %v27043_v33 = vadd.f32 %v27041_v22, %v27024_v6 }
 0xee1   :  { %v27065_v3 = vpop.permute.xlu1 %27064  ;;  %v27058_v14 = vadd.f32 %v27056_v49, %v27043_v33 }
 0xee2   :  { %v27071_v52 = vmul.f32 %v35235_v44, %v27065_v3  ;;  %v28010_v3 = vld [vmem:[%s35383_s14 + $0x78] sm:$0x3] }
 0xee4   :  { %v27039_v20 = vpop.permute.xlu0 %27038  ;;  %v27073_v58 = vadd.f32 %v27071_v52, %v27058_v14  ;;  %v35277_v14 = vld [vmem:[%s35384_s15] sm:$0x1] }
 0xee5   :  { %v27042_v32 = vmul.f32 %v28002_v7, %v27039_v20 }
 0xee6   :  { %v27083_v18 = vpop.permute.xlu1 %27082 }
 0xee7   :  { %v27044_v0 = vadd.f32 %v27042_v32, %v27025_v61  ;;  %v27090_v54 = vmul.f32 %v35244_v50, %v27083_v18 }
 0xee9   :  { %v27088_v41 = vpop.permute.xlu0 %27087  ;;  %v27092_v34 = vadd.f32 %v27090_v54, %v27073_v58 }
 0xeea   :  { %v27091_v62 = vmul.f32 %v28008_v4, %v27088_v41  ;;  %v27145_v4 = vld [vmem:[%s35383_s14 + $0x8] sm:$0x3] }
 0xeeb   :  { %v27118_v10 = vpop.permute.xlu1 %27117  ;;  %v27111_v16 = vadd.f32 %v27109_v15, %v27092_v34  ;;  %v28014_v34 = vld [vmem:[%s35383_s14 + $0x18] sm:$0x3] }
 0xeec   :  { %v27124_v38 = vmul.f32 %v35262_v57, %v27118_v10 }
 0xeee   :  { %v27126_v9 = vadd.f32 %v27124_v38, %v27111_v16  ;;  %v27149_v32 = vpop.permute.xlu0 %27148 }
 0xef0   :  { %v27054_v17 = vpop.permute.xlu1 %27053  ;;  %v27129_v35 = vsel %vm27128_vm15, %v27126_v9, 0.0 }
 0xef1   :  { %v27057_v59 = vmul.f32 %v28004_v19, %v27054_v17 }
 0xef3   :  { %v27059_v46 = vadd.f32 %v27057_v59, %v27044_v0  ;;  %v27178_v0 = vpop.permute.xlu0 %27177 }
 0xef5   :  { %v27069_v39 = vpop.permute.xlu1 %27068 }
 0xef6   :  { %v27072_v31 = vmul.f32 %v28006_v27, %v27069_v39 }
 0xef8   :  { %v27074_v2 = vadd.f32 %v27072_v31, %v27059_v46  ;;  %v27224_v39 = vpop.permute.xlu0 %27223  ;;  %v27156_v31 = vmul.f32 %v27149_v32, %v35199_v56  ;;  %v28018_v56 = vld [vmem:[%s35383_s14 + $0x38] sm:$0x3] }
 0xefa   :  { %v27107_v18 = vpop.permute.xlu1 %27106  ;;  %v27093_v5 = vadd.f32 %v27091_v62, %v27074_v2 }
 0xefb   :  { %v27110_v47 = vmul.f32 %v28010_v3, %v27107_v18  ;;  %v28016_v3 = vld [vmem:[%s35383_s14 + $0x28] sm:$0x3] }
 0xefd   :  { %v27112_v21 = vadd.f32 %v27110_v47, %v27093_v5  ;;  %v27168_v41 = vpop.permute.xlu0 %27167 }
 0xefe   :  { %v27171_v18 = vmul.f32 %v28014_v34, %v27168_v41 }
 0xeff   :  { %v27122_v22 = vpop.permute.xlu1 %27121 }
 0xf00   :  { %v27125_v6 = vmul.f32 %v28012_v28, %v27122_v22 }
 0xf02   :  { %v27127_v25 = vadd.f32 %v27125_v6, %v27112_v21  ;;  %v27214_v47 = vpop.permute.xlu0 %27213 }
 0xf04   :  { %v27131_v7 = vsel %vm27130_vm0, %v27127_v25, 0.0  ;;  %v27164_v20 = vpop.permute.xlu1 %27163 }
 0xf05   :  { %v27132_v51 = vadd.f32 %v27131_v7, %v27129_v35  ;;  %v27170_v58 = vmul.f32 %v35194_v37, %v27164_v20  ;;  %v27184_v37 = vmul.f32 %v35204_v30, %v27178_v0  ;;  %v28020_v30 = vld [vmem:[%s35383_s14 + $0x48] sm:$0x3]  ;;  %v28022_v20 = vld [vmem:[%s35383_s14 + $0x58] sm:$0x3] }
 0xf07   :  { %v27133_v10 = vrot.slane %v27132_v51, 4  ;;  %v27172_v2 = vadd.f32 %v27170_v58, %v27156_v31 }
 0xf09   :  { %v27134_v33 = vadd.f32 %v27133_v10, %v27132_v51  ;;  %v27195_v19 = vpop.permute.xlu1 %27194  ;;  %v27186_v38 = vadd.f32 %v27184_v37, %v27172_v2  ;;  %v27217_v51 = vmul.f32 %v28020_v30, %v27214_v47 }
 0xf0a   :  { %v27202_v5 = vmul.f32 %v35210_v8, %v27195_v19  ;;  %v27260_v8 = vpop.permute.xlu0 %27259 }
 0xf0b   :  { %v27135_v42 = vrot.slane %v27134_v33, 2 }
 0xf0c   :  { %v27204_v25 = vadd.f32 %v27202_v5, %v27186_v38 }
 0xf0d   :  { %v27136_v49 = vadd.f32 %v27135_v42, %v27134_v33  ;;  %v27230_v33 = vmul.f32 %v35235_v44, %v27224_v39 }
 0xf0e   :  { %v27210_v17 = vpop.permute.xlu1 %27209 }
 0xf0f   :  { %v27137_v61 = vrot.slane %v27136_v49, 1  ;;  %v27216_v9 = vmul.f32 %v35227_v24, %v27210_v17  ;;  %v28024_v17 = vld [vmem:[%s35383_s14 + $0x68] sm:$0x3] }
 0xf11   :  { %v27138_v52 = vadd.f32 %v27137_v61, %v27136_v49  ;;  %v27218_v7 = vadd.f32 %v27216_v9, %v27204_v25  ;;  %v28026_v61 = vld [vmem:[%s35383_s14 + $0x78] sm:$0x3]  ;;  %v26675_v9 = vsel %vm20796_vm7, %v34974_v1, %v34978_v40 }
 0xf13   :  { %v27139_v59 = vadd.f32 %v27138_v52, %v35277_v14  ;;  %v27154_v27 = vpop.permute.xlu1 %27153  ;;  %v27232_v49 = vadd.f32 %v27230_v33, %v27218_v7 }
 0xf14   :  { %v27157_v15 = vmul.f32 %v27154_v27, %v27145_v4  ;;  %v27270_v27 = vpop.permute.xlu0 %27269 }
 0xf15   :  { %27141 = vst.msk [vmem:[#allocation4] sm:$0x1] %vm27140_vm1, %v27139_v59  ;;  %v27276_v58 = vmul.f32 %v35262_v57, %v27270_v27 }
 0xf16   :  { %v27173_v28 = vadd.f32 %v27171_v18, %v27157_v15 }
 0xf18   :  { %v27182_v54 = vpop.permute.xlu1 %27181 }
 0xf19   :  { %v27185_v16 = vmul.f32 %v28016_v3, %v27182_v54 }
 0xf1b   :  { %v27187_v6 = vadd.f32 %v27185_v16, %v27173_v28  ;;  %v26638_v28 = vpop.permute.xlu0 %26637 }
 0xf1d   :  { %v27200_v46 = vpop.permute.xlu1 %27199 }
 0xf1e   :  { %v27203_v22 = vmul.f32 %v28018_v56, %v27200_v46 }
 0xf20   :  { %v27205_v35 = vadd.f32 %v27203_v22, %v27187_v6  ;;  %v26668_v22 = vpop.permute.xlu0 %26667  ;;  %v28957_v6 = vld [vmem:[#allocation3 + $0x38] sm:$0xff] }
 0xf21   :  { %v26733_v30 = vmax.f32 %v28957_v6, %v26675_v9  ;;  %v26696_v1 = vsel %vm20796_vm7, %v35105_v36, %v26668_v22 }
 0xf22   :  { %v27228_v62 = vpop.permute.xlu1 %27227  ;;  %v27219_v19 = vadd.f32 %v27217_v51, %v27205_v35  ;;  %v26689_v35 = vsel %vm20796_vm7, %v35002_v11, %v34993_v43 }
 0xf23   :  { %v27231_v42 = vmul.f32 %v28022_v20, %v27228_v62  ;;  %v26748_v7 = vmax.f32 %v34912_v12, %v26689_v35  ;;  %v26755_v20 = vmax.f32 %v34961_v60, %v26696_v1 }
 0xf25   :  { %v27233_v0 = vadd.f32 %v27231_v42, %v27219_v19  ;;  %v26741_v19 = vmax.f32 %v35180_v26, %v26638_v28 }
 0xf27   :  { %v27241_v21 = vpop.permute.xlu1 %27240 }
 0xf28   :  { %v27248_v24 = vmul.f32 %v35244_v50, %v27241_v21  ;;  %v27263_v50 = vmul.f32 %v28026_v61, %v27260_v8  ;;  %v26760_v21 = vpop.permute.xlu0 %26759 }
 0xf29   :  { %v26763_v25 = vsel %vm20796_vm7, %v26638_v28, %v26760_v21 }
 0xf2a   :  { %v27250_v52 = vadd.f32 %v27248_v24, %v27232_v49 }
 0xf2c   :  { %v27256_v10 = vpop.permute.xlu1 %27255  ;;  %v26762_v40 = vpop.permute.xlu0 %26761 }
 0xf2d   :  { %v27262_v32 = vmul.f32 %v35254_v23, %v27256_v10  ;;  %v28028_v23 = vld [vmem:[%s35383_s14 + $0x88] sm:$0x3]  ;;  %v26764_v51 = vsel %vm20796_vm7, %v26668_v22, %v26762_v40  ;;  %s29024_s14 = smov [#allocation4]  }
 0xf2e   :  { %v26768_v8 = vmax.f32 %v35185_v48, %v26764_v51  ;;  %s27311_s3 = sshll.u32 %s29024_s14, 4  ;;  %s27312_s3 = int_to_ptr.vmem [resolvable:$true] %s27311_s3 }
 0xf2f   :  { %v27264_v54 = vadd.f32 %v27262_v32, %v27250_v52  ;;  %p28964_p1 = scmp.lt.s32.totalorder %s27312_s3, %s27312_s3 }
 0xf31   :  { %v27246_v59 = vpop.permute.xlu1 %27245  ;;  %v27278_v4 = vadd.f32 %v27276_v58, %v27264_v54 }
 0xf32   :  { %v27249_v44 = vmul.f32 %v28024_v17, %v27246_v59 }
 0xf33   :  { %v27280_v2 = vsel %vm27128_vm15, %v27278_v4, 0.0 }
 0xf34   :  { %v27251_v39 = vadd.f32 %v27249_v44, %v27233_v0 }
 0xf36   :  { %v27274_v46 = vpop.permute.xlu1 %27273  ;;  %v27265_v31 = vadd.f32 %v27263_v50, %v27251_v39 }
 0xf37   :  { %v27277_v41 = vmul.f32 %v28028_v23, %v27274_v46 }
 0xf39   :  { %v27279_v34 = vadd.f32 %v27277_v41, %v27265_v31 }
 0xf3b   :  { %v27281_v3 = vsel %vm27130_vm0, %v27279_v34, 0.0 }
 0xf3c   :  { %v27282_v15 = vadd.f32 %v27281_v3, %v27280_v2 }
 0xf3e   :  { %v27283_v62 = vrot.slane %v27282_v15, 4 }
 0xf40   :  { %v27284_v37 = vadd.f32 %v27283_v62, %v27282_v15 }
 0xf42   :  { %v27285_v56 = vrot.slane %v27284_v37, 2 }
 0xf44   :  { %v27286_v18 = vadd.f32 %v27285_v56, %v27284_v37 }
 0xf46   :  { %v27287_v16 = vrot.slane %v27286_v18, 1 }
 0xf48   :  { %v27288_v38 = vadd.f32 %v27287_v16, %v27286_v18 }
 0xf4a   :  { %v27289_v5 = vadd.f32 %v27288_v38, %v35277_v14  ;;  %v26767_v14 = vmax.f32 %v35180_v26, %v26763_v25 }
 0xf4c   :  { %27290 = vst.msk [vmem:[#allocation4 + $0x1] sm:$0x1] %vm27140_vm1, %v27289_v5 }
 0xf53   :  { %v27291_v57 = vld [vmem:[#allocation4] sm:$0x3] }
 0xf54   :  { %v27292_v47 = vsel %vm27130_vm0, %v27291_v57, -inf }
 0xf55   :  { %27293 = vmax.xlane.f32.xlu1 %v27292_v47 }
 0xf66   :  { %26811 = vrot.lane.b32.xlu1 %v26733_v30, %s29009_s20 }
 0xf6a   :  { %26827 = vrot.lane.b32.xlu1 %v26767_v14, %s29009_s20 }
 0xf6e   :  { %26841 = vrot.lane.b32.xlu1 %v26748_v7, %s29009_s20 }
 0xf72   :  { %26855 = vrot.lane.b32.xlu1 %v26755_v20, %s29009_s20 }
 0xf76   :  { %26857 = vrot.lane.b32.xlu1 %v26768_v8, %s29009_s20 }
 0xfe2   :  { %v27294_v43 = vpop.xlane.xlu1 %27293 }
 0xfe3   :  { %v27295_v11 = vsub.f32 %v27291_v57, %v27294_v43 }
 0xfe5   :  { %v27296_v10 = vmul.f32 1.442695, %v27295_v11 }
 0xfe6   :  { %v26812_v12 = vpop.permute.xlu1 %26811 }
 0xfe7   :  { %28946 = vpow2.f32 %v27296_v10  ;;  %v26864_v36 = vsel %vm58_vm11, %v35130_v29, %v26812_v12  ;;  %v26865_v33 = vsel %vm58_vm11, %v26812_v12, %v35136_v45  ;;  %v26682_v45 = vsel %vm20796_vm7, %v35075_v63, %v26638_v28 }
 0xfe8   :  { %v26922_v60 = vmax.f32 %v35034_v53, %v26864_v36  ;;  %v26923_v24 = vmax.f32 %v26733_v30, %v26865_v33  ;;  %v28958_v53 = vld [vmem:[#allocation3 + $0x70] sm:$0xff] }
 0xfe9   :  { %v26740_v52 = vmax.f32 %v28958_v53, %v26682_v45 }
 0xfea   :  { %26952 = vst [vmem:[#allocation2 + $0x30] sm:$0xff] %v26922_v60  ;;  %26953 = vst [vmem:[#allocation2 + $0x38] sm:$0xff] %v26923_v24  ;;  %v26828_v48 = vpop.permute.xlu1 %26827 }
 0xfeb   :  { %v26931_v42 = vmax.f32 %v26741_v19, %v26828_v48 }
 0xfed   :  { %26961 = vst.msk [vmem:[#allocation2 + $0x78] sm:$0xff] %vm58_vm11, %v26931_v42 }
 0xfee   :  { %v26842_v49 = vpop.permute.xlu1 %26841 }
 0xff1   :  { %v28947_v32 = vpop.eup %28946 }
 0xff2   :  { %v26856_v17 = vpop.permute.xlu1 %26855  ;;  %v27298_v61 = vsel %vm27130_vm0, %v28947_v32, 0.0 }
 0xff3   :  { %27299 = vadd.xlane.f32.xlu0 %v27298_v61 }
 0xff6   :  { %v26858_v29 = vpop.permute.xlu1 %26857 }
0x1009   :  { %26825 = vrot.lane.b32.xlu0 %v26740_v52, %s29009_s20  ;;  %s28959_s20 = scalar_lea.vmem %s27312_s3, 32 }
0x100a   :  { %p28960_p0 = scmp.ne.s32.totalorder %s27312_s3, %s28959_s20  ;;  %p28965_p2 = scmp.lt.s32.totalorder %s28959_s20, %s28959_s20 }
0x100c   :  { %p28966_p3 = por %p28965_p2, %p28964_p1 }
0x100e   :  { %p28967_p4 = pnand %p28966_p3, %p28960_p0 }
0x1080   :  { %v27300_v26 = vpop.xlane.xlu0 %27299 }
0x1081   :  { %28948 = vlog2.f32 %v27300_v26 }
0x1084   :  { %v26826_v59 = vpop.permute.xlu0 %26825 }
0x1085   :  { %v26871_v27 = vsel %vm58_vm11, %v35161_v13, %v26826_v59  ;;  %v26872_v0 = vsel %vm58_vm11, %v26826_v59, %v26828_v48 }
0x1086   :  { %v26929_v44 = vmax.f32 %v35095_v55, %v26871_v27  ;;  %v26930_v54 = vmax.f32 %v26740_v52, %v26872_v0 }
0x1088   :  { %26959 = vst [vmem:[#allocation2 + $0x68] sm:$0xff] %v26929_v44  ;;  %26960 = vst [vmem:[#allocation2 + $0x70] sm:$0xff] %v26930_v54 }
0x108b   :  { %v28949_v50 = vpop.eup %28948 }
0x108c   :  { %v27302_v63 = vmul.f32 0.6931472, %v28949_v50 }
0x108e   :  { %v27303_v39 = vsub.f32 %v27295_v11, %v27302_v63 }
0x1090   :  { %27304 = vst.msk [vmem:[#allocation4] sm:$0x3] %vm27130_vm0, %v27303_v39 }
0x1091   :  { %28970 = shalt.err (!%p28967_p4)
}
0x1092   :  { %s28971_s5 = scalar_lea.hbm %s35385_s16, 32 }
0x1093   :  { %p28972_p5 = scmp.ne.s32.totalorder %s35385_s16, %s28971_s5  ;;  %p28975_p6 = scmp.lt.u32.totalorder %s28971_s5, %s35385_s16 }
0x1095   :  { %p28977_p7 = pnand %p28975_p6, %p28972_p5 }
0x1097   :  { %28980 = shalt.err (!%p28977_p7)
}
0x1098   :  { %27314 = dma.vmem_to_hbm [thread:$0]  %s27312_s3, 32, %s35385_s16, [#allocation5]  }
0x1099   :  { %28981 = dma.done.wait [#allocation5], 32  }
0x109a   :  { %28982 = vsyncadd [#allocation5], 4294967264 }
0x109b   :  { %27318 = vsyncpa [#allocation5], 1 }

</bundles_post_ra>
